<compile_context>
chip_gen: v6e
topology: v6e:2x2x1
jax: 0.10.0
libtpu: 0.0.40
codegen_flags: <defaults>
</compile_context>

<pallas_src>
import functools

import jax
import jax.numpy as jnp
from jax.experimental import pallas as pl
from jax.experimental.pallas import tpu as pltpu

LANE = 128            # output-channel padding (lane-dense stores)
KPAD = 32             # contraction-dim padding granularity (bf16 sublane packing)
MAX_TILE_M = 2048     # big tiles -> 1-2 grid steps per layer at this size
BN_EPS = 1e-5


def _round_up(x, m):
    return ((x + m - 1) // m) * m


def _pick_tile_m(M, max_tile=MAX_TILE_M):
    """Largest tile <= max_tile dividing M (multiple of 16 for bf16 sublanes)."""
    if M <= max_tile:
        return M                      # block == full dim is always legal
    t = max_tile - (max_tile % 16)
    while t >= 16:
        if M % t == 0:
            return t
        t -= 16
    return M


def _compiler_params(semantics, block_bytes):
    # vmem limit derived from the actual double-buffered block footprint
    # (+4 MiB compiler-scratch headroom), clamped to [16 MiB, 64 MiB] so it is
    # safe on v7x's 64 MiB VMEM and never asks for 48 MiB it does not need.
    need = 2 * block_bytes + (4 << 20)
    limit = int(min(max(need, 16 << 20), 64 << 20))
    return pltpu.CompilerParams(dimension_semantics=semantics,
                                vmem_limit_bytes=limit)


# ----------------------------- Pallas kernels ----------------------------- #

def conv_bias_lrelu_kernel(p_ref, w_ref, b_ref, o_ref):
    # (tm, Kp) bf16 x (Kp, 128) bf16 -> f32 acc; + bias; LeakyReLU(0.2); store bf16.
    acc = jnp.dot(p_ref[...], w_ref[...], preferred_element_type=jnp.float32)
    z = acc + b_ref[...]
    o_ref[...] = jnp.where(z > 0, z, 0.2 * z).astype(o_ref.dtype)


def conv_stats_kernel(p_ref, w_ref, y_ref, ssum_ref, ssq_ref):
    # Raw conv matmul + per-TILE partial channel sum / sum-of-squares.
    # Each grid step owns its own (1, 1, cp) partial block, so the grid axis
    # stays "parallel" (v7x megacore-shardable); partials reduced in JAX glue.
    acc = jnp.dot(p_ref[...], w_ref[...], preferred_element_type=jnp.float32)
    y_ref[...] = acc.astype(y_ref.dtype)
    ssum_ref[...] = jnp.sum(acc, axis=0, keepdims=True)[None]
    ssq_ref[...] = jnp.sum(acc * acc, axis=0, keepdims=True)[None]


def conv_bn_head_kernel(p_ref, w_ref, g_ref, b_ref, wl_ref, bl_ref, o_ref,
                        *, n_batch, hw):
    # Layer 3 fully fused: conv matmul, BatchNorm (batch stats computed here --
    # the single block holds the whole layer), LeakyReLU(0.2),
    # AdaptiveAvgPool2d(1), Linear(128, 1) and Sigmoid.
    acc = jnp.dot(p_ref[...], w_ref[...], preferred_element_type=jnp.float32)  # (M3, cp)
    mean = jnp.mean(acc, axis=0, keepdims=True)
    var = jnp.mean((acc - mean) * (acc - mean), axis=0, keepdims=True)  # centered: no cancellation
    scale = g_ref[...] * jax.lax.rsqrt(var + BN_EPS)
    shift = b_ref[...] - mean * scale
    z = acc * scale + shift
    z = jnp.where(z > 0, z, 0.2 * z)
    pooled = jnp.mean(z.reshape(n_batch, hw, z.shape[-1]), axis=1)      # (N, cp)
    # 128 -> 1 linear as a VPU/XLU reduction (no 1-column MXU matmul).
    logit = jnp.sum(pooled * wl_ref[...], axis=-1, keepdims=True) + bl_ref[...]
    o_ref[...] = jax.nn.sigmoid(logit)


# ------------------------------ JAX glue ---------------------------------- #

def im2col_3x3(x, stride, k_pad):
    """x: (N, H, W, C) NHWC -> bf16 (N*Ho*Wo, k_pad) patches; 3x3 kernel, pad=1."""
    x = x.astype(jnp.bfloat16)                     # half-width im2col intermediates
    N, H, W, C = x.shape
    xp = jnp.pad(x, ((0, 0), (1, 1), (1, 1), (0, 0)))
    Ho = (H - 1) // stride + 1
    Wo = (W - 1) // stride + 1
    cols = []
    for dy in range(3):
        for dx in range(3):
            cols.append(xp[:, dy:dy + stride * (Ho - 1) + 1:stride,
                           dx:dx + stride * (Wo - 1) + 1:stride, :])
    patches = jnp.stack(cols, axis=3).reshape(N * Ho * Wo, 9 * C)
    if k_pad > 9 * C:
        patches = jnp.pad(patches, ((0, 0), (0, k_pad - 9 * C)))
    return patches, N, Ho, Wo


def _prep_conv_weights(w, cp):
    """(3, 3, Cin, Cout) -> bf16 (Kp, cp) matmul weight, Kp = round_up(9*Cin, 32)."""
    kh, kw, cin, cout = w.shape
    k = kh * kw * cin
    kp = _round_up(k, KPAD)
    w_mat = jnp.pad(w.reshape(k, cout), ((0, kp - k), (0, cp - cout)))
    return w_mat.astype(jnp.bfloat16), kp


def conv_bias_lrelu(x, w, b):
    """Layer 1: Conv2d(3x3, stride 1, pad 1, bias) + LeakyReLU(0.2)."""
    cout = w.shape[-1]
    cp = _round_up(cout, LANE)
    w_mat, kp = _prep_conv_weights(w, cp)
    patches, N, Ho, Wo = im2col_3x3(x, stride=1, k_pad=kp)
    b_p = jnp.pad(b, (0, cp - cout)).reshape(1, cp).astype(jnp.float32)

    M = patches.shape[0]
    tm = _pick_tile_m(M)
    block_bytes = tm * kp * 2 + kp * cp * 2 + cp * 4 + tm * cp * 2

    y = pl.pallas_call(
        conv_bias_lrelu_kernel,
        out_shape=jax.ShapeDtypeStruct((M, cp), jnp.bfloat16),
        grid_spec=pltpu.PrefetchScalarGridSpec(
            num_scalar_prefetch=0,
            grid=(M // tm,),
            in_specs=[
                pl.BlockSpec((tm, kp), lambda i: (i, 0)),   # streamed patch tiles
                pl.BlockSpec((kp, cp), lambda i: (0, 0)),   # resident weights
                pl.BlockSpec((1, cp), lambda i: (0, 0)),    # resident bias
            ],
            out_specs=pl.BlockSpec((tm, cp), lambda i: (i, 0)),
        ),
        compiler_params=_compiler_params(("parallel",), block_bytes),
        cost_estimate=pl.CostEstimate(
            flops=2 * M * kp * cp, transcendentals=0,
            bytes_accessed=2 * M * (kp + cp) + 2 * kp * cp + 4 * cp),
    )(patches, w_mat, b_p)
    return y[:, :cout].reshape(N, Ho, Wo, cout)


def conv_stats(x, w, *, stride):
    """Conv2d(3x3, pad 1, no bias) -> raw y (M, cp) bf16 + per-channel sum/sumsq.

    Conv bias before BatchNorm is dropped (exactly cancelled by the mean
    subtraction).  Stats are per-tile partials so the grid axis is "parallel".
    """
    cout = w.shape[-1]
    cp = _round_up(cout, LANE)
    w_mat, kp = _prep_conv_weights(w, cp)
    patches, N, Ho, Wo = im2col_3x3(x, stride=stride, k_pad=kp)

    M = patches.shape[0]
    tm = _pick_tile_m(M)
    g = M // tm
    block_bytes = tm * kp * 2 + kp * cp * 2 + tm * cp * 2 + 2 * cp * 4

    y, ssum_p, ssq_p = pl.pallas_call(
        conv_stats_kernel,
        out_shape=(
            jax.ShapeDtypeStruct((M, cp), jnp.bfloat16),
            jax.ShapeDtypeStruct((g, 1, cp), jnp.float32),
            jax.ShapeDtypeStruct((g, 1, cp), jnp.float32),
        ),
        grid_spec=pltpu.PrefetchScalarGridSpec(
            num_scalar_prefetch=0,
            grid=(g,),
            in_specs=[
                pl.BlockSpec((tm, kp), lambda i: (i, 0)),
                pl.BlockSpec((kp, cp), lambda i: (0, 0)),
            ],
            out_specs=[
                pl.BlockSpec((tm, cp), lambda i: (i, 0)),
                pl.BlockSpec((1, 1, cp), lambda i: (i, 0, 0)),   # per-tile partial sums
                pl.BlockSpec((1, 1, cp), lambda i: (i, 0, 0)),   # per-tile partial sumsq
            ],
        ),
        compiler_params=_compiler_params(("parallel",), block_bytes),
        cost_estimate=pl.CostEstimate(
            flops=2 * M * kp * cp, transcendentals=0,
            bytes_accessed=2 * M * (kp + cp) + 2 * kp * cp + 8 * g * cp),
    )(patches, w_mat)

    ssum = jnp.sum(ssum_p.reshape(g, cp), axis=0)
    ssq = jnp.sum(ssq_p.reshape(g, cp), axis=0)
    return y, ssum, ssq, (N, Ho, Wo, cout)


def conv_bn_head(x, w, gamma, beta, wl, bl):
    """Layer 3 + head: Conv2d(3x3, s2, pad 1) + BatchNorm2d + LeakyReLU +
    AdaptiveAvgPool2d(1) + Linear(128, 1) + Sigmoid as one fused kernel.
    (Single block: layer-3 M and K fit easily in VMEM at this model size.)"""
    cout = w.shape[-1]
    cp = _round_up(cout, LANE)
    w_mat, kp = _prep_conv_weights(w, cp)
    patches, N, Ho, Wo = im2col_3x3(x, stride=2, k_pad=kp)
    gamma_p = jnp.pad(gamma, (0, cp - cout), constant_values=1.0).reshape(1, cp)
    beta_p = jnp.pad(beta, (0, cp - cout)).reshape(1, cp)
    wl_p = jnp.pad(wl.reshape(1, cout), ((0, 0), (0, cp - cout)))

    kernel = functools.partial(conv_bn_head_kernel, n_batch=N, hw=Ho * Wo)
    return pl.pallas_call(
        kernel,
        out_shape=jax.ShapeDtypeStruct((N, 1), jnp.float32),
        in_specs=[pl.BlockSpec(memory_space=pltpu.MemorySpace.VMEM)] * 6,
        out_specs=pl.BlockSpec(memory_space=pltpu.MemorySpace.VMEM),
    )(patches, w_mat, gamma_p.astype(jnp.float32), beta_p.astype(jnp.float32),
      wl_p.astype(jnp.float32), bl.reshape(1, 1).astype(jnp.float32))


def cgan_discriminator_forward(params, x_nchw, cond_nchw):
    # torch.cat([x, cond], dim=1) in NCHW, then NHWC for the kernels.
    x = jnp.concatenate([x_nchw, cond_nchw], axis=1)
    x = jnp.transpose(x, (0, 2, 3, 1))

    # Layer 1: conv + bias + LeakyReLU (Pallas, gridded over M).
    x = conv_bias_lrelu(x, params["w1"], params["b1"])

    # Layer 2: raw conv + batch stats (Pallas).  b2 unused (pre-BN bias cancels).
    y2, ssum2, ssq2, (N, H2, W2, c2) = conv_stats(x, params["w2"], stride=2)
    m2 = N * H2 * W2
    mean2 = ssum2[:c2] / m2
    var2 = jnp.maximum(ssq2[:c2] / m2 - mean2 * mean2, 0.0)  # biased (train-mode) var
    scale2 = params["g2"] * jax.lax.rsqrt(var2 + BN_EPS)
    shift2 = params["be2"] - mean2 * scale2

    # BN2 pass-2 + LeakyReLU fused into the layer-3 patch construction: the
    # per-channel affine + LeakyReLU fuses into the same XLA gather fusion that
    # writes conv3's im2col patches (no separate pallas_call, no extra HBM
    # round trip), and conv zero-padding is applied *after* the activation as
    # in the original module.
    z2 = y2[:, :c2].astype(jnp.float32) * scale2 + shift2
    z2 = jnp.where(z2 > 0, z2, 0.2 * z2).astype(jnp.bfloat16)
    x2 = z2.reshape(N, H2, W2, c2)

    # Layer 3 + head fused (BN3 stats computed in-kernel).  b3 unused (pre-BN).
    return conv_bn_head(x2, params["w3"], params["g3"], params["be3"],
                        params["wl"], params["bl"])


def reference_forward(params, x_nchw, cond_nchw):
    """Pure-JAX f32 reference with the same (train-mode BatchNorm) semantics.
    Includes the pre-BN conv biases, demonstrating they cancel exactly."""
    x = jnp.concatenate([x_nchw, cond_nchw], axis=1)
    x = jnp.transpose(x, (0, 2, 3, 1))

    def conv(h, w, stride):
        return jax.lax.conv_general_dilated(
            h, w, window_strides=(stride, stride), padding=((1, 1), (1, 1)),
            dimension_numbers=("NHWC", "HWIO", "NHWC"))

    def lrelu(z):
        return jnp.where(z > 0, z, 0.2 * z)

    def bn(z, g, b):
        mean = jnp.mean(z, axis=(0, 1, 2), keepdims=True)
        var = jnp.mean((z - mean) ** 2, axis=(0, 1, 2), keepdims=True)
        return (z - mean) * jax.lax.rsqrt(var + BN_EPS) * g + b

    h = lrelu(conv(x, params["w1"], 1) + params["b1"])
    h = lrelu(bn(conv(h, params["w2"], 2) + params["b2"], params["g2"], params["be2"]))
    h = lrelu(bn(conv(h, params["w3"], 2) + params["b3"], params["g3"], params["be3"]))
    pooled = jnp.mean(h, axis=(1, 2))
    return jax.nn.sigmoid(pooled @ params["wl"] + params["bl"])


def init_params(key, in_ch=1, cond_ch=1):
    ks = jax.random.split(key, 12)
    c0 = in_ch + cond_ch
    return {
        "w1": 0.05 * jax.random.normal(ks[0], (3, 3, c0, 32), jnp.float32),
        "b1": 0.01 * jax.random.normal(ks[1], (32,), jnp.float32),
        "w2": 0.05 * jax.random.normal(ks[2], (3, 3, 32, 64), jnp.float32),
        "b2": 0.01 * jax.random.normal(ks[3], (64,), jnp.float32),   # unused in kernels (pre-BN)
        "g2": 1.0 + 0.1 * jax.random.normal(ks[4], (64,), jnp.float32),
        "be2": 0.1 * jax.random.normal(ks[5], (64,), jnp.float32),
        "w3": 0.05 * jax.random.normal(ks[6], (3, 3, 64, 128), jnp.float32),
        "b3": 0.01 * jax.random.normal(ks[7], (128,), jnp.float32),  # unused in kernels (pre-BN)
        "g3": 1.0 + 0.1 * jax.random.normal(ks[8], (128,), jnp.float32),
        "be3": 0.1 * jax.random.normal(ks[9], (128,), jnp.float32),
        "wl": 0.05 * jax.random.normal(ks[10], (128, 1), jnp.float32),
        "bl": 0.01 * jax.random.normal(ks[11], (1,), jnp.float32),
    }


if __name__ == "__main__":
    key = jax.random.PRNGKey(0)
    k_p, k_x, k_c = jax.random.split(key, 3)
    params = init_params(k_p, in_ch=1, cond_ch=1)

    # Small but big enough to exercise a multi-step grid in layer 1 (grid=2).
    N, H, W = 4, 32, 32
    x = jax.random.normal(k_x, (N, 1, H, W), jnp.float32)     # NCHW, like PyTorch
    cond = jax.random.normal(k_c, (N, 1, H, W), jnp.float32)

    out = jax.jit(cgan_discriminator_forward)(params, x, cond)
    out = jax.block_until_ready(out)

    assert out.shape == (N, 1), out.shape
    assert bool(jnp.all(jnp.isfinite(out)))
    assert bool(jnp.all((out > 0.0) & (out < 1.0)))           # sigmoid range

    # Cross-check against the pure-JAX f32 reference (bf16 matmuls -> loose tol).
    ref = reference_forward(params, x, cond)
    max_err = float(jnp.max(jnp.abs(out - ref)))
    assert max_err < 5e-2, max_err
    print("KERNEL_OK")
</pallas_src>

<mosaic_0001>
module attributes {stable_mosaic.version = 11 : i64} {
  func.func @conv_bias_lrelu_kernel(%arg0: i32, %arg1: memref<2048x32xbf16, #tpu.memory_space<vmem>>, %arg2: memref<32x128xbf16, #tpu.memory_space<vmem>>, %arg3: memref<1x128xf32, #tpu.memory_space<vmem>>, %arg4: memref<2048x128xbf16, #tpu.memory_space<vmem>>) attributes {dimension_semantics = [#tpu.dimension_semantics<parallel>], iteration_bounds = array<i64: 2>, scalar_prefetch = 0 : i64, scratch_operands = 0 : i64, tpu.core_type = #tpu.core_type<tc>, window_params = [{transform_indices = @transform_0, window_bounds = array<i64: 2048, 32>}, {pipeline_mode = #tpu.pipeline_mode<synchronous>, transform_indices = @transform_1, window_bounds = array<i64: 32, 128>}, {pipeline_mode = #tpu.pipeline_mode<synchronous>, transform_indices = @transform_2, window_bounds = array<i64: 1, 128>}, {transform_indices = @transform_3, window_bounds = array<i64: 2048, 128>}]} {
    %c0 = arith.constant 0 : index
    %c0_0 = arith.constant 0 : index
    %0 = vector.load %arg1[%c0, %c0_0] : memref<2048x32xbf16, #tpu.memory_space<vmem>>, vector<2048x32xbf16>
    %c0_1 = arith.constant 0 : index
    %c0_2 = arith.constant 0 : index
    %1 = vector.load %arg2[%c0_1, %c0_2] : memref<32x128xbf16, #tpu.memory_space<vmem>>, vector<32x128xbf16>
    %cst = arith.constant dense<0.000000e+00> : vector<2048x128xf32>
    %2 = tpu.matmul %0, %1, %cst {dimension_numbers = #tpu.dot_dimension_numbers<[1], [0], [0], [1], [0, 0, 1, 1], [], []>} : vector<2048x32xbf16>, vector<32x128xbf16>, vector<2048x128xf32> -> vector<2048x128xf32>
    %c0_3 = arith.constant 0 : index
    %c0_4 = arith.constant 0 : index
    %3 = vector.load %arg3[%c0_3, %c0_4] : memref<1x128xf32, #tpu.memory_space<vmem>>, vector<1x128xf32>
    %4 = vector.broadcast %3 : vector<1x128xf32> to vector<2048x128xf32>
    %5 = arith.addf %2, %4 : vector<2048x128xf32>
    %cst_5 = arith.constant 0.000000e+00 : f32
    %6 = vector.broadcast %cst_5 : f32 to vector<2048x128xf32>
    %7 = arith.cmpf ogt, %5, %6 : vector<2048x128xf32>
    %cst_6 = arith.constant 2.000000e-01 : f32
    %8 = vector.broadcast %cst_6 : f32 to vector<2048x128xf32>
    %9 = arith.mulf %8, %5 : vector<2048x128xf32>
    %10 = arith.select %7, %5, %9 : vector<2048x128xi1>, vector<2048x128xf32>
    %11 = arith.truncf %10 : vector<2048x128xf32> to vector<2048x128xbf16>
    %c0_7 = arith.constant 0 : index
    %c0_8 = arith.constant 0 : index
    %12 = vector.load %arg4[%c0_7, %c0_8] : memref<2048x128xbf16, #tpu.memory_space<vmem>>, vector<2048x128xbf16>
    tpu.vector_store %arg4[%c0_7, %c0_8], %11 {strides = array<i32>} : memref<2048x128xbf16, #tpu.memory_space<vmem>>, vector<2048x128xbf16>,
    return
  }
  func.func @transform_0(%arg0: i32) -> (i32, i32) {
    %c0_i32 = arith.constant 0 : i32
    %c0_i32_0 = arith.constant 0 : i32
    return %arg0, %c0_i32 : i32, i32
  }
  func.func @transform_1(%arg0: i32) -> (i32, i32) {
    %c0_i32 = arith.constant 0 : i32
    %c0_i32_0 = arith.constant 0 : i32
    %c0_i32_1 = arith.constant 0 : i32
    return %c0_i32, %c0_i32_0 : i32, i32
  }
  func.func @transform_2(%arg0: i32) -> (i32, i32) {
    %c0_i32 = arith.constant 0 : i32
    %c0_i32_0 = arith.constant 0 : i32
    %c0_i32_1 = arith.constant 0 : i32
    return %c0_i32, %c0_i32_0 : i32, i32
  }
  func.func @transform_3(%arg0: i32) -> (i32, i32) {
    %c0_i32 = arith.constant 0 : i32
    %c0_i32_0 = arith.constant 0 : i32
    return %arg0, %c0_i32 : i32, i32
  }
}

module attributes {stable_mosaic.version = 11 : i64} {
  func.func @conv_stats_kernel(%arg0: i32, %arg1: memref<1024x288xbf16, #tpu.memory_space<vmem>>, %arg2: memref<288x128xbf16, #tpu.memory_space<vmem>>, %arg3: memref<1024x128xbf16, #tpu.memory_space<vmem>>, %arg4: memref<1x1x128xf32, #tpu.memory_space<vmem>>, %arg5: memref<1x1x128xf32, #tpu.memory_space<vmem>>) attributes {dimension_semantics = [#tpu.dimension_semantics<parallel>], iteration_bounds = array<i64: 1>, scalar_prefetch = 0 : i64, scratch_operands = 0 : i64, tpu.core_type = #tpu.core_type<tc>, window_params = [{transform_indices = @transform_0, window_bounds = array<i64: 1024, 288>}, {pipeline_mode = #tpu.pipeline_mode<synchronous>, transform_indices = @transform_1, window_bounds = array<i64: 288, 128>}, {transform_indices = @transform_2, window_bounds = array<i64: 1024, 128>}, {transform_indices = @transform_3, window_bounds = array<i64: 1, 1, 128>}, {transform_indices = @transform_4, window_bounds = array<i64: 1, 1, 128>}]} {
    %c0 = arith.constant 0 : index
    %c0_0 = arith.constant 0 : index
    %0 = vector.load %arg1[%c0, %c0_0] : memref<1024x288xbf16, #tpu.memory_space<vmem>>, vector<1024x288xbf16>
    %c0_1 = arith.constant 0 : index
    %c0_2 = arith.constant 0 : index
    %1 = vector.load %arg2[%c0_1, %c0_2] : memref<288x128xbf16, #tpu.memory_space<vmem>>, vector<288x128xbf16>
    %cst = arith.constant dense<0.000000e+00> : vector<1024x128xf32>
    %2 = tpu.matmul %0, %1, %cst {dimension_numbers = #tpu.dot_dimension_numbers<[1], [0], [0], [1], [0, 0, 1, 1], [], []>} : vector<1024x288xbf16>, vector<288x128xbf16>, vector<1024x128xf32> -> vector<1024x128xf32>
    %3 = arith.truncf %2 : vector<1024x128xf32> to vector<1024x128xbf16>
    %c0_3 = arith.constant 0 : index
    %c0_4 = arith.constant 0 : index
    %4 = vector.load %arg3[%c0_3, %c0_4] : memref<1024x128xbf16, #tpu.memory_space<vmem>>, vector<1024x128xbf16>
    tpu.vector_store %arg3[%c0_3, %c0_4], %3 {strides = array<i32>} : memref<1024x128xbf16, #tpu.memory_space<vmem>>, vector<1024x128xbf16>,
    %cst_5 = arith.constant dense<0.000000e+00> : vector<128xf32>
    %5 = vector.multi_reduction <add>, %2, %cst_5 [0] : vector<1024x128xf32> to vector<128xf32>
    %6 = vector.shape_cast %5 : vector<128xf32> to vector<1x128xf32>
    %7 = vector.shape_cast %6 : vector<1x128xf32> to vector<1x1x128xf32>
    %c0_6 = arith.constant 0 : index
    %c0_7 = arith.constant 0 : index
    %c0_8 = arith.constant 0 : index
    %8 = vector.load %arg4[%c0_6, %c0_7, %c0_8] : memref<1x1x128xf32, #tpu.memory_space<vmem>>, vector<1x1x128xf32>
    tpu.vector_store %arg4[%c0_6, %c0_7, %c0_8], %7 {strides = array<i32>} : memref<1x1x128xf32, #tpu.memory_space<vmem>>, vector<1x1x128xf32>,
    %9 = arith.mulf %2, %2 : vector<1024x128xf32>
    %cst_9 = arith.constant dense<0.000000e+00> : vector<128xf32>
    %10 = vector.multi_reduction <add>, %9, %cst_9 [0] : vector<1024x128xf32> to vector<128xf32>
    %11 = vector.shape_cast %10 : vector<128xf32> to vector<1x128xf32>
    %12 = vector.shape_cast %11 : vector<1x128xf32> to vector<1x1x128xf32>
    %c0_10 = arith.constant 0 : index
    %c0_11 = arith.constant 0 : index
    %c0_12 = arith.constant 0 : index
    %13 = vector.load %arg5[%c0_10, %c0_11, %c0_12] : memref<1x1x128xf32, #tpu.memory_space<vmem>>, vector<1x1x128xf32>
    tpu.vector_store %arg5[%c0_10, %c0_11, %c0_12], %12 {strides = array<i32>} : memref<1x1x128xf32, #tpu.memory_space<vmem>>, vector<1x1x128xf32>,
    return
  }
  func.func @transform_0(%arg0: i32) -> (i32, i32) {
    %c0_i32 = arith.constant 0 : i32
    %c0_i32_0 = arith.constant 0 : i32
    return %arg0, %c0_i32 : i32, i32
  }
  func.func @transform_1(%arg0: i32) -> (i32, i32) {
    %c0_i32 = arith.constant 0 : i32
    %c0_i32_0 = arith.constant 0 : i32
    %c0_i32_1 = arith.constant 0 : i32
    return %c0_i32, %c0_i32_0 : i32, i32
  }
  func.func @transform_2(%arg0: i32) -> (i32, i32) {
    %c0_i32 = arith.constant 0 : i32
    %c0_i32_0 = arith.constant 0 : i32
    return %arg0, %c0_i32 : i32, i32
  }
  func.func @transform_3(%arg0: i32) -> (i32, i32, i32) {
    %c0_i32 = arith.constant 0 : i32
    %c0_i32_0 = arith.constant 0 : i32
    %c0_i32_1 = arith.constant 0 : i32
    return %arg0, %c0_i32, %c0_i32_0 : i32, i32, i32
  }
  func.func @transform_4(%arg0: i32) -> (i32, i32, i32) {
    %c0_i32 = arith.constant 0 : i32
    %c0_i32_0 = arith.constant 0 : i32
    %c0_i32_1 = arith.constant 0 : i32
    return %arg0, %c0_i32, %c0_i32_0 : i32, i32, i32
  }
}

module attributes {stable_mosaic.version = 11 : i64} {
  func.func @conv_bn_head_kernel(%arg0: memref<256x576xbf16, #tpu.memory_space<vmem>>, %arg1: memref<576x128xbf16, #tpu.memory_space<vmem>>, %arg2: memref<1x128xf32, #tpu.memory_space<vmem>>, %arg3: memref<1x128xf32, #tpu.memory_space<vmem>>, %arg4: memref<1x128xf32, #tpu.memory_space<vmem>>, %arg5: memref<1x1xf32, #tpu.memory_space<vmem>>, %arg6: memref<4x1xf32, #tpu.memory_space<vmem>>) attributes {dimension_semantics = [], scalar_prefetch = 0 : i64, scratch_operands = 0 : i64, tpu.core_type = #tpu.core_type<tc>} {
    %c0 = arith.constant 0 : index
    %c0_0 = arith.constant 0 : index
    %0 = vector.load %arg0[%c0, %c0_0] : memref<256x576xbf16, #tpu.memory_space<vmem>>, vector<256x576xbf16>
    %c0_1 = arith.constant 0 : index
    %c0_2 = arith.constant 0 : index
    %1 = vector.load %arg1[%c0_1, %c0_2] : memref<576x128xbf16, #tpu.memory_space<vmem>>, vector<576x128xbf16>
    %cst = arith.constant dense<0.000000e+00> : vector<256x128xf32>
    %2 = tpu.matmul %0, %1, %cst {dimension_numbers = #tpu.dot_dimension_numbers<[1], [0], [0], [1], [0, 0, 1, 1], [], []>} : vector<256x576xbf16>, vector<576x128xbf16>, vector<256x128xf32> -> vector<256x128xf32>
    %cst_3 = arith.constant dense<0.000000e+00> : vector<128xf32>
    %3 = vector.multi_reduction <add>, %2, %cst_3 [0] : vector<256x128xf32> to vector<128xf32>
    %4 = vector.shape_cast %3 : vector<128xf32> to vector<1x128xf32>
    %cst_4 = arith.constant 2.560000e+02 : f32
    %5 = vector.broadcast %cst_4 : f32 to vector<1x128xf32>
    %6 = arith.divf %4, %5 : vector<1x128xf32>
    %7 = vector.broadcast %6 : vector<1x128xf32> to vector<256x128xf32>
    %8 = arith.subf %2, %7 : vector<256x128xf32>
    %9 = vector.broadcast %6 : vector<1x128xf32> to vector<256x128xf32>
    %10 = arith.subf %2, %9 : vector<256x128xf32>
    %11 = arith.mulf %8, %10 : vector<256x128xf32>
    %cst_5 = arith.constant dense<0.000000e+00> : vector<128xf32>
    %12 = vector.multi_reduction <add>, %11, %cst_5 [0] : vector<256x128xf32> to vector<128xf32>
    %13 = vector.shape_cast %12 : vector<128xf32> to vector<1x128xf32>
    %cst_6 = arith.constant 2.560000e+02 : f32
    %14 = vector.broadcast %cst_6 : f32 to vector<1x128xf32>
    %15 = arith.divf %13, %14 : vector<1x128xf32>
    %c0_7 = arith.constant 0 : index
    %c0_8 = arith.constant 0 : index
    %16 = vector.load %arg2[%c0_7, %c0_8] : memref<1x128xf32, #tpu.memory_space<vmem>>, vector<1x128xf32>
    %cst_9 = arith.constant 9.99999974E-6 : f32
    %17 = vector.broadcast %cst_9 : f32 to vector<1x128xf32>
    %18 = arith.addf %15, %17 : vector<1x128xf32>
    %19 = math.rsqrt %18 : vector<1x128xf32>
    %20 = arith.mulf %16, %19 : vector<1x128xf32>
    %c0_10 = arith.constant 0 : index
    %c0_11 = arith.constant 0 : index
    %21 = vector.load %arg3[%c0_10, %c0_11] : memref<1x128xf32, #tpu.memory_space<vmem>>, vector<1x128xf32>
    %22 = arith.mulf %6, %20 : vector<1x128xf32>
    %23 = arith.subf %21, %22 : vector<1x128xf32>
    %24 = vector.broadcast %20 : vector<1x128xf32> to vector<256x128xf32>
    %25 = arith.mulf %2, %24 : vector<256x128xf32>
    %26 = vector.broadcast %23 : vector<1x128xf32> to vector<256x128xf32>
    %27 = arith.addf %25, %26 : vector<256x128xf32>
    %cst_12 = arith.constant 0.000000e+00 : f32
    %28 = vector.broadcast %cst_12 : f32 to vector<256x128xf32>
    %29 = arith.cmpf ogt, %27, %28 : vector<256x128xf32>
    %cst_13 = arith.constant 2.000000e-01 : f32
    %30 = vector.broadcast %cst_13 : f32 to vector<256x128xf32>
    %31 = arith.mulf %30, %27 : vector<256x128xf32>
    %32 = arith.select %29, %27, %31 : vector<256x128xi1>, vector<256x128xf32>
    %33 = vector.shape_cast %32 : vector<256x128xf32> to vector<4x64x128xf32>
    %cst_14 = arith.constant dense<0.000000e+00> : vector<4x128xf32>
    %34 = vector.multi_reduction <add>, %33, %cst_14 [1] : vector<4x64x128xf32> to vector<4x128xf32>
    %cst_15 = arith.constant 6.400000e+01 : f32
    %35 = vector.broadcast %cst_15 : f32 to vector<4x128xf32>
    %36 = arith.divf %34, %35 : vector<4x128xf32>
    %c0_16 = arith.constant 0 : index
    %c0_17 = arith.constant 0 : index
    %37 = vector.load %arg4[%c0_16, %c0_17] : memref<1x128xf32, #tpu.memory_space<vmem>>, vector<1x128xf32>
    %38 = vector.broadcast %37 : vector<1x128xf32> to vector<4x128xf32>
    %39 = arith.mulf %36, %38 : vector<4x128xf32>
    %cst_18 = arith.constant dense<0.000000e+00> : vector<4xf32>
    %40 = vector.multi_reduction <add>, %39, %cst_18 [1] : vector<4x128xf32> to vector<4xf32>
    %41 = vector.shape_cast %40 : vector<4xf32> to vector<4x1xf32>
    %c0_19 = arith.constant 0 : index
    %c0_20 = arith.constant 0 : index
    %42 = vector.load %arg5[%c0_19, %c0_20] : memref<1x1xf32, #tpu.memory_space<vmem>>, vector<1x1xf32>
    %43 = vector.broadcast %42 : vector<1x1xf32> to vector<4x1xf32>
    %44 = arith.addf %41, %43 : vector<4x1xf32>
    %45 = arith.negf %44 : vector<4x1xf32>
    %46 = math.exp %45 : vector<4x1xf32>
    %cst_21 = arith.constant 1.000000e+00 : f32
    %47 = vector.broadcast %cst_21 : f32 to vector<4x1xf32>
    %48 = arith.addf %47, %46 : vector<4x1xf32>
    %49 = arith.divf %47, %48 : vector<4x1xf32>
    %c0_22 = arith.constant 0 : index
    %c0_23 = arith.constant 0 : index
    %50 = vector.load %arg6[%c0_22, %c0_23] : memref<4x1xf32, #tpu.memory_space<vmem>>, vector<4x1xf32>
    tpu.vector_store %arg6[%c0_22, %c0_23], %49 {strides = array<i32>} : memref<4x1xf32, #tpu.memory_space<vmem>>, vector<4x1xf32>,
    return
  }
}

</mosaic_0001>

<bundles_post_ra>
// kernel: cgan_discriminator_forward.3
= control target key start
LH: loop header
LB: loop body
LE: loop exit
PB: predicated region body
PF: predicated region fallthrough
CT: control target
= control target key end

     0   :  { %s6752_s12 = smov 0   ;;  %s7906_s0 = inlined_call_operand.vmem [shape: bf16[4096,32], index: 0, kind: input, shape index: {}]   ;;  %s7907_s1 = inlined_call_operand.vmem [shape: bf16[32,128], index: 1, kind: input, shape index: {}]   ;;  %s7908_s2 = inlined_call_operand.vmem [shape: f32[1,128], index: 2, kind: input, shape index: {}]   ;;  %s7909_s3 = inlined_call_operand.vmem [shape: bf16[4096,128], index: 3, kind: output, shape index: {}]  }
   0x1 LB: > { %s4640_s13 = sadd.s32 4294967295, %s6730_s12   ;;  %p4644_p0 = scmp.ge.s32.totalorder %s6730_s12, 1  ;;  %s6730_s12 = sphi %s6752_s12, %s13_s12  }
   0x2   : > { %p138_p1 = scmp.lt.s32.totalorder %s6730_s12, 3 }
   0x4   : > { %p139_p2 = pnand %p4644_p0, %p138_p1 }
   0x5   : > { %s4645_s16 = sshll.u32 (!%p139_p2), %s4640_s13, 8 }
   0x6   : > { %142 = sbr.rel (%p139_p2) target bundleno = 508 (0x1fc), region = 32  ;;  %p163_p3 = scmp.lt.s32.totalorder (!%p139_p2), %s4645_s16, 511 }
   0xb   : > { %v6591_v0 = vld [vmem:[%s7907_s1 + $0x8] sm:$0xff]   ;;  %v6592_v1 = vld [vmem:[%s7907_s1] sm:$0xff]   ;;  %s7911_s16 = smov (!%p163_p3, %s4645_s16), 511  ;;  %vm1094_vm0 = vcmask 261120  }
   0xc   : > { %6319 = vmatprep.subr.bf16.mxu0 %v6591_v0  ;;  %6579 = vmatprep.subr.bf16.mxu1 %v6591_v0  ;;  %s4646_s19 = sshll.u32 %s7911_s16, 2 }
   0xd   : > { %6320 = vmatpush3.bf16.msra.mxu0 %v6591_v0  ;;  %6581 = vmatpush3.bf16.msra.mxu1 %v6591_v0  ;;  %s6774_s22 = scalar_lea.vmem %s7906_s0, %s4646_s19  ;;  %s7003_s27 = scalar_lea.vmem %s7909_s3, %s4646_s19 }
   0xe   : > { %6321 = vmatprep.subr.bf16.mxu0 %v6592_v1  ;;  %6580 = vmatprep.subr.bf16.mxu1 %v6592_v1  ;;  %v6593_v2 = vld [vmem:[%s6774_s22] sm:$0xff]   ;;  %v6595_v4 = vld [vmem:[%s6774_s22 + $0x8] sm:$0xff]   ;;  %v6597_v6 = vld [vmem:[%s6774_s22 + $0x10] sm:$0xff]  }
   0xf   : > { %v6594_v3 = vld [vmem:[%s6774_s22 + $0x200] sm:$0xff]   ;;  %6323 = vmatprep.mubr.msk.bf16.mxu0 %vm1094_vm0, %v6593_v2  ;;  %v6596_v5 = vld [vmem:[%s6774_s22 + $0x208] sm:$0xff]   ;;  %v6598_v7 = vld [vmem:[%s6774_s22 + $0x210] sm:$0xff]  }
  0x10   : > { %6451 = vmatprep.mubr.msk.bf16.mxu1 %vm1094_vm0, %v6594_v3  ;;  %v6599_v8 = vld [vmem:[%s6774_s22 + $0x18] sm:$0xff]   ;;  %v6601_v10 = vld [vmem:[%s6774_s22 + $0x20] sm:$0xff]   ;;  %v6603_v12 = vld [vmem:[%s6774_s22 + $0x28] sm:$0xff]  }
  0x11   : > { %6322 = vmatpush3.bf16.msra.mxu0 %v6592_v1  ;;  %6582 = vmatpush3.bf16.msra.mxu1 %v6592_v1  ;;  %v6600_v9 = vld [vmem:[%s6774_s22 + $0x218] sm:$0xff]   ;;  %v6602_v11 = vld [vmem:[%s6774_s22 + $0x220] sm:$0xff]   ;;  %v6604_v13 = vld [vmem:[%s6774_s22 + $0x228] sm:$0xff]  }
  0x12   : > { %v6605_v14 = vld [vmem:[%s6774_s22 + $0x30] sm:$0xff]   ;;  %v6607_v16 = vld [vmem:[%s6774_s22 + $0x38] sm:$0xff]   ;;  %v6609_v18 = vld [vmem:[%s6774_s22 + $0x40] sm:$0xff]  }
  0x13   : > { %v6606_v15 = vld [vmem:[%s6774_s22 + $0x230] sm:$0xff]   ;;  %v6608_v17 = vld [vmem:[%s6774_s22 + $0x238] sm:$0xff]   ;;  %v6610_v19 = vld [vmem:[%s6774_s22 + $0x240] sm:$0xff]  }
  0x14   : > { %6324 = vmatmul.mubr.msk.bf16.vlgmr.msra.gmra.mxu0 %vm1094_vm0, %v6595_v4  ;;  %6452 = vmatmul.mubr.msk.bf16.vlgmr.msra.gmra.mxu1 %vm1094_vm0, %v6596_v5  ;;  %v6611_v20 = vld [vmem:[%s6774_s22 + $0x48] sm:$0xff]   ;;  %v6613_v22 = vld [vmem:[%s6774_s22 + $0x50] sm:$0xff]   ;;  %v6615_v24 = vld [vmem:[%s6774_s22 + $0x58] sm:$0xff]  }
  0x15   : > { %6327 = vmatprep.mubr.msk.bf16.mxu0 %vm1094_vm0, %v6597_v6  ;;  %6455 = vmatprep.mubr.msk.bf16.mxu1 %vm1094_vm0, %v6598_v7  ;;  %v6612_v21 = vld [vmem:[%s6774_s22 + $0x248] sm:$0xff]   ;;  %v6614_v23 = vld [vmem:[%s6774_s22 + $0x250] sm:$0xff]   ;;  %v6616_v25 = vld [vmem:[%s6774_s22 + $0x258] sm:$0xff]  }
  0x16   : > { %v6617_v26 = vld [vmem:[%s6774_s22 + $0x60] sm:$0xff]   ;;  %v6619_v28 = vld [vmem:[%s6774_s22 + $0x68] sm:$0xff]   ;;  %v6621_v30 = vld [vmem:[%s6774_s22 + $0x70] sm:$0xff]  }
  0x17   : > { %v6618_v27 = vld [vmem:[%s6774_s22 + $0x260] sm:$0xff]   ;;  %v6620_v29 = vld [vmem:[%s6774_s22 + $0x268] sm:$0xff]   ;;  %v6622_v31 = vld [vmem:[%s6774_s22 + $0x270] sm:$0xff]  }
  0x18   : > { %v6623_v32 = vld [vmem:[%s6774_s22 + $0x78] sm:$0xff]   ;;  %v6625_v34 = vld [vmem:[%s6774_s22 + $0x80] sm:$0xff]   ;;  %v6627_v36 = vld [vmem:[%s6774_s22 + $0x88] sm:$0xff]  }
  0x19   : > { %v6624_v33 = vld [vmem:[%s6774_s22 + $0x278] sm:$0xff]   ;;  %v6626_v35 = vld [vmem:[%s6774_s22 + $0x280] sm:$0xff]   ;;  %v6628_v37 = vld [vmem:[%s6774_s22 + $0x288] sm:$0xff]  }
  0x1a   : > { %v6629_v38 = vld [vmem:[%s6774_s22 + $0x90] sm:$0xff]   ;;  %v6631_v40 = vld [vmem:[%s6774_s22 + $0x98] sm:$0xff]   ;;  %v6633_v42 = vld [vmem:[%s6774_s22 + $0xa0] sm:$0xff]  }
  0x1b   : > { %v6630_v39 = vld [vmem:[%s6774_s22 + $0x290] sm:$0xff]   ;;  %v6632_v41 = vld [vmem:[%s6774_s22 + $0x298] sm:$0xff]   ;;  %v6634_v43 = vld [vmem:[%s6774_s22 + $0x2a0] sm:$0xff]  }
  0x1c   : > { %6328 = vmatmul.mubr.msk.bf16.gmra.mxu0 %vm1094_vm0, %v6599_v8  ;;  %6456 = vmatmul.mubr.msk.bf16.gmra.mxu1 %vm1094_vm0, %v6600_v9  ;;  %v6635_v44 = vld [vmem:[%s6774_s22 + $0xa8] sm:$0xff]   ;;  %v6637_v46 = vld [vmem:[%s6774_s22 + $0xb0] sm:$0xff]   ;;  %v6639_v48 = vld [vmem:[%s6774_s22 + $0xb8] sm:$0xff]  }
  0x1d   : > { %6331 = vmatprep.mubr.msk.bf16.mxu0 %vm1094_vm0, %v6601_v10  ;;  %6459 = vmatprep.mubr.msk.bf16.mxu1 %vm1094_vm0, %v6602_v11  ;;  %v6636_v45 = vld [vmem:[%s6774_s22 + $0x2a8] sm:$0xff]   ;;  %v6638_v47 = vld [vmem:[%s6774_s22 + $0x2b0] sm:$0xff]   ;;  %v6640_v49 = vld [vmem:[%s6774_s22 + $0x2b8] sm:$0xff]  }
  0x1e   : > { %v6641_v50 = vld [vmem:[%s6774_s22 + $0xc0] sm:$0xff]   ;;  %v6643_v52 = vld [vmem:[%s6774_s22 + $0xc8] sm:$0xff]   ;;  %v6645_v54 = vld [vmem:[%s6774_s22 + $0xd0] sm:$0xff]  }
  0x1f   : > { %v6642_v51 = vld [vmem:[%s6774_s22 + $0x2c0] sm:$0xff]   ;;  %v6644_v53 = vld [vmem:[%s6774_s22 + $0x2c8] sm:$0xff]   ;;  %v6646_v55 = vld [vmem:[%s6774_s22 + $0x2d0] sm:$0xff]  }
  0x20   : > { %v6647_v56 = vld [vmem:[%s6774_s22 + $0xd8] sm:$0xff]   ;;  %v6649_v58 = vld [vmem:[%s6774_s22 + $0xe0] sm:$0xff]   ;;  %v6651_v60 = vld [vmem:[%s6774_s22 + $0xe8] sm:$0xff]  }
  0x21   : > { %v6648_v57 = vld [vmem:[%s6774_s22 + $0x2d8] sm:$0xff]   ;;  %v6650_v59 = vld [vmem:[%s6774_s22 + $0x2e0] sm:$0xff]   ;;  %v6652_v61 = vld [vmem:[%s6774_s22 + $0x2e8] sm:$0xff]  }
  0x22   : > { %v6653_v62 = vld [vmem:[%s6774_s22 + $0xf0] sm:$0xff]   ;;  %v6655_v0 = vld [vmem:[%s6774_s22 + $0xf8] sm:$0xff]   ;;  %v6657_v2 = vld [vmem:[%s6774_s22 + $0x100] sm:$0xff]  }
  0x23   : > { %v6654_v63 = vld [vmem:[%s6774_s22 + $0x2f0] sm:$0xff]   ;;  %v6656_v1 = vld [vmem:[%s6774_s22 + $0x2f8] sm:$0xff]   ;;  %v6658_v3 = vld [vmem:[%s6774_s22 + $0x300] sm:$0xff]  }
  0x24   : > { %6332 = vmatmul.mubr.msk.bf16.gmra.mxu0 %vm1094_vm0, %v6603_v12  ;;  %6460 = vmatmul.mubr.msk.bf16.gmra.mxu1 %vm1094_vm0, %v6604_v13  ;;  %v6659_v4 = vld [vmem:[%s6774_s22 + $0x108] sm:$0xff]   ;;  %v6661_v6 = vld [vmem:[%s6774_s22 + $0x110] sm:$0xff]   ;;  %v6663_v8 = vld [vmem:[%s6774_s22 + $0x118] sm:$0xff]  }
  0x25   : > { %6335 = vmatprep.mubr.msk.bf16.mxu0 %vm1094_vm0, %v6605_v14  ;;  %6463 = vmatprep.mubr.msk.bf16.mxu1 %vm1094_vm0, %v6606_v15  ;;  %v6660_v5 = vld [vmem:[%s6774_s22 + $0x308] sm:$0xff]   ;;  %v6662_v7 = vld [vmem:[%s6774_s22 + $0x310] sm:$0xff]   ;;  %v6664_v9 = vld [vmem:[%s6774_s22 + $0x318] sm:$0xff]  }
  0x26   : > { %v6665_v10 = vld [vmem:[%s6774_s22 + $0x120] sm:$0xff]   ;;  %v6667_v12 = vld [vmem:[%s6774_s22 + $0x128] sm:$0xff]   ;;  %v6669_v14 = vld [vmem:[%s6774_s22 + $0x130] sm:$0xff]  }
  0x27   : > { %v6666_v11 = vld [vmem:[%s6774_s22 + $0x320] sm:$0xff]   ;;  %v6668_v13 = vld [vmem:[%s6774_s22 + $0x328] sm:$0xff]   ;;  %v6670_v15 = vld [vmem:[%s6774_s22 + $0x330] sm:$0xff]  }
  0x2c   : > { %6336 = vmatmul.mubr.msk.bf16.gmra.mxu0 %vm1094_vm0, %v6607_v16  ;;  %6464 = vmatmul.mubr.msk.bf16.gmra.mxu1 %vm1094_vm0, %v6608_v17  ;;  %v6671_v16 = vld [vmem:[%s6774_s22 + $0x138] sm:$0xff]  }
  0x2d   : > { %6339 = vmatprep.mubr.msk.bf16.mxu0 %vm1094_vm0, %v6609_v18  ;;  %6467 = vmatprep.mubr.msk.bf16.mxu1 %vm1094_vm0, %v6610_v19  ;;  %v6672_v17 = vld [vmem:[%s6774_s22 + $0x338] sm:$0xff]   ;;  %v6673_v18 = vld [vmem:[%s6774_s22 + $0x140] sm:$0xff]  }
  0x2e   : > { %v6674_v19 = vld [vmem:[%s6774_s22 + $0x340] sm:$0xff]  }
  0x34   : > { %6340 = vmatmul.mubr.msk.bf16.gmra.mxu0 %vm1094_vm0, %v6611_v20  ;;  %6468 = vmatmul.mubr.msk.bf16.gmra.mxu1 %vm1094_vm0, %v6612_v21  ;;  %v6675_v20 = vld [vmem:[%s6774_s22 + $0x148] sm:$0xff]  }
  0x35   : > { %6343 = vmatprep.mubr.msk.bf16.mxu0 %vm1094_vm0, %v6613_v22  ;;  %6471 = vmatprep.mubr.msk.bf16.mxu1 %vm1094_vm0, %v6614_v23  ;;  %v6676_v21 = vld [vmem:[%s6774_s22 + $0x348] sm:$0xff]   ;;  %v6677_v22 = vld [vmem:[%s6774_s22 + $0x150] sm:$0xff]  }
  0x36   : > { %v6678_v23 = vld [vmem:[%s6774_s22 + $0x350] sm:$0xff]  }
  0x3c   : > { %6344 = vmatmul.mubr.msk.bf16.gmra.mxu0 %vm1094_vm0, %v6615_v24  ;;  %6472 = vmatmul.mubr.msk.bf16.gmra.mxu1 %vm1094_vm0, %v6616_v25  ;;  %v6679_v24 = vld [vmem:[%s6774_s22 + $0x158] sm:$0xff]  }
  0x3d   : > { %6347 = vmatprep.mubr.msk.bf16.mxu0 %vm1094_vm0, %v6617_v26  ;;  %6475 = vmatprep.mubr.msk.bf16.mxu1 %vm1094_vm0, %v6618_v27  ;;  %v6680_v25 = vld [vmem:[%s6774_s22 + $0x358] sm:$0xff]   ;;  %v6681_v26 = vld [vmem:[%s6774_s22 + $0x160] sm:$0xff]  }
  0x3e   : > { %v6682_v27 = vld [vmem:[%s6774_s22 + $0x360] sm:$0xff]  }
  0x44   : > { %6348 = vmatmul.mubr.msk.bf16.gmra.mxu0 %vm1094_vm0, %v6619_v28  ;;  %6476 = vmatmul.mubr.msk.bf16.gmra.mxu1 %vm1094_vm0, %v6620_v29  ;;  %v6683_v28 = vld [vmem:[%s6774_s22 + $0x168] sm:$0xff]  }
  0x45   : > { %6351 = vmatprep.mubr.msk.bf16.mxu0 %vm1094_vm0, %v6621_v30  ;;  %6479 = vmatprep.mubr.msk.bf16.mxu1 %vm1094_vm0, %v6622_v31  ;;  %v6684_v29 = vld [vmem:[%s6774_s22 + $0x368] sm:$0xff]   ;;  %v6685_v30 = vld [vmem:[%s6774_s22 + $0x170] sm:$0xff]  }
  0x46   : > { %v6686_v31 = vld [vmem:[%s6774_s22 + $0x370] sm:$0xff]  }
  0x4c   : > { %6352 = vmatmul.mubr.msk.bf16.gmra.mxu0 %vm1094_vm0, %v6623_v32  ;;  %6480 = vmatmul.mubr.msk.bf16.gmra.mxu1 %vm1094_vm0, %v6624_v33  ;;  %v6687_v32 = vld [vmem:[%s6774_s22 + $0x178] sm:$0xff]  }
  0x4d   : > { %6355 = vmatprep.mubr.msk.bf16.mxu0 %vm1094_vm0, %v6625_v34  ;;  %6483 = vmatprep.mubr.msk.bf16.mxu1 %vm1094_vm0, %v6626_v35  ;;  %v6688_v33 = vld [vmem:[%s6774_s22 + $0x378] sm:$0xff]   ;;  %v6689_v34 = vld [vmem:[%s6774_s22 + $0x180] sm:$0xff]  }
  0x4e   : > { %v6690_v35 = vld [vmem:[%s6774_s22 + $0x380] sm:$0xff]  }
  0x54   : > { %6356 = vmatmul.mubr.msk.bf16.gmra.mxu0 %vm1094_vm0, %v6627_v36  ;;  %6484 = vmatmul.mubr.msk.bf16.gmra.mxu1 %vm1094_vm0, %v6628_v37  ;;  %v6691_v36 = vld [vmem:[%s6774_s22 + $0x188] sm:$0xff]  }
  0x55   : > { %6359 = vmatprep.mubr.msk.bf16.mxu0 %vm1094_vm0, %v6629_v38  ;;  %6487 = vmatprep.mubr.msk.bf16.mxu1 %vm1094_vm0, %v6630_v39  ;;  %v6692_v37 = vld [vmem:[%s6774_s22 + $0x388] sm:$0xff]   ;;  %v6693_v38 = vld [vmem:[%s6774_s22 + $0x190] sm:$0xff]   ;;  %v6978_v39 = vld [vmem:[%s7908_s2] ss:$0 sm:$0xff] }
  0x5c   : > { %6360 = vmatmul.mubr.msk.bf16.gmra.mxu0 %vm1094_vm0, %v6631_v40  ;;  %6488 = vmatmul.mubr.msk.bf16.gmra.mxu1 %vm1094_vm0, %v6632_v41  ;;  %v6694_v40 = vld [vmem:[%s6774_s22 + $0x390] sm:$0xff]  }
  0x5d   : > { %6363 = vmatprep.mubr.msk.bf16.mxu0 %vm1094_vm0, %v6633_v42  ;;  %6491 = vmatprep.mubr.msk.bf16.mxu1 %vm1094_vm0, %v6634_v43 }
  0x64   : > { %6364 = vmatmul.mubr.msk.bf16.gmra.mxu0 %vm1094_vm0, %v6635_v44  ;;  %6492 = vmatmul.mubr.msk.bf16.gmra.mxu1 %vm1094_vm0, %v6636_v45 }
  0x65   : > { %6367 = vmatprep.mubr.msk.bf16.mxu0 %vm1094_vm0, %v6637_v46  ;;  %6495 = vmatprep.mubr.msk.bf16.mxu1 %vm1094_vm0, %v6638_v47 }
  0x6c   : > { %6368 = vmatmul.mubr.msk.bf16.gmra.mxu0 %vm1094_vm0, %v6639_v48  ;;  %6496 = vmatmul.mubr.msk.bf16.gmra.mxu1 %vm1094_vm0, %v6640_v49 }
  0x6d   : > { %6371 = vmatprep.mubr.msk.bf16.mxu0 %vm1094_vm0, %v6641_v50  ;;  %6499 = vmatprep.mubr.msk.bf16.mxu1 %vm1094_vm0, %v6642_v51 }
  0x74   : > { %6372 = vmatmul.mubr.msk.bf16.gmra.mxu0 %vm1094_vm0, %v6643_v52  ;;  %6500 = vmatmul.mubr.msk.bf16.gmra.mxu1 %vm1094_vm0, %v6644_v53  ;;  %v6695_v52 = vld [vmem:[%s6774_s22 + $0x198] sm:$0xff]  }
  0x75   : > { %6375 = vmatprep.mubr.msk.bf16.mxu0 %vm1094_vm0, %v6645_v54  ;;  %6503 = vmatprep.mubr.msk.bf16.mxu1 %vm1094_vm0, %v6646_v55 }
  0x7c   : > { %6376 = vmatmul.mubr.msk.bf16.gmra.mxu0 %vm1094_vm0, %v6647_v56  ;;  %6504 = vmatmul.mubr.msk.bf16.gmra.mxu1 %vm1094_vm0, %v6648_v57  ;;  %v6696_v57 = vld [vmem:[%s6774_s22 + $0x398] sm:$0xff]  }
  0x7d   : > { %6379 = vmatprep.mubr.msk.bf16.mxu0 %vm1094_vm0, %v6649_v58  ;;  %6507 = vmatprep.mubr.msk.bf16.mxu1 %vm1094_vm0, %v6650_v59  ;;  %v6697_v58 = vld [vmem:[%s6774_s22 + $0x1a0] sm:$0xff]  }
  0x84   : > { %6380 = vmatmul.mubr.msk.bf16.gmra.mxu0 %vm1094_vm0, %v6651_v60  ;;  %6508 = vmatmul.mubr.msk.bf16.gmra.mxu1 %vm1094_vm0, %v6652_v61 }
  0x85   : > { %6383 = vmatprep.mubr.msk.bf16.mxu0 %vm1094_vm0, %v6653_v62  ;;  %6511 = vmatprep.mubr.msk.bf16.mxu1 %vm1094_vm0, %v6654_v63  ;;  %v6698_v63 = vld [vmem:[%s6774_s22 + $0x3a0] sm:$0xff]  }
  0x8c   : > { %6384 = vmatmul.mubr.msk.bf16.gmra.mxu0 %vm1094_vm0, %v6655_v0  ;;  %6512 = vmatmul.mubr.msk.bf16.gmra.mxu1 %vm1094_vm0, %v6656_v1 }
  0x8d   : > { %6387 = vmatprep.mubr.msk.bf16.mxu0 %vm1094_vm0, %v6657_v2  ;;  %6515 = vmatprep.mubr.msk.bf16.mxu1 %vm1094_vm0, %v6658_v3 }
  0x94   : > { %6388 = vmatmul.mubr.msk.bf16.gmra.mxu0 %vm1094_vm0, %v6659_v4  ;;  %6516 = vmatmul.mubr.msk.bf16.gmra.mxu1 %vm1094_vm0, %v6660_v5 }
  0x95   : > { %6391 = vmatprep.mubr.msk.bf16.mxu0 %vm1094_vm0, %v6661_v6  ;;  %6519 = vmatprep.mubr.msk.bf16.mxu1 %vm1094_vm0, %v6662_v7 }
  0x9c   : > { %6392 = vmatmul.mubr.msk.bf16.gmra.mxu0 %vm1094_vm0, %v6663_v8  ;;  %6520 = vmatmul.mubr.msk.bf16.gmra.mxu1 %vm1094_vm0, %v6664_v9 }
  0x9d   : > { %6395 = vmatprep.mubr.msk.bf16.mxu0 %vm1094_vm0, %v6665_v10  ;;  %6523 = vmatprep.mubr.msk.bf16.mxu1 %vm1094_vm0, %v6666_v11 }
  0xa4   : > { %6396 = vmatmul.mubr.msk.bf16.gmra.mxu0 %vm1094_vm0, %v6667_v12  ;;  %6524 = vmatmul.mubr.msk.bf16.gmra.mxu1 %vm1094_vm0, %v6668_v13 }
  0xa5   : > { %6399 = vmatprep.mubr.msk.bf16.mxu0 %vm1094_vm0, %v6669_v14  ;;  %6527 = vmatprep.mubr.msk.bf16.mxu1 %vm1094_vm0, %v6670_v15 }
  0xac   : > { %6400 = vmatmul.mubr.msk.bf16.gmra.mxu0 %vm1094_vm0, %v6671_v16  ;;  %6528 = vmatmul.mubr.msk.bf16.gmra.mxu1 %vm1094_vm0, %v6672_v17 }
  0xad   : > { %6403 = vmatprep.mubr.msk.bf16.mxu0 %vm1094_vm0, %v6673_v18  ;;  %6531 = vmatprep.mubr.msk.bf16.mxu1 %vm1094_vm0, %v6674_v19 }
  0xb4   : > { %6404 = vmatmul.mubr.msk.bf16.gmra.mxu0 %vm1094_vm0, %v6675_v20  ;;  %6532 = vmatmul.mubr.msk.bf16.gmra.mxu1 %vm1094_vm0, %v6676_v21 }
  0xb5   : > { %6407 = vmatprep.mubr.msk.bf16.mxu0 %vm1094_vm0, %v6677_v22  ;;  %6535 = vmatprep.mubr.msk.bf16.mxu1 %vm1094_vm0, %v6678_v23 }
  0xbc   : > { %6408 = vmatmul.mubr.msk.bf16.gmra.mxu0 %vm1094_vm0, %v6679_v24  ;;  %6536 = vmatmul.mubr.msk.bf16.gmra.mxu1 %vm1094_vm0, %v6680_v25  ;;  %v6699_v25 = vld [vmem:[%s6774_s22 + $0x1a8] sm:$0xff]  }
  0xbd   : > { %6411 = vmatprep.mubr.msk.bf16.mxu0 %vm1094_vm0, %v6681_v26  ;;  %6539 = vmatprep.mubr.msk.bf16.mxu1 %vm1094_vm0, %v6682_v27 }
  0xc4   : > { %6412 = vmatmul.mubr.msk.bf16.gmra.mxu0 %vm1094_vm0, %v6683_v28  ;;  %6540 = vmatmul.mubr.msk.bf16.gmra.mxu1 %vm1094_vm0, %v6684_v29 }
  0xc5   : > { %6415 = vmatprep.mubr.msk.bf16.mxu0 %vm1094_vm0, %v6685_v30  ;;  %6543 = vmatprep.mubr.msk.bf16.mxu1 %vm1094_vm0, %v6686_v31  ;;  %v6700_v31 = vld [vmem:[%s6774_s22 + $0x3a8] sm:$0xff]  }
  0xcc   : > { %6416 = vmatmul.mubr.msk.bf16.gmra.mxu0 %vm1094_vm0, %v6687_v32  ;;  %6544 = vmatmul.mubr.msk.bf16.gmra.mxu1 %vm1094_vm0, %v6688_v33  ;;  %v6701_v32 = vld [vmem:[%s6774_s22 + $0x1b0] sm:$0xff]  }
  0xcd   : > { %6419 = vmatprep.mubr.msk.bf16.mxu0 %vm1094_vm0, %v6689_v34  ;;  %6547 = vmatprep.mubr.msk.bf16.mxu1 %vm1094_vm0, %v6690_v35  ;;  %v6702_v33 = vld [vmem:[%s6774_s22 + $0x3b0] sm:$0xff]  }
  0xd4   : > { %v6325_v41 = vpop.f32.mrf.mxu0  ;;  %6420 = vmatmul.mubr.msk.bf16.gmra.mxu0 %vm1094_vm0, %v6691_v36  ;;  %v6453_v43 = vpop.f32.mrf.mxu1  ;;  %6548 = vmatmul.mubr.msk.bf16.gmra.mxu1 %vm1094_vm0, %v6692_v37 }
  0xd5   : > { %v1522_v42 = vadd.f32 %v6325_v41, %v6978_v39  ;;  %6423 = vmatprep.mubr.msk.bf16.mxu0 %vm1094_vm0, %v6693_v38  ;;  %v2034_v44 = vadd.f32 %v6453_v43, %v6978_v39  ;;  %6551 = vmatprep.mubr.msk.bf16.mxu1 %vm1094_vm0, %v6694_v40 }
  0xd6   : > { %v1513_v45 = vpop.f32.mrf.mxu0  ;;  %v2025_v48 = vpop.f32.mrf.mxu1 }
  0xd7   : > { %vm2538_vm1 = vcmp.gt.f32.partialorder %v1522_v42, 0.0  ;;  %v2794_v46 = vmul.f32 0.2, %v1522_v42  ;;  %v1514_v47 = vadd.f32 %v6978_v39, %v1513_v45  ;;  %vm2666_vm2 = vcmp.gt.f32.partialorder %v2034_v44, 0.0 }
  0xd8   : > { %v2922_v49 = vmul.f32 0.2, %v2034_v44  ;;  %v2026_v50 = vadd.f32 %v6978_v39, %v2025_v48  ;;  %v6326_v51 = vpop.f32.mrf.mxu0  ;;  %v6454_v56 = vpop.f32.mrf.mxu1 }
  0xd9   : > { %v3050_v53 = vsel %vm2538_vm1, %v1522_v42, %v2794_v46  ;;  %vm2536_vm3 = vcmp.gt.f32.partialorder %v1514_v47, 0.0  ;;  %v2792_v54 = vmul.f32 0.2, %v1514_v47  ;;  %v1525_v55 = vadd.f32 %v6326_v51, %v6978_v39 }
  0xda   : > { %v3178_v59 = vsel %vm2666_vm2, %v2034_v44, %v2922_v49  ;;  %vm2664_vm4 = vcmp.gt.f32.partialorder %v2026_v50, 0.0  ;;  %v2920_v60 = vmul.f32 0.2, %v2026_v50  ;;  %v2037_v61 = vadd.f32 %v6454_v56, %v6978_v39  ;;  %v1516_v62 = vpop.f32.mrf.mxu0  ;;  %v2028_v3 = vpop.f32.mrf.mxu1 }
  0xdb   : > { %v3048_v0 = vsel %vm2536_vm3, %v1514_v47, %v2792_v54  ;;  %vm2539_vm5 = vcmp.gt.f32.partialorder %v1525_v55, 0.0  ;;  %v2795_v1 = vmul.f32 0.2, %v1525_v55  ;;  %v1517_v2 = vadd.f32 %v6978_v39, %v1516_v62  ;;  %v6703_v62 = vld [vmem:[%s6774_s22 + $0x1b8] sm:$0xff]  }
  0xdc   : > { %v3176_v4 = vsel %vm2664_vm4, %v2026_v50, %v2920_v60  ;;  %vm2667_vm6 = vcmp.gt.f32.partialorder %v2037_v61, 0.0  ;;  %v2923_v5 = vmul.f32 0.2, %v2037_v61  ;;  %v2029_v6 = vadd.f32 %v6978_v39, %v2028_v3  ;;  %v6329_v7 = vpop.f32.mrf.mxu0  ;;  %6424 = vmatmul.mubr.msk.bf16.gmra.mxu0 %vm1094_vm0, %v6695_v52  ;;  %v6457_v11 = vpop.f32.mrf.mxu1  ;;  %6552 = vmatmul.mubr.msk.bf16.gmra.mxu1 %vm1094_vm0, %v6696_v57 }
  0xdd   : > { %v3051_v8 = vsel %vm2539_vm5, %v1525_v55, %v2795_v1  ;;  %vm2537_vm7 = vcmp.gt.f32.partialorder %v1517_v2, 0.0  ;;  %v2793_v9 = vmul.f32 0.2, %v1517_v2  ;;  %v1538_v10 = vadd.f32 %v6329_v7, %v6978_v39  ;;  %6427 = vmatprep.mubr.msk.bf16.mxu0 %vm1094_vm0, %v6697_v58  ;;  %6555 = vmatprep.mubr.msk.bf16.mxu1 %vm1094_vm0, %v6698_v63 }
  0xde   : > { %v5430_v12 = vpack.c.bf16 %v3051_v8, %v3050_v53  ;;  %v3179_v13 = vsel %vm2667_vm6, %v2037_v61, %v2923_v5  ;;  %vm2665_vm8 = vcmp.gt.f32.partialorder %v2029_v6, 0.0  ;;  %v2921_v14 = vmul.f32 0.2, %v2029_v6  ;;  %v1529_v15 = vpop.f32.mrf.mxu0  ;;  %v2041_v19 = vpop.f32.mrf.mxu1 }
  0xdf   : > { %v5750_v16 = vpack.c.bf16 %v3179_v13, %v3178_v59  ;;  %v3049_v17 = vsel %vm2537_vm7, %v1517_v2, %v2793_v9  ;;  %vm2542_vm9 = vcmp.gt.f32.partialorder %v1538_v10, 0.0  ;;  %v2798_v18 = vmul.f32 0.2, %v1538_v10  ;;  %v6705_v9 = vld [vmem:[%s6774_s22 + $0x1c0] sm:$0xff]  }
  0xe0   : > { %6062 = vst [vmem:[%s7003_s27 + $0x8] sm:$0xff] %v5430_v12   ;;  %v5425_v20 = vpack.c.bf16 %v3049_v17, %v3048_v0  ;;  %v3177_v21 = vsel %vm2665_vm8, %v2029_v6, %v2921_v14  ;;  %v2050_v22 = vadd.f32 %v6457_v11, %v6978_v39  ;;  %v1530_v23 = vadd.f32 %v6978_v39, %v1529_v15  ;;  %v6330_v24 = vpop.f32.mrf.mxu0  ;;  %v6458_v30 = vpop.f32.mrf.mxu1 }
  0xe1   : > { %6126 = vst [vmem:[%s7003_s27 + $0x208] sm:$0xff] %v5750_v16   ;;  %v5745_v26 = vpack.c.bf16 %v3177_v21, %v3176_v4  ;;  %v3054_v27 = vsel %vm2542_vm9, %v1538_v10, %v2798_v18  ;;  %v2042_v28 = vadd.f32 %v6978_v39, %v2041_v19  ;;  %v1541_v29 = vadd.f32 %v6330_v24, %v6978_v39  ;;  %v6704_v4 = vld [vmem:[%s6774_s22 + $0x3b8] sm:$0xff]   ;;  %v6706_v10 = vld [vmem:[%s6774_s22 + $0x3c0] sm:$0xff]  }
  0xe2   : > { %5426 = vst [vmem:[%s7003_s27] sm:$0xff] %v5425_v20   ;;  %vm2670_vm10 = vcmp.gt.f32.partialorder %v2050_v22, 0.0  ;;  %v2926_v34 = vmul.f32 0.2, %v2050_v22  ;;  %vm2540_vm11 = vcmp.gt.f32.partialorder %v1530_v23, 0.0  ;;  %v2796_v35 = vmul.f32 0.2, %v1530_v23  ;;  %v1532_v36 = vpop.f32.mrf.mxu0  ;;  %v2044_v40 = vpop.f32.mrf.mxu1 }
  0xe3   : > { %6125 = vst [vmem:[%s7003_s27 + $0x200] sm:$0xff] %v5745_v26   ;;  %vm2668_vm12 = vcmp.gt.f32.partialorder %v2042_v28, 0.0  ;;  %v2924_v37 = vmul.f32 0.2, %v2042_v28  ;;  %vm2543_vm13 = vcmp.gt.f32.partialorder %v1541_v29, 0.0  ;;  %v2053_v43 = vadd.f32 %v6458_v30, %v6978_v39 }
  0xe4   : > { %v2799_v38 = vmul.f32 0.2, %v1541_v29  ;;  %v3182_v41 = vsel %vm2670_vm10, %v2050_v22, %v2926_v34  ;;  %v3052_v42 = vsel %vm2540_vm11, %v1530_v23, %v2796_v35  ;;  %v1533_v44 = vadd.f32 %v6978_v39, %v1532_v36  ;;  %v6333_v45 = vpop.f32.mrf.mxu0  ;;  %6428 = vmatmul.mubr.msk.bf16.gmra.mxu0 %vm1094_vm0, %v6699_v25  ;;  %v6461_v50 = vpop.f32.mrf.mxu1  ;;  %6556 = vmatmul.mubr.msk.bf16.gmra.mxu1 %vm1094_vm0, %v6700_v31  ;;  %v6707_v34 = vld [vmem:[%s6774_s22 + $0x1c8] sm:$0xff]  }
  0xe5   : > { %v3180_v46 = vsel %vm2668_vm12, %v2042_v28, %v2924_v37  ;;  %v2045_v48 = vadd.f32 %v6978_v39, %v2044_v40  ;;  %v1554_v49 = vadd.f32 %v6333_v45, %v6978_v39  ;;  %vm2671_vm14 = vcmp.gt.f32.partialorder %v2053_v43, 0.0  ;;  %6431 = vmatprep.mubr.msk.bf16.mxu0 %vm1094_vm0, %v6701_v32  ;;  %6559 = vmatprep.mubr.msk.bf16.mxu1 %vm1094_vm0, %v6702_v33 }
  0xe6   : > { %v3055_v47 = vsel %vm2543_vm13, %v1541_v29, %v2799_v38  ;;  %v2927_v52 = vmul.f32 0.2, %v2053_v43  ;;  %vm2541_vm15 = vcmp.gt.f32.partialorder %v1533_v44, 0.0  ;;  %v1545_v53 = vpop.f32.mrf.mxu0  ;;  %v2797_v54 = vmul.f32 0.2, %v1533_v44  ;;  %v2057_v56 = vpop.f32.mrf.mxu1 }
  0xe7   : > { %v5440_v51 = vpack.c.bf16 %v3055_v47, %v3054_v27  ;;  %vm2669_vm1 = vcmp.gt.f32.partialorder %v2045_v48, 0.0  ;;  %v2925_v55 = vmul.f32 0.2, %v2045_v48  ;;  %vm2546_vm2 = vcmp.gt.f32.partialorder %v1554_v49, 0.0 }
  0xe8   : > { %v3183_v57 = vsel %vm2671_vm14, %v2053_v43, %v2927_v52  ;;  %v2802_v58 = vmul.f32 0.2, %v1554_v49  ;;  %v2066_v59 = vadd.f32 %v6461_v50, %v6978_v39  ;;  %v1546_v60 = vadd.f32 %v6978_v39, %v1545_v53  ;;  %v6334_v61 = vpop.f32.mrf.mxu0  ;;  %v6462_v3 = vpop.f32.mrf.mxu1 }
  0xe9   : > { %6064 = vst [vmem:[%s7003_s27 + $0x18] sm:$0xff] %v5440_v51   ;;  %v5760_v63 = vpack.c.bf16 %v3183_v57, %v3182_v41  ;;  %v3053_v0 = vsel %vm2541_vm15, %v1533_v44, %v2797_v54  ;;  %v3181_v1 = vsel %vm2669_vm1, %v2045_v48, %v2925_v55  ;;  %v2058_v2 = vadd.f32 %v6978_v39, %v2057_v56  ;;  %v6708_v41 = vld [vmem:[%s6774_s22 + $0x3c8] sm:$0xff]   ;;  %v6710_v48 = vld [vmem:[%s6774_s22 + $0x3d0] sm:$0xff]  }
  0xea   : > { %v5435_v5 = vpack.c.bf16 %v3053_v0, %v3052_v42  ;;  %v5755_v6 = vpack.c.bf16 %v3181_v1, %v3180_v46  ;;  %v3058_v7 = vsel %vm2546_vm2, %v1554_v49, %v2802_v58  ;;  %vm2674_vm3 = vcmp.gt.f32.partialorder %v2066_v59, 0.0  ;;  %v1548_v8 = vpop.f32.mrf.mxu0  ;;  %v2060_v13 = vpop.f32.mrf.mxu1  ;;  %v6709_v42 = vld [vmem:[%s6774_s22 + $0x1d0] sm:$0xff]  }
  0xeb   : > { %6128 = vst [vmem:[%s7003_s27 + $0x218] sm:$0xff] %v5760_v63   ;;  %v2930_v11 = vmul.f32 0.2, %v2066_v59  ;;  %vm2544_vm4 = vcmp.gt.f32.partialorder %v1546_v60, 0.0  ;;  %v2800_v12 = vmul.f32 0.2, %v1546_v60  ;;  %v1557_v15 = vadd.f32 %v6334_v61, %v6978_v39 }
  0xec   : > { %vm2672_vm5 = vcmp.gt.f32.partialorder %v2058_v2, 0.0  ;;  %6063 = vst [vmem:[%s7003_s27 + $0x10] sm:$0xff] %v5435_v5   ;;  %6127 = vst [vmem:[%s7003_s27 + $0x210] sm:$0xff] %v5755_v6   ;;  %v2928_v14 = vmul.f32 0.2, %v2058_v2  ;;  %v2069_v16 = vadd.f32 %v6462_v3, %v6978_v39  ;;  %v1549_v17 = vadd.f32 %v6978_v39, %v1548_v8  ;;  %v6337_v18 = vpop.f32.mrf.mxu0  ;;  %6432 = vmatmul.mubr.msk.bf16.gmra.mxu0 %vm1094_vm0, %v6703_v62  ;;  %v6465_v23 = vpop.f32.mrf.mxu1  ;;  %v6711_v8 = vld [vmem:[%s6774_s22 + $0x1d8] sm:$0xff]  }
  0xed   : > { %v3186_v19 = vsel %vm2674_vm3, %v2066_v59, %v2930_v11  ;;  %v3056_v20 = vsel %vm2544_vm4, %v1546_v60, %v2800_v12  ;;  %v2061_v21 = vadd.f32 %v6978_v39, %v2060_v13  ;;  %v1570_v22 = vadd.f32 %v6337_v18, %v6978_v39  ;;  %6560 = vmatmul.mubr.msk.bf16.gmra.mxu1 %vm1094_vm0, %v6704_v4 }
  0xee   : > { %v3184_v24 = vsel %vm2672_vm5, %v2058_v2, %v2928_v14  ;;  %vm2547_vm6 = vcmp.gt.f32.partialorder %v1557_v15, 0.0  ;;  %v2803_v25 = vmul.f32 0.2, %v1557_v15  ;;  %vm2675_vm7 = vcmp.gt.f32.partialorder %v2069_v16, 0.0  ;;  %v1561_v26 = vpop.f32.mrf.mxu0  ;;  %6435 = vmatprep.mubr.msk.bf16.mxu0 %vm1094_vm0, %v6705_v9  ;;  %6563 = vmatprep.mubr.msk.bf16.mxu1 %vm1094_vm0, %v6706_v10  ;;  %v2073_v29 = vpop.f32.mrf.mxu1  ;;  %v6712_v14 = vld [vmem:[%s6774_s22 + $0x3d8] sm:$0xff]  }
  0xef   : > { %v2931_v27 = vmul.f32 0.2, %v2069_v16  ;;  %vm2545_vm8 = vcmp.gt.f32.partialorder %v1549_v17, 0.0  ;;  %v2801_v28 = vmul.f32 0.2, %v1549_v17  ;;  %vm2673_vm9 = vcmp.gt.f32.partialorder %v2061_v21, 0.0 }
  0xf0   : > { %v3059_v30 = vsel %vm2547_vm6, %v1557_v15, %v2803_v25  ;;  %v2929_v31 = vmul.f32 0.2, %v2061_v21  ;;  %vm2550_vm10 = vcmp.gt.f32.partialorder %v1570_v22, 0.0  ;;  %v2806_v32 = vmul.f32 0.2, %v1570_v22  ;;  %v6338_v33 = vpop.f32.mrf.mxu0  ;;  %v6466_v40 = vpop.f32.mrf.mxu1  ;;  %v6713_v15 = vld [vmem:[%s6774_s22 + $0x1e0] sm:$0xff]  }
  0xf1   : > { %v5450_v35 = vpack.c.bf16 %v3059_v30, %v3058_v7  ;;  %v3187_v36 = vsel %vm2675_vm7, %v2069_v16, %v2931_v27  ;;  %v3057_v37 = vsel %vm2545_vm8, %v1549_v17, %v2801_v28  ;;  %v2082_v38 = vadd.f32 %v6465_v23, %v6978_v39 }
  0xf2   : > { %v5770_v43 = vpack.c.bf16 %v3187_v36, %v3186_v19  ;;  %v5445_v44 = vpack.c.bf16 %v3057_v37, %v3056_v20  ;;  %v3185_v45 = vsel %vm2673_vm9, %v2061_v21, %v2929_v31  ;;  %v3062_v46 = vsel %vm2550_vm10, %v1570_v22, %v2806_v32  ;;  %v1564_v47 = vpop.f32.mrf.mxu0  ;;  %v2076_v52 = vpop.f32.mrf.mxu1  ;;  %v6714_v21 = vld [vmem:[%s6774_s22 + $0x3e0] sm:$0xff]  }
  0xf3   : > { %6066 = vst [vmem:[%s7003_s27 + $0x28] sm:$0xff] %v5450_v35   ;;  %v5765_v49 = vpack.c.bf16 %v3185_v45, %v3184_v24  ;;  %vm2678_vm11 = vcmp.gt.f32.partialorder %v2082_v38, 0.0  ;;  %v2934_v50 = vmul.f32 0.2, %v2082_v38  ;;  %v1562_v51 = vadd.f32 %v6978_v39, %v1561_v26 }
  0xf4   : > { %6130 = vst [vmem:[%s7003_s27 + $0x228] sm:$0xff] %v5770_v43   ;;  %6065 = vst [vmem:[%s7003_s27 + $0x20] sm:$0xff] %v5445_v44   ;;  %v2074_v53 = vadd.f32 %v6978_v39, %v2073_v29  ;;  %v1573_v54 = vadd.f32 %v6338_v33, %v6978_v39  ;;  %v2085_v55 = vadd.f32 %v6466_v40, %v6978_v39  ;;  %v6341_v57 = vpop.f32.mrf.mxu0  ;;  %6436 = vmatmul.mubr.msk.bf16.gmra.mxu0 %vm1094_vm0, %v6707_v34  ;;  %v6469_v61 = vpop.f32.mrf.mxu1  ;;  %v6715_v43 = vld [vmem:[%s6774_s22 + $0x1e8] sm:$0xff]  }
  0xf5   : > { %v1565_v56 = vadd.f32 %v6978_v39, %v1564_v47  ;;  %6129 = vst [vmem:[%s7003_s27 + $0x220] sm:$0xff] %v5765_v49   ;;  %v3190_v58 = vsel %vm2678_vm11, %v2082_v38, %v2934_v50  ;;  %vm2548_vm12 = vcmp.gt.f32.partialorder %v1562_v51, 0.0  ;;  %v2804_v59 = vmul.f32 0.2, %v1562_v51  ;;  %6564 = vmatmul.mubr.msk.bf16.gmra.mxu1 %vm1094_vm0, %v6708_v41  ;;  %6439 = vmatprep.mubr.msk.bf16.mxu0 %vm1094_vm0, %v6709_v42  ;;  %v6716_v44 = vld [vmem:[%s6774_s22 + $0x3e8] sm:$0xff]  }
  0xf6   : > { %v2077_v60 = vadd.f32 %v6978_v39, %v2076_v52  ;;  %vm2676_vm13 = vcmp.gt.f32.partialorder %v2074_v53, 0.0  ;;  %v2932_v62 = vmul.f32 0.2, %v2074_v53  ;;  %vm2551_vm14 = vcmp.gt.f32.partialorder %v1573_v54, 0.0  ;;  %v1577_v0 = vpop.f32.mrf.mxu0  ;;  %6567 = vmatprep.mubr.msk.bf16.mxu1 %vm1094_vm0, %v6710_v48  ;;  %v2089_v3 = vpop.f32.mrf.mxu1  ;;  %v6717_v52 = vld [vmem:[%s6774_s22 + $0x1f0] sm:$0xff]  }
  0xf7   : > { %v2807_v63 = vmul.f32 0.2, %v1573_v54  ;;  %v3060_v1 = vsel %vm2548_vm12, %v1562_v51, %v2804_v59  ;;  %vm2679_vm15 = vcmp.gt.f32.partialorder %v2085_v55, 0.0  ;;  %v2935_v2 = vmul.f32 0.2, %v2085_v55 }
  0xf8   : > { %vm2549_vm1 = vcmp.gt.f32.partialorder %v1565_v56, 0.0  ;;  %v3188_v4 = vsel %vm2676_vm13, %v2074_v53, %v2932_v62  ;;  %v2805_v6 = vmul.f32 0.2, %v1565_v56  ;;  %vm2677_vm2 = vcmp.gt.f32.partialorder %v2077_v60, 0.0  ;;  %v6342_v7 = vpop.f32.mrf.mxu0  ;;  %v6470_v13 = vpop.f32.mrf.mxu1 }
  0xf9   : > { %v3063_v5 = vsel %vm2551_vm14, %v1573_v54, %v2807_v63  ;;  %v3191_v10 = vsel %vm2679_vm15, %v2085_v55, %v2935_v2  ;;  %v2933_v11 = vmul.f32 0.2, %v2077_v60  ;;  %v1586_v12 = vadd.f32 %v6341_v57, %v6978_v39 }
  0xfa   : > { %v5460_v9 = vpack.c.bf16 %v3063_v5, %v3062_v46  ;;  %v5780_v16 = vpack.c.bf16 %v3191_v10, %v3190_v58  ;;  %v3061_v17 = vsel %vm2549_vm1, %v1565_v56, %v2805_v6  ;;  %v2098_v18 = vadd.f32 %v6469_v61, %v6978_v39  ;;  %v1580_v20 = vpop.f32.mrf.mxu0  ;;  %v2092_v25 = vpop.f32.mrf.mxu1  ;;  %v6718_v58 = vld [vmem:[%s6774_s22 + $0x3f0] sm:$0xff]  }
  0xfb   : > { %v1578_v19 = vadd.f32 %v6978_v39, %v1577_v0  ;;  %v5455_v22 = vpack.c.bf16 %v3061_v17, %v3060_v1  ;;  %v3189_v23 = vsel %vm2677_vm2, %v2077_v60, %v2933_v11  ;;  %vm2554_vm3 = vcmp.gt.f32.partialorder %v1586_v12, 0.0 }
  0xfc   : > { %6068 = vst [vmem:[%s7003_s27 + $0x38] sm:$0xff] %v5460_v9   ;;  %v2810_v24 = vmul.f32 0.2, %v1586_v12  ;;  %6132 = vst [vmem:[%s7003_s27 + $0x238] sm:$0xff] %v5780_v16   ;;  %v5775_v26 = vpack.c.bf16 %v3189_v23, %v3188_v4  ;;  %vm2682_vm4 = vcmp.gt.f32.partialorder %v2098_v18, 0.0  ;;  %v6345_v28 = vpop.f32.mrf.mxu0  ;;  %6440 = vmatmul.mubr.msk.bf16.gmra.mxu0 %vm1094_vm0, %v6711_v8  ;;  %v2090_v31 = vadd.f32 %v6978_v39, %v2089_v3  ;;  %v6473_v33 = vpop.f32.mrf.mxu1  ;;  %v6719_v16 = vld [vmem:[%s6774_s22 + $0x1f8] sm:$0xff]  }
  0xfd   : > { %v2938_v27 = vmul.f32 0.2, %v2098_v18  ;;  %vm2552_vm5 = vcmp.gt.f32.partialorder %v1578_v19, 0.0  ;;  %6067 = vst [vmem:[%s7003_s27 + $0x30] sm:$0xff] %v5455_v22   ;;  %v2808_v30 = vmul.f32 0.2, %v1578_v19  ;;  %v1589_v32 = vadd.f32 %v6342_v7, %v6978_v39  ;;  %6568 = vmatmul.mubr.msk.bf16.gmra.mxu1 %vm1094_vm0, %v6712_v14  ;;  %6443 = vmatprep.mubr.msk.bf16.mxu0 %vm1094_vm0, %v6713_v15 }
  0xfe   : > { %v3066_v29 = vsel %vm2554_vm3, %v1586_v12, %v2810_v24  ;;  %6131 = vst [vmem:[%s7003_s27 + $0x230] sm:$0xff] %v5775_v26   ;;  %v2101_v35 = vadd.f32 %v6470_v13, %v6978_v39  ;;  %v1581_v36 = vadd.f32 %v6978_v39, %v1580_v20  ;;  %v2093_v37 = vadd.f32 %v6978_v39, %v2092_v25  ;;  %v1593_v38 = vpop.f32.mrf.mxu0  ;;  %v2105_v42 = vpop.f32.mrf.mxu1  ;;  %v6720_v24 = vld [vmem:[%s6774_s22 + $0x3f8] sm:$0xff]  }
  0xff   : > { %v3194_v34 = vsel %vm2682_vm4, %v2098_v18, %v2938_v27  ;;  %6571 = vmatprep.mubr.msk.bf16.mxu1 %vm1094_vm0, %v6714_v21  ;;  %v3064_v40 = vsel %vm2552_vm5, %v1578_v19, %v2808_v30  ;;  %vm2680_vm6 = vcmp.gt.f32.partialorder %v2090_v31, 0.0  ;;  %v2936_v41 = vmul.f32 0.2, %v2090_v31 }
 0x100   : > { %vm2555_vm7 = vcmp.gt.f32.partialorder %v1589_v32, 0.0  ;;  %v2811_v45 = vmul.f32 0.2, %v1589_v32  ;;  %vm2683_vm8 = vcmp.gt.f32.partialorder %v2101_v35, 0.0  ;;  %v2939_v46 = vmul.f32 0.2, %v2101_v35  ;;  %v6346_v47 = vpop.f32.mrf.mxu0  ;;  %v6474_v51 = vpop.f32.mrf.mxu1 }
 0x101   : > { %vm2553_vm9 = vcmp.gt.f32.partialorder %v1581_v36, 0.0  ;;  %v3192_v48 = vsel %vm2680_vm6, %v2090_v31, %v2936_v41  ;;  %v2809_v49 = vmul.f32 0.2, %v1581_v36  ;;  %vm2681_vm10 = vcmp.gt.f32.partialorder %v2093_v37, 0.0 }
 0x102   : > { %v2937_v50 = vmul.f32 0.2, %v2093_v37  ;;  %v3067_v53 = vsel %vm2555_vm7, %v1589_v32, %v2811_v45  ;;  %v3195_v54 = vsel %vm2683_vm8, %v2101_v35, %v2939_v46  ;;  %v1602_v55 = vadd.f32 %v6345_v28, %v6978_v39  ;;  %v1596_v57 = vpop.f32.mrf.mxu0  ;;  %v2108_v63 = vpop.f32.mrf.mxu1 }
 0x103   : > { %v2114_v56 = vadd.f32 %v6473_v33, %v6978_v39  ;;  %v5470_v59 = vpack.c.bf16 %v3067_v53, %v3066_v29  ;;  %v5790_v60 = vpack.c.bf16 %v3195_v54, %v3194_v34  ;;  %v3065_v61 = vsel %vm2553_vm9, %v1581_v36, %v2809_v49 }
 0x104   : > { %v3193_v62 = vsel %vm2681_vm10, %v2093_v37, %v2937_v50  ;;  %v5465_v0 = vpack.c.bf16 %v3065_v61, %v3064_v40  ;;  %vm2558_vm11 = vcmp.gt.f32.partialorder %v1602_v55, 0.0  ;;  %v2814_v2 = vmul.f32 0.2, %v1602_v55  ;;  %v6349_v3 = vpop.f32.mrf.mxu0  ;;  %6444 = vmatmul.mubr.msk.bf16.gmra.mxu0 %vm1094_vm0, %v6715_v43  ;;  %v6477_v7 = vpop.f32.mrf.mxu1 }
 0x105   : > { %v5785_v1 = vpack.c.bf16 %v3193_v62, %v3192_v48  ;;  %6070 = vst [vmem:[%s7003_s27 + $0x48] sm:$0xff] %v5470_v59   ;;  %6134 = vst [vmem:[%s7003_s27 + $0x248] sm:$0xff] %v5790_v60   ;;  %vm2686_vm12 = vcmp.gt.f32.partialorder %v2114_v56, 0.0  ;;  %v2942_v4 = vmul.f32 0.2, %v2114_v56  ;;  %v1594_v5 = vadd.f32 %v6978_v39, %v1593_v38  ;;  %6572 = vmatmul.mubr.msk.bf16.gmra.mxu1 %vm1094_vm0, %v6716_v44 }
 0x106   : > { %v2106_v6 = vadd.f32 %v6978_v39, %v2105_v42  ;;  %6447 = vmatprep.mubr.msk.bf16.mxu0 %vm1094_vm0, %v6717_v52  ;;  %6069 = vst [vmem:[%s7003_s27 + $0x40] sm:$0xff] %v5465_v0   ;;  %v3070_v8 = vsel %vm2558_vm11, %v1602_v55, %v2814_v2  ;;  %v1605_v9 = vadd.f32 %v6346_v47, %v6978_v39  ;;  %v1609_v12 = vpop.f32.mrf.mxu0  ;;  %v2121_v15 = vpop.f32.mrf.mxu1 }
 0x107   : > { %6133 = vst [vmem:[%s7003_s27 + $0x240] sm:$0xff] %v5785_v1   ;;  %v2117_v10 = vadd.f32 %v6474_v51, %v6978_v39  ;;  %v1597_v11 = vadd.f32 %v6978_v39, %v1596_v57  ;;  %6575 = vmatprep.mubr.msk.bf16.mxu1 %vm1094_vm0, %v6718_v58  ;;  %v3198_v13 = vsel %vm2686_vm12, %v2114_v56, %v2942_v4  ;;  %vm2556_vm13 = vcmp.gt.f32.partialorder %v1594_v5, 0.0 }
 0x108   : > { %v2812_v14 = vmul.f32 0.2, %v1594_v5  ;;  %vm2684_vm14 = vcmp.gt.f32.partialorder %v2106_v6, 0.0  ;;  %v2940_v17 = vmul.f32 0.2, %v2106_v6  ;;  %vm2559_vm15 = vcmp.gt.f32.partialorder %v1605_v9, 0.0  ;;  %v6350_v19 = vpop.f32.mrf.mxu0  ;;  %v6478_v23 = vpop.f32.mrf.mxu1 }
 0x109   : > { %v2815_v18 = vmul.f32 0.2, %v1605_v9  ;;  %vm2687_vm1 = vcmp.gt.f32.partialorder %v2117_v10, 0.0  ;;  %v2943_v21 = vmul.f32 0.2, %v2117_v10  ;;  %vm2557_vm2 = vcmp.gt.f32.partialorder %v1597_v11, 0.0 }
 0x10a   : > { %v3068_v20 = vsel %vm2556_vm13, %v1594_v5, %v2812_v14  ;;  %v2813_v22 = vmul.f32 0.2, %v1597_v11  ;;  %v3196_v25 = vsel %vm2684_vm14, %v2106_v6, %v2940_v17  ;;  %v2109_v27 = vadd.f32 %v6978_v39, %v2108_v63  ;;  %v1612_v29 = vpop.f32.mrf.mxu0  ;;  %v2124_v34 = vpop.f32.mrf.mxu1 }
 0x10b   : > { %v3071_v26 = vsel %vm2559_vm15, %v1605_v9, %v2815_v18  ;;  %v1618_v28 = vadd.f32 %v6349_v3, %v6978_v39  ;;  %v3199_v31 = vsel %vm2687_vm1, %v2117_v10, %v2943_v21  ;;  %v2130_v33 = vadd.f32 %v6477_v7, %v6978_v39 }
 0x10c   : > { %v5480_v30 = vpack.c.bf16 %v3071_v26, %v3070_v8  ;;  %v3069_v32 = vsel %vm2557_vm2, %v1597_v11, %v2813_v22  ;;  %v5800_v35 = vpack.c.bf16 %v3199_v31, %v3198_v13  ;;  %vm2685_vm3 = vcmp.gt.f32.partialorder %v2109_v27, 0.0  ;;  %v6353_v38 = vpop.f32.mrf.mxu0  ;;  %6448 = vmatmul.mubr.msk.bf16.gmra.mxu0 %vm1094_vm0, %v6719_v16  ;;  %v6481_v42 = vpop.f32.mrf.mxu1 }
 0x10d   : > { %v5475_v36 = vpack.c.bf16 %v3069_v32, %v3068_v20  ;;  %v2941_v37 = vmul.f32 0.2, %v2109_v27  ;;  %vm2562_vm4 = vcmp.gt.f32.partialorder %v1618_v28, 0.0  ;;  %v2818_v40 = vmul.f32 0.2, %v1618_v28  ;;  %6576 = vmatmul.mubr.msk.bf16.gmra.mxu1 %vm1094_vm0, %v6720_v24 }
 0x10e   : > { %6072 = vst [vmem:[%s7003_s27 + $0x58] sm:$0xff] %v5480_v30   ;;  %vm2690_vm5 = vcmp.gt.f32.partialorder %v2130_v33, 0.0  ;;  %v2946_v41 = vmul.f32 0.2, %v2130_v33  ;;  %6136 = vst [vmem:[%s7003_s27 + $0x258] sm:$0xff] %v5800_v35   ;;  %v1610_v44 = vadd.f32 %v6978_v39, %v1609_v12  ;;  %v2122_v45 = vadd.f32 %v6978_v39, %v2121_v15  ;;  %v1625_v47 = vpop.f32.mrf.mxu0  ;;  %v2137_v52 = vpop.f32.mrf.mxu1 }
 0x10f   : > { %6071 = vst [vmem:[%s7003_s27 + $0x50] sm:$0xff] %v5475_v36   ;;  %v3197_v43 = vsel %vm2685_vm3, %v2109_v27, %v2941_v37  ;;  %v1621_v46 = vadd.f32 %v6350_v19, %v6978_v39  ;;  %v3074_v49 = vsel %vm2562_vm4, %v1618_v28, %v2818_v40  ;;  %v2133_v51 = vadd.f32 %v6478_v23, %v6978_v39 }
 0x110   : > { %v5795_v48 = vpack.c.bf16 %v3197_v43, %v3196_v25  ;;  %v3202_v50 = vsel %vm2690_vm5, %v2130_v33, %v2946_v41  ;;  %vm2560_vm6 = vcmp.gt.f32.partialorder %v1610_v44, 0.0  ;;  %v2816_v53 = vmul.f32 0.2, %v1610_v44  ;;  %v6354_v55 = vpop.f32.mrf.mxu0  ;;  %v6482_v58 = vpop.f32.mrf.mxu1 }
 0x111   : > { %vm2688_vm0 = vcmp.gt.f32.partialorder %v2122_v45, 0.0  ;;  %v2944_v54 = vmul.f32 0.2, %v2122_v45  ;;  %vm2563_vm7 = vcmp.gt.f32.partialorder %v1621_v46, 0.0  ;;  %v2819_v56 = vmul.f32 0.2, %v1621_v46 }
 0x112   : > { %6135 = vst [vmem:[%s7003_s27 + $0x250] sm:$0xff] %v5795_v48   ;;  %vm2691_vm8 = vcmp.gt.f32.partialorder %v2133_v51, 0.0  ;;  %v2947_v57 = vmul.f32 0.2, %v2133_v51  ;;  %v3072_v59 = vsel %vm2560_vm6, %v1610_v44, %v2816_v53  ;;  %v1613_v61 = vadd.f32 %v6978_v39, %v1612_v29  ;;  %v1628_v63 = vpop.f32.mrf.mxu0  ;;  %v2140_v4 = vpop.f32.mrf.mxu1 }
 0x113   : > { %v3200_v60 = vsel %vm2688_vm0, %v2122_v45, %v2944_v54  ;;  %v2125_v62 = vadd.f32 %v6978_v39, %v2124_v34  ;;  %v3075_v0 = vsel %vm2563_vm7, %v1621_v46, %v2819_v56  ;;  %v1634_v2 = vadd.f32 %v6353_v38, %v6978_v39 }
 0x114   : > { %v3203_v1 = vsel %vm2691_vm8, %v2133_v51, %v2947_v57  ;;  %v2146_v3 = vadd.f32 %v6481_v42, %v6978_v39  ;;  %v5490_v5 = vpack.c.bf16 %v3075_v0, %v3074_v49  ;;  %vm2561_vm9 = vcmp.gt.f32.partialorder %v1613_v61, 0.0  ;;  %v6357_v8 = vpop.f32.mrf.mxu0  ;;  %v6485_v11 = vpop.f32.mrf.mxu1 }
 0x115   : > { %v5810_v6 = vpack.c.bf16 %v3203_v1, %v3202_v50  ;;  %v2817_v7 = vmul.f32 0.2, %v1613_v61  ;;  %vm2689_vm10 = vcmp.gt.f32.partialorder %v2125_v62, 0.0  ;;  %v2945_v9 = vmul.f32 0.2, %v2125_v62 }
 0x116   : > { %vm2566_vm11 = vcmp.gt.f32.partialorder %v1634_v2, 0.0  ;;  %v2822_v10 = vmul.f32 0.2, %v1634_v2  ;;  %6074 = vst [vmem:[%s7003_s27 + $0x68] sm:$0xff] %v5490_v5   ;;  %vm2694_vm12 = vcmp.gt.f32.partialorder %v2146_v3, 0.0  ;;  %v1626_v14 = vadd.f32 %v6978_v39, %v1625_v47  ;;  %v1641_v15 = vpop.f32.mrf.mxu0  ;;  %v2153_v20 = vpop.f32.mrf.mxu1 }
 0x117   : > { %6138 = vst [vmem:[%s7003_s27 + $0x268] sm:$0xff] %v5810_v6   ;;  %v3073_v12 = vsel %vm2561_vm9, %v1613_v61, %v2817_v7  ;;  %v2950_v13 = vmul.f32 0.2, %v2146_v3  ;;  %v3201_v17 = vsel %vm2689_vm10, %v2125_v62, %v2945_v9  ;;  %v2138_v19 = vadd.f32 %v6978_v39, %v2137_v52 }
 0x118   : > { %v5485_v16 = vpack.c.bf16 %v3073_v12, %v3072_v59  ;;  %v3078_v18 = vsel %vm2566_vm11, %v1634_v2, %v2822_v10  ;;  %v5805_v21 = vpack.c.bf16 %v3201_v17, %v3200_v60  ;;  %vm2564_vm13 = vcmp.gt.f32.partialorder %v1626_v14, 0.0  ;;  %v6358_v24 = vpop.f32.mrf.mxu0  ;;  %v6486_v28 = vpop.f32.mrf.mxu1 }
 0x119   : > { %v3206_v22 = vsel %vm2694_vm12, %v2146_v3, %v2950_v13  ;;  %v2820_v23 = vmul.f32 0.2, %v1626_v14  ;;  %vm2692_vm14 = vcmp.gt.f32.partialorder %v2138_v19, 0.0  ;;  %v2948_v25 = vmul.f32 0.2, %v2138_v19 }
 0x11a   : > { %6073 = vst [vmem:[%s7003_s27 + $0x60] sm:$0xff] %v5485_v16   ;;  %v1637_v26 = vadd.f32 %v6354_v55, %v6978_v39  ;;  %v2149_v27 = vadd.f32 %v6482_v58, %v6978_v39  ;;  %6137 = vst [vmem:[%s7003_s27 + $0x260] sm:$0xff] %v5805_v21   ;;  %v1629_v30 = vadd.f32 %v6978_v39, %v1628_v63  ;;  %v1644_v33 = vpop.f32.mrf.mxu0  ;;  %v2156_v36 = vpop.f32.mrf.mxu1 }
 0x11b   : > { %v3076_v29 = vsel %vm2564_vm13, %v1626_v14, %v2820_v23  ;;  %v2141_v31 = vadd.f32 %v6978_v39, %v2140_v4  ;;  %v1650_v32 = vadd.f32 %v6357_v8, %v6978_v39  ;;  %v3204_v34 = vsel %vm2692_vm14, %v2138_v19, %v2948_v25 }
 0x11c   : > { %vm2567_vm15 = vcmp.gt.f32.partialorder %v1637_v26, 0.0  ;;  %v2823_v35 = vmul.f32 0.2, %v1637_v26  ;;  %vm2695_vm1 = vcmp.gt.f32.partialorder %v2149_v27, 0.0  ;;  %v2951_v37 = vmul.f32 0.2, %v2149_v27  ;;  %v6361_v40 = vpop.f32.mrf.mxu0  ;;  %v6489_v44 = vpop.f32.mrf.mxu1 }
 0x11d   : > { %vm2565_vm2 = vcmp.gt.f32.partialorder %v1629_v30, 0.0  ;;  %v2821_v38 = vmul.f32 0.2, %v1629_v30  ;;  %vm2693_vm3 = vcmp.gt.f32.partialorder %v2141_v31, 0.0  ;;  %v2949_v42 = vmul.f32 0.2, %v2141_v31 }
 0x11e   : > { %v3079_v41 = vsel %vm2567_vm15, %v1637_v26, %v2823_v35  ;;  %vm2570_vm4 = vcmp.gt.f32.partialorder %v1650_v32, 0.0  ;;  %v2826_v43 = vmul.f32 0.2, %v1650_v32  ;;  %v3207_v46 = vsel %vm2695_vm1, %v2149_v27, %v2951_v37  ;;  %v1657_v49 = vpop.f32.mrf.mxu0  ;;  %v2169_v54 = vpop.f32.mrf.mxu1 }
 0x11f   : > { %v5500_v45 = vpack.c.bf16 %v3079_v41, %v3078_v18  ;;  %v3077_v47 = vsel %vm2565_vm2, %v1629_v30, %v2821_v38  ;;  %v2162_v48 = vadd.f32 %v6485_v11, %v6978_v39  ;;  %v5820_v50 = vpack.c.bf16 %v3207_v46, %v3206_v22 }
 0x120   : > { %v5495_v51 = vpack.c.bf16 %v3077_v47, %v3076_v29  ;;  %v3205_v52 = vsel %vm2693_vm3, %v2141_v31, %v2949_v42  ;;  %v3082_v53 = vsel %vm2570_vm4, %v1650_v32, %v2826_v43  ;;  %v1642_v57 = vadd.f32 %v6978_v39, %v1641_v15  ;;  %v6362_v58 = vpop.f32.mrf.mxu0  ;;  %v6490_v63 = vpop.f32.mrf.mxu1 }
 0x121   : > { %6076 = vst [vmem:[%s7003_s27 + $0x78] sm:$0xff] %v5500_v45   ;;  %v5815_v55 = vpack.c.bf16 %v3205_v52, %v3204_v34  ;;  %vm2698_vm5 = vcmp.gt.f32.partialorder %v2162_v48, 0.0  ;;  %v2954_v56 = vmul.f32 0.2, %v2162_v48  ;;  %6140 = vst [vmem:[%s7003_s27 + $0x278] sm:$0xff] %v5820_v50   ;;  %v2154_v59 = vadd.f32 %v6978_v39, %v2153_v20 }
 0x122   : > { %6075 = vst [vmem:[%s7003_s27 + $0x70] sm:$0xff] %v5495_v51   ;;  %v1653_v60 = vadd.f32 %v6358_v24, %v6978_v39  ;;  %v2165_v61 = vadd.f32 %v6486_v28, %v6978_v39  ;;  %v1645_v62 = vadd.f32 %v6978_v39, %v1644_v33  ;;  %vm2568_vm6 = vcmp.gt.f32.partialorder %v1642_v57, 0.0  ;;  %v1660_v3 = vpop.f32.mrf.mxu0  ;;  %v2172_v6 = vpop.f32.mrf.mxu1 }
 0x123   : > { %6139 = vst [vmem:[%s7003_s27 + $0x270] sm:$0xff] %v5815_v55   ;;  %v3210_v0 = vsel %vm2698_vm5, %v2162_v48, %v2954_v56  ;;  %v2824_v1 = vmul.f32 0.2, %v1642_v57  ;;  %v2157_v2 = vadd.f32 %v6978_v39, %v2156_v36  ;;  %vm2696_vm0 = vcmp.gt.f32.partialorder %v2154_v59, 0.0 }
 0x124   : > { %v2952_v4 = vmul.f32 0.2, %v2154_v59  ;;  %vm2571_vm7 = vcmp.gt.f32.partialorder %v1653_v60, 0.0  ;;  %v2827_v5 = vmul.f32 0.2, %v1653_v60  ;;  %vm2699_vm8 = vcmp.gt.f32.partialorder %v2165_v61, 0.0  ;;  %v6365_v9 = vpop.f32.mrf.mxu0  ;;  %v6493_v13 = vpop.f32.mrf.mxu1 }
 0x125   : > { %v3080_v7 = vsel %vm2568_vm6, %v1642_v57, %v2824_v1  ;;  %v2955_v8 = vmul.f32 0.2, %v2165_v61  ;;  %vm2569_vm9 = vcmp.gt.f32.partialorder %v1645_v62, 0.0  ;;  %v2825_v12 = vmul.f32 0.2, %v1645_v62 }
 0x126   : > { %v3208_v10 = vsel %vm2696_vm0, %v2154_v59, %v2952_v4  ;;  %v3083_v11 = vsel %vm2571_vm7, %v1653_v60, %v2827_v5  ;;  %vm2697_vm10 = vcmp.gt.f32.partialorder %v2157_v2, 0.0  ;;  %v2953_v16 = vmul.f32 0.2, %v2157_v2  ;;  %v7159_v18 = vpop.f32.mrf.mxu0  ;;  %v2185_v23 = vpop.f32.mrf.mxu1 }
 0x127   : > { %v5510_v14 = vpack.c.bf16 %v3083_v11, %v3082_v53  ;;  %v3211_v15 = vsel %vm2699_vm8, %v2165_v61, %v2955_v8  ;;  %v1666_v17 = vadd.f32 %v6361_v40, %v6978_v39  ;;  %v3081_v20 = vsel %vm2569_vm9, %v1645_v62, %v2825_v12 }
 0x128   : > { %v5830_v19 = vpack.c.bf16 %v3211_v15, %v3210_v0  ;;  %v2178_v21 = vadd.f32 %v6489_v44, %v6978_v39  ;;  %v1658_v22 = vadd.f32 %v6978_v39, %v1657_v49  ;;  %v5505_v24 = vpack.c.bf16 %v3081_v20, %v3080_v7  ;;  %v6366_v27 = vpop.f32.mrf.mxu0  ;;  %v6494_v30 = vpop.f32.mrf.mxu1  ;;  %v7169_v39 = vld [vmem:[%s7908_s2] ss:$0 sm:$0xff] }
 0x129   : > { %6078 = vst [vmem:[%s7003_s27 + $0x88] sm:$0xff] %v5510_v14   ;;  %v3209_v25 = vsel %vm2697_vm10, %v2157_v2, %v2953_v16  ;;  %vm2574_vm11 = vcmp.gt.f32.partialorder %v1666_v17, 0.0  ;;  %v2830_v26 = vmul.f32 0.2, %v1666_v17  ;;  %v2170_v33 = vadd.f32 %v7169_v39, %v2169_v54 }
 0x12a   : > { %6142 = vst [vmem:[%s7003_s27 + $0x288] sm:$0xff] %v5830_v19   ;;  %v5825_v28 = vpack.c.bf16 %v3209_v25, %v3208_v10  ;;  %vm2702_vm12 = vcmp.gt.f32.partialorder %v2178_v21, 0.0  ;;  %v2958_v29 = vmul.f32 0.2, %v2178_v21  ;;  %vm2572_vm13 = vcmp.gt.f32.partialorder %v1658_v22, 0.0  ;;  %6077 = vst [vmem:[%s7003_s27 + $0x80] sm:$0xff] %v5505_v24   ;;  %v1676_v35 = vpop.f32.mrf.mxu0  ;;  %v7177_v41 = vpop.f32.mrf.mxu1 }
 0x12b   : > { %v3086_v31 = vsel %vm2574_vm11, %v1666_v17, %v2830_v26  ;;  %v2828_v32 = vmul.f32 0.2, %v1658_v22  ;;  %v1669_v34 = vadd.f32 %v7169_v39, %v6362_v58  ;;  %v2181_v37 = vadd.f32 %v7169_v39, %v6490_v63 }
 0x12c   : > { %6141 = vst [vmem:[%s7003_s27 + $0x280] sm:$0xff] %v5825_v28   ;;  %v3214_v36 = vsel %vm2702_vm12, %v2178_v21, %v2958_v29  ;;  %v1661_v38 = vadd.f32 %v7169_v39, %v1660_v3  ;;  %v2173_v40 = vadd.f32 %v7169_v39, %v2172_v6  ;;  %vm2700_vm14 = vcmp.gt.f32.partialorder %v2170_v33, 0.0  ;;  %v6369_v44 = vpop.f32.mrf.mxu0  ;;  %v6497_v47 = vpop.f32.mrf.mxu1 }
 0x12d   : > { %v3084_v42 = vsel %vm2572_vm13, %v1658_v22, %v2828_v32  ;;  %v2956_v43 = vmul.f32 0.2, %v2170_v33  ;;  %vm2575_vm15 = vcmp.gt.f32.partialorder %v1669_v34, 0.0  ;;  %v2831_v45 = vmul.f32 0.2, %v1669_v34 }
 0x12e   : > { %vm2703_vm1 = vcmp.gt.f32.partialorder %v2181_v37, 0.0  ;;  %v2959_v46 = vmul.f32 0.2, %v2181_v37  ;;  %vm2573_vm2 = vcmp.gt.f32.partialorder %v1661_v38, 0.0  ;;  %v2829_v49 = vmul.f32 0.2, %v1661_v38  ;;  %v7179_v51 = vpop.f32.mrf.mxu0  ;;  %v7183_v56 = vpop.f32.mrf.mxu1 }
 0x12f   : > { %v3212_v48 = vsel %vm2700_vm14, %v2170_v33, %v2956_v43  ;;  %vm2701_vm3 = vcmp.gt.f32.partialorder %v2173_v40, 0.0  ;;  %v2957_v50 = vmul.f32 0.2, %v2173_v40  ;;  %v3087_v52 = vsel %vm2575_vm15, %v1669_v34, %v2831_v45 }
 0x130   : > { %v3215_v53 = vsel %vm2703_vm1, %v2181_v37, %v2959_v46  ;;  %v1682_v54 = vadd.f32 %v7169_v39, %v6365_v9  ;;  %v2194_v55 = vadd.f32 %v7169_v39, %v6493_v13  ;;  %v5520_v57 = vpack.c.bf16 %v3087_v52, %v3086_v31  ;;  %v6370_v61 = vpop.f32.mrf.mxu0  ;;  %v6498_v1 = vpop.f32.mrf.mxu1 }
 0x131   : > { %v5840_v58 = vpack.c.bf16 %v3215_v53, %v3214_v36  ;;  %v3085_v59 = vsel %vm2573_vm2, %v1661_v38, %v2829_v49  ;;  %v3213_v60 = vsel %vm2701_vm3, %v2173_v40, %v2957_v50  ;;  %v1674_v3 = vadd.f32 %v7169_v39, %v7159_v18 }
 0x132   : > { %v5515_v62 = vpack.c.bf16 %v3085_v59, %v3084_v42  ;;  %v5835_v63 = vpack.c.bf16 %v3213_v60, %v3212_v48  ;;  %vm2578_vm4 = vcmp.gt.f32.partialorder %v1682_v54, 0.0  ;;  %v2834_v0 = vmul.f32 0.2, %v1682_v54  ;;  %6080 = vst [vmem:[%s7003_s27 + $0x98] sm:$0xff] %v5520_v57   ;;  %v7190_v5 = vpop.f32.mrf.mxu0  ;;  %v7197_v10 = vpop.f32.mrf.mxu1 }
 0x133   : > { %6144 = vst [vmem:[%s7003_s27 + $0x298] sm:$0xff] %v5840_v58   ;;  %vm2706_vm5 = vcmp.gt.f32.partialorder %v2194_v55, 0.0  ;;  %v2962_v2 = vmul.f32 0.2, %v2194_v55  ;;  %v2186_v4 = vadd.f32 %v7169_v39, %v2185_v23  ;;  %v1685_v7 = vadd.f32 %v7169_v39, %v6366_v27 }
 0x134   : > { %6079 = vst [vmem:[%s7003_s27 + $0x90] sm:$0xff] %v5515_v62   ;;  %6143 = vst [vmem:[%s7003_s27 + $0x290] sm:$0xff] %v5835_v63   ;;  %v3090_v6 = vsel %vm2578_vm4, %v1682_v54, %v2834_v0  ;;  %v2197_v8 = vadd.f32 %v7169_v39, %v6494_v30  ;;  %v1677_v9 = vadd.f32 %v7169_v39, %v1676_v35  ;;  %vm2576_vm6 = vcmp.gt.f32.partialorder %v1674_v3, 0.0  ;;  %v7199_v13 = vpop.f32.mrf.mxu0  ;;  %v6501_v16 = vpop.f32.mrf.mxu1 }
 0x135   : > { %v3218_v11 = vsel %vm2706_vm5, %v2194_v55, %v2962_v2  ;;  %v2832_v12 = vmul.f32 0.2, %v1674_v3  ;;  %vm2704_vm0 = vcmp.gt.f32.partialorder %v2186_v4, 0.0  ;;  %v2960_v14 = vmul.f32 0.2, %v2186_v4 }
 0x136   : > { %vm2579_vm7 = vcmp.gt.f32.partialorder %v1685_v7, 0.0  ;;  %v2835_v15 = vmul.f32 0.2, %v1685_v7  ;;  %vm2707_vm8 = vcmp.gt.f32.partialorder %v2197_v8, 0.0  ;;  %v2963_v18 = vmul.f32 0.2, %v2197_v8  ;;  %v7201_v20 = vpop.f32.mrf.mxu0  ;;  %v7206_v25 = vpop.f32.mrf.mxu1 }
 0x137   : > { %v3088_v17 = vsel %vm2576_vm6, %v1674_v3, %v2832_v12  ;;  %vm2577_vm9 = vcmp.gt.f32.partialorder %v1677_v9, 0.0  ;;  %v2833_v19 = vmul.f32 0.2, %v1677_v9  ;;  %v3216_v21 = vsel %vm2704_vm0, %v2186_v4, %v2960_v14 }
 0x138   : > { %v3091_v22 = vsel %vm2579_vm7, %v1685_v7, %v2835_v15  ;;  %v2189_v23 = vadd.f32 %v7169_v39, %v7177_v41  ;;  %v1698_v24 = vadd.f32 %v7169_v39, %v6369_v44  ;;  %v3219_v27 = vsel %vm2707_vm8, %v2197_v8, %v2963_v18  ;;  %v7209_v30 = vpop.f32.mrf.mxu0  ;;  %v7211_v34 = vpop.f32.mrf.mxu1 }
 0x139   : > { %v5530_v26 = vpack.c.bf16 %v3091_v22, %v3090_v6  ;;  %v3089_v28 = vsel %vm2577_vm9, %v1677_v9, %v2833_v19  ;;  %v2210_v29 = vadd.f32 %v7169_v39, %v6497_v47  ;;  %v5850_v31 = vpack.c.bf16 %v3219_v27, %v3218_v11 }
 0x13a   : > { %v5525_v32 = vpack.c.bf16 %v3089_v28, %v3088_v17  ;;  %vm2705_vm10 = vcmp.gt.f32.partialorder %v2189_v23, 0.0  ;;  %v2961_v33 = vmul.f32 0.2, %v2189_v23  ;;  %vm2582_vm11 = vcmp.gt.f32.partialorder %v1698_v24, 0.0  ;;  %v7214_v37 = vpop.f32.mrf.mxu0  ;;  %v7223_v43 = vpop.f32.mrf.mxu1 }
 0x13b   : > { %6082 = vst [vmem:[%s7003_s27 + $0xa8] sm:$0xff] %v5530_v26   ;;  %v2838_v35 = vmul.f32 0.2, %v1698_v24  ;;  %vm2710_vm12 = vcmp.gt.f32.partialorder %v2210_v29, 0.0  ;;  %v2966_v36 = vmul.f32 0.2, %v2210_v29  ;;  %v1690_v40 = vadd.f32 %v7169_v39, %v7179_v51 }
 0x13c   : > { %6146 = vst [vmem:[%s7003_s27 + $0x2a8] sm:$0xff] %v5850_v31   ;;  %6081 = vst [vmem:[%s7003_s27 + $0xa0] sm:$0xff] %v5525_v32   ;;  %v3217_v38 = vsel %vm2705_vm10, %v2189_v23, %v2961_v33  ;;  %v2202_v41 = vadd.f32 %v7169_v39, %v7183_v56  ;;  %v1701_v42 = vadd.f32 %v7169_v39, %v6370_v61  ;;  %v6377_v48 = vpop.f32.mrf.mxu0  ;;  %v7226_v52 = vpop.f32.mrf.mxu1 }
 0x13d   : > { %v5845_v44 = vpack.c.bf16 %v3217_v38, %v3216_v21  ;;  %v3094_v45 = vsel %vm2582_vm11, %v1698_v24, %v2838_v35  ;;  %v3222_v46 = vsel %vm2710_vm12, %v2210_v29, %v2966_v36  ;;  %v2213_v47 = vadd.f32 %v7169_v39, %v6498_v1 }
 0x13e   : > { %vm2580_vm13 = vcmp.gt.f32.partialorder %v1690_v40, 0.0  ;;  %v2836_v49 = vmul.f32 0.2, %v1690_v40  ;;  %vm2708_vm14 = vcmp.gt.f32.partialorder %v2202_v41, 0.0  ;;  %v2964_v50 = vmul.f32 0.2, %v2202_v41  ;;  %v7229_v54 = vpop.f32.mrf.mxu0  ;;  %v7235_v59 = vpop.f32.mrf.mxu1 }
 0x13f   : > { %6145 = vst [vmem:[%s7003_s27 + $0x2a0] sm:$0xff] %v5845_v44   ;;  %vm2583_vm15 = vcmp.gt.f32.partialorder %v1701_v42, 0.0  ;;  %v2839_v51 = vmul.f32 0.2, %v1701_v42  ;;  %vm2711_vm1 = vcmp.gt.f32.partialorder %v2213_v47, 0.0  ;;  %v1693_v57 = vadd.f32 %v7169_v39, %v7190_v5 }
 0x140   : > { %v2967_v53 = vmul.f32 0.2, %v2213_v47  ;;  %v3092_v55 = vsel %vm2580_vm13, %v1690_v40, %v2836_v49  ;;  %v3220_v56 = vsel %vm2708_vm14, %v2202_v41, %v2964_v50  ;;  %v2205_v58 = vadd.f32 %v7169_v39, %v7197_v10  ;;  %v7240_v0 = vpop.f32.mrf.mxu0  ;;  %v7242_v4 = vpop.f32.mrf.mxu1 }
 0x141   : > { %v3095_v60 = vsel %vm2583_vm15, %v1701_v42, %v2839_v51  ;;  %v1714_v62 = vadd.f32 %v7169_v39, %v7199_v13  ;;  %v2226_v63 = vadd.f32 %v7169_v39, %v6501_v16  ;;  %vm2581_vm2 = vcmp.gt.f32.partialorder %v1693_v57, 0.0 }
 0x142   : > { %v3223_v61 = vsel %vm2711_vm1, %v2213_v47, %v2967_v53  ;;  %v5540_v1 = vpack.c.bf16 %v3095_v60, %v3094_v45  ;;  %v2837_v3 = vmul.f32 0.2, %v1693_v57  ;;  %vm2709_vm3 = vcmp.gt.f32.partialorder %v2205_v58, 0.0  ;;  %v7244_v7 = vpop.f32.mrf.mxu0  ;;  %v7250_v11 = vpop.f32.mrf.mxu1 }
 0x143   : > { %v5860_v2 = vpack.c.bf16 %v3223_v61, %v3222_v46  ;;  %v2965_v5 = vmul.f32 0.2, %v2205_v58  ;;  %vm2586_vm4 = vcmp.gt.f32.partialorder %v1714_v62, 0.0  ;;  %v2842_v6 = vmul.f32 0.2, %v1714_v62 }
 0x144   : > { %6084 = vst [vmem:[%s7003_s27 + $0xb8] sm:$0xff] %v5540_v1   ;;  %v3093_v8 = vsel %vm2581_vm2, %v1693_v57, %v2837_v3  ;;  %vm2714_vm5 = vcmp.gt.f32.partialorder %v2226_v63, 0.0  ;;  %v2970_v9 = vmul.f32 0.2, %v2226_v63  ;;  %v1706_v10 = vadd.f32 %v7169_v39, %v7201_v20  ;;  %v7254_v16 = vpop.f32.mrf.mxu0  ;;  %v7256_v21 = vpop.f32.mrf.mxu1 }
 0x145   : > { %6148 = vst [vmem:[%s7003_s27 + $0x2b8] sm:$0xff] %v5860_v2   ;;  %v5535_v12 = vpack.c.bf16 %v3093_v8, %v3092_v55  ;;  %v3221_v13 = vsel %vm2709_vm3, %v2205_v58, %v2965_v5  ;;  %v3098_v14 = vsel %vm2586_vm4, %v1714_v62, %v2842_v6  ;;  %v2218_v15 = vadd.f32 %v7169_v39, %v7206_v25 }
 0x146   : > { %v5855_v17 = vpack.c.bf16 %v3221_v13, %v3220_v56  ;;  %v3226_v18 = vsel %vm2714_vm5, %v2226_v63, %v2970_v9  ;;  %vm2584_vm6 = vcmp.gt.f32.partialorder %v1706_v10, 0.0  ;;  %v2840_v19 = vmul.f32 0.2, %v1706_v10  ;;  %v7263_v24 = vpop.f32.mrf.mxu0  ;;  %v7271_v29 = vpop.f32.mrf.mxu1 }
 0x147   : > { %6083 = vst [vmem:[%s7003_s27 + $0xb0] sm:$0xff] %v5535_v12   ;;  %vm2712_vm0 = vcmp.gt.f32.partialorder %v2218_v15, 0.0  ;;  %v2968_v20 = vmul.f32 0.2, %v2218_v15  ;;  %v1717_v22 = vadd.f32 %v7169_v39, %v7209_v30  ;;  %v2229_v23 = vadd.f32 %v7169_v39, %v7211_v34 }
 0x148   : > { %6147 = vst [vmem:[%s7003_s27 + $0x2b0] sm:$0xff] %v5855_v17   ;;  %v3096_v25 = vsel %vm2584_vm6, %v1706_v10, %v2840_v19  ;;  %v1709_v26 = vadd.f32 %v7169_v39, %v7214_v37  ;;  %v2221_v27 = vadd.f32 %v7169_v39, %v7223_v43  ;;  %v1730_v28 = vadd.f32 %v7169_v39, %v6377_v48  ;;  %v7273_v32 = vpop.f32.mrf.mxu0  ;;  %v7275_v35 = vpop.f32.mrf.mxu1 }
 0x149   : > { %v3224_v31 = vsel %vm2712_vm0, %v2218_v15, %v2968_v20  ;;  %vm2587_vm7 = vcmp.gt.f32.partialorder %v1717_v22, 0.0  ;;  %v2843_v30 = vmul.f32 0.2, %v1717_v22  ;;  %vm2715_vm8 = vcmp.gt.f32.partialorder %v2229_v23, 0.0 }
 0x14a   : > { %v2971_v33 = vmul.f32 0.2, %v2229_v23  ;;  %vm2585_vm9 = vcmp.gt.f32.partialorder %v1709_v26, 0.0  ;;  %v2841_v34 = vmul.f32 0.2, %v1709_v26  ;;  %vm2713_vm10 = vcmp.gt.f32.partialorder %v2221_v27, 0.0  ;;  %v7277_v40 = vpop.f32.mrf.mxu0  ;;  %v7281_v45 = vpop.f32.mrf.mxu1 }
 0x14b   : > { %v3099_v36 = vsel %vm2587_vm7, %v1717_v22, %v2843_v30  ;;  %v2969_v37 = vmul.f32 0.2, %v2221_v27  ;;  %vm2590_vm11 = vcmp.gt.f32.partialorder %v1730_v28, 0.0  ;;  %v2846_v38 = vmul.f32 0.2, %v1730_v28 }
 0x14c   : > { %v5550_v41 = vpack.c.bf16 %v3099_v36, %v3098_v14  ;;  %v3227_v42 = vsel %vm2715_vm8, %v2229_v23, %v2971_v33  ;;  %v3097_v43 = vsel %vm2585_vm9, %v1709_v26, %v2841_v34  ;;  %v2242_v44 = vadd.f32 %v7169_v39, %v7226_v52  ;;  %v7283_v50 = vpop.f32.mrf.mxu0  ;;  %v7288_v56 = vpop.f32.mrf.mxu1 }
 0x14d   : > { %v5870_v46 = vpack.c.bf16 %v3227_v42, %v3226_v18  ;;  %v5545_v47 = vpack.c.bf16 %v3097_v43, %v3096_v25  ;;  %v3225_v48 = vsel %vm2713_vm10, %v2221_v27, %v2969_v37  ;;  %v3102_v49 = vsel %vm2590_vm11, %v1730_v28, %v2846_v38 }
 0x14e   : > { %6086 = vst [vmem:[%s7003_s27 + $0xc8] sm:$0xff] %v5550_v41   ;;  %v5865_v51 = vpack.c.bf16 %v3225_v48, %v3224_v31  ;;  %vm2718_vm12 = vcmp.gt.f32.partialorder %v2242_v44, 0.0  ;;  %v2974_v53 = vmul.f32 0.2, %v2242_v44  ;;  %v1722_v55 = vadd.f32 %v7169_v39, %v7229_v54  ;;  %v7300_v61 = vpop.f32.mrf.mxu0  ;;  %v7305_v1 = vpop.f32.mrf.mxu1 }
 0x14f   : > { %6150 = vst [vmem:[%s7003_s27 + $0x2c8] sm:$0xff] %v5870_v46   ;;  %6085 = vst [vmem:[%s7003_s27 + $0xc0] sm:$0xff] %v5545_v47   ;;  %v2234_v52 = vadd.f32 %v7169_v39, %v7235_v59  ;;  %v1733_v57 = vadd.f32 %v7169_v39, %v7240_v0  ;;  %v2245_v58 = vadd.f32 %v7169_v39, %v7242_v4 }
 0x150   : > { %v1725_v60 = vadd.f32 %v7169_v39, %v7244_v7  ;;  %6149 = vst [vmem:[%s7003_s27 + $0x2c0] sm:$0xff] %v5865_v51   ;;  %v3230_v54 = vsel %vm2718_vm12, %v2242_v44, %v2974_v53  ;;  %vm2588_vm13 = vcmp.gt.f32.partialorder %v1722_v55, 0.0  ;;  %v2844_v62 = vmul.f32 0.2, %v1722_v55  ;;  %v7307_v2 = vpop.f32.mrf.mxu0  ;;  %v7309_v5 = vpop.f32.mrf.mxu1 }
 0x151   : > { %v2237_v63 = vadd.f32 %v7169_v39, %v7250_v11  ;;  %vm2716_vm14 = vcmp.gt.f32.partialorder %v2234_v52, 0.0  ;;  %v2972_v59 = vmul.f32 0.2, %v2234_v52  ;;  %vm2591_vm15 = vcmp.gt.f32.partialorder %v1733_v57, 0.0 }
 0x152   : > { %v2847_v0 = vmul.f32 0.2, %v1733_v57  ;;  %v3100_v3 = vsel %vm2588_vm13, %v1722_v55, %v2844_v62  ;;  %vm2719_vm1 = vcmp.gt.f32.partialorder %v2245_v58, 0.0  ;;  %v2975_v4 = vmul.f32 0.2, %v2245_v58  ;;  %v7311_v9 = vpop.f32.mrf.mxu0  ;;  %v7315_v14 = vpop.f32.mrf.mxu1 }
 0x153   : > { %vm2589_vm2 = vcmp.gt.f32.partialorder %v1725_v60, 0.0  ;;  %v3228_v6 = vsel %vm2716_vm14, %v2234_v52, %v2972_v59  ;;  %v2845_v8 = vmul.f32 0.2, %v1725_v60  ;;  %vm2717_vm3 = vcmp.gt.f32.partialorder %v2237_v63, 0.0 }
 0x154   : > { %v3103_v7 = vsel %vm2591_vm15, %v1733_v57, %v2847_v0  ;;  %v3231_v11 = vsel %vm2719_vm1, %v2245_v58, %v2975_v4  ;;  %v2973_v12 = vmul.f32 0.2, %v2237_v63  ;;  %v1746_v13 = vadd.f32 %v7169_v39, %v7254_v16  ;;  %v7321_v20 = vpop.f32.mrf.mxu0  ;;  %v7324_v16 = vpop.f32.mrf.mxu1 }
 0x155   : > { %v5560_v10 = vpack.c.bf16 %v3103_v7, %v3102_v49  ;;  %v5880_v15 = vpack.c.bf16 %v3231_v11, %v3230_v54  ;;  %v3101_v17 = vsel %vm2589_vm2, %v1725_v60, %v2845_v8  ;;  %v2258_v18 = vadd.f32 %v7169_v39, %v7256_v21 }
 0x156   : > { %v1738_v19 = vadd.f32 %v7169_v39, %v7263_v24  ;;  %v5555_v22 = vpack.c.bf16 %v3101_v17, %v3100_v3  ;;  %v3229_v23 = vsel %vm2717_vm3, %v2237_v63, %v2973_v12  ;;  %vm2594_vm4 = vcmp.gt.f32.partialorder %v1746_v13, 0.0  ;;  %v7327_v28 = vpop.f32.mrf.mxu0  ;;  %v7334_v33 = vpop.f32.mrf.mxu1 }
 0x157   : > { %6088 = vst [vmem:[%s7003_s27 + $0xd8] sm:$0xff] %v5560_v10   ;;  %v2850_v25 = vmul.f32 0.2, %v1746_v13  ;;  %6152 = vst [vmem:[%s7003_s27 + $0x2d8] sm:$0xff] %v5880_v15   ;;  %v5875_v26 = vpack.c.bf16 %v3229_v23, %v3228_v6  ;;  %vm2722_vm5 = vcmp.gt.f32.partialorder %v2258_v18, 0.0  ;;  %v2250_v31 = vadd.f32 %v7169_v39, %v7271_v29 }
 0x158   : > { %v2978_v27 = vmul.f32 0.2, %v2258_v18  ;;  %vm2592_vm6 = vcmp.gt.f32.partialorder %v1738_v19, 0.0  ;;  %6087 = vst [vmem:[%s7003_s27 + $0xd0] sm:$0xff] %v5555_v22   ;;  %v2848_v24 = vmul.f32 0.2, %v1738_v19  ;;  %v1749_v30 = vadd.f32 %v7169_v39, %v7273_v32  ;;  %v7343_v41 = vpop.f32.mrf.mxu0  ;;  %v7345_v32 = vpop.f32.mrf.mxu1 }
 0x159   : > { %v3106_v21 = vsel %vm2594_vm4, %v1746_v13, %v2850_v25  ;;  %6151 = vst [vmem:[%s7003_s27 + $0x2d0] sm:$0xff] %v5875_v26   ;;  %v2261_v36 = vadd.f32 %v7169_v39, %v7275_v35  ;;  %v1741_v37 = vadd.f32 %v7169_v39, %v7277_v40  ;;  %v2253_v38 = vadd.f32 %v7169_v39, %v7281_v45 }
 0x15a   : > { %v3234_v34 = vsel %vm2722_vm5, %v2258_v18, %v2978_v27  ;;  %v3104_v42 = vsel %vm2592_vm6, %v1738_v19, %v2848_v24  ;;  %vm2720_vm0 = vcmp.gt.f32.partialorder %v2250_v31, 0.0  ;;  %v2976_v29 = vmul.f32 0.2, %v2250_v31  ;;  %v7347_v46 = vpop.f32.mrf.mxu0  ;;  %v7349_v48 = vpop.f32.mrf.mxu1 }
 0x15b   : > { %vm2595_vm7 = vcmp.gt.f32.partialorder %v1749_v30, 0.0  ;;  %v2851_v43 = vmul.f32 0.2, %v1749_v30  ;;  %vm2723_vm8 = vcmp.gt.f32.partialorder %v2261_v36, 0.0  ;;  %v2979_v44 = vmul.f32 0.2, %v2261_v36 }
 0x15c   : > { %vm2593_vm9 = vcmp.gt.f32.partialorder %v1741_v37, 0.0  ;;  %v3232_v35 = vsel %vm2720_vm0, %v2250_v31, %v2976_v29  ;;  %v2849_v47 = vmul.f32 0.2, %v1741_v37  ;;  %vm2721_vm10 = vcmp.gt.f32.partialorder %v2253_v38, 0.0  ;;  %v7355_v55 = vpop.f32.mrf.mxu0  ;;  %v7357_v54 = vpop.f32.mrf.mxu1 }
 0x15d   : > { %v2977_v40 = vmul.f32 0.2, %v2253_v38  ;;  %v3107_v45 = vsel %vm2595_vm7, %v1749_v30, %v2851_v43  ;;  %v3235_v49 = vsel %vm2723_vm8, %v2261_v36, %v2979_v44  ;;  %v1762_v51 = vadd.f32 %v7169_v39, %v7283_v50 }
 0x15e   : > { %v2274_v53 = vadd.f32 %v7169_v39, %v7288_v56  ;;  %v5570_v52 = vpack.c.bf16 %v3107_v45, %v3106_v21  ;;  %v5890_v57 = vpack.c.bf16 %v3235_v49, %v3234_v34  ;;  %v3105_v58 = vsel %vm2593_vm9, %v1741_v37, %v2849_v47  ;;  %v7359_v0 = vpop.f32.mrf.mxu0  ;;  %v7367_v4 = vpop.f32.mrf.mxu1 }
 0x15f   : > { %v3233_v60 = vsel %vm2721_vm10, %v2253_v38, %v2977_v40  ;;  %v5565_v62 = vpack.c.bf16 %v3105_v58, %v3104_v42  ;;  %vm2598_vm11 = vcmp.gt.f32.partialorder %v1762_v51, 0.0  ;;  %v2854_v59 = vmul.f32 0.2, %v1762_v51 }
 0x160   : > { %v5885_v63 = vpack.c.bf16 %v3233_v60, %v3232_v35  ;;  %6090 = vst [vmem:[%s7003_s27 + $0xe8] sm:$0xff] %v5570_v52   ;;  %6154 = vst [vmem:[%s7003_s27 + $0x2e8] sm:$0xff] %v5890_v57   ;;  %vm2726_vm12 = vcmp.gt.f32.partialorder %v2274_v53, 0.0  ;;  %v2982_v50 = vmul.f32 0.2, %v2274_v53  ;;  %v1754_v56 = vadd.f32 %v7169_v39, %v7300_v61  ;;  %v7377_v11 = vpop.f32.mrf.mxu0 }
 0x161   : > { %v2266_v3 = vadd.f32 %v7169_v39, %v7305_v1  ;;  %6089 = vst [vmem:[%s7003_s27 + $0xe0] sm:$0xff] %v5565_v62   ;;  %v3110_v6 = vsel %vm2598_vm11, %v1762_v51, %v2854_v59  ;;  %v1765_v7 = vadd.f32 %v7169_v39, %v7307_v2  ;;  %v2277_v8 = vadd.f32 %v7169_v39, %v7309_v5  ;;  %v7379_v1 = vpop.f32.mrf.mxu1 }
 0x162   : > { %6153 = vst [vmem:[%s7003_s27 + $0x2e0] sm:$0xff] %v5885_v63   ;;  %v1757_v10 = vadd.f32 %v7169_v39, %v7311_v9  ;;  %v3238_v61 = vsel %vm2726_vm12, %v2274_v53, %v2982_v50  ;;  %vm2596_vm13 = vcmp.gt.f32.partialorder %v1754_v56, 0.0  ;;  %v2852_v12 = vmul.f32 0.2, %v1754_v56  ;;  %v7381_v17 = vpop.f32.mrf.mxu0 }
 0x163   : > { %vm2724_vm14 = vcmp.gt.f32.partialorder %v2266_v3, 0.0  ;;  %v2980_v13 = vmul.f32 0.2, %v2266_v3  ;;  %vm2599_vm15 = vcmp.gt.f32.partialorder %v1765_v7, 0.0  ;;  %v2855_v15 = vmul.f32 0.2, %v1765_v7  ;;  %v7383_v19 = vpop.f32.mrf.mxu1 }
 0x164   : > { %vm2727_vm1 = vcmp.gt.f32.partialorder %v2277_v8, 0.0  ;;  %v3108_v2 = vsel %vm2596_vm13, %v1754_v56, %v2852_v12  ;;  %v2983_v18 = vmul.f32 0.2, %v2277_v8  ;;  %vm2597_vm2 = vcmp.gt.f32.partialorder %v1757_v10, 0.0  ;;  %v7389_v26 = vpop.f32.mrf.mxu0 }
 0x165   : > { %v2853_v5 = vmul.f32 0.2, %v1757_v10  ;;  %v3236_v9 = vsel %vm2724_vm14, %v2266_v3, %v2980_v13  ;;  %v3111_v22 = vsel %vm2599_vm15, %v1765_v7, %v2855_v15  ;;  %v2269_v23 = vadd.f32 %v7169_v39, %v7315_v14  ;;  %v7393_v30 = vpop.f32.mrf.mxu1 }
 0x166   : > { %v1778_v25 = vadd.f32 %v7169_v39, %v7321_v20  ;;  %v5580_v27 = vpack.c.bf16 %v3111_v22, %v3110_v6  ;;  %v3239_v21 = vsel %vm2727_vm1, %v2277_v8, %v2983_v18  ;;  %v2290_v31 = vadd.f32 %v7169_v39, %v7324_v16  ;;  %v7395_v14 = vpop.f32.mrf.mxu0 }
 0x167   : > { %v3109_v24 = vsel %vm2597_vm2, %v1757_v10, %v2853_v5  ;;  %v5900_v34 = vpack.c.bf16 %v3239_v21, %v3238_v61  ;;  %vm2725_vm3 = vcmp.gt.f32.partialorder %v2269_v23, 0.0  ;;  %v2981_v37 = vmul.f32 0.2, %v2269_v23  ;;  %v7398_v42 = vpop.f32.mrf.mxu1 }
 0x168   : > { %v5575_v36 = vpack.c.bf16 %v3109_v24, %v3108_v2  ;;  %6092 = vst [vmem:[%s7003_s27 + $0xf8] sm:$0xff] %v5580_v27   ;;  %vm2602_vm4 = vcmp.gt.f32.partialorder %v1778_v25, 0.0  ;;  %v2858_v20 = vmul.f32 0.2, %v1778_v25  ;;  %vm2730_vm5 = vcmp.gt.f32.partialorder %v2290_v31, 0.0  ;;  %v7408_v35 = vpop.f32.mrf.mxu0 }
 0x169   : > { %v2986_v38 = vmul.f32 0.2, %v2290_v31  ;;  %6156 = vst [vmem:[%s7003_s27 + $0x2f8] sm:$0xff] %v5900_v34   ;;  %v3237_v29 = vsel %vm2725_vm3, %v2269_v23, %v2981_v37  ;;  %v1770_v16 = vadd.f32 %v7169_v39, %v7327_v28  ;;  %v2282_v43 = vadd.f32 %v7169_v39, %v7334_v33  ;;  %v7412_v51 = vpop.f32.mrf.mxu1 }
 0x16a   : > { %6091 = vst [vmem:[%s7003_s27 + $0xf0] sm:$0xff] %v5575_v36   ;;  %v1781_v44 = vadd.f32 %v7169_v39, %v7343_v41  ;;  %v5895_v47 = vpack.c.bf16 %v3237_v29, %v3236_v9  ;;  %v3114_v40 = vsel %vm2602_vm4, %v1778_v25, %v2858_v20  ;;  %v2293_v49 = vadd.f32 %v7169_v39, %v7345_v32  ;;  %v7414_v52 = vpop.f32.mrf.mxu0 }
 0x16b   : > { %v3242_v45 = vsel %vm2730_vm5, %v2290_v31, %v2986_v38  ;;  %vm2600_vm6 = vcmp.gt.f32.partialorder %v1770_v16, 0.0  ;;  %v2856_v53 = vmul.f32 0.2, %v1770_v16  ;;  %vm2728_vm0 = vcmp.gt.f32.partialorder %v2282_v43, 0.0  ;;  %v7417_v57 = vpop.f32.mrf.mxu1 }
 0x16c   : > { %v2984_v28 = vmul.f32 0.2, %v2282_v43  ;;  %6155 = vst [vmem:[%s7003_s27 + $0x2f0] sm:$0xff] %v5895_v47   ;;  %vm2603_vm7 = vcmp.gt.f32.partialorder %v1781_v44, 0.0  ;;  %v2859_v33 = vmul.f32 0.2, %v1781_v44  ;;  %v1773_v32 = vadd.f32 %v7169_v39, %v7347_v46  ;;  %v7423_v63 = vpop.f32.mrf.mxu0 }
 0x16d   : > { %vm2731_vm8 = vcmp.gt.f32.partialorder %v2293_v49, 0.0  ;;  %v2987_v41 = vmul.f32 0.2, %v2293_v49  ;;  %v3112_v58 = vsel %vm2600_vm6, %v1770_v16, %v2856_v53  ;;  %v2285_v62 = vadd.f32 %v7169_v39, %v7349_v48  ;;  %v7429_v6 = vpop.f32.mrf.mxu1 }
 0x16e   : > { %v3240_v60 = vsel %vm2728_vm0, %v2282_v43, %v2984_v28  ;;  %v3115_v59 = vsel %vm2603_vm7, %v1781_v44, %v2859_v33  ;;  %v1794_v56 = vadd.f32 %v7169_v39, %v7355_v55  ;;  %v2306_v3 = vadd.f32 %v7169_v39, %v7357_v54  ;;  %v7431_v10 = vpop.f32.mrf.mxu0 }
 0x16f   : > { %v3243_v50 = vsel %vm2731_vm8, %v2293_v49, %v2987_v41  ;;  %v5590_v7 = vpack.c.bf16 %v3115_v59, %v3114_v40  ;;  %vm2601_vm9 = vcmp.gt.f32.partialorder %v1773_v32, 0.0  ;;  %v2857_v46 = vmul.f32 0.2, %v1773_v32  ;;  %v7433_v12 = vpop.f32.mrf.mxu1 }
 0x170   : > { %v5910_v8 = vpack.c.bf16 %v3243_v50, %v3242_v45  ;;  %vm2729_vm10 = vcmp.gt.f32.partialorder %v2285_v62, 0.0  ;;  %v2985_v48 = vmul.f32 0.2, %v2285_v62  ;;  %vm2606_vm11 = vcmp.gt.f32.partialorder %v1794_v56, 0.0  ;;  %v7439_v15 = vpop.f32.mrf.mxu0 }
 0x171   : > { %v2862_v61 = vmul.f32 0.2, %v1794_v56  ;;  %6094 = vst [vmem:[%s7003_s27 + $0x108] sm:$0xff] %v5590_v7   ;;  %v3113_v55 = vsel %vm2601_vm9, %v1773_v32, %v2857_v46  ;;  %vm2734_vm12 = vcmp.gt.f32.partialorder %v2306_v3, 0.0  ;;  %v2990_v54 = vmul.f32 0.2, %v2306_v3  ;;  %v7443_v22 = vpop.f32.mrf.mxu1 }
 0x172   : > { %6158 = vst [vmem:[%s7003_s27 + $0x308] sm:$0xff] %v5910_v8   ;;  %v1786_v13 = vadd.f32 %v7169_v39, %v7359_v0  ;;  %v5585_v2 = vpack.c.bf16 %v3113_v55, %v3112_v58  ;;  %v3241_v18 = vsel %vm2729_vm10, %v2285_v62, %v2985_v48  ;;  %v2298_v9 = vadd.f32 %v7169_v39, %v7367_v4  ;;  %v7445_v21 = vpop.f32.mrf.mxu0 }
 0x173   : > { %v3118_v5 = vsel %vm2606_vm11, %v1794_v56, %v2862_v61  ;;  %v5905_v23 = vpack.c.bf16 %v3241_v18, %v3240_v60  ;;  %v3246_v25 = vsel %vm2734_vm12, %v2306_v3, %v2990_v54  ;;  %v1797_v24 = vadd.f32 %v7169_v39, %v7377_v11  ;;  %v7452_v34 = vpop.f32.mrf.mxu1 }
 0x174   : > { %vm2604_vm13 = vcmp.gt.f32.partialorder %v1786_v13, 0.0  ;;  %v2860_v27 = vmul.f32 0.2, %v1786_v13  ;;  %6093 = vst [vmem:[%s7003_s27 + $0x100] sm:$0xff] %v5585_v2   ;;  %vm2732_vm14 = vcmp.gt.f32.partialorder %v2298_v9, 0.0  ;;  %v2309_v31 = vadd.f32 %v7169_v39, %v7379_v1  ;;  %v7461_v38 = vpop.f32.mrf.mxu0 }
 0x175   : > { %v2988_v0 = vmul.f32 0.2, %v2298_v9  ;;  %6157 = vst [vmem:[%s7003_s27 + $0x300] sm:$0xff] %v5905_v23   ;;  %v1789_v36 = vadd.f32 %v7169_v39, %v7381_v17  ;;  %v2301_v37 = vadd.f32 %v7169_v39, %v7383_v19  ;;  %v1810_v20 = vadd.f32 %v7169_v39, %v7389_v26  ;;  %v7463_v1 = vpop.f32.mrf.mxu1 }
 0x176   : > { %v3116_v4 = vsel %vm2604_vm13, %v1786_v13, %v2860_v27  ;;  %vm2607_vm15 = vcmp.gt.f32.partialorder %v1797_v24, 0.0  ;;  %v2863_v11 = vmul.f32 0.2, %v1797_v24  ;;  %vm2735_vm1 = vcmp.gt.f32.partialorder %v2309_v31, 0.0  ;;  %v7465_v44 = vpop.f32.mrf.mxu0 }
 0x177   : > { %v3244_v29 = vsel %vm2732_vm14, %v2298_v9, %v2988_v0  ;;  %v2991_v16 = vmul.f32 0.2, %v2309_v31  ;;  %vm2605_vm2 = vcmp.gt.f32.partialorder %v1789_v36, 0.0  ;;  %v2861_v43 = vmul.f32 0.2, %v1789_v36  ;;  %v7467_v26 = vpop.f32.mrf.mxu1 }
 0x178   : > { %vm2733_vm3 = vcmp.gt.f32.partialorder %v2301_v37, 0.0  ;;  %v3119_v17 = vsel %vm2607_vm15, %v1797_v24, %v2863_v11  ;;  %v2989_v19 = vmul.f32 0.2, %v2301_v37  ;;  %vm2610_vm4 = vcmp.gt.f32.partialorder %v1810_v20, 0.0  ;;  %v7471_v28 = vpop.f32.mrf.mxu0 }
 0x179   : > { %v2866_v47 = vmul.f32 0.2, %v1810_v20  ;;  %v5600_v40 = vpack.c.bf16 %v3119_v17, %v3118_v5  ;;  %v3247_v45 = vsel %vm2735_vm1, %v2309_v31, %v2991_v16  ;;  %v3117_v49 = vsel %vm2605_vm2, %v1789_v36, %v2861_v43  ;;  %v7473_v32 = vpop.f32.mrf.mxu1 }
 0x17a   : > { %v2322_v53 = vadd.f32 %v7169_v39, %v7393_v30  ;;  %v5920_v33 = vpack.c.bf16 %v3247_v45, %v3246_v25  ;;  %v5595_v41 = vpack.c.bf16 %v3117_v49, %v3116_v4  ;;  %v3245_v58 = vsel %vm2733_vm3, %v2301_v37, %v2989_v19  ;;  %v7478_v56 = vpop.f32.mrf.mxu0 }
 0x17b   : > { %v3122_v60 = vsel %vm2610_vm4, %v1810_v20, %v2866_v47  ;;  %6096 = vst [vmem:[%s7003_s27 + $0x118] sm:$0xff] %v5600_v40   ;;  %v5915_v62 = vpack.c.bf16 %v3245_v58, %v3244_v29  ;;  %v1802_v50 = vadd.f32 %v7169_v39, %v7395_v14  ;;  %v2314_v30 = vadd.f32 %v7169_v39, %v7398_v42  ;;  %v7490_v46 = vpop.f32.mrf.mxu1 }
 0x17c   : > { %vm2738_vm5 = vcmp.gt.f32.partialorder %v2322_v53, 0.0  ;;  %v2994_v59 = vmul.f32 0.2, %v2322_v53  ;;  %6160 = vst [vmem:[%s7003_s27 + $0x318] sm:$0xff] %v5920_v33   ;;  %6095 = vst [vmem:[%s7003_s27 + $0x110] sm:$0xff] %v5595_v41   ;;  %v1813_v3 = vadd.f32 %v7169_v39, %v7408_v35  ;;  %v2325_v7 = vadd.f32 %v7169_v39, %v7412_v51  ;;  %v7495_v55 = vpop.f32.mrf.mxu0 }
 0x17d   : > { %v1805_v8 = vadd.f32 %v7169_v39, %v7414_v52  ;;  %6159 = vst [vmem:[%s7003_s27 + $0x310] sm:$0xff] %v5915_v62   ;;  %vm2608_vm6 = vcmp.gt.f32.partialorder %v1802_v50, 0.0  ;;  %v2864_v48 = vmul.f32 0.2, %v1802_v50  ;;  %v2317_v61 = vadd.f32 %v7169_v39, %v7417_v57  ;;  %v7497_v54 = vpop.f32.mrf.mxu1 }
 0x17e   : > { %v3250_v14 = vsel %vm2738_vm5, %v2322_v53, %v2994_v59  ;;  %vm2736_vm0 = vcmp.gt.f32.partialorder %v2314_v30, 0.0  ;;  %v2992_v42 = vmul.f32 0.2, %v2314_v30  ;;  %vm2611_vm7 = vcmp.gt.f32.partialorder %v1813_v3, 0.0  ;;  %v7499_v13 = vpop.f32.mrf.mxu0 }
 0x17f   : > { %v2867_v35 = vmul.f32 0.2, %v1813_v3  ;;  %v3120_v51 = vsel %vm2608_vm6, %v1802_v50, %v2864_v48  ;;  %vm2739_vm8 = vcmp.gt.f32.partialorder %v2325_v7, 0.0  ;;  %v2995_v52 = vmul.f32 0.2, %v2325_v7  ;;  %v7501_v57 = vpop.f32.mrf.mxu1 }
 0x180   : > { %vm2609_vm9 = vcmp.gt.f32.partialorder %v1805_v8, 0.0  ;;  %v3248_v2 = vsel %vm2736_vm0, %v2314_v30, %v2992_v42  ;;  %v2865_v5 = vmul.f32 0.2, %v1805_v8  ;;  %vm2737_vm10 = vcmp.gt.f32.partialorder %v2317_v61, 0.0  ;;  %v7505_v0 = vpop.f32.mrf.mxu0 }
 0x181   : > { %v3123_v18 = vsel %vm2611_vm7, %v1813_v3, %v2867_v35  ;;  %v3251_v23 = vsel %vm2739_vm8, %v2325_v7, %v2995_v52  ;;  %v2993_v25 = vmul.f32 0.2, %v2317_v61  ;;  %v1826_v27 = vadd.f32 %v7169_v39, %v7423_v63  ;;  %v7511_v37 = vpop.f32.mrf.mxu1  ;;  %v7544_v3 = vld [vmem:[%s7908_s2] ss:$0 sm:$0xff] }
 0x182   : > { %v5610_v9 = vpack.c.bf16 %v3123_v18, %v3122_v60  ;;  %v5930_v24 = vpack.c.bf16 %v3251_v23, %v3250_v14  ;;  %v3121_v31 = vsel %vm2609_vm9, %v1805_v8, %v2865_v5  ;;  %v2338_v4 = vadd.f32 %v7169_v39, %v7429_v6  ;;  %v7514_v63 = vpop.f32.mrf.mxu0 }
 0x183   : > { %v1818_v36 = vadd.f32 %v7169_v39, %v7431_v10  ;;  %v5605_v20 = vpack.c.bf16 %v3121_v31, %v3120_v51  ;;  %v3249_v29 = vsel %vm2737_vm10, %v2317_v61, %v2993_v25  ;;  %vm2614_vm11 = vcmp.gt.f32.partialorder %v1826_v27, 0.0  ;;  %v7517_v17 = vpop.f32.mrf.mxu1 }
 0x184   : > { %6098 = vst [vmem:[%s7003_s27 + $0x128] sm:$0xff] %v5610_v9   ;;  %v2870_v11 = vmul.f32 0.2, %v1826_v27  ;;  %6162 = vst [vmem:[%s7003_s27 + $0x328] sm:$0xff] %v5930_v24   ;;  %v5925_v16 = vpack.c.bf16 %v3249_v29, %v3248_v2  ;;  %vm2742_vm12 = vcmp.gt.f32.partialorder %v2338_v4, 0.0  ;;  %v2330_v19 = vadd.f32 %v7169_v39, %v7433_v12  ;;  %v7524_v40 = vpop.f32.mrf.mxu0 }
 0x185   : > { %v2998_v43 = vmul.f32 0.2, %v2338_v4  ;;  %vm2612_vm13 = vcmp.gt.f32.partialorder %v1818_v36, 0.0  ;;  %6097 = vst [vmem:[%s7003_s27 + $0x120] sm:$0xff] %v5605_v20   ;;  %v2868_v10 = vmul.f32 0.2, %v1818_v36  ;;  %v1829_v47 = vadd.f32 %v7169_v39, %v7439_v15  ;;  %v7533_v41 = vpop.f32.mrf.mxu1 }
 0x186   : > { %v3126_v6 = vsel %vm2614_vm11, %v1826_v27, %v2870_v11  ;;  %6161 = vst [vmem:[%s7003_s27 + $0x320] sm:$0xff] %v5925_v16   ;;  %v2341_v49 = vadd.f32 %v7169_v39, %v7443_v22  ;;  %v1821_v53 = vadd.f32 %v7169_v39, %v7445_v21  ;;  %v2333_v33 = vadd.f32 %v7169_v39, %v7452_v34  ;;  %v7535_v15 = vpop.f32.mrf.mxu0 }
 0x187   : > { %v3254_v45 = vsel %vm2742_vm12, %v2338_v4, %v2998_v43  ;;  %v3124_v58 = vsel %vm2612_vm13, %v1818_v36, %v2868_v10  ;;  %vm2740_vm14 = vcmp.gt.f32.partialorder %v2330_v19, 0.0  ;;  %v2996_v12 = vmul.f32 0.2, %v2330_v19  ;;  %v7537_v59 = vpop.f32.mrf.mxu1 }
 0x188   : > { %vm2615_vm15 = vcmp.gt.f32.partialorder %v1829_v47, 0.0  ;;  %v2871_v60 = vmul.f32 0.2, %v1829_v47  ;;  %vm2743_vm1 = vcmp.gt.f32.partialorder %v2341_v49, 0.0  ;;  %v2999_v62 = vmul.f32 0.2, %v2341_v49  ;;  %v7539_v30 = vpop.f32.mrf.mxu0 }
 0x189   : > { %vm2613_vm2 = vcmp.gt.f32.partialorder %v1821_v53, 0.0  ;;  %v3252_v22 = vsel %vm2740_vm14, %v2330_v19, %v2996_v12  ;;  %v2869_v50 = vmul.f32 0.2, %v1821_v53  ;;  %vm2741_vm3 = vcmp.gt.f32.partialorder %v2333_v33, 0.0  ;;  %v7550_v14 = vpop.f32.mrf.mxu1 }
 0x18a   : > { %v2997_v21 = vmul.f32 0.2, %v2333_v33  ;;  %v3127_v39 = vsel %vm2615_vm15, %v1829_v47, %v2871_v60  ;;  %v3255_v34 = vsel %vm2743_vm1, %v2341_v49, %v2999_v62  ;;  %v1842_v7 = vadd.f32 %v7544_v3, %v7461_v38  ;;  %v7552_v51 = vpop.f32.mrf.mxu0 }
 0x18b   : > { %v2354_v8 = vadd.f32 %v7544_v3, %v7463_v1  ;;  %v5620_v48 = vpack.c.bf16 %v3127_v39, %v3126_v6  ;;  %v5940_v61 = vpack.c.bf16 %v3255_v34, %v3254_v45  ;;  %v3125_v42 = vsel %vm2613_vm2, %v1821_v53, %v2869_v50  ;;  %v7554_v5 = vpop.f32.mrf.mxu1 }
 0x18c   : > { %v3253_v35 = vsel %vm2741_vm3, %v2333_v33, %v2997_v21  ;;  %v5615_v52 = vpack.c.bf16 %v3125_v42, %v3124_v58  ;;  %vm2618_vm4 = vcmp.gt.f32.partialorder %v1842_v7, 0.0  ;;  %v2874_v18 = vmul.f32 0.2, %v1842_v7  ;;  %v7562_v23 = vpop.f32.mrf.mxu0 }
 0x18d   : > { %v5935_v2 = vpack.c.bf16 %v3253_v35, %v3252_v22  ;;  %6100 = vst [vmem:[%s7003_s27 + $0x138] sm:$0xff] %v5620_v48   ;;  %6164 = vst [vmem:[%s7003_s27 + $0x338] sm:$0xff] %v5940_v61   ;;  %vm2746_vm5 = vcmp.gt.f32.partialorder %v2354_v8, 0.0  ;;  %v3002_v38 = vmul.f32 0.2, %v2354_v8  ;;  %v1834_v1 = vadd.f32 %v7544_v3, %v7465_v44  ;;  %v7572_v4 = vpop.f32.mrf.mxu1 }
 0x18e   : > { %v2346_v9 = vadd.f32 %v7544_v3, %v7467_v26  ;;  %6099 = vst [vmem:[%s7003_s27 + $0x130] sm:$0xff] %v5615_v52   ;;  %v3130_v25 = vsel %vm2618_vm4, %v1842_v7, %v2874_v18  ;;  %v1845_v27 = vadd.f32 %v7544_v3, %v7471_v28  ;;  %v2357_v24 = vadd.f32 %v7544_v3, %v7473_v32  ;;  %v7574_v26 = vpop.f32.mrf.mxu0 }
 0x18f   : > { %6163 = vst [vmem:[%s7003_s27 + $0x330] sm:$0xff] %v5935_v2   ;;  %v1837_v31 = vadd.f32 %v7544_v3, %v7478_v56  ;;  %v3258_v44 = vsel %vm2746_vm5, %v2354_v8, %v3002_v38  ;;  %vm2616_vm6 = vcmp.gt.f32.partialorder %v1834_v1, 0.0  ;;  %v2872_v36 = vmul.f32 0.2, %v1834_v1  ;;  %v7576_v11 = vpop.f32.mrf.mxu1 }
 0x190   : > { %vm2744_vm0 = vcmp.gt.f32.partialorder %v2346_v9, 0.0  ;;  %v3000_v20 = vmul.f32 0.2, %v2346_v9  ;;  %vm2619_vm7 = vcmp.gt.f32.partialorder %v1845_v27, 0.0  ;;  %v2875_v29 = vmul.f32 0.2, %v1845_v27  ;;  %v7578_v43 = vpop.f32.mrf.mxu0 }
 0x191   : > { %vm2747_vm8 = vcmp.gt.f32.partialorder %v2357_v24, 0.0  ;;  %v3128_v28 = vsel %vm2616_vm6, %v1834_v1, %v2872_v36  ;;  %v3003_v16 = vmul.f32 0.2, %v2357_v24  ;;  %vm2617_vm9 = vcmp.gt.f32.partialorder %v1837_v31, 0.0  ;;  %v7584_v47 = vpop.f32.mrf.mxu1 }
 0x192   : > { %v2873_v32 = vmul.f32 0.2, %v1837_v31  ;;  %v3256_v56 = vsel %vm2744_vm0, %v2346_v9, %v3000_v20  ;;  %v3131_v6 = vsel %vm2619_vm7, %v1845_v27, %v2875_v29  ;;  %v2349_v10 = vadd.f32 %v7544_v3, %v7490_v46  ;;  %v7588_v58 = vpop.f32.mrf.mxu0 }
 0x193   : > { %v1858_v19 = vadd.f32 %v7544_v3, %v7495_v55  ;;  %v5630_v45 = vpack.c.bf16 %v3131_v6, %v3130_v25  ;;  %v3259_v49 = vsel %vm2747_vm8, %v2357_v24, %v3003_v16  ;;  %v2370_v33 = vadd.f32 %v7544_v3, %v7497_v54  ;;  %v7590_v46 = vpop.f32.mrf.mxu1 }
 0x194   : > { %v3129_v53 = vsel %vm2617_vm9, %v1837_v31, %v2873_v32  ;;  %v5950_v12 = vpack.c.bf16 %v3259_v49, %v3258_v44  ;;  %vm2745_vm10 = vcmp.gt.f32.partialorder %v2349_v10, 0.0  ;;  %v3001_v62 = vmul.f32 0.2, %v2349_v10  ;;  %v7593_v50 = vpop.f32.mrf.mxu0 }
 0x195   : > { %v5625_v60 = vpack.c.bf16 %v3129_v53, %v3128_v28  ;;  %6102 = vst [vmem:[%s7003_s27 + $0x148] sm:$0xff] %v5630_v45   ;;  %vm2622_vm11 = vcmp.gt.f32.partialorder %v1858_v19, 0.0  ;;  %v2878_v55 = vmul.f32 0.2, %v1858_v19  ;;  %vm2750_vm12 = vcmp.gt.f32.partialorder %v2370_v33, 0.0  ;;  %v7603_v7 = vpop.f32.mrf.mxu1 }
 0x196   : > { %v3006_v22 = vmul.f32 0.2, %v2370_v33  ;;  %6166 = vst [vmem:[%s7003_s27 + $0x348] sm:$0xff] %v5950_v12   ;;  %v3257_v21 = vsel %vm2745_vm10, %v2349_v10, %v3001_v62  ;;  %v1850_v54 = vadd.f32 %v7544_v3, %v7499_v13  ;;  %v2362_v39 = vadd.f32 %v7544_v3, %v7501_v57  ;;  %v7607_v35 = vpop.f32.mrf.mxu0 }
 0x197   : > { %6101 = vst [vmem:[%s7003_s27 + $0x140] sm:$0xff] %v5625_v60   ;;  %v1861_v34 = vadd.f32 %v7544_v3, %v7505_v0  ;;  %v5945_v8 = vpack.c.bf16 %v3257_v21, %v3256_v56  ;;  %v3134_v48 = vsel %vm2622_vm11, %v1858_v19, %v2878_v55  ;;  %v2373_v42 = vadd.f32 %v7544_v3, %v7511_v37  ;;  %v7609_v2 = vpop.f32.mrf.mxu1 }
 0x198   : > { %v3262_v61 = vsel %vm2750_vm12, %v2370_v33, %v3006_v22  ;;  %vm2620_vm13 = vcmp.gt.f32.partialorder %v1850_v54, 0.0  ;;  %v2876_v52 = vmul.f32 0.2, %v1850_v54  ;;  %vm2748_vm14 = vcmp.gt.f32.partialorder %v2362_v39, 0.0  ;;  %v7612_v18 = vpop.f32.mrf.mxu0 }
 0x199   : > { %v3004_v13 = vmul.f32 0.2, %v2362_v39  ;;  %6165 = vst [vmem:[%s7003_s27 + $0x340] sm:$0xff] %v5945_v8   ;;  %vm2623_vm15 = vcmp.gt.f32.partialorder %v1861_v34, 0.0  ;;  %v2879_v57 = vmul.f32 0.2, %v1861_v34  ;;  %v1853_v37 = vadd.f32 %v7544_v3, %v7514_v63  ;;  %v7618_v25 = vpop.f32.mrf.mxu1 }
 0x19a   : > { %vm2751_vm1 = vcmp.gt.f32.partialorder %v2373_v42, 0.0  ;;  %v3007_v0 = vmul.f32 0.2, %v2373_v42  ;;  %v3132_v38 = vsel %vm2620_vm13, %v1850_v54, %v2876_v52  ;;  %v2365_v9 = vadd.f32 %v7544_v3, %v7517_v17  ;;  %v7624_v36 = vpop.f32.mrf.mxu0 }
 0x19b   : > { %v3260_v1 = vsel %vm2748_vm14, %v2362_v39, %v3004_v13  ;;  %v3135_v27 = vsel %vm2623_vm15, %v1861_v34, %v2879_v57  ;;  %v1874_v31 = vadd.f32 %v7544_v3, %v7524_v40  ;;  %v2386_v44 = vadd.f32 %v7544_v3, %v7533_v41  ;;  %v7626_v28 = vpop.f32.mrf.mxu1 }
 0x19c   : > { %v3263_v24 = vsel %vm2751_vm1, %v2373_v42, %v3007_v0  ;;  %v5640_v20 = vpack.c.bf16 %v3135_v27, %v3134_v48  ;;  %vm2621_vm2 = vcmp.gt.f32.partialorder %v1853_v37, 0.0  ;;  %v2877_v63 = vmul.f32 0.2, %v1853_v37  ;;  %v7628_v32 = vpop.f32.mrf.mxu0 }
 0x19d   : > { %v5960_v29 = vpack.c.bf16 %v3263_v24, %v3262_v61  ;;  %vm2749_vm3 = vcmp.gt.f32.partialorder %v2365_v9, 0.0  ;;  %v3005_v17 = vmul.f32 0.2, %v2365_v9  ;;  %vm2626_vm4 = vcmp.gt.f32.partialorder %v1874_v31, 0.0  ;;  %v7634_v6 = vpop.f32.mrf.mxu1 }
 0x19e   : > { %v2882_v16 = vmul.f32 0.2, %v1874_v31  ;;  %6104 = vst [vmem:[%s7003_s27 + $0x158] sm:$0xff] %v5640_v20   ;;  %v3133_v40 = vsel %vm2621_vm2, %v1853_v37, %v2877_v63  ;;  %vm2754_vm5 = vcmp.gt.f32.partialorder %v2386_v44, 0.0  ;;  %v3010_v41 = vmul.f32 0.2, %v2386_v44  ;;  %v7638_v53 = vpop.f32.mrf.mxu0 }
 0x19f   : > { %6168 = vst [vmem:[%s7003_s27 + $0x358] sm:$0xff] %v5960_v29   ;;  %v1866_v56 = vadd.f32 %v7544_v3, %v7535_v15  ;;  %v5635_v10 = vpack.c.bf16 %v3133_v40, %v3132_v38  ;;  %v3261_v19 = vsel %vm2749_vm3, %v2365_v9, %v3005_v17  ;;  %v2378_v49 = vadd.f32 %v7544_v3, %v7537_v59  ;;  %v7640_v62 = vpop.f32.mrf.mxu1 }
 0x1a0   : > { %v3138_v45 = vsel %vm2626_vm4, %v1874_v31, %v2882_v16  ;;  %v5955_v33 = vpack.c.bf16 %v3261_v19, %v3260_v1  ;;  %v3266_v12 = vsel %vm2754_vm5, %v2386_v44, %v3010_v41  ;;  %v1877_v55 = vadd.f32 %v7544_v3, %v7539_v30  ;;  %v7647_v21 = vpop.f32.mrf.mxu0 }
 0x1a1   : > { %vm2624_vm6 = vcmp.gt.f32.partialorder %v1866_v56, 0.0  ;;  %v2880_v60 = vmul.f32 0.2, %v1866_v56  ;;  %6103 = vst [vmem:[%s7003_s27 + $0x150] sm:$0xff] %v5635_v10   ;;  %vm2752_vm0 = vcmp.gt.f32.partialorder %v2378_v49, 0.0  ;;  %v2389_v22 = vadd.f32 %v7544_v3, %v7550_v14  ;;  %v7656_v8 = vpop.f32.mrf.mxu1 }
 0x1a2   : > { %v3008_v15 = vmul.f32 0.2, %v2378_v49  ;;  %6167 = vst [vmem:[%s7003_s27 + $0x350] sm:$0xff] %v5955_v33   ;;  %v1869_v54 = vadd.f32 %v7544_v3, %v7552_v51  ;;  %v2381_v39 = vadd.f32 %v7544_v3, %v7554_v5  ;;  %v1890_v34 = vadd.f32 %v7544_v3, %v7562_v23  ;;  %v7658_v14 = vpop.f32.mrf.mxu0 }
 0x1a3   : > { %v3136_v59 = vsel %vm2624_vm6, %v1866_v56, %v2880_v60  ;;  %vm2627_vm7 = vcmp.gt.f32.partialorder %v1877_v55, 0.0  ;;  %v2883_v30 = vmul.f32 0.2, %v1877_v55  ;;  %vm2755_vm8 = vcmp.gt.f32.partialorder %v2389_v22, 0.0  ;;  %v7660_v52 = vpop.f32.mrf.mxu1 }
 0x1a4   : > { %v3264_v48 = vsel %vm2752_vm0, %v2378_v49, %v3008_v15  ;;  %v3011_v61 = vmul.f32 0.2, %v2389_v22  ;;  %vm2625_vm9 = vcmp.gt.f32.partialorder %v1869_v54, 0.0  ;;  %v2881_v42 = vmul.f32 0.2, %v1869_v54  ;;  %v7662_v23 = vpop.f32.mrf.mxu0 }
 0x1a5   : > { %vm2753_vm10 = vcmp.gt.f32.partialorder %v2381_v39, 0.0  ;;  %v3139_v51 = vsel %vm2627_vm7, %v1877_v55, %v2883_v30  ;;  %v3009_v5 = vmul.f32 0.2, %v2381_v39  ;;  %vm2630_vm11 = vcmp.gt.f32.partialorder %v1890_v34, 0.0  ;;  %v7666_v37 = vpop.f32.mrf.mxu1 }
 0x1a6   : > { %v2886_v13 = vmul.f32 0.2, %v1890_v34  ;;  %v5650_v57 = vpack.c.bf16 %v3139_v51, %v3138_v45  ;;  %v3267_v0 = vsel %vm2755_vm8, %v2389_v22, %v3011_v61  ;;  %v3137_v38 = vsel %vm2625_vm9, %v1869_v54, %v2881_v42  ;;  %v7668_v44 = vpop.f32.mrf.mxu0 }
 0x1a7   : > { %v2402_v1 = vadd.f32 %v7544_v3, %v7572_v4  ;;  %v5970_v9 = vpack.c.bf16 %v3267_v0, %v3266_v12  ;;  %v5645_v27 = vpack.c.bf16 %v3137_v38, %v3136_v59  ;;  %v3265_v24 = vsel %vm2753_vm10, %v2381_v39, %v3009_v5  ;;  %v7673_v17 = vpop.f32.mrf.mxu1 }
 0x1a8   : > { %v3142_v31 = vsel %vm2630_vm11, %v1890_v34, %v2886_v13  ;;  %6106 = vst [vmem:[%s7003_s27 + $0x168] sm:$0xff] %v5650_v57   ;;  %v5965_v20 = vpack.c.bf16 %v3265_v24, %v3264_v48  ;;  %v1882_v63 = vadd.f32 %v7544_v3, %v7574_v26  ;;  %v2394_v4 = vadd.f32 %v7544_v3, %v7576_v11  ;;  %v7685_v56 = vpop.f32.mrf.mxu0 }
 0x1a9   : > { %vm2758_vm12 = vcmp.gt.f32.partialorder %v2402_v1, 0.0  ;;  %v3014_v29 = vmul.f32 0.2, %v2402_v1  ;;  %6170 = vst [vmem:[%s7003_s27 + $0x368] sm:$0xff] %v5970_v9   ;;  %6105 = vst [vmem:[%s7003_s27 + $0x160] sm:$0xff] %v5645_v27   ;;  %v1893_v16 = vadd.f32 %v7544_v3, %v7578_v43  ;;  %v2405_v40 = vadd.f32 %v7544_v3, %v7584_v47  ;;  %v7690_v45 = vpop.f32.mrf.mxu1 }
 0x1aa   : > { %v1885_v41 = vadd.f32 %v7544_v3, %v7588_v58  ;;  %6169 = vst [vmem:[%s7003_s27 + $0x360] sm:$0xff] %v5965_v20   ;;  %vm2628_vm13 = vcmp.gt.f32.partialorder %v1882_v63, 0.0  ;;  %v2884_v10 = vmul.f32 0.2, %v1882_v63  ;;  %v2397_v19 = vadd.f32 %v7544_v3, %v7590_v46  ;;  %v7692_v49 = vpop.f32.mrf.mxu0 }
 0x1ab   : > { %v3270_v26 = vsel %vm2758_vm12, %v2402_v1, %v3014_v29  ;;  %vm2756_vm14 = vcmp.gt.f32.partialorder %v2394_v4, 0.0  ;;  %v3012_v11 = vmul.f32 0.2, %v2394_v4  ;;  %vm2631_vm15 = vcmp.gt.f32.partialorder %v1893_v16, 0.0  ;;  %v7694_v33 = vpop.f32.mrf.mxu1 }
 0x1ac   : > { %v2887_v43 = vmul.f32 0.2, %v1893_v16  ;;  %v3140_v47 = vsel %vm2628_vm13, %v1882_v63, %v2884_v10  ;;  %vm2759_vm1 = vcmp.gt.f32.partialorder %v2405_v40, 0.0  ;;  %v3015_v58 = vmul.f32 0.2, %v2405_v40  ;;  %v7696_v46 = vpop.f32.mrf.mxu0 }
 0x1ad   : > { %vm2629_vm2 = vcmp.gt.f32.partialorder %v1885_v41, 0.0  ;;  %v3268_v12 = vsel %vm2756_vm14, %v2394_v4, %v3012_v11  ;;  %v2885_v15 = vmul.f32 0.2, %v1885_v41  ;;  %vm2757_vm3 = vcmp.gt.f32.partialorder %v2397_v19, 0.0  ;;  %v7700_v39 = vpop.f32.mrf.mxu1 }
 0x1ae   : > { %v3143_v60 = vsel %vm2631_vm15, %v1893_v16, %v2887_v43  ;;  %v3271_v22 = vsel %vm2759_vm1, %v2405_v40, %v3015_v58  ;;  %v3013_v59 = vmul.f32 0.2, %v2397_v19  ;;  %v1906_v54 = vadd.f32 %v7544_v3, %v7593_v50  ;;  %v7706_v42 = vpop.f32.mrf.mxu0 }
 0x1af   : > { %v5660_v55 = vpack.c.bf16 %v3143_v60, %v3142_v31  ;;  %v5980_v34 = vpack.c.bf16 %v3271_v22, %v3270_v26  ;;  %v3141_v48 = vsel %vm2629_vm2, %v1885_v41, %v2885_v15  ;;  %v2418_v30 = vadd.f32 %v7544_v3, %v7603_v7  ;;  %v7709_v50 = vpop.f32.mrf.mxu1 }
 0x1b0   : > { %v1898_v61 = vadd.f32 %v7544_v3, %v7607_v35  ;;  %v5655_v51 = vpack.c.bf16 %v3141_v48, %v3140_v47  ;;  %v3269_v5 = vsel %vm2757_vm3, %v2397_v19, %v3013_v59  ;;  %vm2634_vm4 = vcmp.gt.f32.partialorder %v1906_v54, 0.0  ;;  %v7712_v38 = vpop.f32.mrf.mxu0 }
 0x1b1   : > { %6108 = vst [vmem:[%s7003_s27 + $0x178] sm:$0xff] %v5660_v55   ;;  %v2890_v13 = vmul.f32 0.2, %v1906_v54  ;;  %6172 = vst [vmem:[%s7003_s27 + $0x378] sm:$0xff] %v5980_v34   ;;  %v5975_v57 = vpack.c.bf16 %v3269_v5, %v3268_v12  ;;  %vm2762_vm5 = vcmp.gt.f32.partialorder %v2418_v30, 0.0  ;;  %v2410_v1 = vadd.f32 %v7544_v3, %v7609_v2  ;;  %v7719_v27 = vpop.f32.mrf.mxu1 }
 0x1b2   : > { %v3018_v0 = vmul.f32 0.2, %v2418_v30  ;;  %vm2632_vm6 = vcmp.gt.f32.partialorder %v1898_v61, 0.0  ;;  %6107 = vst [vmem:[%s7003_s27 + $0x170] sm:$0xff] %v5655_v51   ;;  %v2888_v35 = vmul.f32 0.2, %v1898_v61  ;;  %v1909_v9 = vadd.f32 %v7544_v3, %v7612_v18  ;;  %v7728_v63 = vpop.f32.mrf.mxu0 }
 0x1b3   : > { %v3146_v7 = vsel %vm2634_vm4, %v1906_v54, %v2890_v13  ;;  %6171 = vst [vmem:[%s7003_s27 + $0x370] sm:$0xff] %v5975_v57   ;;  %v2421_v31 = vadd.f32 %v7544_v3, %v7618_v25  ;;  %v1901_v20 = vadd.f32 %v7544_v3, %v7624_v36  ;;  %v2413_v29 = vadd.f32 %v7544_v3, %v7626_v28  ;;  %v7730_v18 = vpop.f32.mrf.mxu1 }
 0x1b4   : > { %v3274_v24 = vsel %vm2762_vm5, %v2418_v30, %v3018_v0  ;;  %v3144_v4 = vsel %vm2632_vm6, %v1898_v61, %v2888_v35  ;;  %vm2760_vm0 = vcmp.gt.f32.partialorder %v2410_v1, 0.0  ;;  %v3016_v2 = vmul.f32 0.2, %v2410_v1  ;;  %v7732_v41 = vpop.f32.mrf.mxu0 }
 0x1b5   : > { %vm2635_vm7 = vcmp.gt.f32.partialorder %v1909_v9, 0.0  ;;  %v2891_v16 = vmul.f32 0.2, %v1909_v9  ;;  %vm2763_vm8 = vcmp.gt.f32.partialorder %v2421_v31, 0.0  ;;  %v3019_v40 = vmul.f32 0.2, %v2421_v31  ;;  %v7734_v28 = vpop.f32.mrf.mxu1 }
 0x1b6   : > { %vm2633_vm9 = vcmp.gt.f32.partialorder %v1901_v20, 0.0  ;;  %v3272_v25 = vsel %vm2760_vm0, %v2410_v1, %v3016_v2  ;;  %v2889_v26 = vmul.f32 0.2, %v1901_v20  ;;  %vm2761_vm10 = vcmp.gt.f32.partialorder %v2413_v29, 0.0  ;;  %v7740_v59 = vpop.f32.mrf.mxu0 }
 0x1b7   : > { %v3017_v36 = vmul.f32 0.2, %v2413_v29  ;;  %v3147_v10 = vsel %vm2635_vm7, %v1909_v9, %v2891_v16  ;;  %v3275_v19 = vsel %vm2763_vm8, %v2421_v31, %v3019_v40  ;;  %v1922_v11 = vadd.f32 %v7544_v3, %v7628_v32  ;;  %v7742_v54 = vpop.f32.mrf.mxu1 }
 0x1b8   : > { %v2434_v43 = vadd.f32 %v7544_v3, %v7634_v6  ;;  %v5670_v47 = vpack.c.bf16 %v3147_v10, %v3146_v7  ;;  %v5990_v58 = vpack.c.bf16 %v3275_v19, %v3274_v24  ;;  %v3145_v12 = vsel %vm2633_vm9, %v1901_v20, %v2889_v26 }
 0x1b9   : > { %v3273_v60 = vsel %vm2761_vm10, %v2413_v29, %v3017_v36  ;;  %v5665_v15 = vpack.c.bf16 %v3145_v12, %v3144_v4  ;;  %vm2638_vm11 = vcmp.gt.f32.partialorder %v1922_v11, 0.0  ;;  %v2894_v22 = vmul.f32 0.2, %v1922_v11  ;;  %v7760_v0 = vpop.f32.mrf.mxu1 }
 0x1ba   : > { %v5985_v55 = vpack.c.bf16 %v3273_v60, %v3272_v25  ;;  %6110 = vst [vmem:[%s7003_s27 + $0x188] sm:$0xff] %v5670_v47   ;;  %6174 = vst [vmem:[%s7003_s27 + $0x388] sm:$0xff] %v5990_v58   ;;  %vm2766_vm12 = vcmp.gt.f32.partialorder %v2434_v43, 0.0  ;;  %v3022_v32 = vmul.f32 0.2, %v2434_v43  ;;  %v1914_v6 = vadd.f32 %v7544_v3, %v7638_v53 }
 0x1bb   : > { %v2426_v34 = vadd.f32 %v7544_v3, %v7640_v62  ;;  %6109 = vst [vmem:[%s7003_s27 + $0x180] sm:$0xff] %v5665_v15   ;;  %v3150_v48 = vsel %vm2638_vm11, %v1922_v11, %v2894_v22  ;;  %v1925_v30 = vadd.f32 %v7544_v3, %v7647_v21  ;;  %v2437_v61 = vadd.f32 %v7544_v3, %v7656_v8  ;;  %v7758_v62 = vpop.f32.mrf.mxu0  ;;  %v7770_v25 = vpop.f32.mrf.mxu1 }
 0x1bc   : > { %6173 = vst [vmem:[%s7003_s27 + $0x380] sm:$0xff] %v5985_v55   ;;  %v1917_v51 = vadd.f32 %v7544_v3, %v7658_v14  ;;  %v3278_v5 = vsel %vm2766_vm12, %v2434_v43, %v3022_v32  ;;  %vm2636_vm13 = vcmp.gt.f32.partialorder %v1914_v6, 0.0  ;;  %v2892_v13 = vmul.f32 0.2, %v1914_v6 }
 0x1bd   : > { %vm2764_vm14 = vcmp.gt.f32.partialorder %v2426_v34, 0.0  ;;  %v3020_v53 = vmul.f32 0.2, %v2426_v34  ;;  %vm2639_vm15 = vcmp.gt.f32.partialorder %v1925_v30, 0.0  ;;  %v2895_v57 = vmul.f32 0.2, %v1925_v30  ;;  %v7768_v40 = vpop.f32.mrf.mxu0  ;;  %v7785_v15 = vpop.f32.mrf.mxu1 }
 0x1be   : > { %vm2767_vm1 = vcmp.gt.f32.partialorder %v2437_v61, 0.0  ;;  %v3148_v7 = vsel %vm2636_vm13, %v1914_v6, %v2892_v13  ;;  %v3023_v21 = vmul.f32 0.2, %v2437_v61  ;;  %vm2637_vm2 = vcmp.gt.f32.partialorder %v1917_v51, 0.0 }
 0x1bf   : > { %v2893_v8 = vmul.f32 0.2, %v1917_v51  ;;  %v3276_v35 = vsel %vm2764_vm14, %v2426_v34, %v3020_v53  ;;  %v3151_v1 = vsel %vm2639_vm15, %v1925_v30, %v2895_v57  ;;  %v2429_v14 = vadd.f32 %v7544_v3, %v7660_v52  ;;  %v7783_v60 = vpop.f32.mrf.mxu0 }
 0x1c0   : > { %v1938_v9 = vadd.f32 %v7544_v3, %v7662_v23  ;;  %v5680_v24 = vpack.c.bf16 %v3151_v1, %v3150_v48  ;;  %v3279_v31 = vsel %vm2767_vm1, %v2437_v61, %v3023_v21  ;;  %v2450_v29 = vadd.f32 %v7544_v3, %v7666_v37 }
 0x1c1   : > { %v3149_v20 = vsel %vm2637_vm2, %v1917_v51, %v2893_v8  ;;  %v6000_v4 = vpack.c.bf16 %v3279_v31, %v3278_v5  ;;  %vm2765_vm3 = vcmp.gt.f32.partialorder %v2429_v14, 0.0  ;;  %v3021_v16 = vmul.f32 0.2, %v2429_v14  ;;  %v7796_v5 = vpop.f32.mrf.mxu0 }
 0x1c2   : > { %v5675_v2 = vpack.c.bf16 %v3149_v20, %v3148_v7  ;;  %6112 = vst [vmem:[%s7003_s27 + $0x198] sm:$0xff] %v5680_v24   ;;  %vm2642_vm4 = vcmp.gt.f32.partialorder %v1938_v9, 0.0  ;;  %v2898_v52 = vmul.f32 0.2, %v1938_v9  ;;  %vm2770_vm5 = vcmp.gt.f32.partialorder %v2450_v29, 0.0 }
 0x1c3   : > { %v3026_v23 = vmul.f32 0.2, %v2450_v29  ;;  %6176 = vst [vmem:[%s7003_s27 + $0x398] sm:$0xff] %v6000_v4   ;;  %v3277_v26 = vsel %vm2765_vm3, %v2429_v14, %v3021_v16  ;;  %v1930_v37 = vadd.f32 %v7544_v3, %v7668_v44  ;;  %v2442_v36 = vadd.f32 %v7544_v3, %v7673_v17 }
 0x1c4   : > { %6111 = vst [vmem:[%s7003_s27 + $0x190] sm:$0xff] %v5675_v2   ;;  %v1941_v10 = vadd.f32 %v7544_v3, %v7685_v56  ;;  %v5995_v19 = vpack.c.bf16 %v3277_v26, %v3276_v35  ;;  %v3154_v11 = vsel %vm2642_vm4, %v1938_v9, %v2898_v52  ;;  %v2453_v47 = vadd.f32 %v7544_v3, %v7690_v45  ;;  %v7806_v9 = vpop.f32.mrf.mxu0 }
 0x1c5   : > { %v3282_v43 = vsel %vm2770_vm5, %v2450_v29, %v3026_v23  ;;  %vm2640_vm6 = vcmp.gt.f32.partialorder %v1930_v37, 0.0  ;;  %v2896_v58 = vmul.f32 0.2, %v1930_v37  ;;  %vm2768_vm0 = vcmp.gt.f32.partialorder %v2442_v36, 0.0 }
 0x1c6   : > { %v3024_v12 = vmul.f32 0.2, %v2442_v36  ;;  %6175 = vst [vmem:[%s7003_s27 + $0x390] sm:$0xff] %v5995_v19   ;;  %vm2643_vm7 = vcmp.gt.f32.partialorder %v1941_v10, 0.0  ;;  %v2899_v44 = vmul.f32 0.2, %v1941_v10  ;;  %v1933_v22 = vadd.f32 %v7544_v3, %v7692_v49  ;;  %v7798_v49 = vpop.f32.mrf.mxu1 }
 0x1c7   : > { %vm2771_vm8 = vcmp.gt.f32.partialorder %v2453_v47, 0.0  ;;  %v3027_v17 = vmul.f32 0.2, %v2453_v47  ;;  %v3152_v56 = vsel %vm2640_vm6, %v1930_v37, %v2896_v58  ;;  %v2445_v45 = vadd.f32 %v7544_v3, %v7694_v33 }
 0x1c8   : > { %v3280_v55 = vsel %vm2768_vm0, %v2442_v36, %v3024_v12  ;;  %v3155_v32 = vsel %vm2643_vm7, %v1941_v10, %v2899_v44  ;;  %v1954_v34 = vadd.f32 %v7544_v3, %v7696_v46  ;;  %v2466_v48 = vadd.f32 %v7544_v3, %v7700_v39  ;;  %v7808_v24 = vpop.f32.mrf.mxu1 }
 0x1c9   : > { %v3283_v6 = vsel %vm2771_vm8, %v2453_v47, %v3027_v17  ;;  %v5690_v30 = vpack.c.bf16 %v3155_v32, %v3154_v11  ;;  %vm2641_vm9 = vcmp.gt.f32.partialorder %v1933_v22, 0.0  ;;  %v2897_v51 = vmul.f32 0.2, %v1933_v22 }
 0x1ca   : > { %v6010_v61 = vpack.c.bf16 %v3283_v6, %v3282_v43  ;;  %vm2769_vm10 = vcmp.gt.f32.partialorder %v2445_v45, 0.0  ;;  %v3025_v13 = vmul.f32 0.2, %v2445_v45  ;;  %vm2646_vm11 = vcmp.gt.f32.partialorder %v1954_v34, 0.0  ;;  %v7824_v26 = vpop.f32.mrf.mxu1 }
 0x1cb   : > { %v2902_v33 = vmul.f32 0.2, %v1954_v34  ;;  %6114 = vst [vmem:[%s7003_s27 + $0x1a8] sm:$0xff] %v5690_v30   ;;  %v3153_v53 = vsel %vm2641_vm9, %v1933_v22, %v2897_v51  ;;  %vm2774_vm12 = vcmp.gt.f32.partialorder %v2466_v48, 0.0  ;;  %v3030_v46 = vmul.f32 0.2, %v2466_v48 }
 0x1cc   : > { %6178 = vst [vmem:[%s7003_s27 + $0x3a8] sm:$0xff] %v6010_v61   ;;  %v1946_v39 = vadd.f32 %v7544_v3, %v7706_v42  ;;  %v5685_v57 = vpack.c.bf16 %v3153_v53, %v3152_v56  ;;  %v3281_v7 = vsel %vm2769_vm10, %v2445_v45, %v3025_v13  ;;  %v2458_v8 = vadd.f32 %v7544_v3, %v7709_v50 }
 0x1cd   : > { %v3158_v21 = vsel %vm2646_vm11, %v1954_v34, %v2902_v33  ;;  %v6005_v35 = vpack.c.bf16 %v3281_v7, %v3280_v55  ;;  %v3286_v1 = vsel %vm2774_vm12, %v2466_v48, %v3030_v46  ;;  %v1957_v42 = vadd.f32 %v7544_v3, %v7712_v38  ;;  %v7833_v55 = vpop.f32.mrf.mxu1 }
 0x1ce   : > { %vm2644_vm13 = vcmp.gt.f32.partialorder %v1946_v39, 0.0  ;;  %v2900_v14 = vmul.f32 0.2, %v1946_v39  ;;  %6113 = vst [vmem:[%s7003_s27 + $0x1a0] sm:$0xff] %v5685_v57   ;;  %vm2772_vm14 = vcmp.gt.f32.partialorder %v2458_v8, 0.0  ;;  %v2469_v20 = vadd.f32 %v7544_v3, %v7719_v27  ;;  %v7822_v27 = vpop.f32.mrf.mxu0 }
 0x1cf   : > { %v3028_v31 = vmul.f32 0.2, %v2458_v8  ;;  %6177 = vst [vmem:[%s7003_s27 + $0x3a0] sm:$0xff] %v6005_v35   ;;  %v1949_v50 = vadd.f32 %v7544_v3, %v7728_v63  ;;  %v2461_v4 = vadd.f32 %v7544_v3, %v7730_v18  ;;  %v1970_v2 = vadd.f32 %v7544_v3, %v7732_v41  ;;  %v7850_v61 = vpop.f32.mrf.mxu1 }
 0x1d0   : > { %v3156_v29 = vsel %vm2644_vm13, %v1946_v39, %v2900_v14  ;;  %vm2647_vm15 = vcmp.gt.f32.partialorder %v1957_v42, 0.0  ;;  %v2903_v52 = vmul.f32 0.2, %v1957_v42  ;;  %vm2775_vm1 = vcmp.gt.f32.partialorder %v2469_v20, 0.0  ;;  %v7831_v56 = vpop.f32.mrf.mxu0 }
 0x1d1   : > { %v3284_v16 = vsel %vm2772_vm14, %v2458_v8, %v3028_v31  ;;  %v3031_v23 = vmul.f32 0.2, %v2469_v20  ;;  %vm2645_vm2 = vcmp.gt.f32.partialorder %v1949_v50, 0.0  ;;  %v2901_v38 = vmul.f32 0.2, %v1949_v50  ;;  %v6574_v31 = vpop.f32.mrf.mxu1 }
 0x1d2   : > { %vm2773_vm3 = vcmp.gt.f32.partialorder %v2461_v4, 0.0  ;;  %v3159_v63 = vsel %vm2647_vm15, %v1957_v42, %v2903_v52  ;;  %v3029_v37 = vmul.f32 0.2, %v2461_v4  ;;  %vm2650_vm4 = vcmp.gt.f32.partialorder %v1970_v2, 0.0 }
 0x1d3   : > { %v2906_v18 = vmul.f32 0.2, %v1970_v2  ;;  %v5700_v36 = vpack.c.bf16 %v3159_v63, %v3158_v21  ;;  %v3287_v41 = vsel %vm2775_vm1, %v2469_v20, %v3031_v23  ;;  %v3157_v10 = vsel %vm2645_vm2, %v1949_v50, %v2901_v38 }
 0x1d4   : > { %v2482_v19 = vadd.f32 %v7544_v3, %v7734_v28  ;;  %v6020_v11 = vpack.c.bf16 %v3287_v41, %v3286_v1  ;;  %v5695_v43 = vpack.c.bf16 %v3157_v10, %v3156_v29  ;;  %v3285_v47 = vsel %vm2773_vm3, %v2461_v4, %v3029_v37 }
 0x1d5   : > { %v3162_v58 = vsel %vm2650_vm4, %v1970_v2, %v2906_v18  ;;  %6116 = vst [vmem:[%s7003_s27 + $0x1b8] sm:$0xff] %v5700_v36   ;;  %v6015_v12 = vpack.c.bf16 %v3285_v47, %v3284_v16  ;;  %v1962_v17 = vadd.f32 %v7544_v3, %v7740_v59  ;;  %v2474_v28 = vadd.f32 %v7544_v3, %v7742_v54 }
 0x1d6   : > { %vm2778_vm5 = vcmp.gt.f32.partialorder %v2482_v19, 0.0  ;;  %v3034_v44 = vmul.f32 0.2, %v2482_v19  ;;  %6180 = vst [vmem:[%s7003_s27 + $0x3b8] sm:$0xff] %v6020_v11   ;;  %6115 = vst [vmem:[%s7003_s27 + $0x1b0] sm:$0xff] %v5695_v43   ;;  %v1973_v22 = vadd.f32 %v7544_v3, %v7758_v62  ;;  %v2485_v45 = vadd.f32 %v7544_v3, %v7760_v0  ;;  %v7848_v0 = vpop.f32.mrf.mxu0 }
 0x1d7   : > { %v1965_v32 = vadd.f32 %v7544_v3, %v7768_v40  ;;  %6179 = vst [vmem:[%s7003_s27 + $0x3b0] sm:$0xff] %v6015_v12   ;;  %vm2648_vm6 = vcmp.gt.f32.partialorder %v1962_v17, 0.0  ;;  %v2904_v6 = vmul.f32 0.2, %v1962_v17  ;;  %v2477_v34 = vadd.f32 %v7544_v3, %v7770_v25 }
 0x1d8   : > { %v3290_v59 = vsel %vm2778_vm5, %v2482_v19, %v3034_v44  ;;  %vm2776_vm0 = vcmp.gt.f32.partialorder %v2474_v28, 0.0  ;;  %v3032_v48 = vmul.f32 0.2, %v2474_v28  ;;  %vm2651_vm7 = vcmp.gt.f32.partialorder %v1973_v22, 0.0  ;;  %v6446_v14 = vpop.f32.mrf.mxu0 }
 0x1d9   : > { %v2907_v54 = vmul.f32 0.2, %v1973_v22  ;;  %v3160_v30 = vsel %vm2648_vm6, %v1962_v17, %v2904_v6  ;;  %vm2779_vm8 = vcmp.gt.f32.partialorder %v2485_v45, 0.0  ;;  %v3035_v62 = vmul.f32 0.2, %v2485_v45 }
 0x1da   : > { %vm2649_vm9 = vcmp.gt.f32.partialorder %v1965_v32, 0.0  ;;  %v3288_v40 = vsel %vm2776_vm0, %v2474_v28, %v3032_v48  ;;  %v2905_v13 = vmul.f32 0.2, %v1965_v32  ;;  %vm2777_vm10 = vcmp.gt.f32.partialorder %v2477_v34, 0.0  ;;  %v1996_v38 = vpop.f32.mrf.mxu0 }
 0x1db   : > { %v3163_v51 = vsel %vm2651_vm7, %v1973_v22, %v2907_v54  ;;  %v3291_v25 = vsel %vm2779_vm8, %v2485_v45, %v3035_v62  ;;  %v3033_v53 = vmul.f32 0.2, %v2477_v34  ;;  %v1986_v46 = vadd.f32 %v7544_v3, %v7783_v60 }
 0x1dc   : > { %v5710_v33 = vpack.c.bf16 %v3163_v51, %v3162_v58  ;;  %v6030_v39 = vpack.c.bf16 %v3291_v25, %v3290_v59  ;;  %v3161_v57 = vsel %vm2649_vm9, %v1965_v32, %v2905_v13  ;;  %v2498_v7 = vadd.f32 %v7544_v3, %v7785_v15  ;;  %v6449_v47 = vpop.f32.mrf.mxu0 }
 0x1dd   : > { %v1978_v21 = vadd.f32 %v7544_v3, %v7796_v5  ;;  %v5705_v8 = vpack.c.bf16 %v3161_v57, %v3160_v30  ;;  %v3289_v35 = vsel %vm2777_vm10, %v2477_v34, %v3033_v53  ;;  %vm2654_vm11 = vcmp.gt.f32.partialorder %v1986_v46, 0.0 }
 0x1de   : > { %6118 = vst [vmem:[%s7003_s27 + $0x1c8] sm:$0xff] %v5710_v33   ;;  %v2910_v1 = vmul.f32 0.2, %v1986_v46  ;;  %6182 = vst [vmem:[%s7003_s27 + $0x3c8] sm:$0xff] %v6030_v39   ;;  %v6025_v42 = vpack.c.bf16 %v3289_v35, %v3288_v40  ;;  %vm2782_vm12 = vcmp.gt.f32.partialorder %v2498_v7, 0.0  ;;  %v2490_v15 = vadd.f32 %v7544_v3, %v7798_v49  ;;  %v2508_v49 = vpop.f32.mrf.mxu1  ;;  %v2009_v48 = vpop.f32.mrf.mxu0 }
 0x1df   : > { %v3038_v60 = vmul.f32 0.2, %v2498_v7  ;;  %vm2652_vm13 = vcmp.gt.f32.partialorder %v1978_v21, 0.0  ;;  %6117 = vst [vmem:[%s7003_s27 + $0x1c0] sm:$0xff] %v5705_v8   ;;  %v2908_v29 = vmul.f32 0.2, %v1978_v21  ;;  %v1989_v5 = vadd.f32 %v7544_v3, %v7806_v9 }
 0x1e0   : > { %v3166_v20 = vsel %vm2654_vm11, %v1986_v46, %v2910_v1  ;;  %6181 = vst [vmem:[%s7003_s27 + $0x3c0] sm:$0xff] %v6025_v42   ;;  %v2501_v4 = vadd.f32 %v7544_v3, %v7808_v24  ;;  %v1981_v2 = vadd.f32 %v7544_v3, %v7822_v27  ;;  %v2493_v16 = vadd.f32 %v7544_v3, %v7824_v26  ;;  %v6577_v58 = vpop.f32.mrf.mxu1  ;;  %v6450_v57 = vpop.f32.mrf.mxu0 }
 0x1e1   : > { %v3294_v50 = vsel %vm2782_vm12, %v2498_v7, %v3038_v60  ;;  %v3164_v52 = vsel %vm2652_vm13, %v1978_v21, %v2908_v29  ;;  %vm2780_vm14 = vcmp.gt.f32.partialorder %v2490_v15, 0.0  ;;  %v3036_v23 = vmul.f32 0.2, %v2490_v15 }
 0x1e2   : > { %vm2655_vm15 = vcmp.gt.f32.partialorder %v1989_v5, 0.0  ;;  %v2911_v63 = vmul.f32 0.2, %v1989_v5  ;;  %vm2783_vm1 = vcmp.gt.f32.partialorder %v2501_v4, 0.0  ;;  %v3039_v9 = vmul.f32 0.2, %v2501_v4  ;;  %v2521_v54 = vpop.f32.mrf.mxu1 }
 0x1e3   : > { %vm2653_vm2 = vcmp.gt.f32.partialorder %v1981_v2, 0.0  ;;  %v3292_v37 = vsel %vm2780_vm14, %v2490_v15, %v3036_v23  ;;  %v2909_v18 = vmul.f32 0.2, %v1981_v2  ;;  %vm2781_vm3 = vcmp.gt.f32.partialorder %v2493_v16, 0.0 }
 0x1e4   : > { %v3037_v24 = vmul.f32 0.2, %v2493_v16  ;;  %v3167_v27 = vsel %vm2655_vm15, %v1989_v5, %v2911_v63  ;;  %v3295_v36 = vsel %vm2783_vm1, %v2501_v4, %v3039_v9  ;;  %v2002_v26 = vadd.f32 %v7544_v3, %v7831_v56  ;;  %v6578_v7 = vpop.f32.mrf.mxu1 }
 0x1e5   : > { %v2514_v41 = vadd.f32 %v7544_v3, %v7833_v55  ;;  %v5720_v10 = vpack.c.bf16 %v3167_v27, %v3166_v20  ;;  %v6040_v19 = vpack.c.bf16 %v3295_v36, %v3294_v50  ;;  %v3165_v11 = vsel %vm2653_vm2, %v1981_v2, %v2909_v18  ;;  %v2012_v50 = vpop.f32.mrf.mxu0 }
 0x1e6   : > { %v3293_v43 = vsel %vm2781_vm3, %v2493_v16, %v3037_v24  ;;  %v5715_v12 = vpack.c.bf16 %v3165_v11, %v3164_v52  ;;  %vm2658_vm4 = vcmp.gt.f32.partialorder %v2002_v26, 0.0  ;;  %v2914_v17 = vmul.f32 0.2, %v2002_v26  ;;  %v2524_v4 = vpop.f32.mrf.mxu1 }
 0x1e7   : > { %v6035_v44 = vpack.c.bf16 %v3293_v43, %v3292_v37  ;;  %6120 = vst [vmem:[%s7003_s27 + $0x1d8] sm:$0xff] %v5720_v10   ;;  %6184 = vst [vmem:[%s7003_s27 + $0x3d8] sm:$0xff] %v6040_v19   ;;  %vm2786_vm5 = vcmp.gt.f32.partialorder %v2514_v41, 0.0  ;;  %v3042_v28 = vmul.f32 0.2, %v2514_v41  ;;  %v1994_v56 = vadd.f32 %v7544_v3, %v7848_v0 }
 0x1e8   : > { %v2506_v55 = vadd.f32 %v7544_v3, %v7850_v61  ;;  %6119 = vst [vmem:[%s7003_s27 + $0x1d0] sm:$0xff] %v5715_v12   ;;  %v2005_v22 = vadd.f32 %v7544_v3, %v6446_v14  ;;  %v2517_v45 = vadd.f32 %v7544_v3, %v6574_v31  ;;  %v1997_v32 = vadd.f32 %v7544_v3, %v1996_v38 }
 0x1e9   : > { %6183 = vst [vmem:[%s7003_s27 + $0x3d0] sm:$0xff] %v6035_v44   ;;  %v3170_v59 = vsel %vm2658_vm4, %v2002_v26, %v2914_v17  ;;  %v3298_v6 = vsel %vm2786_vm5, %v2514_v41, %v3042_v28  ;;  %vm2656_vm6 = vcmp.gt.f32.partialorder %v1994_v56, 0.0  ;;  %v2912_v34 = vmul.f32 0.2, %v1994_v56 }
 0x1ea   : > { %v3040_v30 = vmul.f32 0.2, %v2506_v55  ;;  %vm2659_vm0 = vcmp.gt.f32.partialorder %v2005_v22, 0.0  ;;  %v2915_v62 = vmul.f32 0.2, %v2005_v22  ;;  %vm2787_vm7 = vcmp.gt.f32.partialorder %v2517_v45, 0.0 }
 0x1eb   : > { %vm2784_vm8 = vcmp.gt.f32.partialorder %v2506_v55, 0.0  ;;  %v3043_v0 = vmul.f32 0.2, %v2517_v45  ;;  %vm2657_vm9 = vcmp.gt.f32.partialorder %v1997_v32, 0.0  ;;  %v2913_v61 = vmul.f32 0.2, %v1997_v32 }
 0x1ec   : > { %v3168_v40 = vsel %vm2656_vm6, %v1994_v56, %v2912_v34  ;;  %v3171_v51 = vsel %vm2659_vm0, %v2005_v22, %v2915_v62  ;;  %v2509_v13 = vadd.f32 %v7544_v3, %v2508_v49  ;;  %v2018_v33 = vadd.f32 %v7544_v3, %v6449_v47 }
 0x1ed   : > { %v5730_v25 = vpack.c.bf16 %v3171_v51, %v3170_v59  ;;  %v3299_v53 = vsel %vm2787_vm7, %v2517_v45, %v3043_v0  ;;  %v3169_v46 = vsel %vm2657_vm9, %v1997_v32, %v2913_v61  ;;  %v2530_v39 = vadd.f32 %v7544_v3, %v6577_v58  ;;  %v6723_v3 = vld [vmem:[%s7908_s2] ss:$0 sm:$0xff] }
 0x1ee   : > { %v6050_v21 = vpack.c.bf16 %v3299_v53, %v3298_v6  ;;  %v5725_v8 = vpack.c.bf16 %v3169_v46, %v3168_v40  ;;  %vm2785_vm10 = vcmp.gt.f32.partialorder %v2509_v13, 0.0  ;;  %v3041_v35 = vmul.f32 0.2, %v2509_v13 }
 0x1ef   : > { %6122 = vst [vmem:[%s7003_s27 + $0x1e8] sm:$0xff] %v5730_v25   ;;  %vm2662_vm11 = vcmp.gt.f32.partialorder %v2018_v33, 0.0  ;;  %v2918_v1 = vmul.f32 0.2, %v2018_v33  ;;  %vm2790_vm12 = vcmp.gt.f32.partialorder %v2530_v39, 0.0  ;;  %v3296_v31 = vsel %vm2784_vm8, %v2506_v55, %v3040_v30 }
 0x1f0   : > { %v3046_v14 = vmul.f32 0.2, %v2530_v39  ;;  %6186 = vst [vmem:[%s7003_s27 + $0x3e8] sm:$0xff] %v6050_v21   ;;  %6121 = vst [vmem:[%s7003_s27 + $0x1e0] sm:$0xff] %v5725_v8   ;;  %v3297_v42 = vsel %vm2785_vm10, %v2509_v13, %v3041_v35  ;;  %v2010_v60 = vadd.f32 %v6723_v3, %v2009_v48  ;;  %v2021_v20 = vadd.f32 %v6723_v3, %v6450_v57 }
 0x1f1   : > { %v6045_v29 = vpack.c.bf16 %v3297_v42, %v3296_v31  ;;  %v2522_v15 = vadd.f32 %v6723_v3, %v2521_v54  ;;  %v2533_v5 = vadd.f32 %v6723_v3, %v6578_v7  ;;  %v3174_v2 = vsel %vm2662_vm11, %v2018_v33, %v2918_v1 }
 0x1f2   : > { %v3302_v16 = vsel %vm2790_vm12, %v2530_v39, %v3046_v14  ;;  %vm2663_vm13 = vcmp.gt.f32.partialorder %v2021_v20, 0.0  ;;  %v2919_v52 = vmul.f32 0.2, %v2021_v20  ;;  %vm2660_vm15 = vcmp.gt.f32.partialorder %v2010_v60, 0.0 }
 0x1f3   : > { %6185 = vst [vmem:[%s7003_s27 + $0x3e0] sm:$0xff] %v6045_v29   ;;  %vm2791_vm14 = vcmp.gt.f32.partialorder %v2533_v5, 0.0  ;;  %v3047_v23 = vmul.f32 0.2, %v2533_v5  ;;  %v2916_v38 = vmul.f32 0.2, %v2010_v60  ;;  %v2013_v49 = vadd.f32 %v6723_v3, %v2012_v50 }
 0x1f4   : > { %v2525_v63 = vadd.f32 %v6723_v3, %v2524_v4  ;;  %vm2788_vm1 = vcmp.gt.f32.partialorder %v2522_v15, 0.0  ;;  %v3044_v9 = vmul.f32 0.2, %v2522_v15  ;;  %v3175_v37 = vsel %vm2663_vm13, %v2021_v20, %v2919_v52 }
 0x1f5   : > { %v3303_v18 = vsel %vm2791_vm14, %v2533_v5, %v3047_v23  ;;  %v5740_v24 = vpack.c.bf16 %v3175_v37, %v3174_v2  ;;  %vm2661_vm2 = vcmp.gt.f32.partialorder %v2013_v49, 0.0  ;;  %v2917_v36 = vmul.f32 0.2, %v2013_v49 }
 0x1f6   : > { %v6060_v27 = vpack.c.bf16 %v3303_v18, %v3302_v16  ;;  %vm2789_vm3 = vcmp.gt.f32.partialorder %v2525_v63, 0.0  ;;  %v3045_v26 = vmul.f32 0.2, %v2525_v63  ;;  %v3172_v41 = vsel %vm2660_vm15, %v2010_v60, %v2916_v38 }
 0x1f7   : > { %6124 = vst [vmem:[%s7003_s27 + $0x1f8] sm:$0xff] %v5740_v24   ;;  %v3173_v10 = vsel %vm2661_vm2, %v2013_v49, %v2917_v36  ;;  %v3300_v19 = vsel %vm2788_vm1, %v2522_v15, %v3044_v9 }
 0x1f8   : > { %6188 = vst [vmem:[%s7003_s27 + $0x3f8] sm:$0xff] %v6060_v27   ;;  %v5735_v11 = vpack.c.bf16 %v3173_v10, %v3172_v41  ;;  %v3301_v43 = vsel %vm2789_vm3, %v2525_v63, %v3045_v26 }
 0x1f9   : > { %v6055_v47 = vpack.c.bf16 %v3301_v43, %v3300_v19 }
 0x1fa   : > { %6123 = vst [vmem:[%s7003_s27 + $0x1f0] sm:$0xff] %v5735_v11  }
 0x1fb   : > { %6187 = vst [vmem:[%s7003_s27 + $0x3f0] sm:$0xff] %v6055_v47  }
 0x1fc PF: > { %s13_s12 = sadd.s32 1, %s6730_s12  }
 0x1fd   : > { %p10_p4 = scmp.ge.s32.totalorder %s13_s12, 4  }
 0x1ff   :  { %12 = sbr.rel (!%p10_p4) target bundleno = 1 (0x1), region = 62 }

// kernel: cgan_discriminator_forward.4
= control target key start
LH: loop header
LB: loop body
LE: loop exit
PB: predicated region body
PF: predicated region fallthrough
CT: control target
= control target key end

     0   :  { %v5124_v0 = vmov 0   ;;  %vm1375_vm0 = vcmask 261120   ;;  %s6719_s1 = inlined_call_operand.vmem [shape: bf16[288,128], index: 1, kind: input, shape index: {}]   ;;  %s6720_s0 = inlined_call_operand.vmem [shape: bf16[1024,288], index: 0, kind: input, shape index: {}]   ;;  %s6721_s2 = inlined_call_operand.vmem [shape: bf16[1024,128], index: 2, kind: output, shape index: {0}]   ;;  %s6722_s3 = inlined_call_operand.vmem [shape: f32[1,1,128], index: 3, kind: output, shape index: {1}]   ;;  %s6723_s4 = inlined_call_operand.vmem [shape: f32[1,1,128], index: 4, kind: output, shape index: {2}]  }
   0x1   :  { %1568 = vmatprep.subr.bf16.mxu0 %v5124_v0  ;;  %4817 = vmatprep.subr.bf16.mxu1 %v5124_v0  ;;  %v4850_v1 = vld [vmem:[%s6719_s1 + $0x38] sm:$0xff]   ;;  %v4851_v2 = vld [vmem:[%s6719_s1 + $0x30] sm:$0xff]   ;;  %v4852_v3 = vld [vmem:[%s6719_s1 + $0x28] sm:$0xff]  }
   0x2   :  { %1569 = vmatpush1.bf16.msra.mxu0 %v4850_v1  ;;  %4833 = vmatpush1.bf16.msra.mxu1 %v4850_v1  ;;  %v4853_v4 = vld [vmem:[%s6719_s1 + $0x20] sm:$0xff]   ;;  %v4854_v5 = vld [vmem:[%s6719_s1 + $0x18] sm:$0xff]   ;;  %v4855_v7 = vld [vmem:[%s6719_s1 + $0x10] sm:$0xff]  }
   0x3   :  { %1570 = vmatprep.subr.bf16.mxu0 %v5124_v0  ;;  %4818 = vmatprep.subr.bf16.mxu1 %v5124_v0  ;;  %v4868_v6 = vld [vmem:[%s6720_s0 + $0x4] ss:$12 sps:$4 sm:$0xff]   ;;  %v4856_v9 = vld [vmem:[%s6719_s1 + $0x8] sm:$0xff]   ;;  %v4858_v11 = vld [vmem:[%s6719_s1 + $0x78] sm:$0xff]  }
   0x4   :  { %v4871_v8 = vld [vmem:[%s6720_s0 + $0x484] ss:$12 sps:$4 sm:$0xff]   ;;  %1600 = vmatprep.mubr.bf16.mxu0 %v4868_v6  ;;  %v4860_v13 = vld [vmem:[%s6719_s1 + $0x68] sm:$0xff]   ;;  %v4862_v15 = vld [vmem:[%s6719_s1 + $0x58] sm:$0xff]  }
   0x5   :  { %1984 = vmatprep.mubr.bf16.mxu1 %v4871_v8  ;;  %v4857_v10 = vld [vmem:[%s6719_s1] sm:$0xff]   ;;  %v4859_v12 = vld [vmem:[%s6719_s1 + $0x70] sm:$0xff]   ;;  %v4864_v17 = vld [vmem:[%s6719_s1 + $0x48] sm:$0xff]  }
   0x6   :  { %1571 = vmatpush1.bf16.msra.mxu0 %v4851_v2  ;;  %4834 = vmatpush1.bf16.msra.mxu1 %v4851_v2  ;;  %v4861_v14 = vld [vmem:[%s6719_s1 + $0x60] sm:$0xff]   ;;  %v4863_v16 = vld [vmem:[%s6719_s1 + $0x50] sm:$0xff]   ;;  %v4914_v19 = vld [vmem:[%s6719_s1 + $0x88] sm:$0xff]  }
   0x7   :  { %1572 = vmatprep.subr.bf16.mxu0 %v5124_v0  ;;  %4819 = vmatprep.subr.bf16.mxu1 %v5124_v0  ;;  %v4865_v18 = vld [vmem:[%s6719_s1 + $0x40] sm:$0xff]   ;;  %v4872_v22 = vld [vmem:[%s6720_s0 + $0x1c] ss:$12 sps:$4 sm:$0xff]   ;;  %v4884_v31 = vld [vmem:[%s6720_s0 + $0x4c] ss:$12 sps:$4 sm:$0xff]  }
   0x8   :  { %v4866_v20 = vld [vmem:[%s6720_s0] ss:$12 sps:$4 sm:$0xff]   ;;  %v4874_v23 = vld [vmem:[%s6720_s0 + $0x49c] ss:$12 sps:$4 sm:$0xff]   ;;  %v4876_v25 = vld [vmem:[%s6720_s0 + $0x18] ss:$12 sps:$4 sm:$0xff]  }
   0x9   :  { %v4869_v21 = vld [vmem:[%s6720_s0 + $0x480] ss:$12 sps:$4 sm:$0xff]   ;;  %v4877_v26 = vld [vmem:[%s6720_s0 + $0x498] ss:$12 sps:$4 sm:$0xff]   ;;  %v4882_v29 = vld [vmem:[%s6720_s0 + $0x30] ss:$12 sps:$4 sm:$0xff]  }
   0xa   :  { %1573 = vmatpush1.bf16.msra.mxu0 %v4852_v3  ;;  %4835 = vmatpush1.bf16.msra.mxu1 %v4852_v3  ;;  %v4963_v24 = vld [vmem:[%s6719_s1 + $0x80] sm:$0xff]   ;;  %v4883_v30 = vld [vmem:[%s6720_s0 + $0x4b0] ss:$12 sps:$4 sm:$0xff]   ;;  %v4886_v32 = vld [vmem:[%s6720_s0 + $0x4cc] ss:$12 sps:$4 sm:$0xff]  }
   0xb   :  { %1574 = vmatprep.subr.bf16.mxu0 %v5124_v0  ;;  %4820 = vmatprep.subr.bf16.mxu1 %v5124_v0  ;;  %v4878_v27 = vld [vmem:[%s6720_s0 + $0x34] ss:$12 sps:$4 sm:$0xff]   ;;  %v4890_v35 = vld [vmem:[%s6720_s0 + $0x64] ss:$12 sps:$4 sm:$0xff]   ;;  %v4896_v39 = vld [vmem:[%s6720_s0 + $0x7c] ss:$12 sps:$4 sm:$0xff]  }
   0xc   :  { %v4880_v28 = vld [vmem:[%s6720_s0 + $0x4b4] ss:$12 sps:$4 sm:$0xff]   ;;  %v4892_v36 = vld [vmem:[%s6720_s0 + $0x4e4] ss:$12 sps:$4 sm:$0xff]   ;;  %v4898_v40 = vld [vmem:[%s6720_s0 + $0x4fc] ss:$12 sps:$4 sm:$0xff]  }
   0xd   :  { %v4888_v33 = vld [vmem:[%s6720_s0 + $0x48] ss:$12 sps:$4 sm:$0xff]   ;;  %v4894_v37 = vld [vmem:[%s6720_s0 + $0x60] ss:$12 sps:$4 sm:$0xff]   ;;  %v4900_v41 = vld [vmem:[%s6720_s0 + $0x78] ss:$12 sps:$4 sm:$0xff]  }
   0xe   :  { %1575 = vmatpush1.bf16.msra.mxu0 %v4853_v4  ;;  %4836 = vmatpush1.bf16.msra.mxu1 %v4853_v4  ;;  %v4889_v34 = vld [vmem:[%s6720_s0 + $0x4c8] ss:$12 sps:$4 sm:$0xff]   ;;  %v4895_v38 = vld [vmem:[%s6720_s0 + $0x4e0] ss:$12 sps:$4 sm:$0xff]   ;;  %v4901_v42 = vld [vmem:[%s6720_s0 + $0x4f8] ss:$12 sps:$4 sm:$0xff]  }
   0xf   :  { %1576 = vmatprep.subr.bf16.mxu0 %v5124_v0  ;;  %4821 = vmatprep.subr.bf16.mxu1 %v5124_v0  ;;  %v4902_v43 = vld [vmem:[%s6720_s0 + $0x94] ss:$12 sps:$4 sm:$0xff]   ;;  %v4906_v45 = vld [vmem:[%s6720_s0 + $0x90] ss:$12 sps:$4 sm:$0xff]   ;;  %v4908_v47 = vld [vmem:[%s6720_s0 + $0xac] ss:$12 sps:$4 sm:$0xff]  }
  0x10   :  { %v4904_v44 = vld [vmem:[%s6720_s0 + $0x514] ss:$12 sps:$4 sm:$0xff]   ;;  %v4907_v46 = vld [vmem:[%s6720_s0 + $0x510] ss:$12 sps:$4 sm:$0xff]   ;;  %v4910_v48 = vld [vmem:[%s6720_s0 + $0x52c] ss:$12 sps:$4 sm:$0xff]  }
  0x11   :  { %v4912_v49 = vld [vmem:[%s6720_s0 + $0xa8] ss:$12 sps:$4 sm:$0xff]   ;;  %v4915_v51 = vld [vmem:[%s6720_s0 + $0xc4] ss:$12 sps:$4 sm:$0xff]   ;;  %v4919_v53 = vld [vmem:[%s6720_s0 + $0xc0] ss:$12 sps:$4 sm:$0xff]  }
  0x12   :  { %1577 = vmatpush1.bf16.msra.mxu0 %v4854_v5  ;;  %4837 = vmatpush1.bf16.msra.mxu1 %v4854_v5  ;;  %v4913_v50 = vld [vmem:[%s6720_s0 + $0x528] ss:$12 sps:$4 sm:$0xff]   ;;  %v4917_v52 = vld [vmem:[%s6720_s0 + $0x544] ss:$12 sps:$4 sm:$0xff]   ;;  %v4920_v54 = vld [vmem:[%s6720_s0 + $0x540] ss:$12 sps:$4 sm:$0xff]  }
  0x13   :  { %1578 = vmatprep.subr.bf16.mxu0 %v5124_v0  ;;  %4822 = vmatprep.subr.bf16.mxu1 %v5124_v0  ;;  %v4921_v55 = vld [vmem:[%s6720_s0 + $0xdc] ss:$12 sps:$4 sm:$0xff]   ;;  %v4925_v57 = vld [vmem:[%s6720_s0 + $0xd8] ss:$12 sps:$4 sm:$0xff]   ;;  %v4927_v59 = vld [vmem:[%s6720_s0 + $0xf4] ss:$12 sps:$4 sm:$0xff]  }
  0x14   :  { %v4923_v56 = vld [vmem:[%s6720_s0 + $0x55c] ss:$12 sps:$4 sm:$0xff]   ;;  %v4926_v58 = vld [vmem:[%s6720_s0 + $0x558] ss:$12 sps:$4 sm:$0xff]   ;;  %v4929_v60 = vld [vmem:[%s6720_s0 + $0x574] ss:$12 sps:$4 sm:$0xff]  }
  0x15   :  { %v4931_v61 = vld [vmem:[%s6720_s0 + $0xf0] ss:$12 sps:$4 sm:$0xff]   ;;  %v4933_v63 = vld [vmem:[%s6720_s0 + $0x10c] ss:$12 sps:$4 sm:$0xff]   ;;  %v4937_v1 = vld [vmem:[%s6720_s0 + $0x108] ss:$12 sps:$4 sm:$0xff]  }
  0x16   :  { %1579 = vmatpush1.bf16.msra.mxu0 %v4855_v7  ;;  %4838 = vmatpush1.bf16.msra.mxu1 %v4855_v7  ;;  %v4932_v62 = vld [vmem:[%s6720_s0 + $0x570] ss:$12 sps:$4 sm:$0xff]   ;;  %v4938_v2 = vld [vmem:[%s6720_s0 + $0x588] ss:$12 sps:$4 sm:$0xff]   ;;  %v4943_v5 = vld [vmem:[%s6720_s0 + $0x120] ss:$12 sps:$4 sm:$0xff]  }
  0x17   :  { %1580 = vmatprep.subr.bf16.mxu0 %v5124_v0  ;;  %4823 = vmatprep.subr.bf16.mxu1 %v5124_v0  ;;  %v4939_v3 = vld [vmem:[%s6720_s0 + $0x124] ss:$12 sps:$4 sm:$0xff]   ;;  %v4944_v6 = vld [vmem:[%s6720_s0 + $0x5a0] ss:$12 sps:$4 sm:$0xff]   ;;  %v4945_v7 = vld [vmem:[%s6720_s0 + $0x13c] ss:$12 sps:$4 sm:$0xff]  }
  0x18   :  { %v4941_v4 = vld [vmem:[%s6720_s0 + $0x5a4] ss:$12 sps:$4 sm:$0xff]   ;;  %v4947_v8 = vld [vmem:[%s6720_s0 + $0x5bc] ss:$12 sps:$4 sm:$0xff]  }
  0x1a   :  { %1581 = vmatpush1.bf16.msra.mxu0 %v4856_v9  ;;  %4839 = vmatpush1.bf16.msra.mxu1 %v4856_v9  ;;  %v4949_v9 = vld [vmem:[%s6720_s0 + $0x138] ss:$12 sps:$4 sm:$0xff]  }
  0x1b   :  { %1582 = vmatprep.subr.bf16.mxu0 %v5124_v0  ;;  %4824 = vmatprep.subr.bf16.mxu1 %v5124_v0 }
  0x1e   :  { %1583 = vmatpush1.bf16.msra.mxu0 %v4857_v10  ;;  %4840 = vmatpush1.bf16.msra.mxu1 %v4857_v10  ;;  %v4950_v10 = vld [vmem:[%s6720_s0 + $0x5b8] ss:$12 sps:$4 sm:$0xff]  }
  0x1f   :  { %1584 = vmatprep.subr.bf16.mxu0 %v5124_v0  ;;  %4825 = vmatprep.subr.bf16.mxu1 %v5124_v0 }
  0x22   :  { %1585 = vmatpush2.bf16.msra.mxu0 %v4858_v11  ;;  %4841 = vmatpush2.bf16.msra.mxu1 %v4858_v11  ;;  %v4951_v11 = vld [vmem:[%s6720_s0 + $0x154] ss:$12 sps:$4 sm:$0xff]  }
  0x23   :  { %1586 = vmatprep.subr.bf16.mxu0 %v5124_v0  ;;  %4826 = vmatprep.subr.bf16.mxu1 %v5124_v0 }
  0x26   :  { %1587 = vmatpush2.bf16.msra.mxu0 %v4859_v12  ;;  %4842 = vmatpush2.bf16.msra.mxu1 %v4859_v12  ;;  %v4953_v12 = vld [vmem:[%s6720_s0 + $0x5d4] ss:$12 sps:$4 sm:$0xff]  }
  0x27   :  { %1588 = vmatprep.subr.bf16.mxu0 %v5124_v0  ;;  %4827 = vmatprep.subr.bf16.mxu1 %v5124_v0 }
  0x2a   :  { %1589 = vmatpush2.bf16.msra.mxu0 %v4860_v13  ;;  %4843 = vmatpush2.bf16.msra.mxu1 %v4860_v13  ;;  %v4955_v13 = vld [vmem:[%s6720_s0 + $0x150] ss:$12 sps:$4 sm:$0xff]  }
  0x2b   :  { %1590 = vmatprep.subr.bf16.mxu0 %v5124_v0  ;;  %4828 = vmatprep.subr.bf16.mxu1 %v5124_v0 }
  0x2e   :  { %1591 = vmatpush2.bf16.msra.mxu0 %v4861_v14  ;;  %4844 = vmatpush2.bf16.msra.mxu1 %v4861_v14  ;;  %v4956_v14 = vld [vmem:[%s6720_s0 + $0x5d0] ss:$12 sps:$4 sm:$0xff]  }
  0x2f   :  { %1592 = vmatprep.subr.bf16.mxu0 %v5124_v0  ;;  %4829 = vmatprep.subr.bf16.mxu1 %v5124_v0 }
  0x32   :  { %1593 = vmatpush2.bf16.msra.mxu0 %v4862_v15  ;;  %4845 = vmatpush2.bf16.msra.mxu1 %v4862_v15  ;;  %v4957_v15 = vld [vmem:[%s6720_s0 + $0x16c] ss:$12 sps:$4 sm:$0xff]  }
  0x33   :  { %1594 = vmatprep.subr.bf16.mxu0 %v5124_v0  ;;  %4830 = vmatprep.subr.bf16.mxu1 %v5124_v0 }
  0x36   :  { %1595 = vmatpush2.bf16.msra.mxu0 %v4863_v16  ;;  %4846 = vmatpush2.bf16.msra.mxu1 %v4863_v16  ;;  %v4959_v16 = vld [vmem:[%s6720_s0 + $0x5ec] ss:$12 sps:$4 sm:$0xff]  }
  0x37   :  { %1596 = vmatprep.subr.bf16.mxu0 %v5124_v0  ;;  %4831 = vmatprep.subr.bf16.mxu1 %v5124_v0 }
  0x3a   :  { %1597 = vmatpush2.bf16.msra.mxu0 %v4864_v17  ;;  %4847 = vmatpush2.bf16.msra.mxu1 %v4864_v17  ;;  %v4961_v17 = vld [vmem:[%s6720_s0 + $0x168] ss:$12 sps:$4 sm:$0xff]  }
  0x3b   :  { %1598 = vmatprep.subr.bf16.mxu0 %v5124_v0  ;;  %4832 = vmatprep.subr.bf16.mxu1 %v5124_v0  ;;  %v4935_v0 = vld [vmem:[%s6720_s0 + $0x58c] ss:$12 sps:$4 sm:$0xff]  }
  0x3e   :  { %1599 = vmatpush2.bf16.msra.mxu0 %v4865_v18  ;;  %4848 = vmatpush2.bf16.msra.mxu1 %v4865_v18  ;;  %v4962_v18 = vld [vmem:[%s6720_s0 + $0x5e8] ss:$12 sps:$4 sm:$0xff]  }
  0x3f   :  { %4685 = vmatprep.subr.bf16.mxu1 %v4914_v19 }
  0x41   :  { %1601 = vmatmul.mubr.bf16.vlgmr.msra.gmra.mxu0 %v4866_v20  ;;  %1985 = vmatmul.mubr.bf16.vlgmr.msra.gmra.mxu1 %v4869_v21  ;;  %v4966_v20 = vld [vmem:[%s6720_s0 + $0x8] ss:$12 sps:$4 sm:$0xff]   ;;  %v4967_v21 = vld [vmem:[%s6720_s0 + $0x180] ss:$12 sps:$4 sm:$0xff]  }
  0x42   :  { %1608 = vmatprep.mubr.bf16.mxu0 %v4872_v22  ;;  %1992 = vmatprep.mubr.bf16.mxu1 %v4874_v23  ;;  %v4968_v22 = vld [vmem:[%s6720_s0 + $0x20] ss:$12 sps:$4 sm:$0xff]   ;;  %v4969_v23 = vld [vmem:[%s6720_s0 + $0x19c] ss:$12 sps:$4 sm:$0xff]  }
  0x43   :  { %4686 = vmatpush3.bf16.msra.mxu1 %v4914_v19  ;;  %v4964_v19 = vld [vmem:[%s6720_s0 + $0x184] ss:$12 sps:$4 sm:$0xff]  }
  0x44   :  { %4687 = vmatprep.subr.bf16.mxu1 %v4963_v24 }
  0x47   :  { %4688 = vmatpush3.bf16.msra.mxu1 %v4963_v24  ;;  %v4971_v24 = vld [vmem:[%s6720_s0 + $0x38] ss:$12 sps:$4 sm:$0xff]  }
  0x49   :  { %1609 = vmatmul.mubr.bf16.gmra.mxu0 %v4876_v25  ;;  %1993 = vmatmul.mubr.bf16.gmra.mxu1 %v4877_v26  ;;  %v4972_v25 = vld [vmem:[%s6720_s0 + $0x198] ss:$12 sps:$4 sm:$0xff]   ;;  %v4973_v26 = vld [vmem:[%s6720_s0 + $0x50] ss:$12 sps:$4 sm:$0xff]  }
  0x4a   :  { %1616 = vmatprep.mubr.bf16.mxu0 %v4878_v27  ;;  %2000 = vmatprep.mubr.bf16.mxu1 %v4880_v28  ;;  %v4974_v27 = vld [vmem:[%s6720_s0 + $0x1b4] ss:$12 sps:$4 sm:$0xff]  }
  0x4b   :  { %v4976_v28 = vld [vmem:[%s6720_s0 + $0x68] ss:$12 sps:$4 sm:$0xff]  }
  0x51   :  { %1617 = vmatmul.mubr.bf16.gmra.mxu0 %v4882_v29  ;;  %2001 = vmatmul.mubr.bf16.gmra.mxu1 %v4883_v30  ;;  %v4977_v29 = vld [vmem:[%s6720_s0 + $0x1b0] ss:$12 sps:$4 sm:$0xff]   ;;  %v4978_v30 = vld [vmem:[%s6720_s0 + $0x80] ss:$12 sps:$4 sm:$0xff]  }
  0x52   :  { %1624 = vmatprep.mubr.bf16.mxu0 %v4884_v31  ;;  %2008 = vmatprep.mubr.bf16.mxu1 %v4886_v32  ;;  %v4979_v31 = vld [vmem:[%s6720_s0 + $0x1cc] ss:$12 sps:$4 sm:$0xff]  }
  0x53   :  { %v4981_v32 = vld [vmem:[%s6720_s0 + $0x98] ss:$12 sps:$4 sm:$0xff]  }
  0x59   :  { %1625 = vmatmul.mubr.bf16.gmra.mxu0 %v4888_v33  ;;  %2009 = vmatmul.mubr.bf16.gmra.mxu1 %v4889_v34  ;;  %v4982_v33 = vld [vmem:[%s6720_s0 + $0x1c8] ss:$12 sps:$4 sm:$0xff]   ;;  %v4983_v34 = vld [vmem:[%s6720_s0 + $0xb0] ss:$12 sps:$4 sm:$0xff]  }
  0x5a   :  { %1632 = vmatprep.mubr.bf16.mxu0 %v4890_v35  ;;  %2016 = vmatprep.mubr.bf16.mxu1 %v4892_v36  ;;  %v4984_v35 = vld [vmem:[%s6720_s0 + $0x1e4] ss:$12 sps:$4 sm:$0xff]   ;;  %v4986_v36 = vld [vmem:[%s6720_s0 + $0xc8] ss:$12 sps:$4 sm:$0xff]  }
  0x61   :  { %1633 = vmatmul.mubr.bf16.gmra.mxu0 %v4894_v37  ;;  %2017 = vmatmul.mubr.bf16.gmra.mxu1 %v4895_v38  ;;  %v4987_v37 = vld [vmem:[%s6720_s0 + $0x1e0] ss:$12 sps:$4 sm:$0xff]  }
  0x62   :  { %1640 = vmatprep.mubr.bf16.mxu0 %v4896_v39  ;;  %2024 = vmatprep.mubr.bf16.mxu1 %v4898_v40  ;;  %v4988_v38 = vld [vmem:[%s6720_s0 + $0xe0] ss:$12 sps:$4 sm:$0xff]   ;;  %v4989_v39 = vld [vmem:[%s6720_s0 + $0x1fc] ss:$12 sps:$4 sm:$0xff]   ;;  %v4991_v40 = vld [vmem:[%s6720_s0 + $0xf8] ss:$12 sps:$4 sm:$0xff]  }
  0x69   :  { %1641 = vmatmul.mubr.bf16.gmra.mxu0 %v4900_v41  ;;  %2025 = vmatmul.mubr.bf16.gmra.mxu1 %v4901_v42  ;;  %v4992_v41 = vld [vmem:[%s6720_s0 + $0x1f8] ss:$12 sps:$4 sm:$0xff]   ;;  %v4993_v42 = vld [vmem:[%s6720_s0 + $0x110] ss:$12 sps:$4 sm:$0xff]  }
  0x6a   :  { %1648 = vmatprep.mubr.bf16.mxu0 %v4902_v43  ;;  %2032 = vmatprep.mubr.bf16.mxu1 %v4904_v44  ;;  %v4994_v43 = vld [vmem:[%s6720_s0 + $0x214] ss:$12 sps:$4 sm:$0xff]  }
  0x6b   :  { %v4996_v44 = vld [vmem:[%s6720_s0 + $0x128] ss:$12 sps:$4 sm:$0xff]  }
  0x71   :  { %1649 = vmatmul.mubr.bf16.gmra.mxu0 %v4906_v45  ;;  %2033 = vmatmul.mubr.bf16.gmra.mxu1 %v4907_v46  ;;  %v4997_v45 = vld [vmem:[%s6720_s0 + $0x210] ss:$12 sps:$4 sm:$0xff]   ;;  %v4998_v46 = vld [vmem:[%s6720_s0 + $0x140] ss:$12 sps:$4 sm:$0xff]  }
  0x72   :  { %1656 = vmatprep.mubr.bf16.mxu0 %v4908_v47  ;;  %2040 = vmatprep.mubr.bf16.mxu1 %v4910_v48  ;;  %v4999_v47 = vld [vmem:[%s6720_s0 + $0x22c] ss:$12 sps:$4 sm:$0xff]  }
  0x73   :  { %v5001_v48 = vld [vmem:[%s6720_s0 + $0x158] ss:$12 sps:$4 sm:$0xff]  }
  0x79   :  { %1657 = vmatmul.mubr.bf16.gmra.mxu0 %v4912_v49  ;;  %2041 = vmatmul.mubr.bf16.gmra.mxu1 %v4913_v50  ;;  %v5002_v49 = vld [vmem:[%s6720_s0 + $0x228] ss:$12 sps:$4 sm:$0xff]   ;;  %v5003_v50 = vld [vmem:[%s6720_s0 + $0x170] ss:$12 sps:$4 sm:$0xff]  }
  0x7a   :  { %1664 = vmatprep.mubr.bf16.mxu0 %v4915_v51  ;;  %2048 = vmatprep.mubr.bf16.mxu1 %v4917_v52  ;;  %v5004_v51 = vld [vmem:[%s6720_s0 + $0x244] ss:$12 sps:$4 sm:$0xff]   ;;  %v5006_v52 = vld [vmem:[%s6720_s0 + $0x188] ss:$12 sps:$4 sm:$0xff]  }
  0x81   :  { %1665 = vmatmul.mubr.bf16.gmra.mxu0 %v4919_v53  ;;  %2049 = vmatmul.mubr.bf16.gmra.mxu1 %v4920_v54  ;;  %v5007_v53 = vld [vmem:[%s6720_s0 + $0x240] ss:$12 sps:$4 sm:$0xff]  }
  0x82   :  { %1672 = vmatprep.mubr.bf16.mxu0 %v4921_v55  ;;  %2056 = vmatprep.mubr.bf16.mxu1 %v4923_v56  ;;  %v5008_v54 = vld [vmem:[%s6720_s0 + $0x1a0] ss:$12 sps:$4 sm:$0xff]   ;;  %v5009_v55 = vld [vmem:[%s6720_s0 + $0x25c] ss:$12 sps:$4 sm:$0xff]   ;;  %v5011_v56 = vld [vmem:[%s6720_s0 + $0x1b8] ss:$12 sps:$4 sm:$0xff]  }
  0x89   :  { %1673 = vmatmul.mubr.bf16.gmra.mxu0 %v4925_v57  ;;  %2057 = vmatmul.mubr.bf16.gmra.mxu1 %v4926_v58 }
  0x8a   :  { %1680 = vmatprep.mubr.bf16.mxu0 %v4927_v59  ;;  %2064 = vmatprep.mubr.bf16.mxu1 %v4929_v60 }
  0x91   :  { %1681 = vmatmul.mubr.bf16.gmra.mxu0 %v4931_v61  ;;  %2065 = vmatmul.mubr.bf16.gmra.mxu1 %v4932_v62 }
  0x92   :  { %1688 = vmatprep.mubr.bf16.mxu0 %v4933_v63  ;;  %2072 = vmatprep.mubr.bf16.mxu1 %v4935_v0  ;;  %v5012_v63 = vld [vmem:[%s6720_s0 + $0x258] ss:$12 sps:$4 sm:$0xff]   ;;  %v5013_v0 = vld [vmem:[%s6720_s0 + $0x1d0] ss:$12 sps:$4 sm:$0xff]  }
  0x99   :  { %1689 = vmatmul.mubr.bf16.gmra.mxu0 %v4937_v1  ;;  %2073 = vmatmul.mubr.bf16.gmra.mxu1 %v4938_v2  ;;  %v5014_v1 = vld [vmem:[%s6720_s0 + $0x274] ss:$12 sps:$4 sm:$0xff]  }
  0x9a   :  { %1696 = vmatprep.mubr.bf16.mxu0 %v4939_v3  ;;  %2080 = vmatprep.mubr.bf16.mxu1 %v4941_v4  ;;  %v5016_v2 = vld [vmem:[%s6720_s0 + $0x1e8] ss:$12 sps:$4 sm:$0xff]  }
  0xa1   :  { %1697 = vmatmul.mubr.bf16.gmra.mxu0 %v4943_v5  ;;  %2081 = vmatmul.mubr.bf16.gmra.mxu1 %v4944_v6 }
  0xa2   :  { %1704 = vmatprep.mubr.bf16.mxu0 %v4945_v7  ;;  %2088 = vmatprep.mubr.bf16.mxu1 %v4947_v8 }
  0xa9   :  { %1705 = vmatmul.mubr.bf16.gmra.mxu0 %v4949_v9  ;;  %2089 = vmatmul.mubr.bf16.gmra.mxu1 %v4950_v10 }
  0xaa   :  { %1712 = vmatprep.mubr.bf16.mxu0 %v4951_v11  ;;  %2096 = vmatprep.mubr.bf16.mxu1 %v4953_v12  ;;  %v5017_v11 = vld [vmem:[%s6720_s0 + $0x270] ss:$12 sps:$4 sm:$0xff]   ;;  %v5018_v12 = vld [vmem:[%s6720_s0 + $0x200] ss:$12 sps:$4 sm:$0xff]  }
  0xb1   :  { %1713 = vmatmul.mubr.bf16.gmra.mxu0 %v4955_v13  ;;  %2097 = vmatmul.mubr.bf16.gmra.mxu1 %v4956_v14  ;;  %v5019_v13 = vld [vmem:[%s6720_s0 + $0x28c] ss:$12 sps:$4 sm:$0xff]  }
  0xb2   :  { %1720 = vmatprep.mubr.bf16.mxu0 %v4957_v15  ;;  %2104 = vmatprep.mubr.bf16.mxu1 %v4959_v16  ;;  %v5021_v14 = vld [vmem:[%s6720_s0 + $0x218] ss:$12 sps:$4 sm:$0xff]  }
  0xb9   :  { %1721 = vmatmul.mubr.bf16.gmra.mxu0 %v4961_v17  ;;  %2105 = vmatmul.mubr.bf16.gmra.mxu1 %v4962_v18 }
  0xba   :  { %1728 = vmatprep.mubr.bf16.mxu0 %v4964_v19  ;;  %4689 = vmatprep.mubr.msk.bf16.mxu1 %vm1375_vm0, %v4966_v20 }
  0xc1   :  { %1729 = vmatmul.mubr.bf16.gmra.mxu0 %v4967_v21  ;;  %4690 = vmatmul.mubr.msk.bf16.vlgmr.msra.gmra.mxu1 %vm1375_vm0, %v4968_v22 }
  0xc2   :  { %1736 = vmatprep.mubr.bf16.mxu0 %v4969_v23  ;;  %4693 = vmatprep.mubr.msk.bf16.mxu1 %vm1375_vm0, %v4971_v24  ;;  %v5022_v23 = vld [vmem:[%s6720_s0 + $0x288] ss:$12 sps:$4 sm:$0xff]   ;;  %v5023_v24 = vld [vmem:[%s6720_s0 + $0x230] ss:$12 sps:$4 sm:$0xff]  }
  0xc9   :  { %1737 = vmatmul.mubr.bf16.gmra.mxu0 %v4972_v25  ;;  %4694 = vmatmul.mubr.msk.bf16.gmra.mxu1 %vm1375_vm0, %v4973_v26  ;;  %v5026_v25 = vld [vmem:[%s6720_s0 + $0x2a4] ss:$12 sps:$4 sm:$0xff]   ;;  %v5027_v26 = vld [vmem:[%s6720_s0 + $0x248] ss:$12 sps:$4 sm:$0xff]  }
  0xca   :  { %1744 = vmatprep.mubr.bf16.mxu0 %v4974_v27  ;;  %4697 = vmatprep.mubr.msk.bf16.mxu1 %vm1375_vm0, %v4976_v28 }
  0xd1   :  { %1745 = vmatmul.mubr.bf16.gmra.mxu0 %v4977_v29  ;;  %4698 = vmatmul.mubr.msk.bf16.gmra.mxu1 %vm1375_vm0, %v4978_v30 }
  0xd2   :  { %1752 = vmatprep.mubr.bf16.mxu0 %v4979_v31  ;;  %4701 = vmatprep.mubr.msk.bf16.mxu1 %vm1375_vm0, %v4981_v32 }
  0xd9   :  { %1753 = vmatmul.mubr.bf16.gmra.mxu0 %v4982_v33  ;;  %4702 = vmatmul.mubr.msk.bf16.gmra.mxu1 %vm1375_vm0, %v4983_v34 }
  0xda   :  { %1760 = vmatprep.mubr.bf16.mxu0 %v4984_v35  ;;  %4705 = vmatprep.mubr.msk.bf16.mxu1 %vm1375_vm0, %v4986_v36  ;;  %v5024_v35 = vld [vmem:[%s6720_s0 + $0x2a0] ss:$12 sps:$4 sm:$0xff]  }
  0xdb   :  { %v5028_v36 = vld [vmem:[%s6720_s0 + $0x260] ss:$12 sps:$4 sm:$0xff]  }
  0xe1   :  { %1761 = vmatmul.mubr.bf16.gmra.mxu0 %v4987_v37  ;;  %4706 = vmatmul.mubr.msk.bf16.gmra.mxu1 %vm1375_vm0, %v4988_v38  ;;  %v5031_v37 = vld [vmem:[%s6720_s0 + $0x2bc] ss:$12 sps:$4 sm:$0xff]   ;;  %v5032_v38 = vld [vmem:[%s6720_s0 + $0x278] ss:$12 sps:$4 sm:$0xff]  }
  0xe2   :  { %1768 = vmatprep.mubr.bf16.mxu0 %v4989_v39  ;;  %4709 = vmatprep.mubr.msk.bf16.mxu1 %vm1375_vm0, %v4991_v40 }
  0xe9   :  { %1769 = vmatmul.mubr.bf16.gmra.mxu0 %v4992_v41  ;;  %4710 = vmatmul.mubr.msk.bf16.gmra.mxu1 %vm1375_vm0, %v4993_v42 }
  0xea   :  { %1776 = vmatprep.mubr.bf16.mxu0 %v4994_v43  ;;  %4713 = vmatprep.mubr.msk.bf16.mxu1 %vm1375_vm0, %v4996_v44 }
  0xf1   :  { %1777 = vmatmul.mubr.bf16.gmra.mxu0 %v4997_v45  ;;  %4714 = vmatmul.mubr.msk.bf16.gmra.mxu1 %vm1375_vm0, %v4998_v46 }
  0xf2   :  { %1784 = vmatprep.mubr.bf16.mxu0 %v4999_v47  ;;  %4717 = vmatprep.mubr.msk.bf16.mxu1 %vm1375_vm0, %v5001_v48  ;;  %v5029_v47 = vld [vmem:[%s6720_s0 + $0x2b8] ss:$12 sps:$4 sm:$0xff]   ;;  %v5033_v48 = vld [vmem:[%s6720_s0 + $0x290] ss:$12 sps:$4 sm:$0xff]  }
  0xf9   :  { %1785 = vmatmul.mubr.bf16.gmra.mxu0 %v5002_v49  ;;  %4718 = vmatmul.mubr.msk.bf16.gmra.mxu1 %vm1375_vm0, %v5003_v50  ;;  %v5036_v49 = vld [vmem:[%s6720_s0 + $0x2d4] ss:$12 sps:$4 sm:$0xff]  }
  0xfa   :  { %1792 = vmatprep.mubr.bf16.mxu0 %v5004_v51  ;;  %4721 = vmatprep.mubr.msk.bf16.mxu1 %vm1375_vm0, %v5006_v52  ;;  %v5037_v50 = vld [vmem:[%s6720_s0 + $0x2a8] ss:$12 sps:$4 sm:$0xff]  }
 0x101   :  { %v5559_v57 = vpop.f32.mrf.mxu0  ;;  %1793 = vmatmul.mubr.bf16.gmra.mxu0 %v5007_v53  ;;  %v5561_v58 = vpop.f32.mrf.mxu1  ;;  %4722 = vmatmul.mubr.msk.bf16.gmra.mxu1 %vm1375_vm0, %v5008_v54 }
 0x102   :  { %1800 = vmatprep.mubr.bf16.mxu0 %v5009_v55  ;;  %4725 = vmatprep.mubr.msk.bf16.mxu1 %vm1375_vm0, %v5011_v56 }
 0x103   :  { %v1604_v59 = vpop.f32.mrf.mxu0  ;;  %v1988_v60 = vpop.f32.mrf.mxu1 }
 0x105   :  { %v5565_v61 = vpop.f32.mrf.mxu0  ;;  %v5567_v62 = vpop.f32.mrf.mxu1 }
 0x107   :  { %v1607_v3 = vpop.f32.mrf.mxu0  ;;  %v1991_v4 = vpop.f32.mrf.mxu1 }
 0x109   :  { %v5581_v5 = vpop.f32.mrf.mxu0  ;;  %1801 = vmatmul.mubr.bf16.gmra.mxu0 %v5012_v63  ;;  %v5583_v6 = vpop.f32.mrf.mxu1  ;;  %4726 = vmatmul.mubr.msk.bf16.gmra.mxu1 %vm1375_vm0, %v5013_v0  ;;  %v5034_v63 = vld [vmem:[%s6720_s0 + $0x2d0] ss:$12 sps:$4 sm:$0xff]   ;;  %v5038_v0 = vld [vmem:[%s6720_s0 + $0x2c0] ss:$12 sps:$4 sm:$0xff]  }
 0x10a   :  { %1808 = vmatprep.mubr.bf16.mxu0 %v5014_v1  ;;  %4729 = vmatprep.mubr.msk.bf16.mxu1 %vm1375_vm0, %v5016_v2  ;;  %v5041_v1 = vld [vmem:[%s6720_s0 + $0x2ec] ss:$12 sps:$4 sm:$0xff]  }
 0x10b   :  { %v1612_v7 = vpop.f32.mrf.mxu0  ;;  %v1996_v8 = vpop.f32.mrf.mxu1  ;;  %v5042_v2 = vld [vmem:[%s6720_s0 + $0x2d8] ss:$12 sps:$4 sm:$0xff]  }
 0x10d   :  { %v5587_v9 = vpop.f32.mrf.mxu0  ;;  %v5589_v10 = vpop.f32.mrf.mxu1 }
 0x10f   :  { %v1615_v15 = vpop.f32.mrf.mxu0  ;;  %v1999_v16 = vpop.f32.mrf.mxu1 }
 0x110   :  { %v5039_v15 = vld [vmem:[%s6720_s0 + $0x2e8] ss:$12 sps:$4 sm:$0xff]   ;;  %v5043_v16 = vld [vmem:[%s6720_s0 + $0x2f0] ss:$12 sps:$4 sm:$0xff]  }
 0x111   :  { %v5603_v17 = vpop.f32.mrf.mxu0  ;;  %1809 = vmatmul.mubr.bf16.gmra.mxu0 %v5017_v11  ;;  %v5605_v18 = vpop.f32.mrf.mxu1  ;;  %4730 = vmatmul.mubr.msk.bf16.gmra.mxu1 %vm1375_vm0, %v5018_v12 }
 0x112   :  { %1816 = vmatprep.mubr.bf16.mxu0 %v5019_v13  ;;  %4733 = vmatprep.mubr.msk.bf16.mxu1 %vm1375_vm0, %v5021_v14 }
 0x113   :  { %v1620_v19 = vpop.f32.mrf.mxu0  ;;  %v2004_v20 = vpop.f32.mrf.mxu1 }
 0x114   :  { %v5046_v19 = vld [vmem:[%s6720_s0 + $0x304] ss:$12 sps:$4 sm:$0xff]   ;;  %v5047_v20 = vld [vmem:[%s6720_s0 + $0x308] ss:$12 sps:$4 sm:$0xff]  }
 0x115   :  { %v5609_v21 = vpop.f32.mrf.mxu0  ;;  %v5611_v22 = vpop.f32.mrf.mxu1 }
 0x117   :  { %v1623_v27 = vpop.f32.mrf.mxu0  ;;  %v2007_v28 = vpop.f32.mrf.mxu1 }
 0x119   :  { %v5625_v29 = vpop.f32.mrf.mxu0  ;;  %1817 = vmatmul.mubr.bf16.gmra.mxu0 %v5022_v23  ;;  %v5627_v30 = vpop.f32.mrf.mxu1  ;;  %4734 = vmatmul.mubr.msk.bf16.gmra.mxu1 %vm1375_vm0, %v5023_v24 }
 0x11a   :  { %1824 = vmatprep.mubr.bf16.mxu0 %v5026_v25  ;;  %4737 = vmatprep.mubr.msk.bf16.mxu1 %vm1375_vm0, %v5027_v26 }
 0x11b   :  { %v1628_v31 = vpop.f32.mrf.mxu0  ;;  %v2012_v32 = vpop.f32.mrf.mxu1 }
 0x11d   :  { %v5631_v33 = vpop.f32.mrf.mxu0  ;;  %v5633_v34 = vpop.f32.mrf.mxu1 }
 0x11f   :  { %v1631_v39 = vpop.f32.mrf.mxu0  ;;  %v2015_v40 = vpop.f32.mrf.mxu1 }
 0x121   :  { %v5647_v41 = vpop.f32.mrf.mxu0  ;;  %1825 = vmatmul.mubr.bf16.gmra.mxu0 %v5024_v35  ;;  %v5649_v42 = vpop.f32.mrf.mxu1  ;;  %4738 = vmatmul.mubr.msk.bf16.gmra.mxu1 %vm1375_vm0, %v5028_v36  ;;  %v5044_v35 = vld [vmem:[%s6720_s0 + $0x300] ss:$12 sps:$4 sm:$0xff]  }
 0x122   :  { %1832 = vmatprep.mubr.bf16.mxu0 %v5031_v37  ;;  %4741 = vmatprep.mubr.msk.bf16.mxu1 %vm1375_vm0, %v5032_v38  ;;  %v5048_v36 = vld [vmem:[%s6720_s0 + $0x320] ss:$12 sps:$4 sm:$0xff]   ;;  %v5051_v37 = vld [vmem:[%s6720_s0 + $0x31c] ss:$12 sps:$4 sm:$0xff]   ;;  %v5052_v38 = vld [vmem:[%s6720_s0 + $0x338] ss:$12 sps:$4 sm:$0xff]  }
 0x123   :  { %v1636_v43 = vpop.f32.mrf.mxu0  ;;  %v2020_v44 = vpop.f32.mrf.mxu1 }
 0x125   :  { %v5653_v45 = vpop.f32.mrf.mxu0  ;;  %v5655_v46 = vpop.f32.mrf.mxu1 }
 0x126   :  { %6724 = vst [vmem:[#allocation2_spill] sm:$0xff] %v5655_v46 }
 0x127   :  { %v1639_v51 = vpop.f32.mrf.mxu0  ;;  %v2023_v52 = vpop.f32.mrf.mxu1 }
 0x128   :  { %v5049_v51 = vld [vmem:[%s6720_s0 + $0x318] ss:$12 sps:$4 sm:$0xff]   ;;  %v5053_v52 = vld [vmem:[%s6720_s0 + $0x350] ss:$12 sps:$4 sm:$0xff]  }
 0x129   :  { %v5669_v53 = vpop.f32.mrf.mxu0  ;;  %1833 = vmatmul.mubr.bf16.gmra.mxu0 %v5029_v47  ;;  %v5671_v54 = vpop.f32.mrf.mxu1  ;;  %4742 = vmatmul.mubr.msk.bf16.gmra.mxu1 %vm1375_vm0, %v5033_v48 }
 0x12a   :  { %1840 = vmatprep.mubr.bf16.mxu0 %v5036_v49  ;;  %4745 = vmatprep.mubr.msk.bf16.mxu1 %vm1375_vm0, %v5037_v50 }
 0x12b   :  { %v1644_v55 = vpop.f32.mrf.mxu0  ;;  %v2028_v56 = vpop.f32.mrf.mxu1 }
 0x12c   :  { %v5056_v55 = vld [vmem:[%s6720_s0 + $0x334] ss:$12 sps:$4 sm:$0xff]  }
 0x12d   :  { %v5675_v59 = vpop.f32.mrf.mxu0  ;;  %v5677_v60 = vpop.f32.mrf.mxu1  ;;  %v5057_v56 = vld [vmem:[%s6720_s0 + $0x368] ss:$12 sps:$4 sm:$0xff]  }
 0x12f   :  { %v1647_v3 = vpop.f32.mrf.mxu0  ;;  %v2031_v4 = vpop.f32.mrf.mxu1 }
 0x131   :  { %v5691_v7 = vpop.f32.mrf.mxu0  ;;  %1841 = vmatmul.mubr.bf16.gmra.mxu0 %v5034_v63  ;;  %v5693_v8 = vpop.f32.mrf.mxu1  ;;  %4746 = vmatmul.mubr.msk.bf16.gmra.mxu1 %vm1375_vm0, %v5038_v0 }
 0x132   :  { %6725 = vst [vmem:[#allocation3_spill] sm:$0xff] %v5693_v8  ;;  %1848 = vmatprep.mubr.bf16.mxu0 %v5041_v1  ;;  %4749 = vmatprep.mubr.msk.bf16.mxu1 %vm1375_vm0, %v5042_v2 }
 0x133   :  { %v1652_v11 = vpop.f32.mrf.mxu0  ;;  %v2036_v12 = vpop.f32.mrf.mxu1 }
 0x135   :  { %v5697_v13 = vpop.f32.mrf.mxu0  ;;  %v5699_v14 = vpop.f32.mrf.mxu1 }
 0x136   :  { %6726 = vst [vmem:[#allocation4_spill] sm:$0xff] %v5699_v14 }
 0x137   :  { %v1655_v23 = vpop.f32.mrf.mxu0  ;;  %v2039_v24 = vpop.f32.mrf.mxu1 }
 0x139   :  { %v5713_v25 = vpop.f32.mrf.mxu0  ;;  %1849 = vmatmul.mubr.bf16.gmra.mxu0 %v5039_v15  ;;  %v5715_v26 = vpop.f32.mrf.mxu1  ;;  %4750 = vmatmul.mubr.msk.bf16.gmra.mxu1 %vm1375_vm0, %v5043_v16  ;;  %v5054_v15 = vld [vmem:[%s6720_s0 + $0x330] ss:$12 sps:$4 sm:$0xff]   ;;  %v5058_v16 = vld [vmem:[%s6720_s0 + $0x380] ss:$12 sps:$4 sm:$0xff]  }
 0x13a   :  { %6727 = vst [vmem:[#allocation5_spill] sm:$0xff] %v5715_v26  ;;  %1856 = vmatprep.mubr.bf16.mxu0 %v5046_v19  ;;  %4753 = vmatprep.mubr.msk.bf16.mxu1 %vm1375_vm0, %v5047_v20  ;;  %v5061_v19 = vld [vmem:[%s6720_s0 + $0x34c] ss:$12 sps:$4 sm:$0xff]  }
 0x13b   :  { %v1660_v27 = vpop.f32.mrf.mxu0  ;;  %v2044_v28 = vpop.f32.mrf.mxu1  ;;  %v5062_v20 = vld [vmem:[%s6720_s0 + $0x398] ss:$12 sps:$4 sm:$0xff]  }
 0x13d   :  { %v5719_v31 = vpop.f32.mrf.mxu0  ;;  %v5721_v32 = vpop.f32.mrf.mxu1 }
 0x13e   :  { %6728 = vst [vmem:[#allocation6_spill] sm:$0xff] %v5721_v32 }
 0x13f   :  { %v1663_v39 = vpop.f32.mrf.mxu0  ;;  %v2047_v40 = vpop.f32.mrf.mxu1 }
 0x140   :  { %v5059_v39 = vld [vmem:[%s6720_s0 + $0x348] ss:$12 sps:$4 sm:$0xff]   ;;  %v5063_v40 = vld [vmem:[%s6720_s0 + $0x3b0] ss:$12 sps:$4 sm:$0xff]  }
 0x141   :  { %v5735_v43 = vpop.f32.mrf.mxu0  ;;  %1857 = vmatmul.mubr.bf16.gmra.mxu0 %v5044_v35  ;;  %v5737_v44 = vpop.f32.mrf.mxu1  ;;  %4754 = vmatmul.mubr.msk.bf16.gmra.mxu1 %vm1375_vm0, %v5048_v36 }
 0x142   :  { %6729 = vst [vmem:[#allocation7_spill] sm:$0xff] %v5737_v44  ;;  %1864 = vmatprep.mubr.bf16.mxu0 %v5051_v37  ;;  %4757 = vmatprep.mubr.msk.bf16.mxu1 %vm1375_vm0, %v5052_v38  ;;  %v5097_v44 = vld [vmem:[%s6720_s0 + $0x4e8] ss:$12 sps:$4 sm:$0xff]  }
 0x143   :  { %v1668_v47 = vpop.f32.mrf.mxu0  ;;  %v2052_v48 = vpop.f32.mrf.mxu1 }
 0x144   :  { %v5066_v47 = vld [vmem:[%s6720_s0 + $0x364] ss:$12 sps:$4 sm:$0xff]   ;;  %v5067_v48 = vld [vmem:[%s6720_s0 + $0x3c8] ss:$12 sps:$4 sm:$0xff]  }
 0x145   :  { %v5741_v49 = vpop.f32.mrf.mxu0  ;;  %v5743_v50 = vpop.f32.mrf.mxu1 }
 0x146   :  { %6730 = vst [vmem:[#allocation8_spill] sm:$0xff] %v5743_v50  ;;  %v5089_v50 = vld [vmem:[%s6720_s0 + $0x3d8] ss:$12 sps:$4 sm:$0xff]  }
 0x147   :  { %v1671_v63 = vpop.f32.mrf.mxu0  ;;  %v2055_v0 = vpop.f32.mrf.mxu1 }
 0x149   :  { %v5757_v1 = vpop.f32.mrf.mxu0  ;;  %1865 = vmatmul.mubr.bf16.gmra.mxu0 %v5049_v51  ;;  %v5759_v2 = vpop.f32.mrf.mxu1  ;;  %4758 = vmatmul.mubr.msk.bf16.gmra.mxu1 %vm1375_vm0, %v5053_v52 }
 0x14a   :  { %6731 = vst [vmem:[#allocation9_spill] sm:$0xff] %v5759_v2  ;;  %1872 = vmatprep.mubr.bf16.mxu0 %v5056_v55  ;;  %4761 = vmatprep.mubr.msk.bf16.mxu1 %vm1375_vm0, %v5057_v56 }
 0x14b   :  { %v1676_v3 = vpop.f32.mrf.mxu0  ;;  %v2060_v4 = vpop.f32.mrf.mxu1 }
 0x14d   :  { %v5763_v11 = vpop.f32.mrf.mxu0  ;;  %v5765_v12 = vpop.f32.mrf.mxu1 }
 0x14e   :  { %6732 = vst [vmem:[#allocation10_spill] sm:$0xff] %v5765_v12 }
 0x14f   :  { %v1679_v23 = vpop.f32.mrf.mxu0  ;;  %v2063_v24 = vpop.f32.mrf.mxu1 }
 0x151   :  { %v5779_v27 = vpop.f32.mrf.mxu0  ;;  %1873 = vmatmul.mubr.bf16.gmra.mxu0 %v5054_v15  ;;  %v5781_v28 = vpop.f32.mrf.mxu1  ;;  %4762 = vmatmul.mubr.msk.bf16.gmra.mxu1 %vm1375_vm0, %v5058_v16  ;;  %v5064_v15 = vld [vmem:[%s6720_s0 + $0x360] ss:$12 sps:$4 sm:$0xff]  }
 0x152   :  { %6733 = vst [vmem:[#allocation11_spill] sm:$0xff] %v5781_v28  ;;  %1880 = vmatprep.mubr.bf16.mxu0 %v5061_v19  ;;  %4765 = vmatprep.mubr.msk.bf16.mxu1 %vm1375_vm0, %v5062_v20  ;;  %v5068_v16 = vld [vmem:[%s6720_s0 + $0x3e0] ss:$12 sps:$4 sm:$0xff]   ;;  %v5071_v19 = vld [vmem:[%s6720_s0 + $0x37c] ss:$12 sps:$4 sm:$0xff]  }
 0x153   :  { %v1684_v35 = vpop.f32.mrf.mxu0  ;;  %v2068_v36 = vpop.f32.mrf.mxu1  ;;  %v5072_v20 = vld [vmem:[%s6720_s0 + $0x3f8] ss:$12 sps:$4 sm:$0xff]  }
 0x155   :  { %v5785_v37 = vpop.f32.mrf.mxu0  ;;  %v5787_v38 = vpop.f32.mrf.mxu1 }
 0x156   :  { %6734 = vst [vmem:[#allocation12_spill] sm:$0xff] %v5787_v38 }
 0x157   :  { %v1687_v51 = vpop.f32.mrf.mxu0  ;;  %v2071_v52 = vpop.f32.mrf.mxu1 }
 0x158   :  { %v5069_v51 = vld [vmem:[%s6720_s0 + $0x378] ss:$12 sps:$4 sm:$0xff]   ;;  %v5073_v52 = vld [vmem:[%s6720_s0 + $0x410] ss:$12 sps:$4 sm:$0xff]  }
 0x159   :  { %v5801_v55 = vpop.f32.mrf.mxu0  ;;  %1881 = vmatmul.mubr.bf16.gmra.mxu0 %v5059_v39  ;;  %v5803_v56 = vpop.f32.mrf.mxu1  ;;  %4766 = vmatmul.mubr.msk.bf16.gmra.mxu1 %vm1375_vm0, %v5063_v40 }
 0x15a   :  { %6735 = vst [vmem:[#allocation13_spill] sm:$0xff] %v5803_v56  ;;  %1888 = vmatprep.mubr.bf16.mxu0 %v5066_v47  ;;  %4769 = vmatprep.mubr.msk.bf16.mxu1 %vm1375_vm0, %v5067_v48 }
 0x15b   :  { %v1692_v63 = vpop.f32.mrf.mxu0  ;;  %v2076_v0 = vpop.f32.mrf.mxu1 }
 0x15c   :  { %v5076_v63 = vld [vmem:[%s6720_s0 + $0x394] ss:$12 sps:$4 sm:$0xff]  }
 0x15d   :  { %v5807_v3 = vpop.f32.mrf.mxu0  ;;  %v5809_v4 = vpop.f32.mrf.mxu1  ;;  %v5077_v0 = vld [vmem:[%s6720_s0 + $0x428] ss:$12 sps:$4 sm:$0xff]  }
 0x15e   :  { %6736 = vst [vmem:[#allocation14_spill] sm:$0xff] %v5809_v4 }
 0x15f   :  { %v1695_v23 = vpop.f32.mrf.mxu0  ;;  %v2079_v24 = vpop.f32.mrf.mxu1 }
 0x161   :  { %v5823_v35 = vpop.f32.mrf.mxu0  ;;  %1889 = vmatmul.mubr.bf16.gmra.mxu0 %v5064_v15  ;;  %v5825_v36 = vpop.f32.mrf.mxu1  ;;  %4770 = vmatmul.mubr.msk.bf16.gmra.mxu1 %vm1375_vm0, %v5068_v16 }
 0x162   :  { %6737 = vst [vmem:[#allocation15_spill] sm:$0xff] %v5825_v36  ;;  %1896 = vmatprep.mubr.bf16.mxu0 %v5071_v19  ;;  %4773 = vmatprep.mubr.msk.bf16.mxu1 %vm1375_vm0, %v5072_v20 }
 0x163   :  { %v1700_v39 = vpop.f32.mrf.mxu0  ;;  %v2084_v40 = vpop.f32.mrf.mxu1 }
 0x165   :  { %v5829_v47 = vpop.f32.mrf.mxu0  ;;  %v5831_v48 = vpop.f32.mrf.mxu1 }
 0x166   :  { %6738 = vst [vmem:[#allocation16_spill] sm:$0xff] %v5831_v48 }
 0x167   :  { %v1703_v15 = vpop.f32.mrf.mxu0  ;;  %v2087_v16 = vpop.f32.mrf.mxu1 }
 0x168   :  { %v5074_v15 = vld [vmem:[%s6720_s0 + $0x390] ss:$12 sps:$4 sm:$0xff]  }
 0x169   :  { %v5845_v19 = vpop.f32.mrf.mxu0  ;;  %1897 = vmatmul.mubr.bf16.gmra.mxu0 %v5069_v51  ;;  %v5847_v20 = vpop.f32.mrf.mxu1  ;;  %4774 = vmatmul.mubr.msk.bf16.gmra.mxu1 %vm1375_vm0, %v5073_v52  ;;  %v5078_v51 = vld [vmem:[%s6720_s0 + $0x440] ss:$12 sps:$4 sm:$0xff]  }
 0x16a   :  { %6739 = vst [vmem:[#allocation17_spill] sm:$0xff] %v5847_v20  ;;  %1904 = vmatprep.mubr.bf16.mxu0 %v5076_v63  ;;  %4777 = vmatprep.mubr.msk.bf16.mxu1 %vm1375_vm0, %v5077_v0  ;;  %v5081_v52 = vld [vmem:[%s6720_s0 + $0x3ac] ss:$12 sps:$4 sm:$0xff]  }
 0x16b   :  { %v1708_v23 = vpop.f32.mrf.mxu0  ;;  %v2092_v24 = vpop.f32.mrf.mxu1  ;;  %v5082_v63 = vld [vmem:[%s6720_s0 + $0x458] ss:$12 sps:$4 sm:$0xff]  }
 0x16d   :  { %v5851_v39 = vpop.f32.mrf.mxu0  ;;  %v5853_v40 = vpop.f32.mrf.mxu1 }
 0x16e   :  { %6740 = vst [vmem:[#allocation18_spill] sm:$0xff] %v5853_v40 }
 0x16f   :  { %v1711_v0 = vpop.f32.mrf.mxu0  ;;  %v2095_v16 = vpop.f32.mrf.mxu1 }
 0x170   :  { %v5079_v0 = vld [vmem:[%s6720_s0 + $0x3a8] ss:$12 sps:$4 sm:$0xff]  }
 0x171   :  { %v5867_v23 = vpop.f32.mrf.mxu0  ;;  %1905 = vmatmul.mubr.bf16.gmra.mxu0 %v5074_v15  ;;  %v5869_v24 = vpop.f32.mrf.mxu1  ;;  %4778 = vmatmul.mubr.msk.bf16.gmra.mxu1 %vm1375_vm0, %v5078_v51  ;;  %v5083_v15 = vld [vmem:[%s6720_s0 + $0x470] ss:$12 sps:$4 sm:$0xff]  }
 0x172   :  { %6741 = vst [vmem:[#allocation19_spill] sm:$0xff] %v5869_v24  ;;  %1912 = vmatprep.mubr.bf16.mxu0 %v5081_v52  ;;  %4781 = vmatprep.mubr.msk.bf16.mxu1 %vm1375_vm0, %v5082_v63  ;;  %v5086_v51 = vld [vmem:[%s6720_s0 + $0x3c4] ss:$12 sps:$4 sm:$0xff]  }
 0x173   :  { %v1716_v48 = vpop.f32.mrf.mxu0  ;;  %v2100_v36 = vpop.f32.mrf.mxu1 }
 0x174   :  { %v5087_v36 = vld [vmem:[%s6720_s0 + $0x488] ss:$12 sps:$4 sm:$0xff]  }
 0x175   :  { %v5873_v40 = vpop.f32.mrf.mxu0  ;;  %v5875_v20 = vpop.f32.mrf.mxu1 }
 0x176   :  { %6742 = vst [vmem:[#allocation20_spill] sm:$0xff] %v5875_v20 }
 0x177   :  { %v1719_v48 = vpop.f32.mrf.mxu0  ;;  %v2103_v52 = vpop.f32.mrf.mxu1 }
 0x178   :  { %v5084_v48 = vld [vmem:[%s6720_s0 + $0x3c0] ss:$12 sps:$4 sm:$0xff]  }
 0x179   :  { %v5889_v63 = vpop.f32.mrf.mxu0  ;;  %1913 = vmatmul.mubr.bf16.gmra.mxu0 %v5079_v0  ;;  %v5891_v16 = vpop.f32.mrf.mxu1  ;;  %4782 = vmatmul.mubr.msk.bf16.gmra.mxu1 %vm1375_vm0, %v5083_v15  ;;  %v5088_v0 = vld [vmem:[%s6720_s0 + $0x4a0] ss:$12 sps:$4 sm:$0xff]   ;;  %v5091_v15 = vld [vmem:[%s6720_s0 + $0x3dc] ss:$12 sps:$4 sm:$0xff]  }
 0x17a   :  { %6743 = vst [vmem:[#allocation21_spill] sm:$0xff] %v5891_v16  ;;  %1920 = vmatprep.mubr.bf16.mxu0 %v5086_v51  ;;  %4785 = vmatprep.mubr.msk.bf16.mxu1 %vm1375_vm0, %v5087_v36 }
 0x17b   :  { %v1724_v20 = vpop.f32.mrf.mxu0  ;;  %v2108_v24 = vpop.f32.mrf.mxu1 }
 0x17c   :  { %v5092_v20 = vld [vmem:[%s6720_s0 + $0x4b8] ss:$12 sps:$4 sm:$0xff]  }
 0x17d   :  { %v5895_v38 = vpop.f32.mrf.mxu0  ;;  %v5897_v28 = vpop.f32.mrf.mxu1 }
 0x17e   :  { %6744 = vst [vmem:[#allocation22_spill] sm:$0xff] %v5897_v28 }
 0x17f   :  { %v1727_v24 = vpop.f32.mrf.mxu0  ;;  %v2111_v51 = vpop.f32.mrf.mxu1 }
 0x180   :  { %v5093_v24 = vld [vmem:[%s6720_s0 + $0x4d0] ss:$12 sps:$4 sm:$0xff]  }
 0x181   :  { %v5911_v36 = vpop.f32.mrf.mxu0  ;;  %1921 = vmatmul.mubr.bf16.gmra.mxu0 %v5084_v48  ;;  %v4691_v52 = vpop.f32.mrf.mxu1  ;;  %4786 = vmatmul.mubr.msk.bf16.gmra.mxu1 %vm1375_vm0, %v5088_v0 }
 0x182   :  { %1928 = vmatprep.mubr.bf16.mxu0 %v5091_v15  ;;  %4789 = vmatprep.mubr.msk.bf16.mxu1 %vm1375_vm0, %v5092_v20  ;;  %v2156_v48 = vadd.f32 %v4691_v52, %v5581_v5 }
 0x183   :  { %v1732_v28 = vpop.f32.mrf.mxu0  ;;  %v2147_v16 = vpop.f32.mrf.mxu1 }
 0x184   :  { %v2148_v0 = vadd.f32 %v2147_v16, %v5559_v57  ;;  %v5096_v28 = vld [vmem:[%s6720_s0 + $0x3f4] ss:$12 sps:$4 sm:$0xff]  }
 0x185   :  { %v5915_v4 = vpop.f32.mrf.mxu0  ;;  %v4692_v56 = vpop.f32.mrf.mxu1 }
 0x186   :  { %v2159_v15 = vadd.f32 %v4692_v56, %v5587_v9  ;;  %v3432_v57 = vmul.f32 %v2148_v0, %v2148_v0 }
 0x187   :  { %v1735_v20 = vpop.f32.mrf.mxu0  ;;  %v2150_v51 = vpop.f32.mrf.mxu1 }
 0x188   :  { %v4244_v12 = vpack.c.bf16 %v2159_v15, %v2156_v48  ;;  %v2151_v2 = vadd.f32 %v2150_v51, %v5565_v61  ;;  %v3434_v61 = vmul.f32 %v2156_v48, %v2156_v48  ;;  %v3435_v8 = vmul.f32 %v2159_v15, %v2159_v15 }
 0x189   :  { %v5933_v14 = vpop.f32.mrf.mxu0  ;;  %1929 = vmatmul.mubr.bf16.gmra.mxu0 %v5089_v50  ;;  %v4695_v5 = vpop.f32.mrf.mxu1  ;;  %4790 = vmatmul.mubr.msk.bf16.gmra.mxu1 %vm1375_vm0, %v5093_v24 }
 0x18a   :  { %4556 = vst [vmem:[%s6721_s2 + $0x8] sm:$0xff] %v4244_v12   ;;  %v4239_v9 = vpack.c.bf16 %v2151_v2, %v2148_v0  ;;  %v3298_v56 = vadd.f32 %v2151_v2, %v2148_v0  ;;  %v3433_v16 = vmul.f32 %v2151_v2, %v2151_v2  ;;  %1936 = vmatprep.mubr.bf16.mxu0 %v5096_v28  ;;  %v5094_v2 = vld [vmem:[%s6720_s0 + $0x3f0] ss:$12 sps:$4 sm:$0xff]  }
 0x18b   :  { %v1740_v52 = vpop.f32.mrf.mxu0  ;;  %v2163_v20 = vpop.f32.mrf.mxu1  ;;  %4793 = vmatprep.mubr.msk.bf16.mxu1 %vm1375_vm0, %v5097_v44  ;;  %v5098_v44 = vld [vmem:[%s6720_s0 + $0x500] ss:$12 sps:$4 sm:$0xff]  }
 0x18c   :  { %4240 = vst [vmem:[%s6721_s2] sm:$0xff] %v4239_v9   ;;  %v3299_v50 = vadd.f32 %v3298_v56, %v2156_v48  ;;  %v3560_v24 = vadd.f32 %v3433_v16, %v3432_v57  ;;  %v2164_v51 = vadd.f32 %v2163_v20, %v5603_v17  ;;  %v2172_v9 = vadd.f32 %v4695_v5, %v5625_v29  ;;  %v5101_v17 = vld [vmem:[%s6720_s0 + $0x40c] ss:$12 sps:$4 sm:$0xff]  }
 0x18d   :  { %v5944_v32 = vpop.f32.mrf.mxu0  ;;  %v4696_v12 = vpop.f32.mrf.mxu1  ;;  %v5102_v57 = vld [vmem:[%s6720_s0 + $0x518] ss:$12 sps:$4 sm:$0xff]  }
 0x18e   :  { %v3300_v0 = vadd.f32 %v3299_v50, %v2159_v15  ;;  %v3561_v28 = vadd.f32 %v3560_v24, %v3434_v61  ;;  %v2175_v48 = vadd.f32 %v4696_v12, %v5631_v33  ;;  %v3436_v26 = vmul.f32 %v2164_v51, %v2164_v51 }
 0x18f   :  { %v1743_v56 = vpop.f32.mrf.mxu0  ;;  %v2166_v16 = vpop.f32.mrf.mxu1 }
 0x190   :  { %v3562_v52 = vadd.f32 %v3561_v28, %v3435_v8  ;;  %v3301_v20 = vadd.f32 %v3300_v0, %v2164_v51  ;;  %v4254_v46 = vpack.c.bf16 %v2175_v48, %v2172_v9  ;;  %v2167_v15 = vadd.f32 %v2166_v16, %v5609_v21  ;;  %v5103_v28 = vld [vmem:[%s6720_s0 + $0x530] ss:$12 sps:$4 sm:$0xff]  }
 0x191   :  { %v5961_v61 = vpop.f32.mrf.mxu0  ;;  %1937 = vmatmul.mubr.bf16.gmra.mxu0 %v5094_v2  ;;  %v4699_v29 = vpop.f32.mrf.mxu1  ;;  %4794 = vmatmul.mubr.msk.bf16.gmra.mxu1 %vm1375_vm0, %v5098_v44  ;;  %v3438_v21 = vmul.f32 %v2172_v9, %v2172_v9  ;;  %v3439_v56 = vmul.f32 %v2175_v48, %v2175_v48 }
 0x192   :  { %v3563_v33 = vadd.f32 %v3562_v52, %v3436_v26  ;;  %4558 = vst [vmem:[%s6721_s2 + $0x18] sm:$0xff] %v4254_v46   ;;  %1944 = vmatprep.mubr.bf16.mxu0 %v5101_v17  ;;  %4797 = vmatprep.mubr.msk.bf16.mxu1 %vm1375_vm0, %v5102_v57  ;;  %v4249_v8 = vpack.c.bf16 %v2167_v15, %v2164_v51  ;;  %v5099_v51 = vld [vmem:[%s6720_s0 + $0x408] ss:$12 sps:$4 sm:$0xff]  }
 0x193   :  { %v3302_v5 = vadd.f32 %v3301_v20, %v2167_v15  ;;  %v3437_v50 = vmul.f32 %v2167_v15, %v2167_v15  ;;  %v1748_v24 = vpop.f32.mrf.mxu0  ;;  %v2179_v12 = vpop.f32.mrf.mxu1  ;;  %v2188_v17 = vadd.f32 %v4699_v29, %v5669_v53 }
 0x194   :  { %4557 = vst [vmem:[%s6721_s2 + $0x10] sm:$0xff] %v4249_v8   ;;  %v2180_v26 = vadd.f32 %v2179_v12, %v5647_v41  ;;  %v5107_v41 = vld [vmem:[%s6720_s0 + $0x548] ss:$12 sps:$4 sm:$0xff]  }
 0x195   :  { %v3303_v2 = vadd.f32 %v3302_v5, %v2172_v9  ;;  %v3564_v44 = vadd.f32 %v3563_v33, %v3437_v50  ;;  %v5972_v0 = vpop.f32.mrf.mxu0  ;;  %v4700_v46 = vpop.f32.mrf.mxu1  ;;  %v5106_v9 = vld [vmem:[%s6720_s0 + $0x424] ss:$12 sps:$4 sm:$0xff]  }
 0x196   :  { %v2191_v57 = vadd.f32 %v4700_v46, %v5675_v59  ;;  %v3440_v29 = vmul.f32 %v2180_v26, %v2180_v26 }
 0x197   :  { %v3304_v16 = vadd.f32 %v3303_v2, %v2175_v48  ;;  %v3565_v52 = vadd.f32 %v3564_v44, %v3438_v21  ;;  %v1751_v20 = vpop.f32.mrf.mxu0  ;;  %v2182_v15 = vpop.f32.mrf.mxu1  ;;  %v3442_v44 = vmul.f32 %v2188_v17, %v2188_v17 }
 0x198   :  { %v4264_v33 = vpack.c.bf16 %v2191_v57, %v2188_v17  ;;  %v2183_v8 = vadd.f32 %v2182_v15, %v5653_v45  ;;  %v3443_v20 = vmul.f32 %v2191_v57, %v2191_v57 }
 0x199   :  { %v3566_v5 = vadd.f32 %v3565_v52, %v3439_v56  ;;  %v3305_v53 = vadd.f32 %v3304_v16, %v2180_v26  ;;  %v5989_v59 = vpop.f32.mrf.mxu0  ;;  %1945 = vmatmul.mubr.bf16.gmra.mxu0 %v5099_v51  ;;  %v4703_v50 = vpop.f32.mrf.mxu1  ;;  %4798 = vmatmul.mubr.msk.bf16.gmra.mxu1 %vm1375_vm0, %v5103_v28 }
 0x19a   :  { %4560 = vst [vmem:[%s6721_s2 + $0x28] sm:$0xff] %v4264_v33   ;;  %v4259_v48 = vpack.c.bf16 %v2183_v8, %v2180_v26  ;;  %v3441_v24 = vmul.f32 %v2183_v8, %v2183_v8  ;;  %1952 = vmatprep.mubr.bf16.mxu0 %v5106_v9  ;;  %4801 = vmatprep.mubr.msk.bf16.mxu1 %vm1375_vm0, %v5107_v41  ;;  %v5104_v9 = vld [vmem:[%s6720_s0 + $0x420] ss:$12 sps:$4 sm:$0xff]  }
 0x19b   :  { %v3567_v12 = vadd.f32 %v3566_v5, %v3440_v29  ;;  %v3306_v45 = vadd.f32 %v3305_v53, %v2183_v8  ;;  %v1756_v21 = vpop.f32.mrf.mxu0  ;;  %v2195_v2 = vpop.f32.mrf.mxu1  ;;  %v5108_v41 = vld [vmem:[%s6720_s0 + $0x560] ss:$12 sps:$4 sm:$0xff]   ;;  %v2204_v16 = vadd.f32 %v4703_v50, %v5713_v25 }
 0x19c   :  { %4559 = vst [vmem:[%s6721_s2 + $0x20] sm:$0xff] %v4259_v48   ;;  %v2196_v28 = vadd.f32 %v2195_v2, %v5691_v7  ;;  %v5112_v7 = vld [vmem:[%s6720_s0 + $0x578] ss:$12 sps:$4 sm:$0xff]  }
 0x19d   :  { %v3307_v46 = vadd.f32 %v3306_v45, %v2188_v17  ;;  %v3568_v51 = vadd.f32 %v3567_v12, %v3441_v24  ;;  %v6000_v56 = vpop.f32.mrf.mxu0  ;;  %v4704_v26 = vpop.f32.mrf.mxu1  ;;  %v5111_v17 = vld [vmem:[%s6720_s0 + $0x43c] ss:$12 sps:$4 sm:$0xff]  }
 0x19e   :  { %v2207_v52 = vadd.f32 %v4704_v26, %v5719_v31  ;;  %v3444_v50 = vmul.f32 %v2196_v28, %v2196_v28 }
 0x19f   :  { %v3308_v15 = vadd.f32 %v3307_v46, %v2191_v57  ;;  %v3569_v33 = vadd.f32 %v3568_v51, %v3442_v44  ;;  %v1759_v8 = vpop.f32.mrf.mxu0  ;;  %v2198_v5 = vpop.f32.mrf.mxu1  ;;  %v3446_v44 = vmul.f32 %v2204_v16, %v2204_v16 }
 0x1a0   :  { %v4274_v53 = vpack.c.bf16 %v2207_v52, %v2204_v16  ;;  %v2199_v29 = vadd.f32 %v2198_v5, %v5697_v13 }
 0x1a1   :  { %v3570_v48 = vadd.f32 %v3569_v33, %v3443_v20  ;;  %v3309_v25 = vadd.f32 %v3308_v15, %v2196_v28  ;;  %v6017_v31 = vpop.f32.mrf.mxu0  ;;  %1953 = vmatmul.mubr.bf16.gmra.mxu0 %v5104_v9  ;;  %v4707_v24 = vpop.f32.mrf.mxu1  ;;  %4802 = vmatmul.mubr.msk.bf16.gmra.mxu1 %vm1375_vm0, %v5108_v41  ;;  %v5109_v41 = vld [vmem:[%s6720_s0 + $0x438] ss:$12 sps:$4 sm:$0xff]   ;;  %v3447_v15 = vmul.f32 %v2207_v52, %v2207_v52 }
 0x1a2   :  { %4562 = vst [vmem:[%s6721_s2 + $0x38] sm:$0xff] %v4274_v53   ;;  %v4269_v57 = vpack.c.bf16 %v2199_v29, %v2196_v28  ;;  %v3445_v12 = vmul.f32 %v2199_v29, %v2199_v29  ;;  %1960 = vmatprep.mubr.bf16.mxu0 %v5111_v17  ;;  %4805 = vmatprep.mubr.msk.bf16.mxu1 %vm1375_vm0, %v5112_v7  ;;  %v5113_v17 = vld [vmem:[%s6720_s0 + $0x590] ss:$12 sps:$4 sm:$0xff]  }
 0x1a3   :  { %v3571_v45 = vadd.f32 %v3570_v48, %v3444_v50  ;;  %v3310_v13 = vadd.f32 %v3309_v25, %v2199_v29  ;;  %v1764_v21 = vpop.f32.mrf.mxu0  ;;  %v2211_v2 = vpop.f32.mrf.mxu1  ;;  %v2220_v7 = vadd.f32 %v4707_v24, %v5757_v1 }
 0x1a4   :  { %4561 = vst [vmem:[%s6721_s2 + $0x30] sm:$0xff] %v4269_v57   ;;  %v2212_v26 = vadd.f32 %v2211_v2, %v5735_v43  ;;  %v5117_v43 = vld [vmem:[%s6720_s0 + $0x5a8] ss:$12 sps:$4 sm:$0xff]  }
 0x1a5   :  { %v3311_v46 = vadd.f32 %v3310_v13, %v2204_v16  ;;  %v3572_v51 = vadd.f32 %v3571_v45, %v3445_v12  ;;  %v6028_v9 = vpop.f32.mrf.mxu0  ;;  %v4708_v28 = vpop.f32.mrf.mxu1  ;;  %v5116_v16 = vld [vmem:[%s6720_s0 + $0x454] ss:$12 sps:$4 sm:$0xff]   ;;  %v3450_v21 = vmul.f32 %v2220_v7, %v2220_v7 }
 0x1a6   :  { %v2223_v20 = vadd.f32 %v4708_v28, %v5763_v11  ;;  %v3448_v50 = vmul.f32 %v2212_v26, %v2212_v26  ;;  %v5114_v28 = vld [vmem:[%s6720_s0 + $0x450] ss:$12 sps:$4 sm:$0xff]  }
 0x1a7   :  { %v3312_v33 = vadd.f32 %v3311_v46, %v2207_v52  ;;  %v3573_v8 = vadd.f32 %v3572_v51, %v3446_v44  ;;  %v1767_v5 = vpop.f32.mrf.mxu0  ;;  %v2214_v53 = vpop.f32.mrf.mxu1 }
 0x1a8   :  { %v4284_v29 = vpack.c.bf16 %v2223_v20, %v2220_v7  ;;  %v2215_v48 = vadd.f32 %v2214_v53, %v5741_v49 }
 0x1a9   :  { %v3574_v25 = vadd.f32 %v3573_v8, %v3447_v15  ;;  %v3313_v1 = vadd.f32 %v3312_v33, %v2212_v26  ;;  %v6045_v11 = vpop.f32.mrf.mxu0  ;;  %1961 = vmatmul.mubr.bf16.gmra.mxu0 %v5109_v41  ;;  %v4711_v24 = vpop.f32.mrf.mxu1  ;;  %4806 = vmatmul.mubr.msk.bf16.gmra.mxu1 %vm1375_vm0, %v5113_v17  ;;  %v5118_v41 = vld [vmem:[%s6720_s0 + $0x5c0] ss:$12 sps:$4 sm:$0xff]  }
 0x1aa   :  { %4564 = vst [vmem:[%s6721_s2 + $0x48] sm:$0xff] %v4284_v29   ;;  %v4279_v52 = vpack.c.bf16 %v2215_v48, %v2212_v26  ;;  %v3449_v57 = vmul.f32 %v2215_v48, %v2215_v48  ;;  %1968 = vmatprep.mubr.bf16.mxu0 %v5116_v16  ;;  %4809 = vmatprep.mubr.msk.bf16.mxu1 %vm1375_vm0, %v5117_v43 }
 0x1ab   :  { %v3575_v12 = vadd.f32 %v3574_v25, %v3448_v50  ;;  %v3314_v49 = vadd.f32 %v3313_v1, %v2215_v48  ;;  %v1772_v45 = vpop.f32.mrf.mxu0  ;;  %v2227_v13 = vpop.f32.mrf.mxu1  ;;  %v2236_v17 = vadd.f32 %v4711_v24, %v5801_v55  ;;  %v3451_v43 = vmul.f32 %v2223_v20, %v2223_v20 }
 0x1ac   :  { %4563 = vst [vmem:[%s6721_s2 + $0x40] sm:$0xff] %v4279_v52   ;;  %v2228_v46 = vadd.f32 %v2227_v13, %v5779_v27  ;;  %v5122_v27 = vld [vmem:[%s6720_s0 + $0x5d8] ss:$12 sps:$4 sm:$0xff]  }
 0x1ad   :  { %v3315_v2 = vadd.f32 %v3314_v49, %v2220_v7  ;;  %v3576_v44 = vadd.f32 %v3575_v12, %v3449_v57  ;;  %v6056_v51 = vpop.f32.mrf.mxu0  ;;  %v4712_v26 = vpop.f32.mrf.mxu1  ;;  %v5121_v7 = vld [vmem:[%s6720_s0 + $0x46c] ss:$12 sps:$4 sm:$0xff]   ;;  %v3454_v12 = vmul.f32 %v2236_v17, %v2236_v17 }
 0x1ae   :  { %v2239_v16 = vadd.f32 %v4712_v26, %v5807_v3  ;;  %v3452_v25 = vmul.f32 %v2228_v46, %v2228_v46 }
 0x1af   :  { %v3316_v15 = vadd.f32 %v3315_v2, %v2223_v20  ;;  %v3577_v33 = vadd.f32 %v3576_v44, %v3450_v21  ;;  %v1775_v8 = vpop.f32.mrf.mxu0  ;;  %v2230_v5 = vpop.f32.mrf.mxu1  ;;  %v5119_v44 = vld [vmem:[%s6720_s0 + $0x468] ss:$12 sps:$4 sm:$0xff]  }
 0x1b0   :  { %v4294_v53 = vpack.c.bf16 %v2239_v16, %v2236_v17  ;;  %v2231_v29 = vadd.f32 %v2230_v5, %v5785_v37 }
 0x1b1   :  { %v3578_v48 = vadd.f32 %v3577_v33, %v3451_v43  ;;  %v3317_v55 = vadd.f32 %v3316_v15, %v2228_v46  ;;  %v6073_v3 = vpop.f32.mrf.mxu0  ;;  %1969 = vmatmul.mubr.bf16.gmra.mxu0 %v5114_v28  ;;  %v4715_v1 = vpop.f32.mrf.mxu1  ;;  %4810 = vmatmul.mubr.msk.bf16.gmra.mxu1 %vm1375_vm0, %v5118_v41  ;;  %v3455_v41 = vmul.f32 %v2239_v16, %v2239_v16 }
 0x1b2   :  { %4566 = vst [vmem:[%s6721_s2 + $0x58] sm:$0xff] %v4294_v53   ;;  %v4289_v20 = vpack.c.bf16 %v2231_v29, %v2228_v46  ;;  %v3453_v50 = vmul.f32 %v2231_v29, %v2231_v29  ;;  %1976 = vmatprep.mubr.bf16.mxu0 %v5121_v7  ;;  %4813 = vmatprep.mubr.msk.bf16.mxu1 %vm1375_vm0, %v5122_v27  ;;  %v5123_v46 = vld [vmem:[%s6720_s0 + $0x5f0] ss:$12 sps:$4 sm:$0xff]  }
 0x1b3   :  { %v3579_v24 = vadd.f32 %v3578_v48, %v3452_v25  ;;  %v3318_v37 = vadd.f32 %v3317_v55, %v2231_v29  ;;  %v1780_v52 = vpop.f32.mrf.mxu0  ;;  %v2243_v57 = vpop.f32.mrf.mxu1  ;;  %v2252_v26 = vadd.f32 %v4715_v1, %v5845_v19 }
 0x1b4   :  { %4565 = vst [vmem:[%s6721_s2 + $0x50] sm:$0xff] %v4289_v20   ;;  %v2244_v13 = vadd.f32 %v2243_v57, %v5823_v35 }
 0x1b5   :  { %v3319_v49 = vadd.f32 %v3318_v37, %v2236_v17  ;;  %v3580_v45 = vadd.f32 %v3579_v24, %v3453_v50  ;;  %v6084_v21 = vpop.f32.mrf.mxu0  ;;  %v4716_v2 = vpop.f32.mrf.mxu1 }
 0x1b6   :  { %v2255_v28 = vadd.f32 %v4716_v2, %v5851_v39  ;;  %v3456_v5 = vmul.f32 %v2244_v13, %v2244_v13 }
 0x1b7   :  { %v3320_v17 = vadd.f32 %v3319_v49, %v2239_v16  ;;  %v3581_v7 = vadd.f32 %v3580_v45, %v3454_v12  ;;  %v1783_v27 = vpop.f32.mrf.mxu0  ;;  %v2246_v35 = vpop.f32.mrf.mxu1 }
 0x1b8   :  { %v4304_v43 = vpack.c.bf16 %v2255_v28, %v2252_v26  ;;  %v2247_v15 = vadd.f32 %v2246_v35, %v5829_v47  ;;  %v3458_v47 = vmul.f32 %v2252_v26, %v2252_v26  ;;  %v3459_v12 = vmul.f32 %v2255_v28, %v2255_v28 }
 0x1b9   :  { %v3582_v33 = vadd.f32 %v3581_v7, %v3455_v41  ;;  %v3321_v8 = vadd.f32 %v3320_v17, %v2244_v13  ;;  %v6095_v53 = vpop.f32.mrf.mxu0  ;;  %1977 = vmatmul.mubr.bf16.gmra.mxu0 %v5119_v44  ;;  %v4719_v29 = vpop.f32.mrf.mxu1  ;;  %4814 = vmatmul.mubr.msk.bf16.gmra.mxu1 %vm1375_vm0, %v5123_v46 }
 0x1ba   :  { %4568 = vst [vmem:[%s6721_s2 + $0x68] sm:$0xff] %v4304_v43   ;;  %v4299_v19 = vpack.c.bf16 %v2247_v15, %v2244_v13  ;;  %v3457_v39 = vmul.f32 %v2247_v15, %v2247_v15  ;;  %v2268_v52 = vadd.f32 %v4719_v29, %v5889_v63 }
 0x1bb   :  { %v3583_v16 = vadd.f32 %v3582_v33, %v3456_v5  ;;  %v3322_v48 = vadd.f32 %v3321_v8, %v2247_v15  ;;  %v1788_v55 = vpop.f32.mrf.mxu0  ;;  %v2259_v25 = vpop.f32.mrf.mxu1 }
 0x1bc   :  { %4567 = vst [vmem:[%s6721_s2 + $0x60] sm:$0xff] %v4299_v19   ;;  %v2260_v50 = vadd.f32 %v2259_v25, %v5867_v23 }
 0x1bd   :  { %v3323_v1 = vadd.f32 %v3322_v48, %v2252_v26  ;;  %v3584_v20 = vadd.f32 %v3583_v16, %v3457_v39  ;;  %v6105_v24 = vpop.f32.mrf.mxu0  ;;  %v4720_v37 = vpop.f32.mrf.mxu1 }
 0x1be   :  { %v2271_v57 = vadd.f32 %v4720_v37, %v5895_v38  ;;  %v3460_v17 = vmul.f32 %v2260_v50, %v2260_v50 }
 0x1bf   :  { %v3324_v49 = vadd.f32 %v3323_v1, %v2255_v28  ;;  %v3585_v45 = vadd.f32 %v3584_v20, %v3458_v47  ;;  %v1791_v13 = vpop.f32.mrf.mxu0  ;;  %v2262_v2 = vpop.f32.mrf.mxu1 }
 0x1c0   :  { %v4314_v44 = vpack.c.bf16 %v2271_v57, %v2268_v52  ;;  %v2263_v46 = vadd.f32 %v2262_v2, %v5873_v40  ;;  %v3462_v40 = vmul.f32 %v2268_v52, %v2268_v52  ;;  %v3463_v16 = vmul.f32 %v2271_v57, %v2271_v57 }
 0x1c1   :  { %v3586_v41 = vadd.f32 %v3585_v45, %v3459_v12  ;;  %v3325_v26 = vadd.f32 %v3324_v49, %v2260_v50  ;;  %v6110_v7 = vpop.f32.mrf.mxu0  ;;  %v4723_v23 = vpop.f32.mrf.mxu1 }
 0x1c2   :  { %4570 = vst [vmem:[%s6721_s2 + $0x78] sm:$0xff] %v4314_v44   ;;  %v4309_v63 = vpack.c.bf16 %v2263_v46, %v2260_v50  ;;  %v3461_v38 = vmul.f32 %v2263_v46, %v2263_v46  ;;  %v2284_v19 = vadd.f32 %v4723_v23, %v5933_v14 }
 0x1c3   :  { %v3587_v27 = vadd.f32 %v3586_v41, %v3460_v17  ;;  %v3326_v28 = vadd.f32 %v3325_v26, %v2263_v46  ;;  %v1796_v35 = vpop.f32.mrf.mxu0  ;;  %v2275_v43 = vpop.f32.mrf.mxu1 }
 0x1c4   :  { %4569 = vst [vmem:[%s6721_s2 + $0x70] sm:$0xff] %v4309_v63   ;;  %v2276_v8 = vadd.f32 %v2275_v43, %v5911_v36 }
 0x1c5   :  { %v3327_v15 = vadd.f32 %v3326_v28, %v2268_v52  ;;  %v3588_v33 = vadd.f32 %v3587_v27, %v3461_v38  ;;  %v6119_v5 = vpop.f32.mrf.mxu0  ;;  %v4724_v29 = vpop.f32.mrf.mxu1 }
 0x1c6   :  { %v2287_v39 = vadd.f32 %v4724_v29, %v5944_v32  ;;  %v3464_v52 = vmul.f32 %v2276_v8, %v2276_v8 }
 0x1c7   :  { %v3328_v48 = vadd.f32 %v3327_v15, %v2271_v57  ;;  %v3589_v55 = vadd.f32 %v3588_v33, %v3462_v40  ;;  %v1799_v25 = vpop.f32.mrf.mxu0  ;;  %v2278_v47 = vpop.f32.mrf.mxu1 }
 0x1c8   :  { %v4324_v1 = vpack.c.bf16 %v2287_v39, %v2284_v19  ;;  %v2279_v20 = vadd.f32 %v2278_v47, %v5915_v4  ;;  %v3466_v4 = vmul.f32 %v2284_v19, %v2284_v19  ;;  %v3467_v63 = vmul.f32 %v2287_v39, %v2287_v39 }
 0x1c9   :  { %v3590_v50 = vadd.f32 %v3589_v55, %v3463_v16  ;;  %v3329_v37 = vadd.f32 %v3328_v48, %v2276_v8  ;;  %v6124_v12 = vpop.f32.mrf.mxu0  ;;  %v4727_v36 = vpop.f32.mrf.mxu1 }
 0x1ca   :  { %4572 = vst [vmem:[%s6721_s2 + $0x88] sm:$0xff] %v4324_v1   ;;  %v4319_v14 = vpack.c.bf16 %v2279_v20, %v2276_v8  ;;  %v3465_v32 = vmul.f32 %v2279_v20, %v2279_v20  ;;  %v2300_v17 = vadd.f32 %v4727_v36, %v5989_v59 }
 0x1cb   :  { %v3591_v49 = vadd.f32 %v3590_v50, %v3464_v52  ;;  %v3330_v57 = vadd.f32 %v3329_v37, %v2279_v20  ;;  %v1804_v45 = vpop.f32.mrf.mxu0  ;;  %v2291_v13 = vpop.f32.mrf.mxu1 }
 0x1cc   :  { %4571 = vst [vmem:[%s6721_s2 + $0x80] sm:$0xff] %v4319_v14   ;;  %v2292_v46 = vadd.f32 %v2291_v13, %v5961_v61 }
 0x1cd   :  { %v3331_v2 = vadd.f32 %v3330_v57, %v2284_v19  ;;  %v3592_v44 = vadd.f32 %v3591_v49, %v3465_v32  ;;  %v6133_v41 = vpop.f32.mrf.mxu0  ;;  %v4728_v26 = vpop.f32.mrf.mxu1 }
 0x1ce   :  { %v2303_v23 = vadd.f32 %v4728_v26, %v6000_v56  ;;  %v3468_v8 = vmul.f32 %v2292_v46, %v2292_v46 }
 0x1cf   :  { %v3332_v38 = vadd.f32 %v3331_v2, %v2287_v39  ;;  %v3593_v27 = vadd.f32 %v3592_v44, %v3466_v4  ;;  %v1807_v28 = vpop.f32.mrf.mxu0  ;;  %v2294_v35 = vpop.f32.mrf.mxu1 }
 0x1d0   :  { %v4334_v43 = vpack.c.bf16 %v2303_v23, %v2300_v17  ;;  %v2295_v40 = vadd.f32 %v2294_v35, %v5972_v0  ;;  %v3470_v0 = vmul.f32 %v2300_v17, %v2300_v17  ;;  %v3471_v52 = vmul.f32 %v2303_v23, %v2303_v23 }
 0x1d1   :  { %v3594_v15 = vadd.f32 %v3593_v27, %v3467_v63  ;;  %v3333_v33 = vadd.f32 %v3332_v38, %v2292_v46  ;;  %v6138_v29 = vpop.f32.mrf.mxu0  ;;  %v4731_v61 = vpop.f32.mrf.mxu1 }
 0x1d2   :  { %4574 = vst [vmem:[%s6721_s2 + $0x98] sm:$0xff] %v4334_v43   ;;  %v4329_v59 = vpack.c.bf16 %v2295_v40, %v2292_v46  ;;  %v3469_v56 = vmul.f32 %v2295_v40, %v2295_v40  ;;  %v2316_v50 = vadd.f32 %v4731_v61, %v6045_v11 }
 0x1d3   :  { %v3595_v19 = vadd.f32 %v3594_v15, %v3468_v8  ;;  %v3334_v39 = vadd.f32 %v3333_v33, %v2295_v40  ;;  %v1812_v16 = vpop.f32.mrf.mxu0  ;;  %v2307_v48 = vpop.f32.mrf.mxu1 }
 0x1d4   :  { %4573 = vst [vmem:[%s6721_s2 + $0x90] sm:$0xff] %v4329_v59   ;;  %v2308_v47 = vadd.f32 %v2307_v48, %v6017_v31 }
 0x1d5   :  { %v3335_v55 = vadd.f32 %v3334_v39, %v2300_v17  ;;  %v3596_v25 = vadd.f32 %v3595_v19, %v3469_v56  ;;  %v6147_v1 = vpop.f32.mrf.mxu0  ;;  %v4732_v20 = vpop.f32.mrf.mxu1 }
 0x1d6   :  { %v2319_v37 = vadd.f32 %v4732_v20, %v6056_v51  ;;  %v3472_v2 = vmul.f32 %v2308_v47, %v2308_v47 }
 0x1d7   :  { %v3336_v36 = vadd.f32 %v3335_v55, %v2303_v23  ;;  %v3597_v14 = vadd.f32 %v3596_v25, %v3470_v0  ;;  %v1815_v32 = vpop.f32.mrf.mxu0  ;;  %v2310_v49 = vpop.f32.mrf.mxu1 }
 0x1d8   :  { %v4344_v57 = vpack.c.bf16 %v2319_v37, %v2316_v50  ;;  %v2311_v45 = vadd.f32 %v2310_v49, %v6028_v9  ;;  %v3474_v9 = vmul.f32 %v2316_v50, %v2316_v50  ;;  %v3475_v15 = vmul.f32 %v2319_v37, %v2319_v37 }
 0x1d9   :  { %v3598_v13 = vadd.f32 %v3597_v14, %v3471_v52  ;;  %v3337_v4 = vadd.f32 %v3336_v36, %v2308_v47  ;;  %v6152_v44 = vpop.f32.mrf.mxu0  ;;  %v4735_v31 = vpop.f32.mrf.mxu1 }
 0x1da   :  { %4576 = vst [vmem:[%s6721_s2 + $0xa8] sm:$0xff] %v4344_v57   ;;  %v4339_v11 = vpack.c.bf16 %v2311_v45, %v2308_v47  ;;  %v3473_v51 = vmul.f32 %v2311_v45, %v2311_v45  ;;  %v2332_v43 = vadd.f32 %v4735_v31, %v6095_v53 }
 0x1db   :  { %v3599_v46 = vadd.f32 %v3598_v13, %v3472_v2  ;;  %v3338_v26 = vadd.f32 %v3337_v4, %v2311_v45  ;;  %v1820_v17 = vpop.f32.mrf.mxu0  ;;  %v2323_v23 = vpop.f32.mrf.mxu1 }
 0x1dc   :  { %4575 = vst [vmem:[%s6721_s2 + $0xa0] sm:$0xff] %v4339_v11   ;;  %v2324_v27 = vadd.f32 %v2323_v23, %v6073_v3 }
 0x1dd   :  { %v3339_v63 = vadd.f32 %v3338_v26, %v2316_v50  ;;  %v3600_v38 = vadd.f32 %v3599_v46, %v3473_v51  ;;  %v1821_v28 = vpop.f32.mrf.mxu0  ;;  %v4736_v35 = vpop.f32.mrf.mxu1 }
 0x1de   :  { %v2335_v40 = vadd.f32 %v4736_v35, %v6105_v24  ;;  %v3476_v48 = vmul.f32 %v2324_v27, %v2324_v27 }
 0x1df   :  { %v3340_v33 = vadd.f32 %v3339_v63, %v2319_v37  ;;  %v3601_v8 = vadd.f32 %v3600_v38, %v3474_v9  ;;  %v1823_v61 = vpop.f32.mrf.mxu0  ;;  %v2326_v59 = vpop.f32.mrf.mxu1 }
 0x1e0   :  { %v4354_v56 = vpack.c.bf16 %v2335_v40, %v2332_v43  ;;  %v2327_v19 = vadd.f32 %v2326_v59, %v6084_v21  ;;  %v3478_v21 = vmul.f32 %v2332_v43, %v2332_v43  ;;  %v3479_v57 = vmul.f32 %v2335_v40, %v2335_v40 }
 0x1e1   :  { %v3602_v39 = vadd.f32 %v3601_v8, %v3475_v15  ;;  %v3341_v16 = vadd.f32 %v3340_v33, %v2324_v27  ;;  %v6164_v0 = vpop.f32.mrf.mxu0  ;;  %v4739_v3 = vpop.f32.mrf.mxu1 }
 0x1e2   :  { %4578 = vst [vmem:[%s6721_s2 + $0xb8] sm:$0xff] %v4354_v56   ;;  %v4349_v53 = vpack.c.bf16 %v2327_v19, %v2324_v27  ;;  %v3477_v24 = vmul.f32 %v2327_v19, %v2327_v19  ;;  %v2348_v32 = vadd.f32 %v4739_v3, %v6124_v12 }
 0x1e3   :  { %v3603_v55 = vadd.f32 %v3602_v39, %v3476_v48  ;;  %v3342_v25 = vadd.f32 %v3341_v16, %v2327_v19  ;;  %v1828_v47 = vpop.f32.mrf.mxu0  ;;  %v2339_v20 = vpop.f32.mrf.mxu1 }
 0x1e4   :  { %4577 = vst [vmem:[%s6721_s2 + $0xb0] sm:$0xff] %v4349_v53   ;;  %v2340_v52 = vadd.f32 %v2339_v20, %v6110_v7 }
 0x1e5   :  { %v3343_v50 = vadd.f32 %v3342_v25, %v2332_v43  ;;  %v3604_v37 = vadd.f32 %v3603_v55, %v3477_v24  ;;  %v6173_v36 = vpop.f32.mrf.mxu0  ;;  %v4740_v14 = vpop.f32.mrf.mxu1 }
 0x1e6   :  { %v2351_v49 = vadd.f32 %v4740_v14, %v6133_v41  ;;  %v3480_v26 = vmul.f32 %v2340_v52, %v2340_v52 }
 0x1e7   :  { %v3344_v45 = vadd.f32 %v3343_v50, %v2335_v40  ;;  %v3605_v13 = vadd.f32 %v3604_v37, %v3478_v21  ;;  %v1831_v4 = vpop.f32.mrf.mxu0  ;;  %v2342_v2 = vpop.f32.mrf.mxu1 }
 0x1e8   :  { %v4364_v31 = vpack.c.bf16 %v2351_v49, %v2348_v32  ;;  %v2343_v11 = vadd.f32 %v2342_v2, %v6119_v5  ;;  %v3482_v5 = vmul.f32 %v2348_v32, %v2348_v32  ;;  %v3483_v61 = vmul.f32 %v2351_v49, %v2351_v49 }
 0x1e9   :  { %v3606_v51 = vadd.f32 %v3605_v13, %v3479_v57  ;;  %v3345_v46 = vadd.f32 %v3344_v45, %v2340_v52  ;;  %v1834_v17 = vpop.f32.mrf.mxu0  ;;  %v4743_v7 = vpop.f32.mrf.mxu1 }
 0x1ea   :  { %4580 = vst [vmem:[%s6721_s2 + $0xc8] sm:$0xff] %v4364_v31   ;;  %v4359_v12 = vpack.c.bf16 %v2343_v11, %v2340_v52  ;;  %v3481_v23 = vmul.f32 %v2343_v11, %v2343_v11  ;;  %v2364_v33 = vadd.f32 %v4743_v7, %v6152_v44 }
 0x1eb   :  { %v3607_v41 = vadd.f32 %v3606_v51, %v3480_v26  ;;  %v3346_v9 = vadd.f32 %v3345_v46, %v2343_v11  ;;  %v1836_v63 = vpop.f32.mrf.mxu0  ;;  %v2355_v38 = vpop.f32.mrf.mxu1 }
 0x1ec   :  { %4579 = vst [vmem:[%s6721_s2 + $0xc0] sm:$0xff] %v4359_v12   ;;  %v2356_v43 = vadd.f32 %v2355_v38, %v6138_v29 }
 0x1ed   :  { %v3347_v27 = vadd.f32 %v3346_v9, %v2348_v32  ;;  %v3608_v35 = vadd.f32 %v3607_v41, %v3481_v23  ;;  %v1837_v40 = vpop.f32.mrf.mxu0  ;;  %v4744_v15 = vpop.f32.mrf.mxu1 }
 0x1ee   :  { %v2367_v8 = vadd.f32 %v4744_v15, %v1821_v28  ;;  %v3484_v24 = vmul.f32 %v2356_v43, %v2356_v43 }
 0x1ef   :  { %v3348_v59 = vadd.f32 %v3347_v27, %v2351_v49  ;;  %v3609_v56 = vadd.f32 %v3608_v35, %v3482_v5  ;;  %v1839_v19 = vpop.f32.mrf.mxu0  ;;  %v2358_v39 = vpop.f32.mrf.mxu1 }
 0x1f0   :  { %v4374_v16 = vpack.c.bf16 %v2367_v8, %v2364_v33  ;;  %v2359_v48 = vadd.f32 %v2358_v39, %v6147_v1  ;;  %v3486_v1 = vmul.f32 %v2364_v33, %v2364_v33  ;;  %v3487_v45 = vmul.f32 %v2367_v8, %v2367_v8 }
 0x1f1   :  { %v3610_v3 = vadd.f32 %v3609_v56, %v3483_v61  ;;  %v3349_v53 = vadd.f32 %v3348_v59, %v2356_v43  ;;  %v1842_v55 = vpop.f32.mrf.mxu0  ;;  %v4747_v25 = vpop.f32.mrf.mxu1 }
 0x1f2   :  { %4582 = vst [vmem:[%s6721_s2 + $0xd8] sm:$0xff] %v4374_v16   ;;  %v4369_v29 = vpack.c.bf16 %v2359_v48, %v2356_v43  ;;  %v3485_v44 = vmul.f32 %v2359_v48, %v2359_v48  ;;  %v2380_v49 = vadd.f32 %v4747_v25, %v1834_v17 }
 0x1f3   :  { %v3611_v28 = vadd.f32 %v3610_v3, %v3484_v24  ;;  %v3350_v47 = vadd.f32 %v3349_v53, %v2359_v48  ;;  %v1844_v20 = vpop.f32.mrf.mxu0  ;;  %v2371_v21 = vpop.f32.mrf.mxu1 }
 0x1f4   :  { %4581 = vst [vmem:[%s6721_s2 + $0xd0] sm:$0xff] %v4369_v29   ;;  %v2372_v52 = vadd.f32 %v2371_v21, %v6164_v0 }
 0x1f5   :  { %v3351_v50 = vadd.f32 %v3350_v47, %v2364_v33  ;;  %v3612_v37 = vadd.f32 %v3611_v28, %v3485_v44  ;;  %v1845_v14 = vpop.f32.mrf.mxu0  ;;  %v4748_v32 = vpop.f32.mrf.mxu1 }
 0x1f6   :  { %v2383_v57 = vadd.f32 %v4748_v32, %v1837_v40  ;;  %v3488_v7 = vmul.f32 %v2372_v52, %v2372_v52 }
 0x1f7   :  { %v3352_v13 = vadd.f32 %v3351_v50, %v2367_v8  ;;  %v3613_v4 = vadd.f32 %v3612_v37, %v3486_v1  ;;  %v1847_v2 = vpop.f32.mrf.mxu0  ;;  %v2374_v31 = vpop.f32.mrf.mxu1 }
 0x1f8   :  { %v4384_v11 = vpack.c.bf16 %v2383_v57, %v2380_v49  ;;  %v2375_v51 = vadd.f32 %v2374_v31, %v6173_v36  ;;  %v3490_v36 = vmul.f32 %v2380_v49, %v2380_v49  ;;  %v3491_v8 = vmul.f32 %v2383_v57, %v2383_v57 }
 0x1f9   :  { %v3614_v46 = vadd.f32 %v3613_v4, %v3487_v45  ;;  %v3353_v26 = vadd.f32 %v3352_v13, %v2372_v52  ;;  %v1850_v12 = vpop.f32.mrf.mxu0  ;;  %v4751_v23 = vpop.f32.mrf.mxu1 }
 0x1fa   :  { %4584 = vst [vmem:[%s6721_s2 + $0xe8] sm:$0xff] %v4384_v11   ;;  %v4379_v0 = vpack.c.bf16 %v2375_v51, %v2372_v52  ;;  %v3489_v17 = vmul.f32 %v2375_v51, %v2375_v51  ;;  %v2396_v15 = vadd.f32 %v4751_v23, %v1850_v12 }
 0x1fb   :  { %v3615_v41 = vadd.f32 %v3614_v46, %v3488_v7  ;;  %v3354_v9 = vadd.f32 %v3353_v26, %v2375_v51  ;;  %v1852_v63 = vpop.f32.mrf.mxu0  ;;  %v2387_v38 = vpop.f32.mrf.mxu1 }
 0x1fc   :  { %4583 = vst [vmem:[%s6721_s2 + $0xe0] sm:$0xff] %v4379_v0   ;;  %v2388_v35 = vadd.f32 %v2387_v38, %v1842_v55  ;;  %v3494_v21 = vmul.f32 %v2396_v15, %v2396_v15 }
 0x1fd   :  { %v3355_v5 = vadd.f32 %v3354_v9, %v2380_v49  ;;  %v3616_v27 = vadd.f32 %v3615_v41, %v3489_v17  ;;  %v1853_v43 = vpop.f32.mrf.mxu0  ;;  %v4752_v40 = vpop.f32.mrf.mxu1 }
 0x1fe   :  { %v2399_v33 = vadd.f32 %v4752_v40, %v1853_v43  ;;  %v3492_v53 = vmul.f32 %v2388_v35, %v2388_v35 }
 0x1ff   :  { %v3356_v61 = vadd.f32 %v3355_v5, %v2383_v57  ;;  %v3617_v59 = vadd.f32 %v3616_v27, %v3490_v36  ;;  %v1855_v56 = vpop.f32.mrf.mxu0  ;;  %v2390_v19 = vpop.f32.mrf.mxu1 }
 0x200   :  { %v4394_v39 = vpack.c.bf16 %v2399_v33, %v2396_v15  ;;  %v2391_v16 = vadd.f32 %v2390_v19, %v1845_v14  ;;  %v3495_v14 = vmul.f32 %v2399_v33, %v2399_v33 }
 0x201   :  { %v3618_v48 = vadd.f32 %v3617_v59, %v3491_v8  ;;  %v3357_v3 = vadd.f32 %v3356_v61, %v2388_v35  ;;  %v1858_v24 = vpop.f32.mrf.mxu0  ;;  %v4755_v25 = vpop.f32.mrf.mxu1 }
 0x202   :  { %4586 = vst [vmem:[%s6721_s2 + $0xf8] sm:$0xff] %v4394_v39   ;;  %v4389_v55 = vpack.c.bf16 %v2391_v16, %v2388_v35  ;;  %v3493_v29 = vmul.f32 %v2391_v16, %v2391_v16 }
 0x203   :  { %v3619_v44 = vadd.f32 %v3618_v48, %v3492_v53  ;;  %v3358_v28 = vadd.f32 %v3357_v3, %v2391_v16  ;;  %v1860_v47 = vpop.f32.mrf.mxu0  ;;  %v2403_v20 = vpop.f32.mrf.mxu1 }
 0x204   :  { %4585 = vst [vmem:[%s6721_s2 + $0xf0] sm:$0xff] %v4389_v55   ;;  %v6209_v13 = vadd.f32 %v2403_v20, %v1858_v24 }
 0x205   :  { %v3359_v1 = vadd.f32 %v3358_v28, %v2396_v15  ;;  %v3620_v50 = vadd.f32 %v3619_v44, %v3493_v29  ;;  %v1861_v37 = vpop.f32.mrf.mxu0  ;;  %v4756_v52 = vpop.f32.mrf.mxu1 }
 0x207   :  { %v6207_v32 = vadd.f32 %v3359_v1, %v2399_v33  ;;  %v3621_v49 = vadd.f32 %v3620_v50, %v3494_v21  ;;  %v1863_v57 = vpop.f32.mrf.mxu0  ;;  %v2406_v45 = vpop.f32.mrf.mxu1 }
 0x208   :  { %v6211_v4 = vadd.f32 %v2406_v45, %v1861_v37 }
 0x209   :  { %v6213_v2 = vadd.f32 %v3621_v49, %v3495_v14  ;;  %v1866_v31 = vpop.f32.mrf.mxu0  ;;  %v4759_v11 = vpop.f32.mrf.mxu1 }
 0x20a   :  { %v4399_v51 = vpack.c.bf16 %v6211_v4, %v6209_v13  ;;  %v6220_v23 = vadd.f32 %v4755_v25, %v1866_v31 }
 0x20b   :  { %v1868_v46 = vpop.f32.mrf.mxu0  ;;  %v2419_v26 = vpop.f32.mrf.mxu1 }
 0x20c   :  { %4587 = vst [vmem:[%s6721_s2 + $0x100] sm:$0xff] %v4399_v51  }
 0x20d   :  { %v1869_v7 = vpop.f32.mrf.mxu0  ;;  %v4760_v12 = vpop.f32.mrf.mxu1 }
 0x20e   :  { %v6222_v0 = vadd.f32 %v4756_v52, %v1869_v7 }
 0x20f   :  { %v1871_v17 = vpop.f32.mrf.mxu0  ;;  %v2422_v41 = vpop.f32.mrf.mxu1 }
 0x210   :  { %v4404_v9 = vpack.c.bf16 %v6222_v0, %v6220_v23 }
 0x211   :  { %v1874_v63 = vpop.f32.mrf.mxu0  ;;  %v4763_v38 = vpop.f32.mrf.mxu1 }
 0x212   :  { %4588 = vst [vmem:[%s6721_s2 + $0x108] sm:$0xff] %v4404_v9   ;;  %v6229_v43 = vadd.f32 %v2419_v26, %v1874_v63 }
 0x213   :  { %v1876_v36 = vpop.f32.mrf.mxu0  ;;  %v2435_v5 = vpop.f32.mrf.mxu1 }
 0x215   :  { %v1877_v27 = vpop.f32.mrf.mxu0  ;;  %v4764_v35 = vpop.f32.mrf.mxu1 }
 0x216   :  { %v6231_v40 = vadd.f32 %v2422_v41, %v1877_v27 }
 0x217   :  { %v1879_v15 = vpop.f32.mrf.mxu0  ;;  %v2438_v33 = vpop.f32.mrf.mxu1 }
 0x218   :  { %v4409_v8 = vpack.c.bf16 %v6231_v40, %v6229_v43  ;;  %v3361_v15 = vadd.f32 %v6207_v32, %v6209_v13 }
 0x219   :  { %v1882_v61 = vpop.f32.mrf.mxu0  ;;  %v4767_v59 = vpop.f32.mrf.mxu1 }
 0x21a   :  { %4589 = vst [vmem:[%s6721_s2 + $0x110] sm:$0xff] %v4409_v8   ;;  %v6238_v48 = vadd.f32 %v4759_v11, %v1882_v61  ;;  %v3497_v8 = vmul.f32 %v6211_v4, %v6211_v4  ;;  %v3362_v32 = vadd.f32 %v3361_v15, %v6211_v4 }
 0x21b   :  { %v1884_v56 = vpop.f32.mrf.mxu0  ;;  %v2451_v19 = vpop.f32.mrf.mxu1 }
 0x21d   :  { %v1885_v39 = vpop.f32.mrf.mxu0  ;;  %v4768_v16 = vpop.f32.mrf.mxu1 }
 0x21e   :  { %v6240_v3 = vadd.f32 %v4760_v12, %v1885_v39 }
 0x21f   :  { %v1887_v53 = vpop.f32.mrf.mxu0  ;;  %v2454_v24 = vpop.f32.mrf.mxu1 }
 0x220   :  { %v4414_v25 = vpack.c.bf16 %v6240_v3, %v6238_v48 }
 0x221   :  { %v1890_v55 = vpop.f32.mrf.mxu0  ;;  %v6244_v29 = vpop.f32.mrf.mxu1 }
 0x222   :  { %4590 = vst [vmem:[%s6721_s2 + $0x118] sm:$0xff] %v4414_v25   ;;  %v6253_v21 = vadd.f32 %v2435_v5, %v1890_v55  ;;  %v3499_v55 = vmul.f32 %v6222_v0, %v6222_v0 }
 0x223   :  { %v1892_v44 = vpop.f32.mrf.mxu0  ;;  %v6249_v28 = vpop.f32.mrf.mxu1 }
 0x225   :  { %v1893_v47 = vpop.f32.mrf.mxu0  ;;  %v6251_v20 = vpop.f32.mrf.mxu1 }
 0x226   :  { %v6255_v1 = vadd.f32 %v2438_v33, %v1893_v47 }
 0x227   :  { %v1895_v50 = vpop.f32.mrf.mxu0  ;;  %v6257_v37 = vpop.f32.mrf.mxu1 }
 0x228   :  { %v4419_v52 = vpack.c.bf16 %v6255_v1, %v6253_v21 }
 0x229   :  { %v1898_v14 = vpop.f32.mrf.mxu0  ;;  %v6261_v49 = vpop.f32.mrf.mxu1 }
 0x22a   :  { %4591 = vst [vmem:[%s6721_s2 + $0x120] sm:$0xff] %v4419_v52   ;;  %v6270_v51 = vadd.f32 %v4763_v38, %v1898_v14  ;;  %v3496_v38 = vmul.f32 %v6209_v13, %v6209_v13  ;;  %v3363_v14 = vadd.f32 %v3362_v32, %v6220_v23 }
 0x22b   :  { %v1900_v57 = vpop.f32.mrf.mxu0  ;;  %v6266_v45 = vpop.f32.mrf.mxu1 }
 0x22c   :  { %v3623_v33 = vadd.f32 %v6213_v2, %v3496_v38  ;;  %v3498_v2 = vmul.f32 %v6220_v23, %v6220_v23  ;;  %v3500_v57 = vmul.f32 %v6229_v43, %v6229_v43 }
 0x22d   :  { %v1901_v31 = vpop.f32.mrf.mxu0  ;;  %v6268_v11 = vpop.f32.mrf.mxu1 }
 0x22e   :  { %v6272_v46 = vadd.f32 %v4764_v35, %v1901_v31  ;;  %v3624_v13 = vadd.f32 %v3623_v33, %v3497_v8  ;;  %v3502_v8 = vmul.f32 %v6238_v48, %v6238_v48 }
 0x22f   :  { %v1903_v26 = vpop.f32.mrf.mxu0  ;;  %v6274_v7 = vpop.f32.mrf.mxu1 }
 0x230   :  { %v4424_v12 = vpack.c.bf16 %v6272_v46, %v6270_v51  ;;  %v3625_v4 = vadd.f32 %v3624_v13, %v3498_v2 }
 0x231   :  { %v1906_v17 = vpop.f32.mrf.mxu0  ;;  %v6278_v41 = vpop.f32.mrf.mxu1 }
 0x232   :  { %4592 = vst [vmem:[%s6721_s2 + $0x128] sm:$0xff] %v4424_v12   ;;  %v6289_v27 = vadd.f32 %v2451_v19, %v1906_v17  ;;  %v3364_v17 = vadd.f32 %v3363_v14, %v6222_v0 }
 0x233   :  { %v1908_v9 = vpop.f32.mrf.mxu0  ;;  %v6283_v63 = vpop.f32.mrf.mxu1 }
 0x234   :  { %v3626_v9 = vadd.f32 %v3625_v4, %v3499_v55  ;;  %v3365_v23 = vadd.f32 %v3364_v17, %v6229_v43 }
 0x235   :  { %v1909_v36 = vpop.f32.mrf.mxu0  ;;  %v6287_v5 = vpop.f32.mrf.mxu1 }
 0x236   :  { %v6291_v35 = vadd.f32 %v2454_v24, %v1909_v36  ;;  %v3627_v36 = vadd.f32 %v3626_v9, %v3500_v57  ;;  %v3366_v0 = vadd.f32 %v3365_v23, %v6231_v40 }
 0x237   :  { %v1911_v61 = vpop.f32.mrf.mxu0  ;;  %v6298_v56 = vpop.f32.mrf.mxu1 }
 0x238   :  { %v4429_v39 = vpack.c.bf16 %v6291_v35, %v6289_v27 }
 0x239   :  { %v1914_v53 = vpop.f32.mrf.mxu0  ;;  %v6302_v25 = vpop.f32.mrf.mxu1 }
 0x23a   :  { %4593 = vst [vmem:[%s6721_s2 + $0x130] sm:$0xff] %v4429_v39   ;;  %v6316_v50 = vadd.f32 %v4767_v59, %v1914_v53  ;;  %v3501_v59 = vmul.f32 %v6231_v40, %v6231_v40  ;;  %v3503_v40 = vmul.f32 %v6240_v3, %v6240_v3 }
 0x23b   :  { %v1916_v19 = vpop.f32.mrf.mxu0  ;;  %v6310_v24 = vpop.f32.mrf.mxu1 }
 0x23c   :  { %v3628_v61 = vadd.f32 %v3627_v36, %v3501_v59  ;;  %v3367_v19 = vadd.f32 %v3366_v0, %v6238_v48  ;;  %v3507_v0 = vmul.f32 %v6272_v46, %v6272_v46 }
 0x23d   :  { %v1917_v44 = vpop.f32.mrf.mxu0  ;;  %v6314_v47 = vpop.f32.mrf.mxu1 }
 0x23e   :  { %v6318_v52 = vadd.f32 %v4768_v16, %v1917_v44  ;;  %v3629_v14 = vadd.f32 %v3628_v61, %v3502_v8 }
 0x23f   :  { %v1919_v31 = vpop.f32.mrf.mxu0  ;;  %v6323_v26 = vpop.f32.mrf.mxu1 }
 0x240   :  { %v4434_v12 = vpack.c.bf16 %v6318_v52, %v6316_v50 }
 0x241   :  { %v1922_v16 = vpop.f32.mrf.mxu0  ;;  %v4787_v38 = vpop.f32.mrf.mxu1 }
 0x242   :  { %4594 = vst [vmem:[%s6721_s2 + $0x138] sm:$0xff] %v4434_v12   ;;  %v6338_v32 = vadd.f32 %v6249_v28, %v1922_v16  ;;  %v6341_v13 = vadd.f32 %v4787_v38, %v5583_v6  ;;  %v3506_v38 = vmul.f32 %v6270_v51, %v6270_v51 }
 0x243   :  { %v1924_v15 = vpop.f32.mrf.mxu0  ;;  %v2531_v33 = vpop.f32.mrf.mxu1 }
 0x244   :  { %v6360_v4 = vadd.f32 %v2531_v33, %v5561_v58  ;;  %v3505_v58 = vmul.f32 %v6255_v1, %v6255_v1 }
 0x245   :  { %v1925_v39 = vpop.f32.mrf.mxu0  ;;  %v4788_v53 = vpop.f32.mrf.mxu1 }
 0x246   :  { %v6344_v2 = vadd.f32 %v6257_v37, %v1925_v39  ;;  %v6347_v43 = vadd.f32 %v4788_v53, %v5589_v10  ;;  %v3368_v37 = vadd.f32 %v3367_v19, %v6240_v3  ;;  %v3504_v10 = vmul.f32 %v6253_v21, %v6253_v21 }
 0x247   :  { %v1927_v55 = vpop.f32.mrf.mxu0  ;;  %v2534_v44 = vpop.f32.mrf.mxu1  ;;  %v3630_v3 = vadd.f32 %v3629_v14, %v3503_v40 }
 0x248   :  { %v4439_v28 = vpack.c.bf16 %v6344_v2, %v6338_v32  ;;  %v4484_v6 = vpack.c.bf16 %v6347_v43, %v6341_v13  ;;  %v6363_v48 = vadd.f32 %v2534_v44, %v5567_v62  ;;  %v3369_v12 = vadd.f32 %v3368_v37, %v6253_v21 }
 0x249   :  { %v1930_v57 = vpop.f32.mrf.mxu0  ;;  %v4791_v31 = vpop.f32.mrf.mxu1  ;;  %v3631_v59 = vadd.f32 %v3630_v3, %v3504_v10 }
 0x24a   :  { %4595 = vst [vmem:[%s6721_s2 + $0x140] sm:$0xff] %v4439_v28   ;;  %4604 = vst [vmem:[%s6721_s2 + $0x188] sm:$0xff] %v4484_v6   ;;  %v4479_v62 = vpack.c.bf16 %v6363_v48, %v6360_v4  ;;  %v3370_v16 = vadd.f32 %v3369_v12, %v6255_v1  ;;  %v6383_v36 = vadd.f32 %v6244_v29, %v1930_v57 }
 0x24b   :  { %v1932_v17 = vpop.f32.mrf.mxu0  ;;  %v2547_v9 = vpop.f32.mrf.mxu1  ;;  %v6386_v15 = vadd.f32 %v4791_v31, %v5627_v30  ;;  %v3632_v8 = vadd.f32 %v3631_v59, %v3505_v58 }
 0x24c   :  { %4603 = vst [vmem:[%s6721_s2 + $0x180] sm:$0xff] %v4479_v62   ;;  %v3371_v53 = vadd.f32 %v3370_v16, %v6270_v51  ;;  %v3510_v62 = vmul.f32 %v6316_v50, %v6316_v50 }
 0x24d   :  { %v1933_v23 = vpop.f32.mrf.mxu0  ;;  %v4792_v21 = vpop.f32.mrf.mxu1  ;;  %v3633_v19 = vadd.f32 %v3632_v8, %v3506_v38 }
 0x24e   :  { %v6389_v33 = vadd.f32 %v6251_v20, %v1933_v23  ;;  %v6392_v1 = vadd.f32 %v4792_v21, %v5633_v34  ;;  %v3508_v20 = vmul.f32 %v6289_v27, %v6289_v27  ;;  %v6404_v34 = vadd.f32 %v2547_v9, %v5605_v18 }
 0x24f   :  { %v1935_v61 = vpop.f32.mrf.mxu0  ;;  %v2550_v39 = vpop.f32.mrf.mxu1  ;;  %v3372_v51 = vadd.f32 %v3371_v53, %v6272_v46  ;;  %v3634_v14 = vadd.f32 %v3633_v19, %v3507_v0 }
 0x250   :  { %v4444_v29 = vpack.c.bf16 %v6389_v33, %v6383_v36  ;;  %v4494_v30 = vpack.c.bf16 %v6392_v1, %v6386_v15  ;;  %v6407_v40 = vadd.f32 %v2550_v39, %v5611_v22  ;;  %v3509_v22 = vmul.f32 %v6291_v35, %v6291_v35 }
 0x251   :  { %v1938_v55 = vpop.f32.mrf.mxu0  ;;  %v4795_v44 = vpop.f32.mrf.mxu1  ;;  %v3373_v37 = vadd.f32 %v3372_v51, %v6289_v27  ;;  %v3635_v10 = vadd.f32 %v3634_v14, %v3508_v20  ;;  %v6747_v14 = vld [vmem:[#allocation6_spill] sm:$0xff] }
 0x252   :  { %4596 = vst [vmem:[%s6721_s2 + $0x148] sm:$0xff] %v4444_v29   ;;  %4606 = vst [vmem:[%s6721_s2 + $0x198] sm:$0xff] %v4494_v30   ;;  %v4489_v18 = vpack.c.bf16 %v6407_v40, %v6404_v34  ;;  %v6425_v46 = vadd.f32 %v6266_v45, %v1938_v55  ;;  %v6428_v3 = vadd.f32 %v4795_v44, %v5671_v54  ;;  %v6746_v55 = vld [vmem:[#allocation5_spill] sm:$0xff] }
 0x253   :  { %v1940_v28 = vpop.f32.mrf.mxu0  ;;  %v2563_v6 = vpop.f32.mrf.mxu1  ;;  %v3374_v27 = vadd.f32 %v3373_v37, %v6291_v35  ;;  %v3636_v59 = vadd.f32 %v3635_v10, %v3509_v22  ;;  %v6745_v35 = vld [vmem:[#allocation2_spill] sm:$0xff]  ;;  %v3513_v30 = vmul.f32 %v6344_v2, %v6344_v2 }
 0x254   :  { %4605 = vst [vmem:[%s6721_s2 + $0x190] sm:$0xff] %v4489_v18   ;;  %v6447_v16 = vadd.f32 %v2563_v6, %v5649_v42  ;;  %v3512_v42 = vmul.f32 %v6338_v32, %v6338_v32  ;;  %v3514_v28 = vmul.f32 %v6383_v36, %v6383_v36 }
 0x255   :  { %v1941_v57 = vpop.f32.mrf.mxu0  ;;  %v4796_v31 = vpop.f32.mrf.mxu1 }
 0x256   :  { %v6431_v12 = vadd.f32 %v6274_v7, %v1941_v57  ;;  %v6434_v58 = vadd.f32 %v4796_v31, %v5677_v60  ;;  %v3375_v7 = vadd.f32 %v3374_v27, %v6316_v50  ;;  %v3511_v60 = vmul.f32 %v6318_v52, %v6318_v52 }
 0x257   :  { %v1943_v17 = vpop.f32.mrf.mxu0  ;;  %v2566_v9 = vpop.f32.mrf.mxu1  ;;  %v3637_v50 = vadd.f32 %v3636_v59, %v3510_v62  ;;  %v3515_v31 = vmul.f32 %v6389_v33, %v6389_v33  ;;  %v6749_v62 = vld [vmem:[#allocation4_spill] sm:$0xff] }
 0x258   :  { %v4449_v45 = vpack.c.bf16 %v6431_v12, %v6425_v46  ;;  %v4504_v54 = vpack.c.bf16 %v6434_v58, %v6428_v3  ;;  %v6450_v38 = vadd.f32 %v2566_v9, %v6745_v35  ;;  %v3376_v8 = vadd.f32 %v3375_v7, %v6318_v52 }
 0x259   :  { %v1946_v23 = vpop.f32.mrf.mxu0  ;;  %v4799_v21 = vpop.f32.mrf.mxu1  ;;  %v3638_v53 = vadd.f32 %v3637_v50, %v3511_v60  ;;  %v3516_v35 = vmul.f32 %v6425_v46, %v6425_v46  ;;  %v3517_v50 = vmul.f32 %v6431_v12, %v6431_v12 }
 0x25a   :  { %4597 = vst [vmem:[%s6721_s2 + $0x150] sm:$0xff] %v4449_v45   ;;  %4608 = vst [vmem:[%s6721_s2 + $0x1a8] sm:$0xff] %v4504_v54   ;;  %v4499_v0 = vpack.c.bf16 %v6450_v38, %v6447_v16  ;;  %v3377_v29 = vadd.f32 %v3376_v8, %v6338_v32  ;;  %v2492_v20 = vadd.f32 %v6261_v49, %v1946_v23 }
 0x25b   :  { %v1948_v61 = vpop.f32.mrf.mxu0  ;;  %v2579_v39 = vpop.f32.mrf.mxu1  ;;  %v6471_v44 = vadd.f32 %v4799_v21, %v6746_v55  ;;  %v3639_v32 = vadd.f32 %v3638_v53, %v3512_v42  ;;  %v6751_v53 = vld [vmem:[#allocation10_spill] sm:$0xff] }
 0x25c   :  { %4607 = vst [vmem:[%s6721_s2 + $0x1a0] sm:$0xff] %v4499_v0   ;;  %v3378_v37 = vadd.f32 %v3377_v29, %v6344_v2  ;;  %v6750_v0 = vld [vmem:[#allocation9_spill] sm:$0xff]  ;;  %v3518_v55 = vmul.f32 %v2492_v20, %v2492_v20 }
 0x25d   :  { %v1949_v19 = vpop.f32.mrf.mxu0  ;;  %v4800_v52 = vpop.f32.mrf.mxu1  ;;  %v3640_v57 = vadd.f32 %v3639_v32, %v3513_v30 }
 0x25e   :  { %v2495_v51 = vadd.f32 %v6268_v11, %v1949_v19  ;;  %v6475_v18 = vadd.f32 %v4800_v52, %v6747_v14  ;;  %v6748_v11 = vld [vmem:[#allocation3_spill] sm:$0xff]  ;;  %v3379_v2 = vadd.f32 %v3378_v37, %v6383_v36 }
 0x25f   :  { %v1951_v6 = vpop.f32.mrf.mxu0  ;;  %v2582_v22 = vpop.f32.mrf.mxu1  ;;  %v6485_v27 = vadd.f32 %v2579_v39, %v6748_v11  ;;  %v3641_v45 = vadd.f32 %v3640_v57, %v3514_v28  ;;  %v6752_v28 = vld [vmem:[#allocation7_spill] sm:$0xff] }
 0x260   :  { %v4454_v10 = vpack.c.bf16 %v2495_v51, %v2492_v20  ;;  %v4514_v49 = vpack.c.bf16 %v6475_v18, %v6471_v44  ;;  %v6488_v17 = vadd.f32 %v2582_v22, %v6749_v62  ;;  %v3380_v23 = vadd.f32 %v3379_v2, %v6389_v33  ;;  %v6753_v22 = vld [vmem:[#allocation8_spill] sm:$0xff] }
 0x261   :  { %v1954_v9 = vpop.f32.mrf.mxu0  ;;  %v4803_v59 = vpop.f32.mrf.mxu1  ;;  %v3642_v21 = vadd.f32 %v3641_v45, %v3515_v31 }
 0x262   :  { %4598 = vst [vmem:[%s6721_s2 + $0x158] sm:$0xff] %v4454_v10   ;;  %4610 = vst [vmem:[%s6721_s2 + $0x1b8] sm:$0xff] %v4514_v49   ;;  %v4509_v54 = vpack.c.bf16 %v6488_v17, %v6485_v27  ;;  %v2500_v42 = vadd.f32 %v6283_v63, %v1954_v9  ;;  %v6509_v61 = vadd.f32 %v4803_v59, %v6750_v0 }
 0x263   :  { %v1956_v7 = vpop.f32.mrf.mxu0  ;;  %v2595_v60 = vpop.f32.mrf.mxu1  ;;  %v3381_v33 = vadd.f32 %v3380_v23, %v6425_v46  ;;  %v3643_v52 = vadd.f32 %v3642_v21, %v3516_v35  ;;  %v3519_v46 = vmul.f32 %v2495_v51, %v2495_v51  ;;  %v6755_v23 = vld [vmem:[#allocation14_spill] sm:$0xff] }
 0x264   :  { %4609 = vst [vmem:[%s6721_s2 + $0x1b0] sm:$0xff] %v4509_v54   ;;  %v6520_v6 = vadd.f32 %v2595_v60, %v6752_v28  ;;  %v3520_v9 = vmul.f32 %v2500_v42, %v2500_v42  ;;  %v6754_v60 = vld [vmem:[#allocation13_spill] sm:$0xff] }
 0x265   :  { %v1957_v36 = vpop.f32.mrf.mxu0  ;;  %v4804_v8 = vpop.f32.mrf.mxu1  ;;  %v3382_v63 = vadd.f32 %v3381_v33, %v6431_v12  ;;  %v3644_v49 = vadd.f32 %v3643_v52, %v3517_v50 }
 0x266   :  { %v2503_v39 = vadd.f32 %v6298_v56, %v1957_v36  ;;  %v6513_v29 = vadd.f32 %v4804_v8, %v6751_v53 }
 0x267   :  { %v1959_v30 = vpop.f32.mrf.mxu0  ;;  %v2598_v19 = vpop.f32.mrf.mxu1  ;;  %v3383_v57 = vadd.f32 %v3382_v63, %v2492_v20  ;;  %v3645_v62 = vadd.f32 %v3644_v49, %v3518_v55  ;;  %v6757_v55 = vld [vmem:[#allocation12_spill] sm:$0xff] }
 0x268   :  { %v4459_v14 = vpack.c.bf16 %v2503_v39, %v2500_v42  ;;  %v4524_v32 = vpack.c.bf16 %v6513_v29, %v6509_v61  ;;  %v6523_v56 = vadd.f32 %v2598_v19, %v6753_v22  ;;  %v3521_v36 = vmul.f32 %v2503_v39, %v2503_v39  ;;  %v6756_v19 = vld [vmem:[#allocation11_spill] sm:$0xff] }
 0x269   :  { %v1962_v37 = vpop.f32.mrf.mxu0  ;;  %v4807_v10 = vpop.f32.mrf.mxu1  ;;  %v3384_v59 = vadd.f32 %v3383_v57, %v2495_v51  ;;  %v3646_v7 = vadd.f32 %v3645_v62, %v3519_v46 }
 0x26a   :  { %4599 = vst [vmem:[%s6721_s2 + $0x160] sm:$0xff] %v4459_v14   ;;  %4612 = vst [vmem:[%s6721_s2 + $0x1c8] sm:$0xff] %v4524_v32   ;;  %v4519_v12 = vpack.c.bf16 %v6523_v56, %v6520_v6  ;;  %v2508_v2 = vadd.f32 %v6278_v41, %v1962_v37  ;;  %v6538_v35 = vadd.f32 %v4807_v10, %v6754_v60 }
 0x26b   :  { %v1964_v31 = vpop.f32.mrf.mxu0  ;;  %v2611_v11 = vpop.f32.mrf.mxu1  ;;  %v3385_v50 = vadd.f32 %v3384_v59, %v2500_v42  ;;  %v3647_v0 = vadd.f32 %v3646_v7, %v3520_v9  ;;  %v6759_v9 = vld [vmem:[#allocation18_spill] sm:$0xff] }
 0x26c   :  { %4611 = vst [vmem:[%s6721_s2 + $0x1c0] sm:$0xff] %v4519_v12   ;;  %v3522_v30 = vmul.f32 %v2508_v2, %v2508_v2  ;;  %v6547_v52 = vadd.f32 %v2611_v11, %v6756_v19  ;;  %v6758_v11 = vld [vmem:[#allocation17_spill] sm:$0xff] }
 0x26d   :  { %v1965_v45 = vpop.f32.mrf.mxu0  ;;  %v4808_v54 = vpop.f32.mrf.mxu1  ;;  %v3386_v33 = vadd.f32 %v3385_v50, %v2503_v39  ;;  %v3648_v39 = vadd.f32 %v3647_v0, %v3521_v36  ;;  %v6760_v50 = vld [vmem:[#allocation15_spill] sm:$0xff] }
 0x26e   :  { %v2511_v20 = vadd.f32 %v6287_v5, %v1965_v45  ;;  %v6542_v21 = vadd.f32 %v4808_v54, %v6755_v23 }
 0x26f   :  { %v1967_v51 = vpop.f32.mrf.mxu0  ;;  %v2614_v8 = vpop.f32.mrf.mxu1  ;;  %v3387_v63 = vadd.f32 %v3386_v33, %v2508_v2  ;;  %v3649_v49 = vadd.f32 %v3648_v39, %v3522_v30 }
 0x270   :  { %v4464_v53 = vpack.c.bf16 %v2511_v20, %v2508_v2  ;;  %v4534_v41 = vpack.c.bf16 %v6542_v21, %v6538_v35  ;;  %v6550_v14 = vadd.f32 %v2614_v8, %v6757_v55  ;;  %v3523_v28 = vmul.f32 %v2511_v20, %v2511_v20  ;;  %v6761_v51 = vld [vmem:[#allocation16_spill] sm:$0xff] }
 0x271   :  { %v1970_v5 = vpop.f32.mrf.mxu0  ;;  %v4811_v32 = vpop.f32.mrf.mxu1  ;;  %v3388_v46 = vadd.f32 %v3387_v63, %v2511_v20 }
 0x272   :  { %4600 = vst [vmem:[%s6721_s2 + $0x168] sm:$0xff] %v4464_v53   ;;  %4614 = vst [vmem:[%s6721_s2 + $0x1d8] sm:$0xff] %v4534_v41   ;;  %v2516_v42 = vadd.f32 %v6310_v24, %v1970_v5  ;;  %v4529_v22 = vpack.c.bf16 %v6550_v14, %v6547_v52  ;;  %v6565_v62 = vadd.f32 %v4811_v32, %v6758_v11 }
 0x273   :  { %v1972_v37 = vpop.f32.mrf.mxu0  ;;  %v2627_v10 = vpop.f32.mrf.mxu1  ;;  %v3650_v2 = vadd.f32 %v3649_v49, %v3523_v28 }
 0x274   :  { %4613 = vst [vmem:[%s6721_s2 + $0x1d0] sm:$0xff] %v4529_v22   ;;  %v3524_v31 = vmul.f32 %v2516_v42, %v2516_v42  ;;  %v3389_v7 = vadd.f32 %v3388_v46, %v2516_v42  ;;  %v6574_v36 = vadd.f32 %v2627_v10, %v6760_v50  ;;  %v6762_v22 = vld [vmem:[#allocation21_spill] sm:$0xff]  ;;  %v6763_v10 = vld [vmem:[#allocation22_spill] sm:$0xff] }
 0x275   :  { %v1973_v57 = vpop.f32.mrf.mxu0  ;;  %v4812_v12 = vpop.f32.mrf.mxu1 }
 0x276   :  { %v2519_v24 = vadd.f32 %v6323_v26, %v1973_v57  ;;  %v6569_v59 = vadd.f32 %v4812_v12, %v6759_v9  ;;  %v3651_v53 = vadd.f32 %v3650_v2, %v3524_v31  ;;  %v6764_v9 = vld [vmem:[#allocation19_spill] sm:$0xff] }
 0x277   :  { %v1975_v45 = vpop.f32.mrf.mxu0  ;;  %v2630_v54 = vpop.f32.mrf.mxu1 }
 0x278   :  { %v4469_v60 = vpack.c.bf16 %v2519_v24, %v2516_v42  ;;  %v3525_v20 = vmul.f32 %v2519_v24, %v2519_v24  ;;  %v4544_v23 = vpack.c.bf16 %v6569_v59, %v6565_v62  ;;  %v6577_v8 = vadd.f32 %v2630_v54, %v6761_v51  ;;  %v6765_v45 = vld [vmem:[#allocation20_spill] sm:$0xff] }
 0x279   :  { %v1978_v0 = vpop.f32.mrf.mxu0  ;;  %v4815_v26 = vpop.f32.mrf.mxu1  ;;  %v3390_v41 = vadd.f32 %v3389_v7, %v2519_v24 }
 0x27a   :  { %4601 = vst [vmem:[%s6721_s2 + $0x170] sm:$0xff] %v4469_v60   ;;  %4616 = vst [vmem:[%s6721_s2 + $0x1e8] sm:$0xff] %v4544_v23   ;;  %v2524_v33 = vadd.f32 %v6302_v25, %v1978_v0  ;;  %v4539_v30 = vpack.c.bf16 %v6577_v8, %v6574_v36  ;;  %v3652_v5 = vadd.f32 %v3651_v53, %v3525_v20 }
 0x27b   :  { %v1980_v19 = vpop.f32.mrf.mxu0  ;;  %v2643_v55 = vpop.f32.mrf.mxu1  ;;  %v6592_v37 = vadd.f32 %v4815_v26, %v6762_v22  ;;  %v3529_v23 = vmul.f32 %v6363_v48, %v6363_v48  ;;  %v3531_v53 = vmul.f32 %v6347_v43, %v6347_v43 }
 0x27c   :  { %v3391_v32 = vadd.f32 %v3390_v41, %v2524_v33  ;;  %v3526_v42 = vmul.f32 %v2524_v33, %v2524_v33  ;;  %4615 = vst [vmem:[%s6721_s2 + $0x1e0] sm:$0xff] %v4539_v30   ;;  %v6601_v2 = vadd.f32 %v2643_v55, %v6764_v9  ;;  %v3533_v55 = vmul.f32 %v6407_v40, %v6407_v40 }
 0x27d   :  { %v1981_v39 = vpop.f32.mrf.mxu0  ;;  %v4816_v63 = vpop.f32.mrf.mxu1 }
 0x27e   :  { %v3653_v28 = vadd.f32 %v3652_v5, %v3526_v42  ;;  %v2527_v25 = vadd.f32 %v6314_v47, %v1981_v39  ;;  %v6596_v49 = vadd.f32 %v4816_v63, %v6763_v10  ;;  %v3528_v47 = vmul.f32 %v6360_v4, %v6360_v4 }
 0x27f   :  { %v1983_v46 = vpop.f32.mrf.mxu0  ;;  %v2646_v57 = vpop.f32.mrf.mxu1 }
 0x280   :  { %v4474_v12 = vpack.c.bf16 %v2527_v25, %v2524_v33  ;;  %v3392_v31 = vadd.f32 %v3391_v32, %v2527_v25  ;;  %v3527_v11 = vmul.f32 %v2527_v25, %v2527_v25  ;;  %v4554_v24 = vpack.c.bf16 %v6596_v49, %v6592_v37 }
 0x281   :  { %v6604_v54 = vadd.f32 %v2646_v57, %v6765_v45 }
 0x282   :  { %4602 = vst [vmem:[%s6721_s2 + $0x178] sm:$0xff] %v4474_v12   ;;  %v3393_v7 = vadd.f32 %v3392_v31, %v6360_v4  ;;  %v3654_v60 = vadd.f32 %v3653_v28, %v3527_v11  ;;  %4618 = vst [vmem:[%s6721_s2 + $0x1f8] sm:$0xff] %v4554_v24   ;;  %v3530_v4 = vmul.f32 %v6341_v13, %v6341_v13 }
 0x283   :  { %v4549_v20 = vpack.c.bf16 %v6604_v54, %v6601_v2 }
 0x284   :  { %v3394_v50 = vadd.f32 %v3393_v7, %v6363_v48  ;;  %v3655_v51 = vadd.f32 %v3654_v60, %v3528_v47  ;;  %v3532_v48 = vmul.f32 %v6404_v34, %v6404_v34 }
 0x285   :  { %4617 = vst [vmem:[%s6721_s2 + $0x1f0] sm:$0xff] %v4549_v20  }
 0x286   :  { %v3395_v0 = vadd.f32 %v3394_v50, %v6341_v13  ;;  %v3656_v26 = vadd.f32 %v3655_v51, %v3529_v23  ;;  %v3534_v13 = vmul.f32 %v6386_v15, %v6386_v15 }
 0x288   :  { %v3396_v41 = vadd.f32 %v3395_v0, %v6347_v43  ;;  %v3657_v33 = vadd.f32 %v3656_v26, %v3530_v4  ;;  %v3535_v43 = vmul.f32 %v6392_v1, %v6392_v1 }
 0x28a   :  { %v3397_v30 = vadd.f32 %v3396_v41, %v6404_v34  ;;  %v3658_v19 = vadd.f32 %v3657_v33, %v3531_v53  ;;  %v3536_v34 = vmul.f32 %v6447_v16, %v6447_v16 }
 0x28c   :  { %v3398_v5 = vadd.f32 %v3397_v30, %v6407_v40  ;;  %v3659_v32 = vadd.f32 %v3658_v19, %v3532_v48  ;;  %v3537_v40 = vmul.f32 %v6450_v38, %v6450_v38 }
 0x28e   :  { %v3399_v42 = vadd.f32 %v3398_v5, %v6386_v15  ;;  %v3660_v39 = vadd.f32 %v3659_v32, %v3533_v55  ;;  %v3538_v15 = vmul.f32 %v6428_v3, %v6428_v3 }
 0x290   :  { %v3400_v63 = vadd.f32 %v3399_v42, %v6392_v1  ;;  %v3661_v28 = vadd.f32 %v3660_v39, %v3534_v13  ;;  %v3539_v1 = vmul.f32 %v6434_v58, %v6434_v58 }
 0x292   :  { %v3401_v22 = vadd.f32 %v3400_v63, %v6447_v16  ;;  %v3662_v25 = vadd.f32 %v3661_v28, %v3535_v43  ;;  %v3540_v16 = vmul.f32 %v6485_v27, %v6485_v27 }
 0x294   :  { %v3402_v10 = vadd.f32 %v3401_v22, %v6450_v38  ;;  %v3663_v46 = vadd.f32 %v3662_v25, %v3536_v34  ;;  %v3541_v38 = vmul.f32 %v6488_v17, %v6488_v17 }
 0x296   :  { %v3403_v57 = vadd.f32 %v3402_v10, %v6428_v3  ;;  %v3664_v12 = vadd.f32 %v3663_v46, %v3537_v40  ;;  %v3542_v3 = vmul.f32 %v6471_v44, %v6471_v44 }
 0x298   :  { %v3404_v31 = vadd.f32 %v3403_v57, %v6434_v58  ;;  %v3665_v11 = vadd.f32 %v3664_v12, %v3538_v15  ;;  %v3543_v58 = vmul.f32 %v6475_v18, %v6475_v18  ;;  %v3557_v15 = vmul.f32 %v6604_v54, %v6604_v54 }
 0x29a   :  { %v3405_v24 = vadd.f32 %v3404_v31, %v6485_v27  ;;  %v3666_v9 = vadd.f32 %v3665_v11, %v3539_v1  ;;  %v3544_v27 = vmul.f32 %v6520_v6, %v6520_v6 }
 0x29c   :  { %v3406_v45 = vadd.f32 %v3405_v24, %v6488_v17  ;;  %v3667_v47 = vadd.f32 %v3666_v9, %v3540_v16  ;;  %v3545_v17 = vmul.f32 %v6523_v56, %v6523_v56 }
 0x29e   :  { %v3668_v7 = vadd.f32 %v3667_v47, %v3541_v38  ;;  %v3407_v60 = vadd.f32 %v3406_v45, %v6471_v44  ;;  %v3546_v44 = vmul.f32 %v6509_v61, %v6509_v61 }
 0x2a0   :  { %v3408_v20 = vadd.f32 %v3407_v60, %v6475_v18  ;;  %v3669_v23 = vadd.f32 %v3668_v7, %v3542_v3  ;;  %v3547_v18 = vmul.f32 %v6513_v29, %v6513_v29 }
 0x2a2   :  { %v3409_v50 = vadd.f32 %v3408_v20, %v6520_v6  ;;  %v3670_v51 = vadd.f32 %v3669_v23, %v3543_v58  ;;  %v3548_v6 = vmul.f32 %v6547_v52, %v6547_v52 }
 0x2a4   :  { %v3410_v4 = vadd.f32 %v3409_v50, %v6523_v56  ;;  %v3671_v0 = vadd.f32 %v3670_v51, %v3544_v27  ;;  %v3549_v56 = vmul.f32 %v6550_v14, %v6550_v14 }
 0x2a6   :  { %v3411_v26 = vadd.f32 %v3410_v4, %v6509_v61  ;;  %v3672_v53 = vadd.f32 %v3671_v0, %v3545_v17  ;;  %v3550_v61 = vmul.f32 %v6538_v35, %v6538_v35 }
 0x2a8   :  { %v3412_v41 = vadd.f32 %v3411_v26, %v6513_v29  ;;  %v3673_v33 = vadd.f32 %v3672_v53, %v3546_v44  ;;  %v3551_v29 = vmul.f32 %v6542_v21, %v6542_v21 }
 0x2aa   :  { %v3413_v48 = vadd.f32 %v3412_v41, %v6547_v52  ;;  %v3674_v30 = vadd.f32 %v3673_v33, %v3547_v18  ;;  %v3552_v52 = vmul.f32 %v6574_v36, %v6574_v36 }
 0x2ac   :  { %v3414_v19 = vadd.f32 %v3413_v48, %v6550_v14  ;;  %v3675_v55 = vadd.f32 %v3674_v30, %v3548_v6  ;;  %v3553_v14 = vmul.f32 %v6577_v8, %v6577_v8 }
 0x2ae   :  { %v3415_v5 = vadd.f32 %v3414_v19, %v6538_v35  ;;  %v3676_v32 = vadd.f32 %v3675_v55, %v3549_v56  ;;  %v3554_v35 = vmul.f32 %v6565_v62, %v6565_v62 }
 0x2b0   :  { %v3416_v13 = vadd.f32 %v3415_v5, %v6542_v21  ;;  %v3677_v42 = vadd.f32 %v3676_v32, %v3550_v61  ;;  %v3555_v21 = vmul.f32 %v6569_v59, %v6569_v59 }
 0x2b2   :  { %v3417_v39 = vadd.f32 %v3416_v13, %v6574_v36  ;;  %v3678_v43 = vadd.f32 %v3677_v42, %v3551_v29  ;;  %v3556_v36 = vmul.f32 %v6601_v2, %v6601_v2 }
 0x2b4   :  { %v3418_v63 = vadd.f32 %v3417_v39, %v6577_v8  ;;  %v3679_v28 = vadd.f32 %v3678_v43, %v3552_v52 }
 0x2b6   :  { %v3419_v34 = vadd.f32 %v3418_v63, %v6565_v62  ;;  %v3680_v22 = vadd.f32 %v3679_v28, %v3553_v14  ;;  %v3558_v62 = vmul.f32 %v6592_v37, %v6592_v37 }
 0x2b8   :  { %v3420_v25 = vadd.f32 %v3419_v34, %v6569_v59  ;;  %v3681_v40 = vadd.f32 %v3680_v22, %v3554_v35  ;;  %v3559_v59 = vmul.f32 %v6596_v49, %v6596_v49 }
 0x2ba   :  { %v3421_v10 = vadd.f32 %v3420_v25, %v6601_v2  ;;  %v3682_v46 = vadd.f32 %v3681_v40, %v3555_v21 }
 0x2bc   :  { %v3422_v8 = vadd.f32 %v3421_v10, %v6604_v54  ;;  %v3683_v57 = vadd.f32 %v3682_v46, %v3556_v36 }
 0x2be   :  { %v3423_v12 = vadd.f32 %v3422_v8, %v6592_v37  ;;  %v3684_v1 = vadd.f32 %v3683_v57, %v3557_v15 }
 0x2c0   :  { %v3424_v31 = vadd.f32 %v3423_v12, %v6596_v49  ;;  %v3685_v11 = vadd.f32 %v3684_v1, %v3558_v62 }
 0x2c2   :  { %v3425_v2 = vrot.slane %v3424_v31, 4  ;;  %v3686_v16 = vadd.f32 %v3685_v11, %v3559_v59 }
 0x2c4   :  { %v3426_v24 = vadd.f32 %v3425_v2, %v3424_v31  ;;  %v3687_v9 = vrot.slane %v3686_v16, 4 }
 0x2c6   :  { %v3427_v38 = vrot.slane %v3426_v24, 2  ;;  %v3688_v45 = vadd.f32 %v3687_v9, %v3686_v16 }
 0x2c8   :  { %v3428_v54 = vadd.f32 %v3427_v38, %v3426_v24  ;;  %v3689_v47 = vrot.slane %v3688_v45, 2 }
 0x2ca   :  { %v3429_v3 = vrot.slane %v3428_v54, 1  ;;  %v3690_v7 = vadd.f32 %v3689_v47, %v3688_v45 }
 0x2cc   :  { %v3430_v60 = vadd.f32 %v3429_v3, %v3428_v54  ;;  %v3691_v58 = vrot.slane %v3690_v7, 1 }
 0x2ce   :  { %3431 = vst [vmem:[%s6722_s3] sm:$0x1] %v3430_v60  ;;  %v3692_v37 = vadd.f32 %v3691_v58, %v3690_v7 }
 0x2d0   :  { %3693 = vst [vmem:[%s6723_s4] sm:$0x1] %v3692_v37 }

// kernel: cgan_discriminator_forward.5
= control target key start
LH: loop header
LB: loop body
LE: loop exit
PB: predicated region body
PF: predicated region fallthrough
CT: control target
= control target key end

     0   :  { %vm810_vm0 = vcmask 523264   ;;  %s3407_s1 = inlined_call_operand.vmem [shape: bf16[576,128], index: 1, kind: input, shape index: {}]   ;;  %s3408_s0 = inlined_call_operand.vmem [shape: bf16[256,576], index: 0, kind: input, shape index: {}]   ;;  %s3409_s5 = inlined_call_operand.<no memory space> [shape: f32[1,1], index: 5, kind: input, shape index: {}]   ;;  %s3410_s2 = inlined_call_operand.vmem [shape: f32[1,128], index: 2, kind: input, shape index: {}]   ;;  %s3411_s3 = inlined_call_operand.vmem [shape: f32[1,128], index: 3, kind: input, shape index: {}]   ;;  %s3412_s4 = inlined_call_operand.vmem [shape: f32[1,128], index: 4, kind: input, shape index: {}]   ;;  %s3413_s6 = inlined_call_operand.vmem [shape: f32[4,1], index: 6, kind: output, shape index: {}]  }
   0x1   :  { %v2203_v0 = vld [vmem:[%s3407_s1 + $0x78] sm:$0xff]   ;;  %v2205_v2 = vld [vmem:[%s3407_s1 + $0x70] sm:$0xff]   ;;  %v2207_v4 = vld [vmem:[%s3407_s1 + $0x68] sm:$0xff]  }
   0x2   :  { %v2204_v1 = vld [vmem:[%s3407_s1 + $0x38] sm:$0xff]   ;;  %1903 = vmatprep.subr.bf16.mxu0 %v2203_v0  ;;  %2187 = vmatprep.subr.bf16.mxu1 %v2203_v0  ;;  %v2206_v3 = vld [vmem:[%s3407_s1 + $0x30] sm:$0xff]   ;;  %v2208_v5 = vld [vmem:[%s3407_s1 + $0x28] sm:$0xff]  }
   0x3   :  { %1904 = vmatpush3.bf16.msra.mxu0 %v2204_v1  ;;  %2195 = vmatpush3.bf16.msra.mxu1 %v2204_v1  ;;  %v2209_v6 = vld [vmem:[%s3407_s1 + $0x60] sm:$0xff]   ;;  %v2211_v8 = vld [vmem:[%s3407_s1 + $0x58] sm:$0xff]   ;;  %v2213_v10 = vld [vmem:[%s3407_s1 + $0x50] sm:$0xff]  }
   0x4   :  { %1905 = vmatprep.subr.bf16.mxu0 %v2205_v2  ;;  %2188 = vmatprep.subr.bf16.mxu1 %v2205_v2  ;;  %v2210_v7 = vld [vmem:[%s3407_s1 + $0x20] sm:$0xff]   ;;  %v2212_v9 = vld [vmem:[%s3407_s1 + $0x18] sm:$0xff]   ;;  %v2214_v13 = vld [vmem:[%s3407_s1 + $0x10] sm:$0xff]  }
   0x5   :  { %v2221_v11 = vld [vmem:[%s3408_s0 + $0x4] ss:$20 sps:$4 sm:$0xff]   ;;  %v2215_v14 = vld [vmem:[%s3407_s1 + $0x48] sm:$0xff]   ;;  %v2219_v20 = vld [vmem:[%s3408_s0] ss:$20 sps:$4 sm:$0xff]  }
   0x6   :  { %v2224_v12 = vld [vmem:[%s3408_s0 + $0x1e4] ss:$20 sps:$4 sm:$0xff]   ;;  %891 = vmatprep.mubr.bf16.mxu0 %v2221_v11  ;;  %v2216_v15 = vld [vmem:[%s3407_s1 + $0x8] sm:$0xff]   ;;  %v2222_v21 = vld [vmem:[%s3408_s0 + $0x1e0] ss:$20 sps:$4 sm:$0xff]  }
   0x7   :  { %1906 = vmatpush3.bf16.msra.mxu0 %v2206_v3  ;;  %2196 = vmatpush3.bf16.msra.mxu1 %v2206_v3  ;;  %v2217_v16 = vld [vmem:[%s3407_s1 + $0x40] sm:$0xff]   ;;  %v2225_v18 = vld [vmem:[%s3407_s1 + $0xf8] sm:$0xff]   ;;  %v2228_v23 = vld [vmem:[%s3407_s1 + $0xf0] sm:$0xff]  }
   0x8   :  { %1907 = vmatprep.subr.bf16.mxu0 %v2207_v4  ;;  %2189 = vmatprep.subr.bf16.mxu1 %v2207_v4  ;;  %v2218_v17 = vld [vmem:[%s3407_s1] sm:$0xff]   ;;  %v2226_v19 = vld [vmem:[%s3407_s1 + $0x118] sm:$0xff]   ;;  %v2229_v26 = vld [vmem:[%s3407_s1 + $0xb0] sm:$0xff]  }
   0x9   :  { %987 = vmatprep.mubr.bf16.mxu1 %v2224_v12  ;;  %v2227_v22 = vld [vmem:[%s3407_s1 + $0xb8] sm:$0xff]   ;;  %v2230_v24 = vld [vmem:[%s3408_s0 + $0x2c] ss:$20 sps:$4 sm:$0xff]   ;;  %v2240_v32 = vld [vmem:[%s3408_s0 + $0x54] ss:$20 sps:$4 sm:$0xff]  }
   0xa   :  { %v2232_v25 = vld [vmem:[%s3408_s0 + $0x20c] ss:$20 sps:$4 sm:$0xff]   ;;  %v2234_v27 = vld [vmem:[%s3408_s0 + $0x28] ss:$20 sps:$4 sm:$0xff]   ;;  %v2257_v34 = vld [vmem:[%s3407_s1 + $0x110] sm:$0xff]  }
   0xb   :  { %1908 = vmatpush3.bf16.msra.mxu0 %v2208_v5  ;;  %2197 = vmatpush3.bf16.msra.mxu1 %v2208_v5  ;;  %v2236_v28 = vld [vmem:[%s3407_s1 + $0xe8] sm:$0xff]   ;;  %v2238_v31 = vld [vmem:[%s3407_s1 + $0xe0] sm:$0xff]   ;;  %v2246_v37 = vld [vmem:[%s3407_s1 + $0xd8] sm:$0xff]  }
   0xc   :  { %1909 = vmatprep.subr.bf16.mxu0 %v2209_v6  ;;  %2190 = vmatprep.subr.bf16.mxu1 %v2209_v6  ;;  %v2235_v29 = vld [vmem:[%s3408_s0 + $0x208] ss:$20 sps:$4 sm:$0xff]   ;;  %v2239_v35 = vld [vmem:[%s3407_s1 + $0xa0] sm:$0xff]   ;;  %v2248_v40 = vld [vmem:[%s3407_s1 + $0xd0] sm:$0xff]  }
   0xd   :  { %v2237_v30 = vld [vmem:[%s3407_s1 + $0xa8] sm:$0xff]   ;;  %v2244_v36 = vld [vmem:[%s3408_s0 + $0x50] ss:$20 sps:$4 sm:$0xff]   ;;  %v2247_v39 = vld [vmem:[%s3407_s1 + $0x98] sm:$0xff]  }
   0xe   :  { %v2242_v33 = vld [vmem:[%s3408_s0 + $0x234] ss:$20 sps:$4 sm:$0xff]   ;;  %v2245_v38 = vld [vmem:[%s3408_s0 + $0x230] ss:$20 sps:$4 sm:$0xff]   ;;  %v2254_v44 = vld [vmem:[%s3408_s0 + $0x78] ss:$20 sps:$4 sm:$0xff]  }
   0xf   :  { %1910 = vmatpush3.bf16.msra.mxu0 %v2210_v7  ;;  %2198 = vmatpush3.bf16.msra.mxu1 %v2210_v7  ;;  %v2250_v41 = vld [vmem:[%s3408_s0 + $0x7c] ss:$20 sps:$4 sm:$0xff]   ;;  %v2255_v45 = vld [vmem:[%s3408_s0 + $0x258] ss:$20 sps:$4 sm:$0xff]   ;;  %v2259_v49 = vld [vmem:[%s3407_s1 + $0xc0] sm:$0xff]  }
  0x10   :  { %1911 = vmatprep.subr.bf16.mxu0 %v2211_v8  ;;  %2191 = vmatprep.subr.bf16.mxu1 %v2211_v8  ;;  %v2252_v42 = vld [vmem:[%s3408_s0 + $0x25c] ss:$20 sps:$4 sm:$0xff]   ;;  %v2256_v46 = vld [vmem:[%s3407_s1 + $0xc8] sm:$0xff]   ;;  %v2261_v50 = vld [vmem:[%s3408_s0 + $0xa4] ss:$20 sps:$4 sm:$0xff]  }
  0x11   :  { %v2249_v43 = vld [vmem:[%s3407_s1 + $0x90] sm:$0xff]   ;;  %v2279_v47 = vld [vmem:[%s3407_s1 + $0x108] sm:$0xff]   ;;  %v2260_v52 = vld [vmem:[%s3407_s1 + $0x80] sm:$0xff]  }
  0x12   :  { %v2258_v48 = vld [vmem:[%s3407_s1 + $0x88] sm:$0xff]   ;;  %v2266_v54 = vld [vmem:[%s3408_s0 + $0xa0] ss:$20 sps:$4 sm:$0xff]   ;;  %v2272_v59 = vld [vmem:[%s3408_s0 + $0x30] ss:$20 sps:$4 sm:$0xff]  }
  0x13   :  { %1912 = vmatpush3.bf16.msra.mxu0 %v2212_v9  ;;  %2199 = vmatpush3.bf16.msra.mxu1 %v2212_v9  ;;  %v2265_v51 = vld [vmem:[%s3408_s0 + $0xc] ss:$20 sps:$4 sm:$0xff]   ;;  %v2263_v53 = vld [vmem:[%s3408_s0 + $0x8] ss:$20 sps:$4 sm:$0xff]   ;;  %v2277_v62 = vld [vmem:[%s3408_s0 + $0xf0] ss:$20 sps:$4 sm:$0xff]  }
  0x14   :  { %1913 = vmatprep.subr.bf16.mxu0 %v2213_v10  ;;  %2192 = vmatprep.subr.bf16.mxu1 %v2213_v10  ;;  %v2267_v55 = vld [vmem:[%s3408_s0 + $0xcc] ss:$20 sps:$4 sm:$0xff]   ;;  %v2269_v57 = vld [vmem:[%s3408_s0 + $0x34] ss:$20 sps:$4 sm:$0xff]   ;;  %v2275_v61 = vld [vmem:[%s3408_s0 + $0x5c] ss:$20 sps:$4 sm:$0xff]  }
  0x15   :  { %v2298_v56 = vld [vmem:[%s3407_s1 + $0x100] sm:$0xff]   ;;  %v2271_v58 = vld [vmem:[%s3408_s0 + $0xc8] ss:$20 sps:$4 sm:$0xff]   ;;  %v2278_v63 = vld [vmem:[%s3408_s0 + $0x58] ss:$20 sps:$4 sm:$0xff]  }
  0x16   :  { %v2273_v60 = vld [vmem:[%s3408_s0 + $0xf4] ss:$20 sps:$4 sm:$0xff]   ;;  %v2280_v0 = vld [vmem:[%s3408_s0 + $0x11c] ss:$20 sps:$4 sm:$0xff]   ;;  %v2282_v1 = vld [vmem:[%s3408_s0 + $0x84] ss:$20 sps:$4 sm:$0xff]  }
  0x17   :  { %1914 = vmatpush3.bf16.msra.mxu0 %v2214_v13  ;;  %2200 = vmatpush3.bf16.msra.mxu1 %v2214_v13  ;;  %v2284_v2 = vld [vmem:[%s3408_s0 + $0x118] ss:$20 sps:$4 sm:$0xff]   ;;  %v2285_v3 = vld [vmem:[%s3408_s0 + $0x80] ss:$20 sps:$4 sm:$0xff]   ;;  %v2291_v7 = vld [vmem:[%s3408_s0 + $0xa8] ss:$20 sps:$4 sm:$0xff]  }
  0x18   :  { %1915 = vmatprep.subr.bf16.mxu0 %v2215_v14  ;;  %2193 = vmatprep.subr.bf16.mxu1 %v2215_v14  ;;  %v2286_v4 = vld [vmem:[%s3408_s0 + $0x144] ss:$20 sps:$4 sm:$0xff]   ;;  %v2288_v5 = vld [vmem:[%s3408_s0 + $0xac] ss:$20 sps:$4 sm:$0xff]   ;;  %v2294_v9 = vld [vmem:[%s3408_s0 + $0xd4] ss:$20 sps:$4 sm:$0xff]  }
  0x19   :  { %v2290_v6 = vld [vmem:[%s3408_s0 + $0x140] ss:$20 sps:$4 sm:$0xff]   ;;  %v2296_v10 = vld [vmem:[%s3408_s0 + $0x168] ss:$20 sps:$4 sm:$0xff]   ;;  %v2297_v11 = vld [vmem:[%s3408_s0 + $0xd0] ss:$20 sps:$4 sm:$0xff]  }
  0x1a   :  { %v2292_v8 = vld [vmem:[%s3408_s0 + $0x16c] ss:$20 sps:$4 sm:$0xff]   ;;  %v2299_v12 = vld [vmem:[%s3408_s0 + $0x194] ss:$20 sps:$4 sm:$0xff]   ;;  %v2301_v13 = vld [vmem:[%s3408_s0 + $0xfc] ss:$20 sps:$4 sm:$0xff]  }
  0x1b   :  { %1916 = vmatpush3.bf16.msra.mxu0 %v2216_v15  ;;  %2201 = vmatpush3.bf16.msra.mxu1 %v2216_v15  ;;  %v2303_v14 = vld [vmem:[%s3408_s0 + $0x190] ss:$20 sps:$4 sm:$0xff]   ;;  %v2304_v15 = vld [vmem:[%s3408_s0 + $0xf8] ss:$20 sps:$4 sm:$0xff]  }
  0x1c   :  { %1917 = vmatprep.subr.bf16.mxu0 %v2217_v16  ;;  %2194 = vmatprep.subr.bf16.mxu1 %v2217_v16  ;;  %v2305_v16 = vld [vmem:[%s3408_s0 + $0x1bc] ss:$20 sps:$4 sm:$0xff]  }
  0x1f   :  { %1918 = vmatpush3.bf16.msra.mxu0 %v2218_v17  ;;  %2202 = vmatpush3.bf16.msra.mxu1 %v2218_v17  ;;  %v2307_v17 = vld [vmem:[%s3408_s0 + $0x124] ss:$20 sps:$4 sm:$0xff]  }
  0x20   :  { %2015 = vmatprep.subr.bf16.mxu1 %v2225_v18  ;;  %2147 = vmatprep.subr.bf16.mxu0 %v2226_v19  ;;  %v2309_v18 = vld [vmem:[%s3408_s0 + $0x1b8] ss:$20 sps:$4 sm:$0xff]  }
  0x22   :  { %892 = vmatmul.mubr.bf16.vlgmr.msra.gmra.mxu0 %v2219_v20  ;;  %988 = vmatmul.mubr.bf16.vlgmr.msra.gmra.mxu1 %v2222_v21  ;;  %v2311_v20 = vld [vmem:[%s3408_s0 + $0x14c] ss:$20 sps:$4 sm:$0xff]   ;;  %v2313_v21 = vld [vmem:[%s3408_s0 + $0x10] ss:$20 sps:$4 sm:$0xff]  }
  0x23   :  { %2016 = vmatpush3.bf16.msra.mxu1 %v2227_v22  ;;  %2148 = vmatpush3.bf16.msra.mxu0 %v2226_v19  ;;  %v2310_v19 = vld [vmem:[%s3408_s0 + $0x120] ss:$20 sps:$4 sm:$0xff]   ;;  %v2314_v22 = vld [vmem:[%s3408_s0 + $0x148] ss:$20 sps:$4 sm:$0xff]  }
  0x24   :  { %2017 = vmatprep.subr.bf16.mxu1 %v2228_v23  ;;  %899 = vmatprep.mubr.bf16.mxu0 %v2230_v24  ;;  %v2315_v23 = vld [vmem:[%s3408_s0 + $0x38] ss:$20 sps:$4 sm:$0xff]   ;;  %v2316_v24 = vld [vmem:[%s3408_s0 + $0x174] ss:$20 sps:$4 sm:$0xff]  }
  0x25   :  { %995 = vmatprep.mubr.bf16.mxu1 %v2232_v25  ;;  %2149 = vmatprep.subr.bf16.mxu0 %v2257_v34  ;;  %v2318_v25 = vld [vmem:[%s3408_s0 + $0x60] ss:$20 sps:$4 sm:$0xff]  }
  0x27   :  { %2018 = vmatpush3.bf16.msra.mxu1 %v2229_v26  ;;  %2150 = vmatpush3.bf16.msra.mxu0 %v2257_v34  ;;  %v2319_v26 = vld [vmem:[%s3408_s0 + $0x170] ss:$20 sps:$4 sm:$0xff]   ;;  %v2329_v34 = vld [vmem:[%s3408_s0 + $0x1c0] ss:$20 sps:$4 sm:$0xff]  }
  0x28   :  { %2019 = vmatprep.subr.bf16.mxu1 %v2236_v28  ;;  %2151 = vmatprep.subr.bf16.mxu0 %v2279_v47  ;;  %v2321_v28 = vld [vmem:[%s3408_s0 + $0x19c] ss:$20 sps:$4 sm:$0xff]  }
  0x2a   :  { %900 = vmatmul.mubr.bf16.gmra.mxu0 %v2234_v27  ;;  %996 = vmatmul.mubr.bf16.gmra.mxu1 %v2235_v29  ;;  %v2320_v27 = vld [vmem:[%s3408_s0 + $0x88] ss:$20 sps:$4 sm:$0xff]   ;;  %v2323_v29 = vld [vmem:[%s3408_s0 + $0xb0] ss:$20 sps:$4 sm:$0xff]  }
  0x2b   :  { %2020 = vmatpush3.bf16.msra.mxu1 %v2237_v30  ;;  %907 = vmatprep.mubr.bf16.mxu0 %v2240_v32  ;;  %v2324_v30 = vld [vmem:[%s3408_s0 + $0x198] ss:$20 sps:$4 sm:$0xff]  }
  0x2c   :  { %2021 = vmatprep.subr.bf16.mxu1 %v2238_v31  ;;  %1003 = vmatprep.mubr.bf16.mxu1 %v2242_v33  ;;  %v2325_v31 = vld [vmem:[%s3408_s0 + $0xd8] ss:$20 sps:$4 sm:$0xff]   ;;  %v2328_v33 = vld [vmem:[%s3408_s0 + $0x100] ss:$20 sps:$4 sm:$0xff]  }
  0x2d   :  { %2152 = vmatpush3.bf16.msra.mxu0 %v2279_v47  ;;  %v2326_v32 = vld [vmem:[%s3408_s0 + $0x1c4] ss:$20 sps:$4 sm:$0xff]  }
  0x2e   :  { %2153 = vmatprep.subr.bf16.mxu0 %v2298_v56  ;;  %v2345_v47 = vld [vmem:[%s3408_s0 + $0x218] ss:$20 sps:$4 sm:$0xff]  }
  0x2f   :  { %2022 = vmatpush3.bf16.msra.mxu1 %v2239_v35  ;;  %v2330_v35 = vld [vmem:[%s3408_s0 + $0x128] ss:$20 sps:$4 sm:$0xff]  }
  0x30   :  { %2023 = vmatprep.subr.bf16.mxu1 %v2246_v37  ;;  %v2333_v37 = vld [vmem:[%s3408_s0 + $0x150] ss:$20 sps:$4 sm:$0xff]  }
  0x31   :  { %2154 = vmatpush3.bf16.msra.mxu0 %v2298_v56 }
  0x32   :  { %908 = vmatmul.mubr.bf16.gmra.mxu0 %v2244_v36  ;;  %1004 = vmatmul.mubr.bf16.gmra.mxu1 %v2245_v38  ;;  %v2331_v36 = vld [vmem:[%s3408_s0 + $0x1ec] ss:$20 sps:$4 sm:$0xff]   ;;  %v2334_v38 = vld [vmem:[%s3408_s0 + $0x1e8] ss:$20 sps:$4 sm:$0xff]  }
  0x33   :  { %2024 = vmatpush3.bf16.msra.mxu1 %v2247_v39  ;;  %915 = vmatprep.mubr.bf16.mxu0 %v2250_v41  ;;  %v2335_v39 = vld [vmem:[%s3408_s0 + $0x178] ss:$20 sps:$4 sm:$0xff]   ;;  %v2338_v41 = vld [vmem:[%s3408_s0 + $0x1a0] ss:$20 sps:$4 sm:$0xff]  }
  0x34   :  { %2025 = vmatprep.subr.bf16.mxu1 %v2248_v40  ;;  %1011 = vmatprep.mubr.bf16.mxu1 %v2252_v42  ;;  %v2336_v40 = vld [vmem:[%s3408_s0 + $0x214] ss:$20 sps:$4 sm:$0xff]   ;;  %v2339_v42 = vld [vmem:[%s3408_s0 + $0x210] ss:$20 sps:$4 sm:$0xff]  }
  0x37   :  { %2026 = vmatpush3.bf16.msra.mxu1 %v2249_v43  ;;  %v2340_v43 = vld [vmem:[%s3408_s0 + $0x1c8] ss:$20 sps:$4 sm:$0xff]  }
  0x38   :  { %2027 = vmatprep.subr.bf16.mxu1 %v2256_v46  ;;  %v2344_v46 = vld [vmem:[%s3408_s0 + $0x238] ss:$20 sps:$4 sm:$0xff]  }
  0x3a   :  { %916 = vmatmul.mubr.bf16.gmra.mxu0 %v2254_v44  ;;  %1012 = vmatmul.mubr.bf16.gmra.mxu1 %v2255_v45  ;;  %v2341_v44 = vld [vmem:[%s3408_s0 + $0x23c] ss:$20 sps:$4 sm:$0xff]  }
  0x3b   :  { %2028 = vmatpush3.bf16.msra.mxu1 %v2258_v48  ;;  %923 = vmatprep.mubr.bf16.mxu0 %v2261_v50  ;;  %v2343_v45 = vld [vmem:[%s3408_s0 + $0x1f0] ss:$20 sps:$4 sm:$0xff]   ;;  %v2349_v50 = vld [vmem:[%s3408_s0 + $0x260] ss:$20 sps:$4 sm:$0xff]  }
  0x3c   :  { %2029 = vmatprep.subr.bf16.mxu1 %v2259_v49  ;;  %1052 = vmatprep.mubr.bf16.mxu1 %v2265_v51  ;;  %v2346_v48 = vld [vmem:[%s3408_s0 + $0x264] ss:$20 sps:$4 sm:$0xff]   ;;  %v2348_v49 = vld [vmem:[%s3408_s0 + $0x240] ss:$20 sps:$4 sm:$0xff]   ;;  %v2350_v51 = vld [vmem:[%s3408_s0 + $0x268] ss:$20 sps:$4 sm:$0xff]  }
  0x3f   :  { %2030 = vmatpush3.bf16.msra.mxu1 %v2260_v52 }
  0x42   :  { %924 = vmatmul.mubr.bf16.gmra.mxu0 %v2266_v54  ;;  %1053 = vmatmul.mubr.bf16.vlgmr.msra.gmra.mxu1 %v2263_v53 }
  0x43   :  { %931 = vmatprep.mubr.bf16.mxu0 %v2267_v55  ;;  %1060 = vmatprep.mubr.bf16.mxu1 %v2269_v57 }
  0x4a   :  { %932 = vmatmul.mubr.bf16.gmra.mxu0 %v2271_v58  ;;  %1061 = vmatmul.mubr.bf16.gmra.mxu1 %v2272_v59 }
  0x4b   :  { %939 = vmatprep.mubr.bf16.mxu0 %v2273_v60  ;;  %1068 = vmatprep.mubr.bf16.mxu1 %v2275_v61 }
  0x52   :  { %940 = vmatmul.mubr.bf16.gmra.mxu0 %v2277_v62  ;;  %1069 = vmatmul.mubr.bf16.gmra.mxu1 %v2278_v63 }
  0x53   :  { %947 = vmatprep.mubr.bf16.mxu0 %v2280_v0  ;;  %1076 = vmatprep.mubr.bf16.mxu1 %v2282_v1 }
  0x5a   :  { %948 = vmatmul.mubr.bf16.gmra.mxu0 %v2284_v2  ;;  %1077 = vmatmul.mubr.bf16.gmra.mxu1 %v2285_v3 }
  0x5b   :  { %955 = vmatprep.mubr.bf16.mxu0 %v2286_v4  ;;  %1084 = vmatprep.mubr.bf16.mxu1 %v2288_v5 }
  0x62   :  { %956 = vmatmul.mubr.bf16.gmra.mxu0 %v2290_v6  ;;  %1085 = vmatmul.mubr.bf16.gmra.mxu1 %v2291_v7 }
  0x63   :  { %963 = vmatprep.mubr.bf16.mxu0 %v2292_v8  ;;  %1092 = vmatprep.mubr.bf16.mxu1 %v2294_v9 }
  0x6a   :  { %964 = vmatmul.mubr.bf16.gmra.mxu0 %v2296_v10  ;;  %1093 = vmatmul.mubr.bf16.gmra.mxu1 %v2297_v11 }
  0x6b   :  { %971 = vmatprep.mubr.bf16.mxu0 %v2299_v12  ;;  %1100 = vmatprep.mubr.bf16.mxu1 %v2301_v13 }
  0x72   :  { %972 = vmatmul.mubr.bf16.gmra.mxu0 %v2303_v14  ;;  %1101 = vmatmul.mubr.bf16.gmra.mxu1 %v2304_v15 }
  0x73   :  { %979 = vmatprep.mubr.bf16.mxu0 %v2305_v16  ;;  %1108 = vmatprep.mubr.bf16.mxu1 %v2307_v17 }
  0x7a   :  { %980 = vmatmul.mubr.bf16.gmra.mxu0 %v2309_v18  ;;  %1109 = vmatmul.mubr.bf16.gmra.mxu1 %v2310_v19 }
  0x7b   :  { %1116 = vmatprep.mubr.bf16.mxu1 %v2311_v20  ;;  %2155 = vmatprep.mubr.msk.bf16.mxu0 %vm810_vm0, %v2313_v21 }
  0x82   :  { %1117 = vmatmul.mubr.bf16.gmra.mxu1 %v2314_v22  ;;  %2156 = vmatmul.mubr.msk.bf16.vlgmr.msra.gmra.mxu0 %vm810_vm0, %v2315_v23 }
  0x83   :  { %1124 = vmatprep.mubr.bf16.mxu1 %v2316_v24  ;;  %2159 = vmatprep.mubr.msk.bf16.mxu0 %vm810_vm0, %v2318_v25 }
  0x8a   :  { %1125 = vmatmul.mubr.bf16.gmra.mxu1 %v2319_v26  ;;  %2160 = vmatmul.mubr.msk.bf16.gmra.mxu0 %vm810_vm0, %v2320_v27 }
  0x8b   :  { %1132 = vmatprep.mubr.bf16.mxu1 %v2321_v28  ;;  %2163 = vmatprep.mubr.msk.bf16.mxu0 %vm810_vm0, %v2323_v29 }
  0x92   :  { %1133 = vmatmul.mubr.bf16.gmra.mxu1 %v2324_v30  ;;  %2164 = vmatmul.mubr.msk.bf16.gmra.mxu0 %vm810_vm0, %v2325_v31 }
  0x93   :  { %1140 = vmatprep.mubr.bf16.mxu1 %v2326_v32  ;;  %2167 = vmatprep.mubr.msk.bf16.mxu0 %vm810_vm0, %v2328_v33 }
  0x9a   :  { %1141 = vmatmul.mubr.bf16.gmra.mxu1 %v2329_v34  ;;  %2168 = vmatmul.mubr.msk.bf16.gmra.mxu0 %vm810_vm0, %v2330_v35 }
  0x9b   :  { %1148 = vmatprep.mubr.bf16.mxu1 %v2331_v36  ;;  %2171 = vmatprep.mubr.msk.bf16.mxu0 %vm810_vm0, %v2333_v37 }
  0xa2   :  { %1149 = vmatmul.mubr.bf16.gmra.mxu1 %v2334_v38  ;;  %2172 = vmatmul.mubr.msk.bf16.gmra.mxu0 %vm810_vm0, %v2335_v39 }
  0xa3   :  { %1156 = vmatprep.mubr.bf16.mxu1 %v2336_v40  ;;  %2175 = vmatprep.mubr.msk.bf16.mxu0 %vm810_vm0, %v2338_v41 }
  0xaa   :  { %1157 = vmatmul.mubr.bf16.gmra.mxu1 %v2339_v42  ;;  %2176 = vmatmul.mubr.msk.bf16.gmra.mxu0 %vm810_vm0, %v2340_v43 }
  0xab   :  { %1164 = vmatprep.mubr.bf16.mxu1 %v2341_v44  ;;  %2179 = vmatprep.mubr.msk.bf16.mxu0 %vm810_vm0, %v2343_v45 }
  0xb2   :  { %1165 = vmatmul.mubr.bf16.gmra.mxu1 %v2344_v46  ;;  %2180 = vmatmul.mubr.msk.bf16.gmra.mxu0 %vm810_vm0, %v2345_v47 }
  0xb3   :  { %1172 = vmatprep.mubr.bf16.mxu1 %v2346_v48  ;;  %2183 = vmatprep.mubr.msk.bf16.mxu0 %vm810_vm0, %v2348_v49 }
  0xba   :  { %1173 = vmatmul.mubr.bf16.gmra.mxu1 %v2349_v50  ;;  %2184 = vmatmul.mubr.msk.bf16.gmra.mxu0 %vm810_vm0, %v2350_v51 }
  0xe2   :  { %v1919_v52 = vpop.f32.mrf.mxu0  ;;  %v1991_v53 = vpop.f32.mrf.mxu1 }
  0xe4   :  { %v1920_v54 = vpop.f32.mrf.mxu0  ;;  %v1992_v55 = vpop.f32.mrf.mxu1 }
  0xe5   :  { %v1921_v56 = vadd.f32 %v1920_v54, %v1919_v52  ;;  %v2756_v57 = vadd.f32 %v1992_v55, %v1991_v53 }
  0xe6   :  { %v1922_v58 = vpop.f32.mrf.mxu0  ;;  %v1994_v59 = vpop.f32.mrf.mxu1 }
  0xe7   :  { %3414 = vst [vmem:[#allocation3_spill] sm:$0xff] %v2756_v57 }
  0xe8   :  { %v1923_v60 = vpop.f32.mrf.mxu0  ;;  %v1995_v61 = vpop.f32.mrf.mxu1 }
  0xe9   :  { %v2758_v62 = vadd.f32 %v1923_v60, %v1922_v58  ;;  %v2760_v63 = vadd.f32 %v1995_v61, %v1994_v59 }
  0xea   :  { %v1925_v0 = vpop.f32.mrf.mxu0  ;;  %v1997_v1 = vpop.f32.mrf.mxu1 }
  0xeb   :  { %3415 = vst [vmem:[#allocation4_spill] sm:$0xff] %v2760_v63 }
  0xec   :  { %v1926_v2 = vpop.f32.mrf.mxu0  ;;  %v1998_v3 = vpop.f32.mrf.mxu1 }
  0xed   :  { %v2762_v4 = vadd.f32 %v1926_v2, %v1925_v0  ;;  %v2764_v5 = vadd.f32 %v1998_v3, %v1997_v1 }
  0xee   :  { %v1928_v6 = vpop.f32.mrf.mxu0  ;;  %v2000_v7 = vpop.f32.mrf.mxu1 }
  0xef   :  { %3416 = vst [vmem:[#allocation5_spill] sm:$0xff] %v2764_v5 }
  0xf0   :  { %v1929_v8 = vpop.f32.mrf.mxu0  ;;  %v2001_v9 = vpop.f32.mrf.mxu1 }
  0xf1   :  { %v2766_v10 = vadd.f32 %v1929_v8, %v1928_v6  ;;  %v2768_v11 = vadd.f32 %v2001_v9, %v2000_v7 }
  0xf2   :  { %v1931_v12 = vpop.f32.mrf.mxu0  ;;  %v2003_v13 = vpop.f32.mrf.mxu1 }
  0xf3   :  { %3417 = vst [vmem:[#allocation6_spill] sm:$0xff] %v2768_v11 }
  0xf4   :  { %v1932_v14 = vpop.f32.mrf.mxu0  ;;  %v2004_v15 = vpop.f32.mrf.mxu1 }
  0xf5   :  { %v2770_v16 = vadd.f32 %v1932_v14, %v1931_v12  ;;  %v2772_v17 = vadd.f32 %v2004_v15, %v2003_v13 }
  0xf6   :  { %v1934_v18 = vpop.f32.mrf.mxu0  ;;  %v2006_v19 = vpop.f32.mrf.mxu1 }
  0xf7   :  { %3418 = vst [vmem:[#allocation7_spill] sm:$0xff] %v2772_v17 }
  0xf8   :  { %v1935_v20 = vpop.f32.mrf.mxu0  ;;  %v2007_v21 = vpop.f32.mrf.mxu1 }
  0xf9   :  { %v2774_v22 = vadd.f32 %v1935_v20, %v1934_v18  ;;  %v2776_v23 = vadd.f32 %v2007_v21, %v2006_v19 }
  0xfa   :  { %v1937_v24 = vpop.f32.mrf.mxu0  ;;  %v2009_v25 = vpop.f32.mrf.mxu1 }
  0xfb   :  { %3419 = vst [vmem:[#allocation8_spill] sm:$0xff] %v2776_v23 }
  0xfc   :  { %v1938_v26 = vpop.f32.mrf.mxu0  ;;  %v2010_v27 = vpop.f32.mrf.mxu1 }
  0xfd   :  { %v2778_v28 = vadd.f32 %v1938_v26, %v1937_v24  ;;  %v2780_v29 = vadd.f32 %v2010_v27, %v2009_v25 }
  0xfe   :  { %v1940_v30 = vpop.f32.mrf.mxu0  ;;  %v2012_v31 = vpop.f32.mrf.mxu1 }
  0xff   :  { %3420 = vst [vmem:[#allocation9_spill] sm:$0xff] %v2780_v29 }
 0x100   :  { %v1941_v32 = vpop.f32.mrf.mxu0  ;;  %v2013_v33 = vpop.f32.mrf.mxu1 }
 0x101   :  { %v2782_v34 = vadd.f32 %v1941_v32, %v1940_v30  ;;  %v2784_v35 = vadd.f32 %v2013_v33, %v2012_v31 }
 0x102   :  { %v1943_v36 = vpop.f32.mrf.mxu0  ;;  %v2031_v37 = vpop.f32.mrf.mxu1 }
 0x103   :  { %3421 = vst [vmem:[#allocation10_spill] sm:$0xff] %v2784_v35 }
 0x104   :  { %v1944_v38 = vpop.f32.mrf.mxu0  ;;  %v2032_v39 = vpop.f32.mrf.mxu1 }
 0x105   :  { %v2786_v40 = vadd.f32 %v1944_v38, %v1943_v36  ;;  %v2033_v41 = vadd.f32 %v2032_v39, %v2031_v37 }
 0x106   :  { %v1946_v42 = vpop.f32.mrf.mxu0  ;;  %v2788_v43 = vpop.f32.mrf.mxu1 }
 0x107   :  { %v2790_v44 = vadd.f32 %v2033_v41, %v1921_v56 }
 0x108   :  { %v1947_v45 = vpop.f32.mrf.mxu0  ;;  %v2792_v46 = vpop.f32.mrf.mxu1 }
 0x109   :  { %v2794_v47 = vadd.f32 %v1947_v45, %v1946_v42 }
 0x10a   :  { %v1949_v48 = vpop.f32.mrf.mxu0  ;;  %v2796_v49 = vpop.f32.mrf.mxu1 }
 0x10c   :  { %v1950_v50 = vpop.f32.mrf.mxu0  ;;  %v2798_v51 = vpop.f32.mrf.mxu1 }
 0x10d   :  { %v2800_v52 = vadd.f32 %v1950_v50, %v1949_v48 }
 0x10e   :  { %v1952_v53 = vpop.f32.mrf.mxu0  ;;  %v2802_v54 = vpop.f32.mrf.mxu1 }
 0x110   :  { %v1953_v55 = vpop.f32.mrf.mxu0  ;;  %v2041_v58 = vpop.f32.mrf.mxu1 }
 0x111   :  { %v2804_v56 = vadd.f32 %v1953_v55, %v1952_v53 }
 0x112   :  { %v1955_v59 = vpop.f32.mrf.mxu0  ;;  %v2806_v60 = vpop.f32.mrf.mxu1 }
 0x114   :  { %v1956_v61 = vpop.f32.mrf.mxu0  ;;  %v2044_v0 = vpop.f32.mrf.mxu1 }
 0x115   :  { %v2808_v1 = vadd.f32 %v1956_v61, %v1955_v59 }
 0x116   :  { %v1958_v2 = vpop.f32.mrf.mxu0  ;;  %v2810_v3 = vpop.f32.mrf.mxu1 }
 0x118   :  { %v1959_v6 = vpop.f32.mrf.mxu0  ;;  %v2047_v7 = vpop.f32.mrf.mxu1 }
 0x119   :  { %v2812_v8 = vadd.f32 %v1959_v6, %v1958_v2 }
 0x11a   :  { %v1961_v9 = vpop.f32.mrf.mxu0  ;;  %v2814_v12 = vpop.f32.mrf.mxu1 }
 0x11c   :  { %v1962_v13 = vpop.f32.mrf.mxu0  ;;  %v2816_v14 = vpop.f32.mrf.mxu1 }
 0x11d   :  { %v2818_v15 = vadd.f32 %v1962_v13, %v1961_v9 }
 0x11e   :  { %v1964_v18 = vpop.f32.mrf.mxu0  ;;  %v2820_v19 = vpop.f32.mrf.mxu1 }
 0x120   :  { %v1965_v20 = vpop.f32.mrf.mxu0  ;;  %v2822_v21 = vpop.f32.mrf.mxu1 }
 0x121   :  { %v2824_v24 = vadd.f32 %v1965_v20, %v1964_v18 }
 0x122   :  { %v2826_v25 = vpop.f32.mrf.mxu0  ;;  %v2828_v26 = vpop.f32.mrf.mxu1 }
 0x124   :  { %v2830_v27 = vpop.f32.mrf.mxu0  ;;  %v2832_v30 = vpop.f32.mrf.mxu1 }
 0x126   :  { %v2834_v31 = vpop.f32.mrf.mxu0  ;;  %v2836_v32 = vpop.f32.mrf.mxu1 }
 0x128   :  { %v2838_v33 = vpop.f32.mrf.mxu0  ;;  %v2840_v36 = vpop.f32.mrf.mxu1 }
 0x129   :  { %3422 = vst [vmem:[#allocation11_spill] sm:$0xff] %v2838_v33  ;;  %v2048_v33 = vadd.f32 %v2047_v7, %v2810_v3 }
 0x12a   :  { %v2842_v37 = vpop.f32.mrf.mxu0  ;;  %v2844_v38 = vpop.f32.mrf.mxu1 }
 0x12b   :  { %3423 = vst [vmem:[#allocation12_spill] sm:$0xff] %v2842_v37 }
 0x12c   :  { %v2846_v39 = vpop.f32.mrf.mxu0  ;;  %v2848_v41 = vpop.f32.mrf.mxu1 }
 0x12d   :  { %3424 = vst [vmem:[#allocation13_spill] sm:$0xff] %v2846_v39  ;;  %v2045_v39 = vadd.f32 %v2044_v0, %v2806_v60 }
 0x12e   :  { %v2850_v42 = vpop.f32.mrf.mxu0  ;;  %v2852_v45 = vpop.f32.mrf.mxu1 }
 0x12f   :  { %3425 = vst [vmem:[#allocation14_spill] sm:$0xff] %v2850_v42  ;;  %v1071_v0 = vadd.f32 %v2045_v39, %v2770_v16 }
 0x130   :  { %v2854_v48 = vpop.f32.mrf.mxu0  ;;  %v2856_v50 = vpop.f32.mrf.mxu1 }
 0x131   :  { %3426 = vst [vmem:[#allocation15_spill] sm:$0xff] %v2854_v48 }
 0x132   :  { %v2858_v53 = vpop.f32.mrf.mxu0  ;;  %v2860_v55 = vpop.f32.mrf.mxu1 }
 0x133   :  { %3427 = vst [vmem:[#allocation16_spill] sm:$0xff] %v2858_v53  ;;  %v2042_v53 = vadd.f32 %v2041_v58, %v2802_v54 }
 0x134   :  { %v2862_v59 = vpop.f32.mrf.mxu0  ;;  %v2864_v61 = vpop.f32.mrf.mxu1 }
 0x135   :  { %3428 = vst [vmem:[#allocation17_spill] sm:$0xff] %v2862_v59 }
 0x136   :  { %v2866_v2 = vpop.f32.mrf.mxu0  ;;  %v2868_v6 = vpop.f32.mrf.mxu1 }
 0x137   :  { %3429 = vst [vmem:[#allocation18_spill] sm:$0xff] %v2866_v2 }
 0x138   :  { %v2870_v9 = vpop.f32.mrf.mxu0  ;;  %v2872_v13 = vpop.f32.mrf.mxu1 }
 0x139   :  { %3430 = vst [vmem:[#allocation19_spill] sm:$0xff] %v2870_v9 }
 0x13a   :  { %v2874_v18 = vpop.f32.mrf.mxu0  ;;  %v2876_v20 = vpop.f32.mrf.mxu1 }
 0x13b   :  { %3431 = vst [vmem:[#allocation20_spill] sm:$0xff] %v2874_v18  ;;  %v2036_v18 = vadd.f32 %v2792_v46, %v2788_v43 }
 0x13c   :  { %v2878_v35 = vpop.f32.mrf.mxu0  ;;  %v2880_v23 = vpop.f32.mrf.mxu1 }
 0x13d   :  { %3432 = vst [vmem:[#allocation21_spill] sm:$0xff] %v2878_v35  ;;  %v2039_v35 = vadd.f32 %v2798_v51, %v2796_v49 }
 0x13e   :  { %v2882_v29 = vpop.f32.mrf.mxu0  ;;  %v2884_v17 = vpop.f32.mrf.mxu1 }
 0x13f   :  { %3433 = vst [vmem:[#allocation22_spill] sm:$0xff] %v2882_v29  ;;  %v1063_v43 = vadd.f32 %v2039_v35, %v2762_v4  ;;  %v2051_v35 = vadd.f32 %v2816_v14, %v2814_v12  ;;  %v2057_v12 = vadd.f32 %v2832_v30, %v2828_v26 }
 0x140   :  { %v2886_v11 = vpop.f32.mrf.mxu0  ;;  %v2888_v5 = vpop.f32.mrf.mxu1 }
 0x141   :  { %3434 = vst [vmem:[#allocation23_spill] sm:$0xff] %v2886_v11  ;;  %v1058_v11 = vadd.f32 %v2036_v18, %v2758_v62  ;;  %v1066_v62 = vadd.f32 %v2042_v53, %v2766_v10  ;;  %v2054_v10 = vadd.f32 %v2822_v21, %v2820_v19  ;;  %v1074_v53 = vadd.f32 %v2048_v33, %v2774_v22 }
 0x142   :  { %v2890_v63 = vpop.f32.mrf.mxu1  ;;  %v2157_v57 = vpop.f32.mrf.mxu0  ;;  %v1079_v16 = vadd.f32 %v2051_v35, %v2778_v28  ;;  %v2060_v21 = vadd.f32 %v2840_v36, %v2836_v32  ;;  %v2063_v28 = vadd.f32 %v2848_v41, %v2844_v38  ;;  %v2069_v41 = vadd.f32 %v2864_v61, %v2860_v55 }
 0x143   :  { %v2914_v54 = vadd.f32 %v2157_v57, %v1063_v43  ;;  %v1082_v22 = vadd.f32 %v2054_v10, %v2782_v34  ;;  %v2066_v34 = vadd.f32 %v2856_v50, %v2852_v45  ;;  %v2072_v45 = vadd.f32 %v2872_v13, %v2868_v6 }
 0x144   :  { %v2894_v9 = vpop.f32.mrf.mxu1  ;;  %v1215_v2 = vpop.f32.mrf.mxu0  ;;  %v2078_v6 = vadd.f32 %v2888_v5, %v2884_v17  ;;  %v1969_v5 = vadd.f32 %v2830_v27, %v2826_v25 }
 0x145   :  { %v2907_v46 = vadd.f32 %v1215_v2, %v2790_v44 }
 0x146   :  { %v2898_v59 = vpop.f32.mrf.mxu1  ;;  %v2158_v29 = vpop.f32.mrf.mxu0 }
 0x148   :  { %v2902_v48 = vpop.f32.mrf.mxu1  ;;  %v1218_v42 = vpop.f32.mrf.mxu0 }
 0x149   :  { %v2909_v37 = vadd.f32 %v1218_v42, %v1058_v11  ;;  %v2923_v11 = vadd.f32 %v2158_v29, %v1066_v62 }
 0x14a   :  { %v2911_v49 = vpop.f32.mrf.mxu1  ;;  %v2161_v51 = vpop.f32.mrf.mxu0 }
 0x14b   :  { %v1342_v58 = vadd.f32 %v2909_v37, %v2907_v46  ;;  %v2947_v43 = vadd.f32 %v2161_v51, %v1079_v16 }
 0x14c   :  { %v2919_v60 = vpop.f32.mrf.mxu1  ;;  %v1231_v4 = vpop.f32.mrf.mxu0 }
 0x14d   :  { %v1343_v44 = vadd.f32 %v1342_v58, %v2914_v54  ;;  %v2931_v7 = vadd.f32 %v1231_v4, %v1071_v0  ;;  %v1087_v4 = vadd.f32 %v2057_v12, %v2786_v40 }
 0x14e   :  { %v2927_v3 = vpop.f32.mrf.mxu1  ;;  %v2162_v57 = vpop.f32.mrf.mxu0 }
 0x14f   :  { %v1344_v42 = vadd.f32 %v1343_v44, %v2923_v11  ;;  %v2955_v30 = vadd.f32 %v2162_v57, %v1082_v22  ;;  %v1090_v44 = vadd.f32 %v2060_v21, %v2794_v47  ;;  %v1095_v57 = vadd.f32 %v2063_v28, %v2800_v52 }
 0x150   :  { %v2935_v2 = vpop.f32.mrf.mxu1  ;;  %v1234_v29 = vpop.f32.mrf.mxu0  ;;  %v1098_v47 = vadd.f32 %v2066_v34, %v2804_v56  ;;  %v2075_v52 = vadd.f32 %v2880_v23, %v2876_v20  ;;  %v2081_v23 = vadd.f32 %v2894_v9, %v2890_v63 }
 0x151   :  { %v1345_v14 = vadd.f32 %v1344_v42, %v2931_v7  ;;  %v2941_v39 = vadd.f32 %v1234_v29, %v1074_v53 }
 0x152   :  { %v2943_v18 = vpop.f32.mrf.mxu1  ;;  %v2165_v19 = vpop.f32.mrf.mxu0  ;;  %v1111_v20 = vadd.f32 %v2075_v52, %v2818_v15  ;;  %v3435_v15 = vld [vmem:[#allocation11_spill] sm:$0xff] }
 0x153   :  { %v1346_v33 = vadd.f32 %v1345_v14, %v2941_v39  ;;  %v2975_v50 = vadd.f32 %v2165_v19, %v1095_v57  ;;  %v1103_v14 = vadd.f32 %v2069_v41, %v2808_v1  ;;  %v1106_v19 = vadd.f32 %v2072_v45, %v2812_v8 }
 0x154   :  { %v2951_v62 = vpop.f32.mrf.mxu1  ;;  %v1247_v26 = vpop.f32.mrf.mxu0  ;;  %v1972_v9 = vadd.f32 %v3435_v15, %v2834_v31 }
 0x155   :  { %v1347_v58 = vadd.f32 %v1346_v33, %v2947_v43  ;;  %v2963_v36 = vadd.f32 %v1247_v26, %v1087_v4  ;;  %v2084_v4 = vadd.f32 %v2902_v48, %v2898_v59  ;;  %v3436_v48 = vld [vmem:[#allocation12_spill] sm:$0xff]  ;;  %v3437_v59 = vld [vmem:[#allocation13_spill] sm:$0xff]  ;;  %v2093_v52 = vadd.f32 %v2951_v62, %v2943_v18 }
 0x156   :  { %v2959_v35 = vpop.f32.mrf.mxu1  ;;  %v2166_v32 = vpop.f32.mrf.mxu0  ;;  %v1975_v41 = vadd.f32 %v3437_v59, %v3436_v48 }
 0x157   :  { %v1348_v51 = vadd.f32 %v1347_v58, %v2955_v30  ;;  %v2981_v55 = vadd.f32 %v2166_v32, %v1098_v47  ;;  %v1114_v32 = vadd.f32 %v2078_v6, %v2824_v24  ;;  %v1122_v45 = vadd.f32 %v2084_v4, %v1972_v9  ;;  %v3438_v47 = vld [vmem:[#allocation14_spill] sm:$0xff]  ;;  %v3440_v6 = vld [vmem:[#allocation16_spill] sm:$0xff]  ;;  %v3443_v4 = vld [vmem:[#allocation19_spill] sm:$0xff] }
 0x158   :  { %v2095_v0 = vpop.f32.mrf.mxu1  ;;  %v1250_v38 = vpop.f32.mrf.mxu0 }
 0x159   :  { %v1349_v40 = vadd.f32 %v1348_v51, %v2963_v36  ;;  %v2971_v10 = vadd.f32 %v1250_v38, %v1090_v44  ;;  %v2087_v44 = vadd.f32 %v2919_v60, %v2911_v49  ;;  %v1119_v38 = vadd.f32 %v2081_v23, %v1969_v5  ;;  %v3439_v49 = vld [vmem:[#allocation15_spill] sm:$0xff]  ;;  %v3442_v5 = vld [vmem:[#allocation18_spill] sm:$0xff] }
 0x15a   :  { %v2097_v42 = vpop.f32.mrf.mxu1  ;;  %v2169_v53 = vpop.f32.mrf.mxu0  ;;  %v1978_v60 = vadd.f32 %v3439_v49, %v3438_v47  ;;  %v1984_v18 = vadd.f32 %v3443_v4, %v3442_v5 }
 0x15b   :  { %v1350_v29 = vadd.f32 %v1349_v40, %v2971_v10  ;;  %v3001_v8 = vadd.f32 %v2169_v53, %v1111_v20  ;;  %v2090_v40 = vadd.f32 %v2935_v2, %v2927_v3  ;;  %v3441_v3 = vld [vmem:[#allocation17_spill] sm:$0xff] }
 0x15c   :  { %v2098_v12 = vpop.f32.mrf.mxu1  ;;  %v1263_v16 = vpop.f32.mrf.mxu0  ;;  %v1981_v2 = vadd.f32 %v3441_v3, %v3440_v6 }
 0x15d   :  { %v1351_v61 = vadd.f32 %v1350_v29, %v2975_v50  ;;  %v2987_v13 = vadd.f32 %v1263_v16, %v1103_v14  ;;  %v1130_v20 = vadd.f32 %v2090_v40, %v1978_v60  ;;  %v3446_v40 = vld [vmem:[#allocation22_spill] sm:$0xff] }
 0x15e   :  { %v2100_v21 = vpop.f32.mrf.mxu1  ;;  %v2170_v22 = vpop.f32.mrf.mxu0 }
 0x15f   :  { %v1352_v56 = vadd.f32 %v1351_v61, %v2981_v55  ;;  %v3009_v25 = vadd.f32 %v2170_v22, %v1114_v32  ;;  %v1127_v61 = vadd.f32 %v2087_v44, %v1975_v41  ;;  %v3444_v44 = vld [vmem:[#allocation20_spill] sm:$0xff] }
 0x160   :  { %v2101_v33 = vpop.f32.mrf.mxu1  ;;  %v1266_v26 = vpop.f32.mrf.mxu0 }
 0x161   :  { %v1353_v1 = vadd.f32 %v1352_v56, %v2987_v13  ;;  %v2995_v28 = vadd.f32 %v1266_v26, %v1106_v19  ;;  %v2096_v26 = vadd.f32 %v2095_v0, %v2959_v35 }
 0x162   :  { %v2103_v17 = vpop.f32.mrf.mxu1  ;;  %v2173_v58 = vpop.f32.mrf.mxu0 }
 0x163   :  { %v1354_v63 = vadd.f32 %v1353_v1, %v2995_v28  ;;  %v3029_v23 = vadd.f32 %v2173_v58, %v1127_v61  ;;  %v2102_v58 = vadd.f32 %v2101_v33, %v2100_v21  ;;  %v1138_v41 = vadd.f32 %v2096_v26, %v1984_v18 }
 0x164   :  { %v2104_v34 = vpop.f32.mrf.mxu1  ;;  %v1279_v51 = vpop.f32.mrf.mxu0 }
 0x165   :  { %v1355_v27 = vadd.f32 %v1354_v63, %v3001_v8  ;;  %v3016_v53 = vadd.f32 %v1279_v51, %v1119_v38  ;;  %v2099_v63 = vadd.f32 %v2098_v12, %v2097_v42  ;;  %v1135_v51 = vadd.f32 %v2093_v52, %v1981_v2 }
 0x166   :  { %v2106_v57 = vpop.f32.mrf.mxu1  ;;  %v2174_v24 = vpop.f32.mrf.mxu0 }
 0x167   :  { %v1356_v31 = vadd.f32 %v1355_v27, %v3009_v25  ;;  %v3034_v15 = vadd.f32 %v2174_v24, %v1130_v20  ;;  %v3445_v27 = vld [vmem:[#allocation21_spill] sm:$0xff]  ;;  %v2105_v24 = vadd.f32 %v2104_v34, %v2103_v17  ;;  %v3448_v34 = vld [vmem:[#allocation3_spill] sm:$0xff] }
 0x168   :  { %v2107_v29 = vpop.f32.mrf.mxu1  ;;  %v1282_v16 = vpop.f32.mrf.mxu0  ;;  %v1987_v38 = vadd.f32 %v3445_v27, %v3444_v44 }
 0x169   :  { %v1357_v14 = vadd.f32 %v1356_v31, %v3016_v53  ;;  %v3024_v22 = vadd.f32 %v1282_v16, %v1122_v45  ;;  %v3447_v31 = vld [vmem:[#allocation23_spill] sm:$0xff]  ;;  %v2108_v61 = vadd.f32 %v2107_v29, %v2106_v57  ;;  %v1151_v20 = vadd.f32 %v2105_v24, %v3448_v34  ;;  %v3449_v29 = vld [vmem:[#allocation4_spill] sm:$0xff] }
 0x16a   :  { %v2109_v56 = vpop.f32.mrf.mxu1  ;;  %v2177_v19 = vpop.f32.mrf.mxu0  ;;  %v1990_v45 = vadd.f32 %v3447_v31, %v3446_v40  ;;  %v1143_v47 = vadd.f32 %v2099_v63, %v1987_v38  ;;  %v3452_v24 = vld [vmem:[#allocation7_spill] sm:$0xff] }
 0x16b   :  { %v1358_v1 = vadd.f32 %v1357_v14, %v3024_v22 }
 0x16c   :  { %v2110_v62 = vpop.f32.mrf.mxu1  ;;  %v1295_v32 = vpop.f32.mrf.mxu0  ;;  %v3047_v21 = vadd.f32 %v2177_v19, %v1143_v47  ;;  %v1146_v33 = vadd.f32 %v2102_v58, %v1990_v45  ;;  %v1154_v19 = vadd.f32 %v2108_v61, %v3449_v29  ;;  %v3453_v61 = vld [vmem:[#allocation9_spill] sm:$0xff] }
 0x16d   :  { %v1359_v9 = vadd.f32 %v1358_v1, %v3029_v23  ;;  %v3039_v48 = vadd.f32 %v1295_v32, %v1135_v51  ;;  %v2111_v2 = vadd.f32 %v2110_v62, %v2109_v56 }
 0x16e   :  { %v2112_v35 = vpop.f32.mrf.mxu1  ;;  %v2178_v0 = vpop.f32.mrf.mxu0 }
 0x16f   :  { %v1360_v59 = vadd.f32 %v1359_v9, %v3034_v15  ;;  %v3050_v26 = vadd.f32 %v2178_v0, %v1146_v33  ;;  %v3450_v9 = vld [vmem:[#allocation5_spill] sm:$0xff] }
 0x170   :  { %v2113_v42 = vpop.f32.mrf.mxu1  ;;  %v1298_v12 = vpop.f32.mrf.mxu0  ;;  %v1159_v51 = vadd.f32 %v2111_v2, %v3450_v9 }
 0x171   :  { %v1361_v49 = vadd.f32 %v1360_v59, %v3039_v48  ;;  %v3045_v60 = vadd.f32 %v1298_v12, %v1138_v41  ;;  %v2114_v4 = vadd.f32 %v2113_v42, %v2112_v35  ;;  %v3451_v35 = vld [vmem:[#allocation6_spill] sm:$0xff] }
 0x172   :  { %v2115_v16 = vpop.f32.mrf.mxu1  ;;  %v2181_v52 = vpop.f32.mrf.mxu0 }
 0x173   :  { %v1362_v14 = vadd.f32 %v1361_v49, %v3045_v60  ;;  %v3062_v0 = vadd.f32 %v2181_v52, %v1159_v51  ;;  %v1162_v58 = vadd.f32 %v2114_v4, %v3451_v35  ;;  %v3455_v4 = vld [vmem:[#allocation10_spill] sm:$0xff] }
 0x174   :  { %v2116_v6 = vpop.f32.mrf.mxu1  ;;  %v1311_v3 = vpop.f32.mrf.mxu0 }
 0x175   :  { %v1363_v17 = vadd.f32 %v1362_v14, %v3047_v21  ;;  %v3054_v18 = vadd.f32 %v1311_v3, %v1151_v20  ;;  %v2117_v56 = vadd.f32 %v2116_v6, %v2115_v16  ;;  %v3454_v6 = vld [vmem:[#allocation8_spill] sm:$0xff] }
 0x176   :  { %v2118_v1 = vpop.f32.mrf.mxu1  ;;  %v2182_v5 = vpop.f32.mrf.mxu0 }
 0x177   :  { %v1364_v57 = vadd.f32 %v1363_v17, %v3050_v26  ;;  %v3066_v45 = vadd.f32 %v2182_v5, %v1162_v58  ;;  %v1167_v47 = vadd.f32 %v2117_v56, %v3452_v24 }
 0x178   :  { %v2119_v32 = vpop.f32.mrf.mxu1  ;;  %v1314_v63 = vpop.f32.mrf.mxu0 }
 0x179   :  { %v1365_v62 = vadd.f32 %v1364_v57, %v3054_v18  ;;  %v3060_v44 = vadd.f32 %v1314_v63, %v1154_v19  ;;  %v2120_v59 = vadd.f32 %v2119_v32, %v2118_v1 }
 0x17a   :  { %v2121_v27 = vpop.f32.mrf.mxu1  ;;  %v2185_v38 = vpop.f32.mrf.mxu0 }
 0x17b   :  { %v1366_v41 = vadd.f32 %v1365_v62, %v3060_v44  ;;  %v1170_v3 = vadd.f32 %v2120_v59, %v3454_v6 }
 0x17c   :  { %v2122_v40 = vpop.f32.mrf.mxu1  ;;  %v1327_v31 = vpop.f32.mrf.mxu0 }
 0x17d   :  { %v1367_v42 = vadd.f32 %v1366_v41, %v3062_v0  ;;  %v2123_v12 = vadd.f32 %v2122_v40, %v2121_v27  ;;  %v3071_v52 = vadd.f32 %v1327_v31, %v1167_v47 }
 0x17e   :  { %v2124_v49 = vpop.f32.mrf.mxu1  ;;  %v2186_v16 = vpop.f32.mrf.mxu0 }
 0x17f   :  { %v1175_v33 = vadd.f32 %v2123_v12, %v3453_v61  ;;  %v1368_v14 = vadd.f32 %v1367_v42, %v3066_v45 }
 0x180   :  { %v2125_v2 = vpop.f32.mrf.mxu1  ;;  %v1330_v17 = vpop.f32.mrf.mxu0 }
 0x181   :  { %v1369_v34 = vadd.f32 %v1368_v14, %v3071_v52  ;;  %v2126_v20 = vadd.f32 %v2125_v2, %v2124_v49  ;;  %v3076_v1 = vadd.f32 %v1330_v17, %v1170_v3  ;;  %v3078_v5 = vadd.f32 %v2185_v38, %v1175_v33 }
 0x183   :  { %v1178_v57 = vadd.f32 %v2126_v20, %v3455_v4  ;;  %v1370_v29 = vadd.f32 %v1369_v34, %v3076_v1 }
 0x185   :  { %v3082_v19 = vadd.f32 %v2186_v16, %v1178_v57  ;;  %v1371_v32 = vadd.f32 %v1370_v29, %v3078_v5 }
 0x187   :  { %v1372_v63 = vadd.f32 %v1371_v32, %v3082_v19 }
 0x189   :  { %v1373_v9 = vrot.slane %v1372_v63, 4 }
 0x18b   :  { %v1374_v51 = vadd.f32 %v1373_v9, %v1372_v63 }
 0x18d   :  { %v1375_v56 = vrot.slane %v1374_v51, 2 }
 0x18f   :  { %v1376_v62 = vadd.f32 %v1375_v56, %v1374_v51 }
 0x191   :  { %v1377_v27 = vrot.slane %v1376_v62, 1 }
 0x193   :  { %v1378_v35 = vadd.f32 %v1377_v27, %v1376_v62 }
 0x195   :  { %v3086_v58 = vmul.f32 0.00390625, %v1378_v35 }
 0x197   :  { %v1381_v38 = vsub.f32 %v2907_v46, %v3086_v58  ;;  %v1382_v59 = vsub.f32 %v2909_v37, %v3086_v58  ;;  %v1383_v41 = vsub.f32 %v2914_v54, %v3086_v58  ;;  %v1384_v42 = vsub.f32 %v2923_v11, %v3086_v58 }
 0x198   :  { %v1385_v12 = vsub.f32 %v2931_v7, %v3086_v58  ;;  %v1386_v49 = vsub.f32 %v2941_v39, %v3086_v58  ;;  %v1387_v33 = vsub.f32 %v2947_v43, %v3086_v58  ;;  %v1388_v3 = vsub.f32 %v2955_v30, %v3086_v58 }
 0x199   :  { %v1413_v40 = vmul.f32 %v1381_v38, %v1381_v38  ;;  %v1414_v31 = vmul.f32 %v1382_v59, %v1382_v59  ;;  %v1415_v24 = vmul.f32 %v1383_v41, %v1383_v41  ;;  %v1416_v16 = vmul.f32 %v1384_v42, %v1384_v42 }
 0x19a   :  { %v1417_v14 = vmul.f32 %v1385_v12, %v1385_v12  ;;  %v1418_v2 = vmul.f32 %v1386_v49, %v1386_v49  ;;  %v1389_v34 = vsub.f32 %v2963_v36, %v3086_v58  ;;  %v1419_v20 = vmul.f32 %v1387_v33, %v1387_v33 }
 0x19b   :  { %v1445_v47 = vadd.f32 %v1414_v31, %v1413_v40  ;;  %v1390_v57 = vsub.f32 %v2971_v10, %v3086_v58  ;;  %v1420_v29 = vmul.f32 %v1388_v3, %v1388_v3  ;;  %v1391_v63 = vsub.f32 %v2975_v50, %v3086_v58 }
 0x19c   :  { %v1421_v9 = vmul.f32 %v1389_v34, %v1389_v34  ;;  %v1392_v56 = vsub.f32 %v2981_v55, %v3086_v58  ;;  %v1393_v35 = vsub.f32 %v2987_v13, %v3086_v58  ;;  %v1394_v41 = vsub.f32 %v2995_v28, %v3086_v58 }
 0x19d   :  { %v1446_v61 = vadd.f32 %v1445_v47, %v1415_v24  ;;  %v1422_v62 = vmul.f32 %v1390_v57, %v1390_v57  ;;  %v1423_v38 = vmul.f32 %v1391_v63, %v1391_v63  ;;  %v1395_v42 = vsub.f32 %v3001_v8, %v3086_v58 }
 0x19e   :  { %v1424_v40 = vmul.f32 %v1392_v56, %v1392_v56  ;;  %v1425_v12 = vmul.f32 %v1393_v35, %v1393_v35  ;;  %v1396_v47 = vsub.f32 %v3009_v25, %v3086_v58  ;;  %v1426_v49 = vmul.f32 %v1394_v41, %v1394_v41 }
 0x19f   :  { %v1447_v6 = vadd.f32 %v1446_v61, %v1416_v16  ;;  %v1397_v61 = vsub.f32 %v3016_v53, %v3086_v58  ;;  %v1427_v33 = vmul.f32 %v1395_v42, %v1395_v42 }
 0x1a0   :  { %v1428_v3 = vmul.f32 %v1396_v47, %v1396_v47 }
 0x1a1   :  { %v1448_v17 = vadd.f32 %v1447_v6, %v1417_v14  ;;  %v1398_v6 = vsub.f32 %v3024_v22, %v3086_v58  ;;  %v1429_v34 = vmul.f32 %v1397_v61, %v1397_v61 }
 0x1a3   :  { %v1449_v4 = vadd.f32 %v1448_v17, %v1418_v2  ;;  %v1399_v17 = vsub.f32 %v3029_v23, %v3086_v58  ;;  %v1430_v57 = vmul.f32 %v1398_v6, %v1398_v6 }
 0x1a5   :  { %v1450_v32 = vadd.f32 %v1449_v4, %v1419_v20  ;;  %v1400_v4 = vsub.f32 %v3034_v15, %v3086_v58  ;;  %v1431_v63 = vmul.f32 %v1399_v17, %v1399_v17  ;;  %v1409_v17 = vsub.f32 %v3071_v52, %v3086_v58 }
 0x1a7   :  { %v1451_v51 = vadd.f32 %v1450_v32, %v1420_v29  ;;  %v1401_v32 = vsub.f32 %v3039_v48, %v3086_v58  ;;  %v1432_v56 = vmul.f32 %v1400_v4, %v1400_v4  ;;  %v1410_v4 = vsub.f32 %v3076_v1, %v3086_v58 }
 0x1a9   :  { %v1452_v27 = vadd.f32 %v1451_v51, %v1421_v9  ;;  %v1402_v51 = vsub.f32 %v3045_v60, %v3086_v58  ;;  %v1433_v35 = vmul.f32 %v1401_v32, %v1401_v32  ;;  %v1411_v32 = vsub.f32 %v3078_v5, %v3086_v58 }
 0x1ab   :  { %v1453_v59 = vadd.f32 %v1452_v27, %v1422_v62  ;;  %v1403_v27 = vsub.f32 %v3047_v21, %v3086_v58  ;;  %v1434_v41 = vmul.f32 %v1402_v51, %v1402_v51  ;;  %v1412_v51 = vsub.f32 %v3082_v19, %v3086_v58 }
 0x1ad   :  { %v1454_v31 = vadd.f32 %v1453_v59, %v1423_v38  ;;  %v1404_v59 = vsub.f32 %v3050_v26, %v3086_v58  ;;  %v1435_v42 = vmul.f32 %v1403_v27, %v1403_v27  ;;  %v1443_v27 = vmul.f32 %v1411_v32, %v1411_v32 }
 0x1af   :  { %v1455_v24 = vadd.f32 %v1454_v31, %v1424_v40  ;;  %v1405_v31 = vsub.f32 %v3054_v18, %v3086_v58  ;;  %v1436_v47 = vmul.f32 %v1404_v59, %v1404_v59 }
 0x1b1   :  { %v1456_v16 = vadd.f32 %v1455_v24, %v1425_v12  ;;  %v1406_v24 = vsub.f32 %v3060_v44, %v3086_v58  ;;  %v1437_v61 = vmul.f32 %v1405_v31, %v1405_v31 }
 0x1b3   :  { %v1457_v14 = vadd.f32 %v1456_v16, %v1426_v49  ;;  %v1407_v16 = vsub.f32 %v3062_v0, %v3086_v58  ;;  %v1438_v6 = vmul.f32 %v1406_v24, %v1406_v24 }
 0x1b5   :  { %v1458_v2 = vadd.f32 %v1457_v14, %v1427_v33  ;;  %v1408_v14 = vsub.f32 %v3066_v45, %v3086_v58 }
 0x1b7   :  { %v1459_v20 = vadd.f32 %v1458_v2, %v1428_v3  ;;  %v11_v2 = vstv %s3409_s5 }
 0x1b8   :  { %12 = vst [vmem:[#allocation2] sm:$0x1] %v11_v2 }
 0x1b9   :  { %v1460_v29 = vadd.f32 %v1459_v20, %v1429_v34  ;;  %v1439_v34 = vmul.f32 %v1407_v16, %v1407_v16 }
 0x1bb   :  { %v1461_v9 = vadd.f32 %v1460_v29, %v1430_v57  ;;  %v1440_v57 = vmul.f32 %v1408_v14, %v1408_v14  ;;  %v1483_v14 = vld [vmem:[%s3410_s2] sm:$0x1] }
 0x1bd   :  { %v1462_v62 = vadd.f32 %v1461_v9, %v1431_v63  ;;  %v1441_v63 = vmul.f32 %v1409_v17, %v1409_v17  ;;  %v1487_v17 = vld [vmem:[%s3411_s3] sm:$0x1] }
 0x1bf   :  { %v1463_v38 = vadd.f32 %v1462_v62, %v1432_v56  ;;  %v1442_v56 = vmul.f32 %v1410_v4, %v1410_v4 }
 0x1c1   :  { %v1464_v40 = vadd.f32 %v1463_v38, %v1433_v35  ;;  %v1444_v38 = vmul.f32 %v1412_v51, %v1412_v51 }
 0x1c3   :  { %v1465_v12 = vadd.f32 %v1464_v40, %v1434_v41 }
 0x1c5   :  { %v1466_v49 = vadd.f32 %v1465_v12, %v1435_v42 }
 0x1c7   :  { %v1467_v33 = vadd.f32 %v1466_v49, %v1436_v47 }
 0x1c9   :  { %v1468_v3 = vadd.f32 %v1467_v33, %v1437_v61  ;;  %v1491_v61 = vlaneseq }
 0x1cb   :  { %v1469_v20 = vadd.f32 %v1468_v3, %v1438_v6  ;;  %v1492_v33 = vshrl.u32 %v1491_v61, 7 }
 0x1cd   :  { %v1470_v29 = vadd.f32 %v1469_v20, %v1439_v34  ;;  %v1493_v6 = vsub.s32 0, %v1492_v33 }
 0x1cf   :  { %v1471_v9 = vadd.f32 %v1470_v29, %v1440_v57 }
 0x1d1   :  { %v1472_v62 = vadd.f32 %v1471_v9, %v1441_v63 }
 0x1d3   :  { %v1473_v35 = vadd.f32 %v1472_v62, %v1442_v56 }
 0x1d5   :  { %v1474_v59 = vadd.f32 %v1473_v35, %v1443_v27 }
 0x1d7   :  { %v1475_v41 = vadd.f32 %v1474_v59, %v1444_v38 }
 0x1d9   :  { %v1476_v40 = vrot.slane %v1475_v41, 4 }
 0x1db   :  { %v1477_v31 = vadd.f32 %v1476_v40, %v1475_v41 }
 0x1dd   :  { %v1478_v42 = vrot.slane %v1477_v31, 2 }
 0x1df   :  { %v1479_v12 = vadd.f32 %v1478_v42, %v1477_v31 }
 0x1e1   :  { %v1480_v24 = vrot.slane %v1479_v12, 1 }
 0x1e3   :  { %v1481_v47 = vadd.f32 %v1480_v24, %v1479_v12 }
 0x1e5   :  { %v1482_v49 = vmul.f32 0.00390625, %v1481_v47 }
 0x1e7   :  { %v1484_v16 = vadd.f32 1e-05, %v1482_v49 }
 0x1e9   :  { %2351 = vrsqrt.f32 %v1484_v16 }
 0x1f6   :  { %v2352_v3 = vpop.eup %2351 }
 0x1f7   :  { %v1486_v2 = vmul.f32 %v2352_v3, %v1483_v14 }
 0x1f9   :  { %v1488_v34 = vmul.f32 %v1486_v2, %v3086_v58  ;;  %v3162_v20 = vrot.slane %v1486_v2, %v1493_v6 }
 0x1fb   :  { %v1489_v4 = vsub.f32 %v1487_v17, %v1488_v34  ;;  %v1520_v57 = vmul.f32 %v3162_v20, %v3054_v18  ;;  %v1521_v29 = vmul.f32 %v3162_v20, %v3060_v44  ;;  %v1522_v51 = vmul.f32 %v3162_v20, %v3062_v0 }
 0x1fc   :  { %v1523_v18 = vmul.f32 %v3162_v20, %v3066_v45  ;;  %v1524_v44 = vmul.f32 %v3162_v20, %v3071_v52  ;;  %v1525_v38 = vmul.f32 %v3162_v20, %v3076_v1  ;;  %v1526_v0 = vmul.f32 %v3162_v20, %v3078_v5 }
 0x1fd   :  { %v3168_v32 = vrot.slane %v1489_v4, %v1493_v6  ;;  %v1496_v1 = vmul.f32 %v3162_v20, %v2907_v46  ;;  %v1497_v5 = vmul.f32 %v3162_v20, %v2909_v37  ;;  %v1498_v61 = vmul.f32 %v3162_v20, %v2914_v54 }
 0x1fe   :  { %v1499_v33 = vmul.f32 %v3162_v20, %v2923_v11  ;;  %v1500_v6 = vmul.f32 %v3162_v20, %v2931_v7  ;;  %v1501_v46 = vmul.f32 %v3162_v20, %v2941_v39  ;;  %v1502_v37 = vmul.f32 %v3162_v20, %v2947_v43 }
 0x1ff   :  { %v1558_v63 = vadd.f32 %v3168_v32, %v1520_v57  ;;  %v1559_v9 = vadd.f32 %v3168_v32, %v1521_v29  ;;  %v1560_v58 = vadd.f32 %v3168_v32, %v1522_v51  ;;  %v1561_v59 = vadd.f32 %v3168_v32, %v1523_v18 }
 0x200   :  { %v1562_v31 = vadd.f32 %v3168_v32, %v1524_v44  ;;  %v1563_v45 = vadd.f32 %v3168_v32, %v1525_v38  ;;  %v1564_v42 = vadd.f32 %v3168_v32, %v1526_v0  ;;  %v1503_v54 = vmul.f32 %v3162_v20, %v2955_v30 }
 0x201   :  { %vm1590_vm1 = vcmp.gt.f32.partialorder %v1558_v63, 0.0  ;;  %vm1591_vm2 = vcmp.gt.f32.partialorder %v1559_v9, 0.0  ;;  %v1622_v56 = vmul.f32 0.2, %v1558_v63  ;;  %v1623_v62 = vmul.f32 0.2, %v1559_v9 }
 0x202   :  { %v1624_v41 = vmul.f32 0.2, %v1560_v58  ;;  %vm1592_vm3 = vcmp.gt.f32.partialorder %v1560_v58, 0.0  ;;  %v1625_v12 = vmul.f32 0.2, %v1561_v59  ;;  %vm1593_vm4 = vcmp.gt.f32.partialorder %v1561_v59, 0.0 }
 0x203   :  { %v1654_v27 = vsel %vm1590_vm1, %v1558_v63, %v1622_v56  ;;  %v1655_v35 = vsel %vm1591_vm2, %v1559_v9, %v1623_v62  ;;  %v1626_v47 = vmul.f32 0.2, %v1562_v31  ;;  %v1627_v49 = vmul.f32 0.2, %v1563_v45 }
 0x204   :  { %v1701_v40 = vadd.f32 %v1655_v35, %v1654_v27  ;;  %v1656_v52 = vsel %vm1592_vm3, %v1560_v58, %v1624_v41  ;;  %v1628_v16 = vmul.f32 0.2, %v1564_v42  ;;  %vm1594_vm5 = vcmp.gt.f32.partialorder %v1562_v31, 0.0 }
 0x205   :  { %vm1595_vm6 = vcmp.gt.f32.partialorder %v1563_v45, 0.0  ;;  %vm1596_vm7 = vcmp.gt.f32.partialorder %v1564_v42, 0.0  ;;  %v1657_v14 = vsel %vm1593_vm4, %v1561_v59, %v1625_v12  ;;  %v1504_v2 = vmul.f32 %v3162_v20, %v2963_v36 }
 0x206   :  { %v1702_v24 = vadd.f32 %v1701_v40, %v1656_v52  ;;  %v1505_v11 = vmul.f32 %v3162_v20, %v2971_v10  ;;  %v1658_v17 = vsel %vm1594_vm5, %v1562_v31, %v1626_v47  ;;  %v1659_v34 = vsel %vm1595_vm6, %v1563_v45, %v1627_v49 }
 0x207   :  { %v1660_v4 = vsel %vm1596_vm7, %v1564_v42, %v1628_v16  ;;  %v1506_v7 = vmul.f32 %v3162_v20, %v2975_v50  ;;  %v1507_v39 = vmul.f32 %v3162_v20, %v2981_v55  ;;  %v1508_v43 = vmul.f32 %v3162_v20, %v2987_v13 }
 0x208   :  { %v1703_v3 = vadd.f32 %v1702_v24, %v1657_v14  ;;  %v1509_v30 = vmul.f32 %v3162_v20, %v2995_v28  ;;  %v1510_v36 = vmul.f32 %v3162_v20, %v3001_v8  ;;  %v1511_v10 = vmul.f32 %v3162_v20, %v3009_v25 }
 0x209   :  { %v1512_v57 = vmul.f32 %v3162_v20, %v3016_v53  ;;  %v1513_v50 = vmul.f32 %v3162_v20, %v3024_v22  ;;  %v1514_v55 = vmul.f32 %v3162_v20, %v3029_v23  ;;  %v1515_v13 = vmul.f32 %v3162_v20, %v3034_v15 }
 0x20a   :  { %v1704_v29 = vadd.f32 %v1703_v3, %v1658_v17  ;;  %v1516_v28 = vmul.f32 %v3162_v20, %v3039_v48  ;;  %v1517_v8 = vmul.f32 %v3162_v20, %v3045_v60  ;;  %v1518_v25 = vmul.f32 %v3162_v20, %v3047_v21 }
 0x20b   :  { %v1519_v53 = vmul.f32 %v3162_v20, %v3050_v26  ;;  %v1527_v22 = vmul.f32 %v3162_v20, %v3082_v19  ;;  %v1534_v23 = vadd.f32 %v3168_v32, %v1496_v1  ;;  %v1535_v63 = vadd.f32 %v3168_v32, %v1497_v5 }
 0x20c   :  { %v3240_v15 = vadd.f32 %v3168_v32, %v1498_v61  ;;  %v3243_v48 = vadd.f32 %v3168_v32, %v1499_v33  ;;  %v3246_v60 = vadd.f32 %v3168_v32, %v1500_v6  ;;  %v3249_v21 = vadd.f32 %v3168_v32, %v1501_v46 }
 0x20d   :  { %v3252_v26 = vadd.f32 %v3168_v32, %v1502_v37  ;;  %v3255_v19 = vadd.f32 %v3168_v32, %v1503_v54  ;;  %v1542_v20 = vadd.f32 %v3168_v32, %v1504_v2  ;;  %v1705_v9 = vadd.f32 %v1704_v29, %v1659_v34 }
 0x20e   :  { %v1543_v51 = vadd.f32 %v3168_v32, %v1505_v11  ;;  %v3260_v58 = vadd.f32 %v3168_v32, %v1506_v7  ;;  %v3263_v56 = vadd.f32 %v3168_v32, %v1507_v39  ;;  %v3266_v62 = vadd.f32 %v3168_v32, %v1508_v43 }
 0x20f   :  { %v1550_v18 = vadd.f32 %v3168_v32, %v1512_v57  ;;  %v1551_v27 = vadd.f32 %v3168_v32, %v1513_v50  ;;  %v3271_v44 = vadd.f32 %v3168_v32, %v1514_v55  ;;  %v3274_v35 = vadd.f32 %v3168_v32, %v1509_v30 }
 0x210   :  { %v3277_v38 = vadd.f32 %v3168_v32, %v1510_v36  ;;  %v3280_v0 = vadd.f32 %v3168_v32, %v1515_v13  ;;  %v1565_v59 = vadd.f32 %v3168_v32, %v1527_v22  ;;  %v3284_v41 = vadd.f32 %v3168_v32, %v1511_v10 }
 0x211   :  { %v3287_v40 = vadd.f32 %v3168_v32, %v1516_v28  ;;  %v3290_v31 = vadd.f32 %v3168_v32, %v1517_v8  ;;  %vm1566_vm8 = vcmp.gt.f32.partialorder %v1534_v23, 0.0  ;;  %vm1567_vm9 = vcmp.gt.f32.partialorder %v1535_v63, 0.0 }
 0x212   :  { %vm1568_vm10 = vcmp.gt.f32.partialorder %v3240_v15, 0.0  ;;  %vm1574_vm11 = vcmp.gt.f32.partialorder %v1542_v20, 0.0  ;;  %vm1575_vm12 = vcmp.gt.f32.partialorder %v1543_v51, 0.0  ;;  %vm1569_vm13 = vcmp.gt.f32.partialorder %v3243_v48, 0.0 }
 0x213   :  { %vm1576_vm14 = vcmp.gt.f32.partialorder %v3260_v58, 0.0  ;;  %vm1582_vm15 = vcmp.gt.f32.partialorder %v1550_v18, 0.0  ;;  %vm1583_vm0 = vcmp.gt.f32.partialorder %v1551_v27, 0.0  ;;  %vm1584_vm1 = vcmp.gt.f32.partialorder %v3271_v44, 0.0 }
 0x214   :  { %vm1577_vm2 = vcmp.gt.f32.partialorder %v3263_v56, 0.0  ;;  %vm1585_vm3 = vcmp.gt.f32.partialorder %v3280_v0, 0.0  ;;  %vm1597_vm4 = vcmp.gt.f32.partialorder %v1565_v59, 0.0  ;;  %v1598_v45 = vmul.f32 0.2, %v1534_v23 }
 0x215   :  { %v1599_v42 = vmul.f32 0.2, %v1535_v63  ;;  %v1706_v12 = vadd.f32 %v1705_v9, %v1660_v4  ;;  %v1600_v52 = vmul.f32 0.2, %v3240_v15  ;;  %v1606_v24 = vmul.f32 0.2, %v1542_v20 }
 0x216   :  { %v1607_v1 = vmul.f32 0.2, %v1543_v51  ;;  %v3301_v5 = vadd.f32 %v3168_v32, %v1518_v25  ;;  %v1601_v47 = vmul.f32 0.2, %v3243_v48  ;;  %v1614_v49 = vmul.f32 0.2, %v1550_v18 }
 0x217   :  { %v1615_v16 = vmul.f32 0.2, %v1551_v27  ;;  %v3307_v61 = vadd.f32 %v3168_v32, %v1519_v53  ;;  %v1602_v33 = vmul.f32 0.2, %v3246_v60  ;;  %v1603_v14 = vmul.f32 0.2, %v3249_v21 }
 0x218   :  { %v3312_v6 = vmul.f32 0.2, %v3252_v26  ;;  %v3318_v46 = vmul.f32 0.2, %v3255_v19  ;;  %v1608_v37 = vmul.f32 0.2, %v3260_v58  ;;  %v1630_v3 = vsel %vm1566_vm8, %v1534_v23, %v1598_v45 }
 0x219   :  { %v1629_v32 = vmul.f32 0.2, %v1565_v59  ;;  %v1616_v54 = vmul.f32 0.2, %v3271_v44  ;;  %v1631_v2 = vsel %vm1567_vm9, %v1535_v63, %v1599_v42  ;;  %v1638_v11 = vsel %vm1574_vm11, %v1542_v20, %v1606_v24 }
 0x21a   :  { %v1639_v17 = vsel %vm1575_vm12, %v1543_v51, %v1607_v1  ;;  %vm1572_vm6 = vcmp.gt.f32.partialorder %v3252_v26, 0.0  ;;  %vm1580_vm7 = vcmp.gt.f32.partialorder %v3277_v38, 0.0  ;;  %vm1588_vm5 = vcmp.gt.f32.partialorder %v3301_v5, 0.0 }
 0x21b   :  { %v1609_v34 = vmul.f32 0.2, %v3263_v56  ;;  %v1610_v4 = vmul.f32 0.2, %v3266_v62  ;;  %v1646_v7 = vsel %vm1582_vm15, %v1550_v18, %v1614_v49  ;;  %v1647_v39 = vsel %vm1583_vm0, %v1551_v27, %v1615_v16 }
 0x21c   :  { %v1611_v43 = vmul.f32 0.2, %v3274_v35  ;;  %v1612_v30 = vmul.f32 0.2, %v3277_v38  ;;  %v1617_v36 = vmul.f32 0.2, %v3280_v0  ;;  %v1632_v10 = vsel %vm1568_vm10, %v3240_v15, %v1600_v52 }
 0x21d   :  { %vm1573_vm8 = vcmp.gt.f32.partialorder %v3255_v19, 0.0  ;;  %vm1581_vm9 = vcmp.gt.f32.partialorder %v3284_v41, 0.0  ;;  %vm1589_vm11 = vcmp.gt.f32.partialorder %v3307_v61, 0.0  ;;  %v1661_v57 = vsel %vm1597_vm4, %v1565_v59, %v1629_v32 }
 0x21e   :  { %v1662_v50 = vadd.f32 %v1631_v2, %v1630_v3  ;;  %v1675_v55 = vadd.f32 %v1639_v17, %v1638_v11  ;;  %v1688_v29 = vadd.f32 %v1647_v39, %v1646_v7  ;;  %v1618_v13 = vmul.f32 0.2, %v3287_v40 }
 0x21f   :  { %v1640_v28 = vsel %vm1576_vm14, %v3260_v58, %v1608_v37  ;;  %v1648_v8 = vsel %vm1584_vm1, %v3271_v44, %v1616_v54  ;;  %v1707_v25 = vadd.f32 %v1706_v12, %v1661_v57  ;;  %v1633_v53 = vsel %vm1569_vm13, %v3243_v48, %v1601_v47 }
 0x220   :  { %v1663_v22 = vadd.f32 %v1662_v50, %v1632_v10  ;;  %v1676_v23 = vadd.f32 %v1675_v55, %v1640_v28  ;;  %v1689_v63 = vadd.f32 %v1688_v29, %v1648_v8  ;;  %v1619_v15 = vmul.f32 0.2, %v3290_v31  ;;  %v1900_v8 = vld [vmem:[%s3412_s4] ss:$0 sm:$0xff] }
 0x221   :  { %v1641_v20 = vsel %vm1577_vm2, %v3263_v56, %v1609_v34  ;;  %v1649_v9 = vsel %vm1585_vm3, %v3280_v0, %v1617_v36  ;;  %v1708_v51 = vrot.slane %v1707_v25, 4  ;;  %vm3456_vm10 = vcmp.gt.f32.partialorder %v3246_v60, 0.0 }
 0x222   :  { %v1634_v58 = vsel %vm3456_vm10, %v3246_v60, %v1602_v33  ;;  %v1664_v18 = vadd.f32 %v1663_v22, %v1633_v53  ;;  %v1677_v48 = vadd.f32 %v1676_v23, %v1641_v20  ;;  %v1690_v27 = vadd.f32 %v1689_v63, %v1649_v9 }
 0x223   :  { %v1620_v44 = vmul.f32 0.2, %v3301_v5  ;;  %vm3457_vm12 = vcmp.gt.f32.partialorder %v3266_v62, 0.0  ;;  %vm3458_vm13 = vcmp.gt.f32.partialorder %v3287_v40, 0.0  ;;  %v1709_v45 = vadd.f32 %v1708_v51, %v1707_v25 }
 0x224   :  { %v1642_v59 = vsel %vm3457_vm12, %v3266_v62, %v1610_v4  ;;  %v1650_v56 = vsel %vm3458_vm13, %v3287_v40, %v1618_v13  ;;  %v1613_v0 = vmul.f32 0.2, %v3284_v41  ;;  %v1665_v42 = vadd.f32 %v1664_v18, %v1634_v58 }
 0x225   :  { %v1678_v12 = vadd.f32 %v1677_v48, %v1642_v59  ;;  %v1691_v52 = vadd.f32 %v1690_v27, %v1650_v56  ;;  %v1621_v60 = vmul.f32 0.2, %v3307_v61  ;;  %vm3459_vm14 = vcmp.gt.f32.partialorder %v3249_v21, 0.0  ;;  %v1901_v59 = vld [vmem:[#allocation2] ss:$0 sm:$0xff] }
 0x226   :  { %v1635_v24 = vsel %vm3459_vm14, %v3249_v21, %v1603_v14  ;;  %vm3460_vm15 = vcmp.gt.f32.partialorder %v3274_v35, 0.0  ;;  %vm3461_vm0 = vcmp.gt.f32.partialorder %v3290_v31, 0.0  ;;  %v1710_v16 = vrot.slane %v1709_v45, 2 }
 0x227   :  { %v1643_v62 = vsel %vm3460_vm15, %v3274_v35, %v1611_v43  ;;  %v1651_v40 = vsel %vm3461_vm0, %v3290_v31, %v1619_v15  ;;  %v1666_v1 = vadd.f32 %v1665_v42, %v1635_v24  ;;  %v1636_v33 = vsel %vm1572_vm6, %v3252_v26, %v3312_v6 }
 0x228   :  { %v1679_v47 = vadd.f32 %v1678_v12, %v1643_v62  ;;  %v1692_v49 = vadd.f32 %v1691_v52, %v1651_v40  ;;  %v1644_v21 = vsel %vm1580_vm7, %v3277_v38, %v1612_v30  ;;  %v1652_v35 = vsel %vm1588_vm5, %v3301_v5, %v1620_v44 }
 0x229   :  { %v1667_v14 = vadd.f32 %v1666_v1, %v1636_v33  ;;  %v1637_v32 = vsel %vm1573_vm8, %v3255_v19, %v3318_v46  ;;  %v1645_v26 = vsel %vm1581_vm9, %v3284_v41, %v1613_v0  ;;  %v1653_v38 = vsel %vm1589_vm11, %v3307_v61, %v1621_v60 }
 0x22a   :  { %v1680_v37 = vadd.f32 %v1679_v47, %v1644_v21  ;;  %v1693_v31 = vadd.f32 %v1692_v49, %v1652_v35  ;;  %v1711_v5 = vadd.f32 %v1710_v16, %v1709_v45  ;;  %vm1735_vm1 = vcmask 1041409  }
 0x22b   :  { %v1668_v6 = vadd.f32 %v1667_v14, %v1637_v32  ;;  %vm1738_vm2 = vcmask 1042434   ;;  %vm1741_vm3 = vcmask 1043459   ;;  %vm1744_vm4 = vcmask 1043456  }
 0x22c   :  { %v1681_v3 = vadd.f32 %v1680_v37, %v1645_v26  ;;  %v1694_v54 = vadd.f32 %v1693_v31, %v1653_v38  ;;  %v1712_v39 = vrot.slane %v1711_v5, 1  ;;  %vm1762_vm5 = vcmask 3072  }
 0x22d   :  { %v1669_v2 = vrot.slane %v1668_v6, 4 }
 0x22e   :  { %v1682_v11 = vrot.slane %v1681_v3, 4  ;;  %v1695_v17 = vrot.slane %v1694_v54, 4  ;;  %v1713_v10 = vadd.f32 %v1712_v39, %v1711_v5 }
 0x22f   :  { %v1670_v34 = vadd.f32 %v1669_v2, %v1668_v6 }
 0x230   :  { %v1683_v4 = vadd.f32 %v1682_v11, %v1681_v3  ;;  %v1696_v7 = vadd.f32 %v1695_v17, %v1694_v54  ;;  %v1718_v28 = vmul.f32 0.015625, %v1713_v10 }
 0x231   :  { %v1671_v19 = vrot.slane %v1670_v34, 2 }
 0x232   :  { %v1684_v46 = vrot.slane %v1683_v4, 2  ;;  %v1697_v43 = vrot.slane %v1696_v7, 2  ;;  %v1729_v15 = vmul.f32 %v1900_v8, %v1718_v28 }
 0x233   :  { %v1672_v30 = vadd.f32 %v1671_v19, %v1670_v34 }
 0x234   :  { %v1685_v41 = vadd.f32 %v1684_v46, %v1683_v4  ;;  %v1698_v36 = vadd.f32 %v1697_v43, %v1696_v7  ;;  %v1740_v18 = vrot.slane %v1729_v15, 5 }
 0x235   :  { %v1673_v57 = vrot.slane %v1672_v30, 1 }
 0x236   :  { %v1686_v61 = vrot.slane %v1685_v41, 1  ;;  %v1699_v50 = vrot.slane %v1698_v36, 1 }
 0x237   :  { %v1674_v55 = vadd.f32 %v1673_v57, %v1672_v30 }
 0x238   :  { %v1687_v29 = vadd.f32 %v1686_v61, %v1685_v41  ;;  %v1700_v13 = vadd.f32 %v1699_v50, %v1698_v36 }
 0x239   :  { %v1715_v25 = vmul.f32 0.015625, %v1674_v55 }
 0x23a   :  { %v1716_v53 = vmul.f32 0.015625, %v1687_v29  ;;  %v1717_v22 = vmul.f32 0.015625, %v1700_v13 }
 0x23b   :  { %v1726_v20 = vmul.f32 %v1900_v8, %v1715_v25 }
 0x23c   :  { %v1727_v23 = vmul.f32 %v1900_v8, %v1716_v53  ;;  %v1728_v63 = vmul.f32 %v1900_v8, %v1717_v22 }
 0x23e   :  { %v1734_v9 = vrot.slane %v1727_v23, 7  ;;  %v1737_v51 = vrot.slane %v1728_v63, 6 }
 0x240   :  { %v1736_v58 = vsel %vm1735_vm1, %v1734_v9, %v1726_v20 }
 0x241   :  { %v1739_v48 = vsel %vm1738_vm2, %v1737_v51, %v1736_v58 }
 0x242   :  { %v1742_v27 = vsel %vm1741_vm3, %v1740_v18, %v1739_v48 }
 0x243   :  { %v1745_v44 = vsel %vm1744_vm4, %v1742_v27, 0.0 }
 0x244   :  { %1746 = vadd.xlane.f32.xlu0 %v1745_v44 }
 0x2cd   :  { %v1747_v56 = vpop.xlane.xlu0 %1746 }
 0x2ce   :  { %v1755_v45 = vadd.f32 %v1901_v59, %v1747_v56 }
 0x2d0   :  { %v1902_v0 = vmul.f32 -1.442695, %v1755_v45 }
 0x2d2   :  { %2353 = vpow2.f32 %v1902_v0 }
 0x2df   :  { %v2354_v42 = vpop.eup %2353 }
 0x2e0   :  { %v1759_v12 = vadd.f32 1.0, %v2354_v42 }
 0x2e2   :  { %2355 = vrcp.f32 %v1759_v12 }
 0x2ef   :  { %v2356_v52 = vpop.eup %2355 }
 0x2f0   :  { %1763 = vst.msk [vmem:[%s3413_s6] sm:$0xf] %vm1762_vm5, %v2356_v52 }

</bundles_post_ra>
